<compile_context>
chip_gen: v7x
topology: tpu7x:2x2x1
jax: 0.10.0
libtpu: 0.0.40
codegen_flags: <defaults>
</compile_context>

<pallas_src>
import functools

import jax
import jax.numpy as jnp
from jax.experimental import pallas as pl
from jax.experimental.pallas import tpu as pltpu

LANE = 128  # lane width / padded channel count


def fused_multiconv_kernel(x_ref, w_ref, b_ref, mask_ref, o_ref, buf_ref,
                           *, H, W, Wp, L, use_im2col):
    # x_ref   : (1, Hp*Wp, CP)   zero-haloed, channel-padded input, flattened
    # w_ref   : (L, 3, 3*CP, CP) per-(layer, ky) weights, rows ordered (kx, cin)
    # b_ref   : (L, 1, CP)       per-layer bias (zero-padded)
    # mask_ref: (H*Wp, CP)       1.0 on valid output columns (1..W), else 0.0
    # o_ref   : (1, H*Wp, CP)    padded-flat output of the last layer (lane dense)
    # buf_ref : (Hp*Wp, 3*CP)  im2col patch [left | center | right]  (im2col path)
    #           (Hp*Wp, CP)    inter-layer activation buffer         (split path)
    CP = x_ref.shape[-1]
    Hp = H + 2
    HWp = H * Wp
    HpWp = Hp * Wp

    if not use_im2col:
        # Split-K path keeps activations directly in buf_ref; its halo row
        # slabs are never written by the inter-layer store, so zero them once
        # (~24 KB) instead of copying the whole input into scratch.
        zeros_halo = jnp.zeros((Wp, CP), jnp.float32)
        buf_ref[0:Wp, :] = zeros_halo
        buf_ref[(Hp - 1) * Wp:HpWp, :] = zeros_halo

    for l in range(L):
        # ---- gather the three kx taps for this layer (hoisted out of ky) ----
        # Roll wraparound / row-crossing values only ever land on halo rows or
        # masked columns (requires Wp >= W + 2, asserted in the wrapper), never
        # on a valid output position.
        if use_im2col:
            if l == 0:
                center = x_ref[0]
                buf_ref[:, CP:2 * CP] = center          # center stripe = activation
            else:
                center = buf_ref[:, CP:2 * CP]          # already holds layer input
            buf_ref[:, 0:CP] = pltpu.roll(center, 1, 0)               # kx = 0 (left)
            buf_ref[:, 2 * CP:3 * CP] = pltpu.roll(center, HpWp - 1, 0)  # kx = 2 (right)
        else:
            center = x_ref[0] if l == 0 else buf_ref[...]
            left = pltpu.roll(center, 1, 0)
            right = pltpu.roll(center, HpWp - 1, 0)

        # ---- 3x3 conv as three row-slab matmuls (acc seeded by first tap) ----
        acc = None
        for ky in range(3):
            r0 = ky * Wp
            if use_im2col:
                contrib = jnp.dot(buf_ref[r0:r0 + HWp, :], w_ref[l, ky],
                                  preferred_element_type=jnp.float32)
            else:
                w_lky = w_ref[l, ky]
                contrib = (
                    jnp.dot(left[r0:r0 + HWp], w_lky[0:CP],
                            preferred_element_type=jnp.float32)
                    + jnp.dot(center[r0:r0 + HWp], w_lky[CP:2 * CP],
                              preferred_element_type=jnp.float32)
                    + jnp.dot(right[r0:r0 + HWp], w_lky[2 * CP:3 * CP],
                              preferred_element_type=jnp.float32))
            acc = contrib if acc is None else acc + contrib
        acc = acc + b_ref[l]

        if l < L - 1:
            # ReLU + zero the halo columns (0 and W+1..Wp-1) in one multiply,
            # then store as the next layer's activation.  Interior rows only:
            # halo rows keep the zeros they inherited from the layer-0 input
            # (im2col path) or the one-time init (split path).
            act = jnp.maximum(acc, 0.0) * mask_ref[...]
            if use_im2col:
                buf_ref[Wp:Wp + HWp, CP:2 * CP] = act
            else:
                buf_ref[Wp:Wp + HWp, :] = act
        else:
            o_ref[0] = acc.astype(o_ref.dtype)


def pack_params(params):
    """One-time packing: zero-pad all channels to a lane-dense CP and lay each
    (layer, ky) weight out as a (3*CP, CP) im2col matrix (rows = kx*CP + cin)."""
    L = len(params)
    chans = [params[0][0].shape[2]] + [w.shape[-1] for (w, _) in params]
    CP = max(LANE, -(-max(chans) // LANE) * LANE)
    w_all = jnp.zeros((L, 3, 3, CP, CP), jnp.float32)
    b_all = jnp.zeros((L, 1, CP), jnp.float32)
    for i, (w, b) in enumerate(params):
        cin, cout = w.shape[2], w.shape[3]
        w_all = w_all.at[i, :, :, :cin, :cout].set(w)
        b_all = b_all.at[i, 0, :cout].set(b)
    return w_all.reshape(L, 3, 3 * CP, CP), b_all


def prefers_im2col():
    """K=3*CP im2col matmuls only help on 256-deep MXUs (v6e/v7x); on v5-era
    and older 128-deep MXUs fall back to three K=CP matmuls per ky."""
    try:
        kind = jax.devices()[0].device_kind.lower()
    except Exception:
        return True
    return not any(t in kind for t in ("v2", "v3", "v4", "v5"))


@functools.partial(jax.jit, static_argnames=("c_out", "use_im2col"))
def multi_conv2d(x_nchw, w_all, b_all, *, c_out, use_im2col=True):
    """Forward pass equivalent to MultiConv2d.forward. Input/output are NCHW."""
    B, C0, H, W = x_nchw.shape
    L, _, _, CP = w_all.shape
    assert C0 <= CP
    Wp = -(-(W + 2) // 8) * 8          # padded width, multiple of 8 (>= W+2)
    Hp = H + 2
    HWp = H * Wp
    # The roll-wraparound safety argument (left/right taps) requires both halo
    # columns (0 and W+1) to exist inside the padded width.
    assert Wp >= W + 2

    # Build the zero halo + channel pad ONCE for the tiny network input and
    # flatten to the kernel's padded-flat layout (~220 KB at this size).
    x = jnp.transpose(x_nchw, (0, 2, 3, 1))                       # NCHW -> NHWC
    x = jnp.pad(x, ((0, 0), (1, 1), (1, Wp - W - 1), (0, CP - C0)))
    x = x.reshape(B, Hp * Wp, CP)

    # 0/1 mask over valid output columns (padded columns 1..W), passed as a
    # resident f32 VMEM input (replaces in-kernel iota + mod + select).
    col = jnp.arange(Wp, dtype=jnp.int32)
    mask_row = ((col >= 1) & (col <= W)).astype(jnp.float32)
    mask = jnp.broadcast_to(mask_row[None, :, None], (H, Wp, CP)).reshape(HWp, CP)

    patch_cols = 3 * CP if use_im2col else CP
    kernel = functools.partial(fused_multiconv_kernel, H=H, W=W, Wp=Wp, L=L,
                               use_im2col=use_im2col)
    y = pl.pallas_call(
        kernel,
        out_shape=jax.ShapeDtypeStruct((B, HWp, CP), jnp.float32),
        grid=(B,),
        in_specs=[
            pl.BlockSpec((1, Hp * Wp, CP), lambda b: (b, 0, 0)),
            pl.BlockSpec((L, 3, 3 * CP, CP), lambda b: (0, 0, 0, 0)),  # resident
            pl.BlockSpec((L, 1, CP), lambda b: (0, 0, 0)),             # resident
            pl.BlockSpec((HWp, CP), lambda b: (0, 0)),                 # resident
        ],
        out_specs=pl.BlockSpec((1, HWp, CP), lambda b: (b, 0, 0)),
        scratch_shapes=[pltpu.VMEM((Hp * Wp, patch_cols), jnp.float32)],
        compiler_params=pltpu.CompilerParams(
            dimension_semantics=("parallel",),    # v7x: one batch element per TC
        ),
    )(x, w_all, b_all, mask)

    # Lane-dense kernel output -> valid region -> NCHW.
    y = y.reshape(B, H, Wp, CP)[:, :, 1:W + 1, :c_out]
    return jnp.transpose(y, (0, 3, 1, 2))


def init_params(key, input_dim, hidden_dim, output_dim, num_layers):
    """Deterministic synthetic parameters mirroring MultiConv2d.__init__ shapes."""
    h = [hidden_dim] * (num_layers - 1)
    in_dims = [input_dim] + h
    out_dims = h + [output_dim]
    params = []
    for cin, cout in zip(in_dims, out_dims):
        key, kw, kb = jax.random.split(key, 3)
        # weights stored as (3, 3, Cin, Cout)  (== PyTorch (Cout,Cin,3,3) transposed)
        fan_in = cin * 9
        w = jax.random.normal(kw, (3, 3, cin, cout), jnp.float32) / jnp.sqrt(fan_in)
        b = jax.random.normal(kb, (cout,), jnp.float32) * 0.01
        params.append((w, b))
    return params


def reference_multi_conv2d(x_nchw, params):
    """Pure-JAX reference using lax.conv_general_dilated (NCHW, same as PyTorch)."""
    x = x_nchw
    n = len(params)
    for i, (w, b) in enumerate(params):
        w_oihw = jnp.transpose(w, (3, 2, 0, 1))  # (3,3,Cin,Cout) -> (Cout,Cin,3,3)
        x = jax.lax.conv_general_dilated(
            x, w_oihw, window_strides=(1, 1), padding=((1, 1), (1, 1)),
            dimension_numbers=("NCHW", "OIHW", "NCHW"))
        x = x + b.reshape(1, -1, 1, 1)
        if i < n - 1:
            x = jnp.maximum(x, 0.0)
    return x


if __name__ == "__main__":
    B, Cin, H, W = 2, 4, 16, 16
    hidden_dim, output_dim, num_layers = 32, 8, 3

    key = jax.random.PRNGKey(0)
    key, kx = jax.random.split(key)
    x = jax.random.normal(kx, (B, Cin, H, W), jnp.float32)
    params = init_params(key, Cin, hidden_dim, output_dim, num_layers)

    w_all, b_all = pack_params(params)                  # one-time weight packing
    out = multi_conv2d(x, w_all, b_all, c_out=output_dim,
                       use_im2col=prefers_im2col())
    out = jax.block_until_ready(out)

    ref = reference_multi_conv2d(x, params)
    assert out.shape == (B, output_dim, H, W), out.shape
    assert jnp.allclose(out, ref, atol=1e-4, rtol=1e-4), float(jnp.max(jnp.abs(out - ref)))

    print("KERNEL_OK")
</pallas_src>

<mosaic_0001>
module attributes {stable_mosaic.version = 11 : i64} {
  func.func @fused_multiconv_kernel(%arg0: i32, %arg1: memref<1x432x128xf32, #tpu.memory_space<vmem>>, %arg2: memref<3x3x384x128xf32, #tpu.memory_space<vmem>>, %arg3: memref<3x1x128xf32, #tpu.memory_space<vmem>>, %arg4: memref<384x128xf32, #tpu.memory_space<vmem>>, %arg5: memref<1x384x128xf32, #tpu.memory_space<vmem>>, %arg6: memref<432x384xf32, #tpu.memory_space<vmem>>) attributes {dimension_semantics = [#tpu.dimension_semantics<parallel>], iteration_bounds = array<i64: 2>, scalar_prefetch = 0 : i64, scratch_operands = 1 : i64, tpu.core_type = #tpu.core_type<tc>, window_params = [{transform_indices = @transform_0, window_bounds = array<i64: 1, 432, 128>}, {pipeline_mode = #tpu.pipeline_mode<synchronous>, transform_indices = @transform_1, window_bounds = array<i64: 3, 3, 384, 128>}, {pipeline_mode = #tpu.pipeline_mode<synchronous>, transform_indices = @transform_2, window_bounds = array<i64: 3, 1, 128>}, {pipeline_mode = #tpu.pipeline_mode<synchronous>, transform_indices = @transform_3, window_bounds = array<i64: 384, 128>}, {transform_indices = @transform_4, window_bounds = array<i64: 1, 384, 128>}]} {
    %c0 = arith.constant 0 : index
    %c0_0 = arith.constant 0 : index
    %c0_1 = arith.constant 0 : index
    %0 = vector.load %arg1[%c0, %c0_0, %c0_1] : memref<1x432x128xf32, #tpu.memory_space<vmem>>, vector<1x432x128xf32>
    %1 = vector.shape_cast %0 : vector<1x432x128xf32> to vector<432x128xf32>
    %c0_2 = arith.constant 0 : index
    %c128 = arith.constant 128 : index
    %2 = vector.load %arg6[%c0_2, %c128] : memref<432x384xf32, #tpu.memory_space<vmem>>, vector<432x128xf32>
    tpu.vector_store %arg6[%c0_2, %c128], %1 {strides = array<i32>} : memref<432x384xf32, #tpu.memory_space<vmem>>, vector<432x128xf32>,
    %c1_i32 = arith.constant 1 : i32
    %3 = tpu.dynamic_rotate %1 by %c1_i32 dim 0 : vector<432x128xf32>, i32 -> vector<432x128xf32>
    %c0_3 = arith.constant 0 : index
    %c0_4 = arith.constant 0 : index
    %4 = vector.load %arg6[%c0_3, %c0_4] : memref<432x384xf32, #tpu.memory_space<vmem>>, vector<432x128xf32>
    tpu.vector_store %arg6[%c0_3, %c0_4], %3 {strides = array<i32>} : memref<432x384xf32, #tpu.memory_space<vmem>>, vector<432x128xf32>,
    %c431_i32 = arith.constant 431 : i32
    %5 = tpu.dynamic_rotate %1 by %c431_i32 dim 0 : vector<432x128xf32>, i32 -> vector<432x128xf32>
    %c0_5 = arith.constant 0 : index
    %c256 = arith.constant 256 : index
    %6 = vector.load %arg6[%c0_5, %c256] : memref<432x384xf32, #tpu.memory_space<vmem>>, vector<432x128xf32>
    tpu.vector_store %arg6[%c0_5, %c256], %5 {strides = array<i32>} : memref<432x384xf32, #tpu.memory_space<vmem>>, vector<432x128xf32>,
    %c0_6 = arith.constant 0 : index
    %c0_7 = arith.constant 0 : index
    %7 = vector.load %arg6[%c0_6, %c0_7] : memref<432x384xf32, #tpu.memory_space<vmem>>, vector<384x384xf32>
    %c0_8 = arith.constant 0 : index
    %c0_9 = arith.constant 0 : index
    %c0_10 = arith.constant 0 : index
    %c0_11 = arith.constant 0 : index
    %8 = vector.load %arg2[%c0_8, %c0_9, %c0_10, %c0_11] : memref<3x3x384x128xf32, #tpu.memory_space<vmem>>, vector<1x1x384x128xf32>
    %9 = vector.shape_cast %8 : vector<1x1x384x128xf32> to vector<384x128xf32>
    %cst = arith.constant dense<0.000000e+00> : vector<384x128xf32>
    %10 = tpu.matmul %7, %9, %cst {dimension_numbers = #tpu.dot_dimension_numbers<[1], [0], [0], [1], [0, 0, 1, 1], [], []>} : vector<384x384xf32>, vector<384x128xf32>, vector<384x128xf32> -> vector<384x128xf32>
    %c24 = arith.constant 24 : index
    %c0_12 = arith.constant 0 : index
    %11 = vector.load %arg6[%c24, %c0_12] : memref<432x384xf32, #tpu.memory_space<vmem>>, vector<384x384xf32>
    %c0_13 = arith.constant 0 : index
    %c1 = arith.constant 1 : index
    %c0_14 = arith.constant 0 : index
    %c0_15 = arith.constant 0 : index
    %12 = vector.load %arg2[%c0_13, %c1, %c0_14, %c0_15] : memref<3x3x384x128xf32, #tpu.memory_space<vmem>>, vector<1x1x384x128xf32>
    %13 = vector.shape_cast %12 : vector<1x1x384x128xf32> to vector<384x128xf32>
    %cst_16 = arith.constant dense<0.000000e+00> : vector<384x128xf32>
    %14 = tpu.matmul %11, %13, %cst_16 {dimension_numbers = #tpu.dot_dimension_numbers<[1], [0], [0], [1], [0, 0, 1, 1], [], []>} : vector<384x384xf32>, vector<384x128xf32>, vector<384x128xf32> -> vector<384x128xf32>
    %15 = arith.addf %10, %14 : vector<384x128xf32>
    %c48 = arith.constant 48 : index
    %c0_17 = arith.constant 0 : index
    %16 = vector.load %arg6[%c48, %c0_17] : memref<432x384xf32, #tpu.memory_space<vmem>>, vector<384x384xf32>
    %c0_18 = arith.constant 0 : index
    %c2 = arith.constant 2 : index
    %c0_19 = arith.constant 0 : index
    %c0_20 = arith.constant 0 : index
    %17 = vector.load %arg2[%c0_18, %c2, %c0_19, %c0_20] : memref<3x3x384x128xf32, #tpu.memory_space<vmem>>, vector<1x1x384x128xf32>
    %18 = vector.shape_cast %17 : vector<1x1x384x128xf32> to vector<384x128xf32>
    %cst_21 = arith.constant dense<0.000000e+00> : vector<384x128xf32>
    %19 = tpu.matmul %16, %18, %cst_21 {dimension_numbers = #tpu.dot_dimension_numbers<[1], [0], [0], [1], [0, 0, 1, 1], [], []>} : vector<384x384xf32>, vector<384x128xf32>, vector<384x128xf32> -> vector<384x128xf32>
    %20 = arith.addf %15, %19 : vector<384x128xf32>
    %c0_22 = arith.constant 0 : index
    %c0_23 = arith.constant 0 : index
    %c0_24 = arith.constant 0 : index
    %21 = vector.load %arg3[%c0_22, %c0_23, %c0_24] : memref<3x1x128xf32, #tpu.memory_space<vmem>>, vector<1x1x128xf32>
    %22 = vector.shape_cast %21 : vector<1x1x128xf32> to vector<1x128xf32>
    %23 = vector.broadcast %22 : vector<1x128xf32> to vector<384x128xf32>
    %24 = arith.addf %20, %23 : vector<384x128xf32>
    %cst_25 = arith.constant 0.000000e+00 : f32
    %25 = vector.broadcast %cst_25 : f32 to vector<384x128xf32>
    %26 = arith.maximumf %24, %25 : vector<384x128xf32>
    %c0_26 = arith.constant 0 : index
    %c0_27 = arith.constant 0 : index
    %27 = vector.load %arg4[%c0_26, %c0_27] : memref<384x128xf32, #tpu.memory_space<vmem>>, vector<384x128xf32>
    %28 = arith.mulf %26, %27 : vector<384x128xf32>
    %c24_28 = arith.constant 24 : index
    %c128_29 = arith.constant 128 : index
    %29 = vector.load %arg6[%c24_28, %c128_29] : memref<432x384xf32, #tpu.memory_space<vmem>>, vector<384x128xf32>
    tpu.vector_store %arg6[%c24_28, %c128_29], %28 {strides = array<i32>} : memref<432x384xf32, #tpu.memory_space<vmem>>, vector<384x128xf32>,
    %c0_30 = arith.constant 0 : index
    %c128_31 = arith.constant 128 : index
    %30 = vector.load %arg6[%c0_30, %c128_31] : memref<432x384xf32, #tpu.memory_space<vmem>>, vector<432x128xf32>
    %c1_i32_32 = arith.constant 1 : i32
    %31 = tpu.dynamic_rotate %30 by %c1_i32_32 dim 0 : vector<432x128xf32>, i32 -> vector<432x128xf32>
    %c0_33 = arith.constant 0 : index
    %c0_34 = arith.constant 0 : index
    %32 = vector.load %arg6[%c0_33, %c0_34] : memref<432x384xf32, #tpu.memory_space<vmem>>, vector<432x128xf32>
    tpu.vector_store %arg6[%c0_33, %c0_34], %31 {strides = array<i32>} : memref<432x384xf32, #tpu.memory_space<vmem>>, vector<432x128xf32>,
    %c431_i32_35 = arith.constant 431 : i32
    %33 = tpu.dynamic_rotate %30 by %c431_i32_35 dim 0 : vector<432x128xf32>, i32 -> vector<432x128xf32>
    %c0_36 = arith.constant 0 : index
    %c256_37 = arith.constant 256 : index
    %34 = vector.load %arg6[%c0_36, %c256_37] : memref<432x384xf32, #tpu.memory_space<vmem>>, vector<432x128xf32>
    tpu.vector_store %arg6[%c0_36, %c256_37], %33 {strides = array<i32>} : memref<432x384xf32, #tpu.memory_space<vmem>>, vector<432x128xf32>,
    %c0_38 = arith.constant 0 : index
    %c0_39 = arith.constant 0 : index
    %35 = vector.load %arg6[%c0_38, %c0_39] : memref<432x384xf32, #tpu.memory_space<vmem>>, vector<384x384xf32>
    %c1_40 = arith.constant 1 : index
    %c0_41 = arith.constant 0 : index
    %c0_42 = arith.constant 0 : index
    %c0_43 = arith.constant 0 : index
    %36 = vector.load %arg2[%c1_40, %c0_41, %c0_42, %c0_43] : memref<3x3x384x128xf32, #tpu.memory_space<vmem>>, vector<1x1x384x128xf32>
    %37 = vector.shape_cast %36 : vector<1x1x384x128xf32> to vector<384x128xf32>
    %cst_44 = arith.constant dense<0.000000e+00> : vector<384x128xf32>
    %38 = tpu.matmul %35, %37, %cst_44 {dimension_numbers = #tpu.dot_dimension_numbers<[1], [0], [0], [1], [0, 0, 1, 1], [], []>} : vector<384x384xf32>, vector<384x128xf32>, vector<384x128xf32> -> vector<384x128xf32>
    %c24_45 = arith.constant 24 : index
    %c0_46 = arith.constant 0 : index
    %39 = vector.load %arg6[%c24_45, %c0_46] : memref<432x384xf32, #tpu.memory_space<vmem>>, vector<384x384xf32>
    %c1_47 = arith.constant 1 : index
    %c1_48 = arith.constant 1 : index
    %c0_49 = arith.constant 0 : index
    %c0_50 = arith.constant 0 : index
    %40 = vector.load %arg2[%c1_47, %c1_48, %c0_49, %c0_50] : memref<3x3x384x128xf32, #tpu.memory_space<vmem>>, vector<1x1x384x128xf32>
    %41 = vector.shape_cast %40 : vector<1x1x384x128xf32> to vector<384x128xf32>
    %cst_51 = arith.constant dense<0.000000e+00> : vector<384x128xf32>
    %42 = tpu.matmul %39, %41, %cst_51 {dimension_numbers = #tpu.dot_dimension_numbers<[1], [0], [0], [1], [0, 0, 1, 1], [], []>} : vector<384x384xf32>, vector<384x128xf32>, vector<384x128xf32> -> vector<384x128xf32>
    %43 = arith.addf %38, %42 : vector<384x128xf32>
    %c48_52 = arith.constant 48 : index
    %c0_53 = arith.constant 0 : index
    %44 = vector.load %arg6[%c48_52, %c0_53] : memref<432x384xf32, #tpu.memory_space<vmem>>, vector<384x384xf32>
    %c1_54 = arith.constant 1 : index
    %c2_55 = arith.constant 2 : index
    %c0_56 = arith.constant 0 : index
    %c0_57 = arith.constant 0 : index
    %45 = vector.load %arg2[%c1_54, %c2_55, %c0_56, %c0_57] : memref<3x3x384x128xf32, #tpu.memory_space<vmem>>, vector<1x1x384x128xf32>
    %46 = vector.shape_cast %45 : vector<1x1x384x128xf32> to vector<384x128xf32>
    %cst_58 = arith.constant dense<0.000000e+00> : vector<384x128xf32>
    %47 = tpu.matmul %44, %46, %cst_58 {dimension_numbers = #tpu.dot_dimension_numbers<[1], [0], [0], [1], [0, 0, 1, 1], [], []>} : vector<384x384xf32>, vector<384x128xf32>, vector<384x128xf32> -> vector<384x128xf32>
    %48 = arith.addf %43, %47 : vector<384x128xf32>
    %c1_59 = arith.constant 1 : index
    %c0_60 = arith.constant 0 : index
    %c0_61 = arith.constant 0 : index
    %49 = vector.load %arg3[%c1_59, %c0_60, %c0_61] : memref<3x1x128xf32, #tpu.memory_space<vmem>>, vector<1x1x128xf32>
    %50 = vector.shape_cast %49 : vector<1x1x128xf32> to vector<1x128xf32>
    %51 = vector.broadcast %50 : vector<1x128xf32> to vector<384x128xf32>
    %52 = arith.addf %48, %51 : vector<384x128xf32>
    %cst_62 = arith.constant 0.000000e+00 : f32
    %53 = vector.broadcast %cst_62 : f32 to vector<384x128xf32>
    %54 = arith.maximumf %52, %53 : vector<384x128xf32>
    %c0_63 = arith.constant 0 : index
    %c0_64 = arith.constant 0 : index
    %55 = vector.load %arg4[%c0_63, %c0_64] : memref<384x128xf32, #tpu.memory_space<vmem>>, vector<384x128xf32>
    %56 = arith.mulf %54, %55 : vector<384x128xf32>
    %c24_65 = arith.constant 24 : index
    %c128_66 = arith.constant 128 : index
    %57 = vector.load %arg6[%c24_65, %c128_66] : memref<432x384xf32, #tpu.memory_space<vmem>>, vector<384x128xf32>
    tpu.vector_store %arg6[%c24_65, %c128_66], %56 {strides = array<i32>} : memref<432x384xf32, #tpu.memory_space<vmem>>, vector<384x128xf32>,
    %c0_67 = arith.constant 0 : index
    %c128_68 = arith.constant 128 : index
    %58 = vector.load %arg6[%c0_67, %c128_68] : memref<432x384xf32, #tpu.memory_space<vmem>>, vector<432x128xf32>
    %c1_i32_69 = arith.constant 1 : i32
    %59 = tpu.dynamic_rotate %58 by %c1_i32_69 dim 0 : vector<432x128xf32>, i32 -> vector<432x128xf32>
    %c0_70 = arith.constant 0 : index
    %c0_71 = arith.constant 0 : index
    %60 = vector.load %arg6[%c0_70, %c0_71] : memref<432x384xf32, #tpu.memory_space<vmem>>, vector<432x128xf32>
    tpu.vector_store %arg6[%c0_70, %c0_71], %59 {strides = array<i32>} : memref<432x384xf32, #tpu.memory_space<vmem>>, vector<432x128xf32>,
    %c431_i32_72 = arith.constant 431 : i32
    %61 = tpu.dynamic_rotate %58 by %c431_i32_72 dim 0 : vector<432x128xf32>, i32 -> vector<432x128xf32>
    %c0_73 = arith.constant 0 : index
    %c256_74 = arith.constant 256 : index
    %62 = vector.load %arg6[%c0_73, %c256_74] : memref<432x384xf32, #tpu.memory_space<vmem>>, vector<432x128xf32>
    tpu.vector_store %arg6[%c0_73, %c256_74], %61 {strides = array<i32>} : memref<432x384xf32, #tpu.memory_space<vmem>>, vector<432x128xf32>,
    %c0_75 = arith.constant 0 : index
    %c0_76 = arith.constant 0 : index
    %63 = vector.load %arg6[%c0_75, %c0_76] : memref<432x384xf32, #tpu.memory_space<vmem>>, vector<384x384xf32>
    %c2_77 = arith.constant 2 : index
    %c0_78 = arith.constant 0 : index
    %c0_79 = arith.constant 0 : index
    %c0_80 = arith.constant 0 : index
    %64 = vector.load %arg2[%c2_77, %c0_78, %c0_79, %c0_80] : memref<3x3x384x128xf32, #tpu.memory_space<vmem>>, vector<1x1x384x128xf32>
    %65 = vector.shape_cast %64 : vector<1x1x384x128xf32> to vector<384x128xf32>
    %cst_81 = arith.constant dense<0.000000e+00> : vector<384x128xf32>
    %66 = tpu.matmul %63, %65, %cst_81 {dimension_numbers = #tpu.dot_dimension_numbers<[1], [0], [0], [1], [0, 0, 1, 1], [], []>} : vector<384x384xf32>, vector<384x128xf32>, vector<384x128xf32> -> vector<384x128xf32>
    %c24_82 = arith.constant 24 : index
    %c0_83 = arith.constant 0 : index
    %67 = vector.load %arg6[%c24_82, %c0_83] : memref<432x384xf32, #tpu.memory_space<vmem>>, vector<384x384xf32>
    %c2_84 = arith.constant 2 : index
    %c1_85 = arith.constant 1 : index
    %c0_86 = arith.constant 0 : index
    %c0_87 = arith.constant 0 : index
    %68 = vector.load %arg2[%c2_84, %c1_85, %c0_86, %c0_87] : memref<3x3x384x128xf32, #tpu.memory_space<vmem>>, vector<1x1x384x128xf32>
    %69 = vector.shape_cast %68 : vector<1x1x384x128xf32> to vector<384x128xf32>
    %cst_88 = arith.constant dense<0.000000e+00> : vector<384x128xf32>
    %70 = tpu.matmul %67, %69, %cst_88 {dimension_numbers = #tpu.dot_dimension_numbers<[1], [0], [0], [1], [0, 0, 1, 1], [], []>} : vector<384x384xf32>, vector<384x128xf32>, vector<384x128xf32> -> vector<384x128xf32>
    %71 = arith.addf %66, %70 : vector<384x128xf32>
    %c48_89 = arith.constant 48 : index
    %c0_90 = arith.constant 0 : index
    %72 = vector.load %arg6[%c48_89, %c0_90] : memref<432x384xf32, #tpu.memory_space<vmem>>, vector<384x384xf32>
    %c2_91 = arith.constant 2 : index
    %c2_92 = arith.constant 2 : index
    %c0_93 = arith.constant 0 : index
    %c0_94 = arith.constant 0 : index
    %73 = vector.load %arg2[%c2_91, %c2_92, %c0_93, %c0_94] : memref<3x3x384x128xf32, #tpu.memory_space<vmem>>, vector<1x1x384x128xf32>
    %74 = vector.shape_cast %73 : vector<1x1x384x128xf32> to vector<384x128xf32>
    %cst_95 = arith.constant dense<0.000000e+00> : vector<384x128xf32>
    %75 = tpu.matmul %72, %74, %cst_95 {dimension_numbers = #tpu.dot_dimension_numbers<[1], [0], [0], [1], [0, 0, 1, 1], [], []>} : vector<384x384xf32>, vector<384x128xf32>, vector<384x128xf32> -> vector<384x128xf32>
    %76 = arith.addf %71, %75 : vector<384x128xf32>
    %c2_96 = arith.constant 2 : index
    %c0_97 = arith.constant 0 : index
    %c0_98 = arith.constant 0 : index
    %77 = vector.load %arg3[%c2_96, %c0_97, %c0_98] : memref<3x1x128xf32, #tpu.memory_space<vmem>>, vector<1x1x128xf32>
    %78 = vector.shape_cast %77 : vector<1x1x128xf32> to vector<1x128xf32>
    %79 = vector.broadcast %78 : vector<1x128xf32> to vector<384x128xf32>
    %80 = arith.addf %76, %79 : vector<384x128xf32>
    %c0_99 = arith.constant 0 : index
    %c0_100 = arith.constant 0 : index
    %c0_101 = arith.constant 0 : index
    %81 = vector.load %arg5[%c0_99, %c0_100, %c0_101] : memref<1x384x128xf32, #tpu.memory_space<vmem>>, vector<1x384x128xf32>
    %82 = vector.shape_cast %81 : vector<1x384x128xf32> to vector<384x128xf32>
    %83 = vector.shape_cast %80 : vector<384x128xf32> to vector<1x384x128xf32>
    tpu.vector_store %arg5[%c0_99, %c0_100, %c0_101], %83 {strides = array<i32>} : memref<1x384x128xf32, #tpu.memory_space<vmem>>, vector<1x384x128xf32>,
    return
  }
  func.func @transform_0(%arg0: i32) -> (i32, i32, i32) {
    %c0_i32 = arith.constant 0 : i32
    %c0_i32_0 = arith.constant 0 : i32
    %c0_i32_1 = arith.constant 0 : i32
    return %arg0, %c0_i32, %c0_i32_0 : i32, i32, i32
  }
  func.func @transform_1(%arg0: i32) -> (i32, i32, i32, i32) {
    %c0_i32 = arith.constant 0 : i32
    %c0_i32_0 = arith.constant 0 : i32
    %c0_i32_1 = arith.constant 0 : i32
    %c0_i32_2 = arith.constant 0 : i32
    %c0_i32_3 = arith.constant 0 : i32
    return %c0_i32, %c0_i32_0, %c0_i32_1, %c0_i32_2 : i32, i32, i32, i32
  }
  func.func @transform_2(%arg0: i32) -> (i32, i32, i32) {
    %c0_i32 = arith.constant 0 : i32
    %c0_i32_0 = arith.constant 0 : i32
    %c0_i32_1 = arith.constant 0 : i32
    %c0_i32_2 = arith.constant 0 : i32
    return %c0_i32, %c0_i32_0, %c0_i32_1 : i32, i32, i32
  }
  func.func @transform_3(%arg0: i32) -> (i32, i32) {
    %c0_i32 = arith.constant 0 : i32
    %c0_i32_0 = arith.constant 0 : i32
    %c0_i32_1 = arith.constant 0 : i32
    return %c0_i32, %c0_i32_0 : i32, i32
  }
  func.func @transform_4(%arg0: i32) -> (i32, i32, i32) {
    %c0_i32 = arith.constant 0 : i32
    %c0_i32_0 = arith.constant 0 : i32
    %c0_i32_1 = arith.constant 0 : i32
    return %arg0, %c0_i32, %c0_i32_0 : i32, i32, i32
  }
}

</mosaic_0001>

<bundles_post_ra>
// kernel: multi_conv2d.1
= control target key start
LH: loop header
LB: loop body
LE: loop exit
PB: predicated region body
PF: predicated region fallthrough
CT: control target
= control target key end

     0   :  { %9 = vsyncpa [#allocation4], 0  ;;  %s17551_s0 = inlined_call_operand.vmem [shape: f32[2,432,128], index: 0, kind: input, shape index: {}]   ;;  %s17552_s1 = inlined_call_operand.hbm [shape: f32[3,3,384,128], index: 1, kind: input, shape index: {}]   ;;  %s17553_s2 = inlined_call_operand.hbm [shape: f32[3,1,128], index: 2, kind: input, shape index: {}]   ;;  %s17554_s3 = inlined_call_operand.vmem [shape: f32[384,128], index: 3, kind: input, shape index: {}]   ;;  %s17555_s4 = inlined_call_operand.vmem [shape: f32[2,384,128], index: 4, kind: output, shape index: {}]  }
   0x1   :  { %10 = vsyncpa [#allocation6], 0  ;;  %s11534_s15 = smov 0  }
   0x2 LB: > { %s11502_s16 = smov [#allocation3]   ;;  %s11540_s18 = sadd.s32 4294967295, %s11500_s15   ;;  %s11500_s15 = sphi %s11534_s15, %s16_s15  }
   0x3   : > { %s148_s17 = sshll.u32 %s11502_s16, 4  ;;  %p9063_p0 = scmp.ge.s32.totalorder %s11500_s15, 1  ;;  %s149_s17 = int_to_ptr.vmem [resolvable:$true] %s148_s17 }
   0x4   : > { %p136_p1 = scmp.lt.s32.totalorder %s11500_s15, 3  ;;  %p17556_p3 = scmp.eq.s32.totalorder %s11540_s18, 0 }
   0x5   : > { %s11503_s20 = smov [#allocation5]   ;;  %s11430_s25 = scalar_lea.hbm %s17552_s1, 55296 }
   0x6   : > { %p11544_p2 = pnand %p9063_p0, %p136_p1  ;;  %s161_s21 = sshll.u32 %s11503_s20, 4  ;;  %s11557_s21 = int_to_ptr.vmem [resolvable:$true] %s161_s21 }
   0x7   : > { %p11431_p6 = scmp.ne.s32.totalorder %s17552_s1, %s11430_s25  ;;  %p11437_p10 = scmp.lt.u32.totalorder %s11430_s25, %s17552_s1 }
   0x8   : > { %s18160_s19 = scalar_select %p11544_p2, 1, 0 }
   0x9   : > { %p11335_p4 = pneg %p11544_p2 }
   0xb   : > { %p11553_p5 = pnand %p17556_p3, %p11335_p4 }
   0xd   : > { %p11432_p7 = pneg %p11553_p5 }
   0xf   : > { %p11433_p8 = pnand %p11432_p7, %p11431_p6 }
  0x11   : > { %p11434_p9 = pneg %p11433_p8 }
  0x13   : > { %p11439_p11 = pnand %p11437_p10, %p11434_p9 }
  0x15   : > { %11442 = shalt.err (!%p11439_p11)
}
  0x16   : > { %s11443_s30 = scalar_lea.vmem %s149_s17, 55296  ;;  %p11451_p1 = scmp.lt.s32.totalorder %s149_s17, %s149_s17 }
  0x17   : > { %p11444_p12 = scmp.ne.s32.totalorder %s149_s17, %s11443_s30  ;;  %p11452_p4 = scmp.lt.s32.totalorder %s11443_s30, %s11443_s30 }
  0x19   : > { %p11446_p13 = pnand %p11444_p12, %p11432_p7  ;;  %p11453_p3 = por %p11452_p4, %p11451_p1 }
  0x1b   : > { %p11447_p0 = pneg %p11446_p13 }
  0x1d   : > { %p11454_p2 = pnand %p11453_p3, %p11447_p0 }
  0x1f   : > { %11457 = shalt.err (!%p11454_p2)
}
  0x20   : > { %s11504_s5 = smov 128   ;;  %s11505_s6 = smov 8  }
  0x21   : > { %11338 = dma.hbm_to_vmem [thread:$0]  (!%p11553_p5), %s17552_s1, 55296, %s149_s17, [#allocation4], %s11504_s5, %s11504_s5, %s11505_s6  }
  0x22   : > { %s11458_s11 = scalar_lea.hbm %s17553_s2, 48 }
  0x23   : > { %p11459_p6 = scmp.ne.s32.totalorder %s17553_s2, %s11458_s11  ;;  %p11465_p8 = scmp.lt.u32.totalorder %s11458_s11, %s17553_s2 }
  0x25   : > { %p11461_p2 = pnand %p11459_p6, %p11432_p7 }
  0x27   : > { %p11462_p3 = pneg %p11461_p2 }
  0x29   : > { %p11467_p9 = pnand %p11465_p8, %p11462_p3 }
  0x2b   : > { %11470 = shalt.err (!%p11467_p9)
}
  0x2c   : > { %s11471_s17 = scalar_lea.vmem %s11557_s21, 48  ;;  %s11478_s20 = scalar_lea.vmem %s11557_s21, 64 }
  0x2d   : > { %p11472_p10 = scmp.ne.s32.totalorder %s11557_s21, %s11471_s17  ;;  %p11479_p13 = scmp.lt.s32.totalorder %s11557_s21, %s11557_s21 }
  0x2e   : > { %p11480_p0 = scmp.lt.s32.totalorder %s11478_s20, %s11471_s17 }
  0x2f   : > { %p11474_p11 = pnand %p11472_p10, %p11432_p7 }
  0x30   : > { %p11481_p1 = por %p11480_p0, %p11479_p13 }
  0x31   : > { %p11475_p12 = pneg %p11474_p11 }
  0x33   : > { %p11482_p4 = pnand %p11481_p1, %p11475_p12 }
  0x35   : > { %11485 = shalt.err (!%p11482_p4)
}
  0x36   : > { %s11506_s23 = smov 16   ;;  %s11507_s24 = smov 1  }
  0x37   : > { %11341 = dma.hbm_to_vmem [thread:$0]  (!%p11553_p5), %s17553_s2, 48, %s11557_s21, [#allocation6], %s11506_s23, %s11506_s23, %s11507_s24  }
  0x38   : > { %p18162_p6 = scmp.ne.s32.totalorder %s18160_s19, 0 }
  0x3a   : > { %188 = sbr.rel (%p18162_p6) target bundleno = 1908 (0x774), region = 36 }
  0x41   : > { %p18163_p7 = scmp.eq.s32.totalorder %s11540_s18, 0 }
  0x43   : > { %11491 = dma.done.wait (%p18163_p7), [#allocation4], 55296   ;;  %p18164_p2 = pmov %p18163_p7 }
  0x45   : > { %11493 = vsyncadd (%p18164_p2), [#allocation4], 4294912000  ;;  %p18165_p3 = pmov %p18164_p2 }
  0x46   : > { %p18166_p8 = pmov %p18164_p2 }
  0x47   : > { %11495 = dma.done.wait (%p18165_p3), [#allocation6], 48  }
  0x48   : > { %11497 = vsyncadd (%p18166_p8), [#allocation6], 4294967248  ;;  %v17559_v0 = vmov 0.0|0.0   ;;  %p218_p5 = scmp.lt.s32.totalorder %s11540_s18, 1  ;;  %v866_v1 = vld [vmem:[#allocation3 + $0x180] sm:$0xff]  ;;  %v867_v2 = vld [vmem:[#allocation3 + $0x188] sm:$0xff]  ;;  %v390_v15 = vlaneseq }
  0x49   : > { %10589 = vmatprep.subr.bf16.mxu0 %v17559_v0  ;;  %v898_v3 = vld [vmem:[#allocation3 + $0x280] sm:$0xff]  ;;  %v10590_v4 = vpack.c.bf16 %v867_v2, %v866_v1  ;;  %v899_v5 = vld [vmem:[#allocation3 + $0x288] sm:$0xff]  ;;  %v868_v6 = vld [vmem:[#allocation3 + $0x190] sm:$0xff] }
  0x4a   : > { %s19404_s18 = smov (!%p218_p5, %s11540_s18), 1  ;;  %v869_v7 = vld [vmem:[#allocation3 + $0x198] sm:$0xff]  ;;  %v11622_v8 = vpack.c.bf16 %v899_v5, %v898_v3  ;;  %v900_v9 = vld [vmem:[#allocation3 + $0x290] sm:$0xff]  ;;  %v902_v13 = vld [vmem:[#allocation3 + $0x2a0] sm:$0xff]  ;;  %v11638_v22 = vshrl.u32 %v390_v15, 7 }
  0x4b   : > { %v901_v10 = vld [vmem:[#allocation3 + $0x298] sm:$0xff]  ;;  %10591 = vmatpush1.bf16.msra.mxu0 %v10590_v4  ;;  %v10593_v11 = vpack.c.bf16 %v869_v7, %v868_v6  ;;  %v903_v14 = vld [vmem:[#allocation3 + $0x2a8] sm:$0xff]  ;;  %s11325_s19 = smul.u32 432, %s19404_s18  ;;  %v870_v16 = vld [vmem:[#allocation3 + $0x1a0] sm:$0xff] }
  0x4c   : > { %v11624_v12 = vpack.c.bf16 %v901_v10, %v900_v9  ;;  %11309 = vmatprep.subr.bf16.mxu1 %v11622_v8  ;;  %10592 = vmatprep.subr.bf16.mxu0 %v17559_v0  ;;  %v871_v17 = vld [vmem:[#allocation3 + $0x1a8] sm:$0xff]  ;;  %v11631_v18 = vpack.c.bf16 %v903_v14, %v902_v13  ;;  %v904_v20 = vld [vmem:[#allocation3 + $0x2b0] sm:$0xff]  ;;  %v905_v21 = vld [vmem:[#allocation3 + $0x2b8] sm:$0xff]  ;;  %18167 = vst [vmem:[#allocation9_spill] sm:$0xff] %v11638_v22  ;;  %vm555_vm0 = vcmp.lt.s32.totalorder %v11638_v22, 7  ;;  %vm392_vm1 = vcmp.lt.s32.totalorder %v11638_v22, 1 }
  0x4d   : > { %11317 = vmatpush3.bf16.msra.mxu1 %v11622_v8  ;;  %v10596_v19 = vpack.c.bf16 %v871_v17, %v870_v16  ;;  %s11636_s27 = scalar_lea.vmem %s17551_s0, %s11325_s19  ;;  %v872_v23 = vld [vmem:[#allocation3 + $0x1b0] sm:$0xff]  ;;  %v873_v24 = vld [vmem:[#allocation3 + $0x1b8] sm:$0xff]  ;;  %v11643_v25 = vpack.c.bf16 %v905_v21, %v904_v20  ;;  %v906_v28 = vld [vmem:[#allocation3 + $0x2c0] sm:$0xff] }
  0x4e   : > { %11310 = vmatprep.subr.bf16.mxu1 %v11624_v12  ;;  %v11646_v26 = vld [vmem:[%s11636_s27 + $0x98] sm:$0xff]  ;;  %v10599_v27 = vpack.c.bf16 %v873_v24, %v872_v23  ;;  %v907_v29 = vld [vmem:[#allocation3 + $0x2c8] sm:$0xff]  ;;  %v11649_v30 = vld [vmem:[%s11636_s27 + $0xa0] sm:$0xff] }
  0x4f   : > { %10594 = vmatpush1.bf16.msra.mxu0 %v10593_v11  ;;  %18168 = vst [vmem:[#allocation10_spill] sm:$0xff] %v11646_v26  ;;  %v17558_v31 = vrot.slane %v11646_v26, 1  ;;  %v874_v32 = vld [vmem:[#allocation3 + $0x1c0] sm:$0xff]  ;;  %v875_v33 = vld [vmem:[#allocation3 + $0x1c8] sm:$0xff]  ;;  %v521_v34 = vrot.slane %v11649_v30, 1  ;;  %v11657_v35 = vpack.c.bf16 %v907_v29, %v906_v28  ;;  %v908_v38 = vld [vmem:[#allocation3 + $0x2d0] sm:$0xff] }
  0x50   : > { %10595 = vmatprep.subr.bf16.mxu0 %v17559_v0  ;;  %v10602_v37 = vpack.c.bf16 %v875_v33, %v874_v32  ;;  %v909_v39 = vld [vmem:[#allocation3 + $0x2d8] sm:$0xff]  ;;  %v876_v40 = vld [vmem:[#allocation3 + $0x1d0] sm:$0xff]  ;;  %v910_v44 = vld [vmem:[#allocation3 + $0x2e0] sm:$0xff] }
  0x51   : > { %11318 = vmatpush3.bf16.msra.mxu1 %v11624_v12  ;;  %v11663_v36 = vsel %vm555_vm0, %v17558_v31, %v521_v34  ;;  %v877_v41 = vld [vmem:[#allocation3 + $0x1d8] sm:$0xff]  ;;  %v11669_v42 = vpack.c.bf16 %v909_v39, %v908_v38  ;;  %v911_v45 = vld [vmem:[#allocation3 + $0x2e8] sm:$0xff]  ;;  %v878_v46 = vld [vmem:[#allocation3 + $0x1e0] sm:$0xff] }
  0x52   : > { %11311 = vmatprep.subr.bf16.mxu1 %v11631_v18  ;;  %18169 = vst [vmem:[#allocation11_spill] sm:$0xff] %v11663_v36  ;;  %9709 = vmatprep.mubr.f32.mxu1 %v11663_v36  ;;  %v10605_v43 = vpack.c.bf16 %v877_v41, %v876_v40  ;;  %v879_v47 = vld [vmem:[#allocation3 + $0x1e8] sm:$0xff]  ;;  %v11674_v48 = vpack.c.bf16 %v911_v45, %v910_v44  ;;  %v912_v50 = vld [vmem:[#allocation3 + $0x2f0] sm:$0xff]  ;;  %v913_v51 = vld [vmem:[#allocation3 + $0x2f8] sm:$0xff] }
  0x53   : > { %10597 = vmatpush1.bf16.msra.mxu0 %v10596_v19  ;;  %v10608_v49 = vpack.c.bf16 %v879_v47, %v878_v46  ;;  %v880_v52 = vld [vmem:[#allocation3 + $0x1f0] sm:$0xff]  ;;  %v881_v53 = vld [vmem:[#allocation3 + $0x1f8] sm:$0xff]  ;;  %v11679_v54 = vpack.c.bf16 %v913_v51, %v912_v50  ;;  %v11682_v55 = vld [vmem:[%s11636_s27 + $0xa8] sm:$0xff] }
  0x54   : > { %10598 = vmatprep.subr.bf16.mxu0 %v17559_v0  ;;  %v10611_v56 = vpack.c.bf16 %v881_v53, %v880_v52  ;;  %v11685_v57 = vld [vmem:[%s11636_s27 + $0xb0] sm:$0xff]  ;;  %v11688_v58 = vld [vmem:[%s11636_s27 + $0x18] sm:$0xff]  ;;  %v882_v59 = vld [vmem:[#allocation3 + $0x200] sm:$0xff]  ;;  %v522_v61 = vrot.slane %v11682_v55, 1 }
  0x55   : > { %11319 = vmatpush3.bf16.msra.mxu1 %v11631_v18  ;;  %v883_v60 = vld [vmem:[#allocation3 + $0x208] sm:$0xff]  ;;  %978 = vmatprep.mubr.f32.mxu0 %v11688_v58  ;;  %v808_v62 = vld [vmem:[#allocation3] sm:$0xff]  ;;  %v523_v1 = vrot.slane %v11685_v57, 1  ;;  %v11697_v2 = vld [vmem:[%s11636_s27 + $0xb8] sm:$0xff] }
  0x56   : > { %11312 = vmatprep.subr.bf16.mxu1 %v11643_v25  ;;  %v809_v63 = vld [vmem:[#allocation3 + $0x8] sm:$0xff]  ;;  %v10614_v3 = vpack.c.bf16 %v883_v60, %v882_v59  ;;  %v11700_v4 = vld [vmem:[%s11636_s27 + $0xc0] sm:$0xff]  ;;  %v884_v5 = vld [vmem:[#allocation3 + $0x210] sm:$0xff]  ;;  %v11706_v7 = vsel %vm555_vm0, %v521_v34, %v522_v61  ;;  %v524_v10 = vrot.slane %v11697_v2, 1 }
  0x57   : > { %10600 = vmatpush1.bf16.msra.mxu0 %v10599_v27  ;;  %v885_v6 = vld [vmem:[#allocation3 + $0x218] sm:$0xff]  ;;  %18170 = vst [vmem:[#allocation12_spill] sm:$0xff] %v11706_v7  ;;  %v10670_v9 = vpack.c.bf16 %v809_v63, %v808_v62  ;;  %v11712_v11 = vsel %vm555_vm0, %v522_v61, %v523_v1  ;;  %v810_v13 = vld [vmem:[#allocation3 + $0x10] sm:$0xff]  ;;  %v525_v15 = vrot.slane %v11700_v4, 1  ;;  %v11716_v16 = vld [vmem:[%s11636_s27 + $0xc8] sm:$0xff] }
  0x58   : > { %10601 = vmatprep.subr.bf16.mxu0 %v17559_v0  ;;  %18171 = vst [vmem:[#allocation13_spill] sm:$0xff] %v11712_v11  ;;  %v811_v14 = vld [vmem:[#allocation3 + $0x18] sm:$0xff]  ;;  %v10617_v17 = vpack.c.bf16 %v885_v6, %v884_v5  ;;  %v11719_v19 = vld [vmem:[%s11636_s27 + $0xd0] sm:$0xff]  ;;  %v886_v20 = vld [vmem:[#allocation3 + $0x220] sm:$0xff]  ;;  %v11726_v23 = vsel %vm555_vm0, %v523_v1, %v524_v10  ;;  %v526_v27 = vrot.slane %v11716_v16, 1 }
  0x59   : > { %11320 = vmatpush3.bf16.msra.mxu1 %v11643_v25  ;;  %v887_v21 = vld [vmem:[#allocation3 + $0x228] sm:$0xff]  ;;  %18172 = vst [vmem:[#allocation14_spill] sm:$0xff] %v11726_v23  ;;  %v10673_v24 = vpack.c.bf16 %v811_v14, %v810_v13  ;;  %v11732_v28 = vsel %vm555_vm0, %v524_v10, %v525_v15  ;;  %v812_v29 = vld [vmem:[#allocation3 + $0x20] sm:$0xff]  ;;  %v527_v33 = vrot.slane %v11719_v19, 1  ;;  %v11736_v34 = vld [vmem:[%s11636_s27 + $0xd8] sm:$0xff] }
  0x5a   : > { %11313 = vmatprep.subr.bf16.mxu1 %v11657_v35  ;;  %18173 = vst [vmem:[#allocation15_spill] sm:$0xff] %v11732_v28  ;;  %v813_v32 = vld [vmem:[#allocation3 + $0x28] sm:$0xff]  ;;  %v11739_v38 = vld [vmem:[%s11636_s27 + $0xe0] sm:$0xff]  ;;  %v888_v39 = vld [vmem:[#allocation3 + $0x230] sm:$0xff]  ;;  %v11746_v41 = vsel %vm555_vm0, %v525_v15, %v526_v27  ;;  %v528_v44 = vrot.slane %v11736_v34, 1 }
  0x5b   : > { %10603 = vmatpush1.bf16.msra.mxu0 %v10602_v37  ;;  %v10620_v37 = vpack.c.bf16 %v887_v21, %v886_v20  ;;  %v889_v40 = vld [vmem:[#allocation3 + $0x238] sm:$0xff]  ;;  %18174 = vst [vmem:[#allocation16_spill] sm:$0xff] %v11746_v41  ;;  %v11752_v45 = vsel %vm555_vm0, %v526_v27, %v527_v33  ;;  %v814_v46 = vld [vmem:[#allocation3 + $0x30] sm:$0xff]  ;;  %v11756_v50 = vld [vmem:[%s11636_s27 + $0xe8] sm:$0xff] }
  0x5c   : > { %10604 = vmatprep.subr.bf16.mxu0 %v17559_v0  ;;  %18175 = vst [vmem:[#allocation17_spill] sm:$0xff] %v11752_v45  ;;  %v815_v47 = vld [vmem:[#allocation3 + $0x38] sm:$0xff]  ;;  %v10623_v51 = vpack.c.bf16 %v889_v40, %v888_v39  ;;  %v11759_v52 = vld [vmem:[%s11636_s27 + $0xf0] sm:$0xff]  ;;  %v890_v53 = vld [vmem:[#allocation3 + $0x240] sm:$0xff]  ;;  %v11766_v59 = vsel %vm555_vm0, %v527_v33, %v528_v44  ;;  %v530_v61 = vrot.slane %v11756_v50, 1 }
  0x5d   : > { %11321 = vmatpush3.bf16.msra.mxu1 %v11657_v35  ;;  %18176 = vst [vmem:[#allocation18_spill] sm:$0xff] %v11766_v59  ;;  %v10679_v60 = vpack.c.bf16 %v815_v47, %v814_v46  ;;  %v816_v63 = vld [vmem:[#allocation3 + $0x40] sm:$0xff]  ;;  %v817_v1 = vld [vmem:[#allocation3 + $0x48] sm:$0xff]  ;;  %v11776_v5 = vld [vmem:[%s11636_s27 + $0xf8] sm:$0xff] }
  0x5e   : > { %11314 = vmatprep.subr.bf16.mxu1 %v11669_v42  ;;  %v892_v10 = vld [vmem:[#allocation3 + $0x250] sm:$0xff]  ;;  %v893_v13 = vld [vmem:[#allocation3 + $0x258] sm:$0xff]  ;;  %v10682_v15 = vpack.c.bf16 %v817_v1, %v816_v63  ;;  %v895_v39 = vld [vmem:[#allocation3 + $0x268] sm:$0xff] }
  0x5f   : > { %10606 = vmatpush1.bf16.msra.mxu0 %v10605_v43  ;;  %v10676_v43 = vpack.c.bf16 %v813_v32, %v812_v29  ;;  %v818_v21 = vld [vmem:[#allocation3 + $0x50] sm:$0xff]  ;;  %v11796_v29 = vld [vmem:[%s11636_s27 + $0x108] sm:$0xff]  ;;  %v10629_v32 = vpack.c.bf16 %v893_v13, %v892_v10  ;;  %v820_v47 = vld [vmem:[#allocation3 + $0x60] sm:$0xff] }
  0x60   : > { %10607 = vmatprep.subr.bf16.mxu0 %v17559_v0  ;;  %v11799_v33 = vld [vmem:[%s11636_s27 + $0x110] sm:$0xff]  ;;  %v897_v63 = vld [vmem:[#allocation3 + $0x278] sm:$0xff] }
  0x61   : > { %11322 = vmatpush3.bf16.msra.mxu1 %v11669_v42  ;;  %v11824_v1 = vld [vmem:[%s11636_s27 + $0x10] sm:$0xff]  ;;  %v11867_v31 = vld [vmem:[%s11636_s27 + $0x138] sm:$0xff] }
  0x62   : > { %11315 = vmatprep.subr.bf16.mxu1 %v11674_v48 }
  0x63   : > { %10609 = vmatpush1.bf16.msra.mxu0 %v10608_v49  ;;  %v529_v49 = vrot.slane %v11739_v38, 1 }
  0x64   : > { %10610 = vmatprep.subr.bf16.mxu0 %v17559_v0 }
  0x65   : > { %11323 = vmatpush3.bf16.msra.mxu1 %v11674_v48  ;;  %v11772_v62 = vsel %vm555_vm0, %v528_v44, %v529_v49  ;;  %v11786_v14 = vsel %vm555_vm0, %v529_v49, %v530_v61  ;;  %v534_v44 = vrot.slane %v11796_v29, 1  ;;  %v821_v49 = vld [vmem:[#allocation3 + $0x68] sm:$0xff] }
  0x66   : > { %11316 = vmatprep.subr.bf16.mxu1 %v11679_v54  ;;  %18177 = vst [vmem:[#allocation19_spill] sm:$0xff] %v11772_v62  ;;  %18178 = vst [vmem:[#allocation20_spill] sm:$0xff] %v11786_v14 }
  0x67   : > { %10612 = vmatpush1.bf16.msra.mxu0 %v10611_v56  ;;  %v891_v56 = vld [vmem:[#allocation3 + $0x248] sm:$0xff] }
  0x68   : > { %10613 = vmatprep.subr.bf16.mxu0 %v17559_v0  ;;  %v10626_v6 = vpack.c.bf16 %v891_v56, %v890_v53  ;;  %v11816_v53 = vld [vmem:[%s11636_s27 + $0x118] sm:$0xff] }
  0x69   : > { %11324 = vmatpush3.bf16.msra.mxu1 %v11679_v54  ;;  %v536_v10 = vrot.slane %v11816_v53, 1 }
  0x6a   : > { %10669 = vmatprep.subr.bf16.mxu1 %v17559_v0 }
  0x6b   : > { %10615 = vmatpush1.bf16.msra.mxu0 %v10614_v3  ;;  %v531_v3 = vrot.slane %v11759_v52, 1 }
  0x6c   : > { %9710 = vmatmul.mubr.f32.vlgmr.msra.gmra.mrb[0].mxu1 %v11706_v7  ;;  %10616 = vmatprep.subr.bf16.mxu0 %v17559_v0 }
  0x6d   : > { %10671 = vmatpush1.bf16.msra.mxu1 %v10670_v9  ;;  %9712 = vmatprep.mubr.f32.mxu1 %v11712_v11  ;;  %v11779_v9 = vld [vmem:[%s11636_s27 + $0x100] sm:$0xff]  ;;  %v11792_v20 = vsel %vm555_vm0, %v530_v61, %v531_v3  ;;  %v896_v61 = vld [vmem:[#allocation3 + $0x270] sm:$0xff]  ;;  %v11990_v11 = vld [vmem:[%s11636_s27 + $0x178] sm:$0xff] }
  0x6e   : > { %10672 = vmatprep.subr.bf16.mxu1 %v17559_v0  ;;  %18179 = vst [vmem:[#allocation21_spill] sm:$0xff] %v11792_v20  ;;  %v533_v27 = vrot.slane %v11779_v9, 1  ;;  %18202 = vst [vmem:[#allocation43_spill] sm:$0xff] %v11990_v11  ;;  %v548_v36 = vrot.slane %v11990_v11, 1 }
  0x6f   : > { %10618 = vmatpush1.bf16.msra.mxu0 %v10617_v17  ;;  %v532_v17 = vrot.slane %v11776_v5, 1 }
  0x70   : > { %9713 = vmatmul.mubr.f32.gmra.mrb[2].mxu1 %v11726_v23  ;;  %10619 = vmatprep.subr.bf16.mxu0 %v17559_v0 }
  0x71   : > { %10674 = vmatpush1.bf16.msra.mxu1 %v10673_v24  ;;  %9715 = vmatprep.mubr.f32.mxu1 %v11732_v28  ;;  %v819_v24 = vld [vmem:[#allocation3 + $0x58] sm:$0xff]  ;;  %v11806_v40 = vsel %vm555_vm0, %v531_v3, %v532_v17  ;;  %v11812_v46 = vsel %vm555_vm0, %v532_v17, %v533_v27  ;;  %v11829_v3 = vsel %vm555_vm0, %v533_v27, %v534_v44  ;;  %v11842_v27 = vrot.slane %v11824_v1, 7 }
  0x72   : > { %10675 = vmatprep.subr.bf16.mxu1 %v17559_v0  ;;  %18180 = vst [vmem:[#allocation22_spill] sm:$0xff] %v11806_v40  ;;  %18181 = vst [vmem:[#allocation23_spill] sm:$0xff] %v11812_v46  ;;  %v823_v17 = vld [vmem:[#allocation3 + $0x78] sm:$0xff] }
  0x73   : > { %10621 = vmatpush1.bf16.msra.mxu0 %v10620_v37  ;;  %v894_v37 = vld [vmem:[#allocation3 + $0x260] sm:$0xff]  ;;  %18182 = vst [vmem:[#allocation24_spill] sm:$0xff] %v11829_v3  ;;  %18184 = vst [vmem:[#allocation26_spill] sm:$0xff] %v11842_v27 }
  0x74   : > { %9716 = vmatmul.mubr.f32.gmra.mrb[4].mxu1 %v11746_v41  ;;  %10622 = vmatprep.subr.bf16.mxu0 %v17559_v0  ;;  %v10632_v56 = vpack.c.bf16 %v895_v39, %v894_v37  ;;  %v339_v37 = vrot.slane %v11688_v58, 7  ;;  %v11846_v39 = vld [vmem:[%s11636_s27 + $0x130] sm:$0xff]  ;;  %v11959_v41 = vld [vmem:[%s11636_s27 + $0x168] sm:$0xff] }
  0x75   : > { %10677 = vmatpush1.bf16.msra.mxu1 %v10676_v43  ;;  %9718 = vmatprep.mubr.f32.mxu1 %v11752_v45  ;;  %v10685_v43 = vpack.c.bf16 %v819_v24, %v818_v21  ;;  %v11839_v24 = vld [vmem:[%s11636_s27 + $0x128] sm:$0xff]  ;;  %18197 = vst [vmem:[#allocation38_spill] sm:$0xff] %v11959_v41  ;;  %v546_v23 = vrot.slane %v11959_v41, 1  ;;  %v279_v41 = vld [vmem:[%s11636_s27 + $0x198] sm:$0xff] }
  0x76   : > { %10678 = vmatprep.subr.bf16.mxu1 %v17559_v0 }
  0x77   : > { %10624 = vmatpush1.bf16.msra.mxu0 %v10623_v51  ;;  %v535_v51 = vrot.slane %v11799_v33, 1 }
  0x78   : > { %9719 = vmatmul.mubr.f32.gmra.mrb[6].mxu1 %v11766_v59  ;;  %10625 = vmatprep.subr.bf16.mxu0 %v17559_v0 }
  0x79   : > { %10680 = vmatpush1.bf16.msra.mxu1 %v10679_v60  ;;  %9721 = vmatprep.mubr.f32.mxu1 %v11772_v62  ;;  %v11819_v60 = vld [vmem:[%s11636_s27 + $0x120] sm:$0xff]  ;;  %v11835_v13 = vsel %vm555_vm0, %v534_v44, %v535_v51  ;;  %v11857_v44 = vsel %vm555_vm0, %v535_v51, %v536_v10  ;;  %v11872_v51 = vsel %vm392_vm1, %v11842_v27, %v339_v37  ;;  %v11928_v62 = vld [vmem:[%s11636_s27 + $0x158] sm:$0xff] }
  0x7a   : > { %10681 = vmatprep.subr.bf16.mxu1 %v17559_v0  ;;  %18183 = vst [vmem:[#allocation25_spill] sm:$0xff] %v11835_v13  ;;  %v537_v21 = vrot.slane %v11819_v60, 1  ;;  %18185 = vst [vmem:[#allocation27_spill] sm:$0xff] %v11857_v44  ;;  %v544_v45 = vrot.slane %v11928_v62, 1 }
  0x7b   : > { %10627 = vmatpush1.bf16.msra.mxu0 %v10626_v6  ;;  %v10688_v6 = vpack.c.bf16 %v821_v49, %v820_v47  ;;  %v538_v49 = vrot.slane %v11839_v24, 1 }
  0x7c   : > { %9722 = vmatmul.mubr.f32.gmra.mrb[8].mxu1 %v11786_v14  ;;  %10628 = vmatprep.subr.bf16.mxu0 %v17559_v0  ;;  %v828_v14 = vld [vmem:[#allocation3 + $0xa0] sm:$0xff] }
  0x7d   : > { %10683 = vmatpush1.bf16.msra.mxu1 %v10682_v15  ;;  %9724 = vmatprep.mubr.f32.mxu1 %v11792_v20  ;;  %v822_v15 = vld [vmem:[#allocation3 + $0x70] sm:$0xff] }
  0x7e   : > { %10684 = vmatprep.subr.bf16.mxu1 %v17559_v0  ;;  %v10691_v47 = vpack.c.bf16 %v823_v17, %v822_v15  ;;  %v11876_v17 = vld [vmem:[%s11636_s27 + $0x140] sm:$0xff] }
  0x7f   : > { %10630 = vmatpush1.bf16.msra.mxu0 %v10629_v32  ;;  %v10635_v32 = vpack.c.bf16 %v897_v63, %v896_v61  ;;  %v824_v61 = vld [vmem:[#allocation3 + $0x80] sm:$0xff]  ;;  %v825_v63 = vld [vmem:[#allocation3 + $0x88] sm:$0xff] }
  0x80   : > { %9725 = vmatmul.mubr.f32.gmra.mrb[10].mxu1 %v11806_v40  ;;  %10631 = vmatprep.subr.bf16.mxu0 %v17559_v0  ;;  %v11897_v40 = vld [vmem:[%s11636_s27 + $0x148] sm:$0xff] }
  0x81   : > { %10686 = vmatpush1.bf16.msra.mxu1 %v10685_v43  ;;  %9727 = vmatprep.mubr.f32.mxu1 %v11812_v46  ;;  %v11852_v43 = vld [vmem:[%s11636_s27 + $0x20] sm:$0xff]  ;;  %v827_v46 = vld [vmem:[#allocation3 + $0x98] sm:$0xff]  ;;  %v542_v20 = vrot.slane %v11897_v40, 1 }
  0x82   : > { %10687 = vmatprep.subr.bf16.mxu1 %v17559_v0  ;;  %v340_v15 = vrot.slane %v11852_v43, 7 }
  0x83   : > { %10633 = vmatpush1.bf16.msra.mxu0 %v10632_v56  ;;  %v11863_v56 = vsel %vm555_vm0, %v536_v10, %v537_v21  ;;  %v11881_v10 = vld [vmem:[%s11636_s27 + $0x28] sm:$0xff] }
  0x84   : > { %9728 = vmatmul.mubr.f32.gmra.mrb[12].mxu1 %v11829_v3  ;;  %10634 = vmatprep.subr.bf16.mxu0 %v17559_v0  ;;  %18186 = vst [vmem:[#allocation28_spill] sm:$0xff] %v11863_v56  ;;  %18187 = vst [vmem:[#allocation29_spill] sm:$0xff] %v11881_v10  ;;  %v18189_v3 = vmov 0.0|0.0  }
  0x85   : > { %10689 = vmatpush1.bf16.msra.mxu1 %v10688_v6  ;;  %9730 = vmatprep.mubr.f32.mxu1 %v11835_v13  ;;  %v539_v6 = vrot.slane %v11846_v39, 1  ;;  %v540_v13 = vrot.slane %v11867_v31, 1 }
  0x86   : > { %10690 = vmatprep.subr.bf16.mxu1 %v17559_v0  ;;  %v10694_v0 = vpack.c.bf16 %v825_v63, %v824_v61  ;;  %v341_v61 = vrot.slane %v11881_v10, 7  ;;  %v11907_v63 = vld [vmem:[%s11636_s27 + $0x150] sm:$0xff] }
  0x87   : > { %10636 = vmatpush1.bf16.msra.mxu0 %v10635_v32  ;;  %v11886_v32 = vsel %vm555_vm0, %v537_v21, %v538_v49  ;;  %v11903_v21 = vsel %vm392_vm1, %v339_v37, %v340_v15 }
  0x88   : > { %9731 = vmatmul.mubr.f32.gmra.mrb[14].mxu1 %v11857_v44  ;;  %10638 = vmatprep.subr.bf16.mxu0 %v11622_v8  ;;  %18188 = vst [vmem:[#allocation30_spill] sm:$0xff] %v11886_v32  ;;  %v11893_v44 = vsel %vm555_vm0, %v538_v49, %v539_v6  ;;  %v11911_v49 = vld [vmem:[%s11636_s27 + $0x30] sm:$0xff] }
  0x89   : > { %10692 = vmatpush1.bf16.msra.mxu1 %v10691_v47  ;;  %9733 = vmatprep.mubr.f32.mxu1 %v11863_v56  ;;  %18190 = vst [vmem:[#allocation31_spill] sm:$0xff] %v11893_v44  ;;  %v826_v47 = vld [vmem:[#allocation3 + $0x90] sm:$0xff]  ;;  %v541_v56 = vrot.slane %v11876_v17, 1 }
  0x8a   : > { %979 = vmatmul.mubr.f32.vlgmr.msra.gmra.mrb[0].mxu0 %v11872_v51  ;;  %10693 = vmatprep.subr.bf16.mxu1 %v18189_v3  ;;  %v10697_v37 = vpack.c.bf16 %v827_v46, %v826_v47  ;;  %v11933_v46 = vsel %vm392_vm1, %v340_v15, %v341_v61  ;;  %v11937_v47 = vld [vmem:[%s11636_s27 + $0x160] sm:$0xff] }
  0x8b   : > { %10640 = vmatpush3.bf16.msra.mxu0 %v11622_v8  ;;  %983 = vmatprep.mubr.f32.mxu0 %v11852_v43  ;;  %v11917_v8 = vsel %vm555_vm0, %v539_v6, %v540_v13  ;;  %v342_v6 = vrot.slane %v11911_v49, 7  ;;  %18193 = vst [vmem:[#allocation34_spill] sm:$0xff] %v11937_v47  ;;  %v11948_v15 = vsel %vm555_vm0, %v541_v56, %v542_v20 }
  0x8c   : > { %9734 = vmatmul.mubr.f32.gmra.mrb[16].mxu1 %v11886_v32  ;;  %10642 = vmatprep.subr.bf16.mxu0 %v11624_v12  ;;  %18191 = vst [vmem:[#allocation32_spill] sm:$0xff] %v11917_v8  ;;  %v11924_v32 = vsel %vm555_vm0, %v540_v13, %v541_v56  ;;  %v11942_v13 = vld [vmem:[%s11636_s27 + $0x38] sm:$0xff]  ;;  %18195 = vst [vmem:[#allocation36_spill] sm:$0xff] %v11948_v15 }
  0x8d   : > { %10695 = vmatpush1.bf16.msra.mxu1 %v10694_v0  ;;  %9736 = vmatprep.mubr.f32.mxu1 %v11893_v44  ;;  %18192 = vst [vmem:[#allocation33_spill] sm:$0xff] %v11924_v32  ;;  %v829_v0 = vld [vmem:[#allocation3 + $0xa8] sm:$0xff]  ;;  %v543_v44 = vrot.slane %v11907_v63, 1  ;;  %18194 = vst [vmem:[#allocation35_spill] sm:$0xff] %v11942_v13  ;;  %v343_v56 = vrot.slane %v11942_v13, 7 }
  0x8e   : > { %984 = vmatmul.mubr.f32.gmra.mrb[2].mxu0 %v11903_v21  ;;  %10696 = vmatprep.subr.bf16.mxu1 %v18189_v3  ;;  %v10700_v59 = vpack.c.bf16 %v829_v0, %v828_v14  ;;  %v11964_v14 = vsel %vm392_vm1, %v341_v61, %v342_v6  ;;  %v11968_v0 = vld [vmem:[%s11636_s27 + $0x170] sm:$0xff] }
  0x8f   : > { %988 = vmatprep.mubr.f32.mxu0 %v11881_v10  ;;  %10644 = vmatpush3.bf16.msra.mxu0 %v11624_v12  ;;  %v11955_v12 = vsel %vm555_vm0, %v542_v20, %v543_v44  ;;  %18198 = vst [vmem:[#allocation39_spill] sm:$0xff] %v11964_v14  ;;  %18199 = vst [vmem:[#allocation40_spill] sm:$0xff] %v11968_v0  ;;  %v11973_v20 = vld [vmem:[%s11636_s27 + $0x40] sm:$0xff]  ;;  %v11979_v61 = vsel %vm555_vm0, %v543_v44, %v544_v45 }
  0x90   : > { %9737 = vmatmul.mubr.f32.gmra.mrb[18].mxu1 %v11917_v8  ;;  %10646 = vmatprep.subr.bf16.mxu0 %v11631_v18  ;;  %18196 = vst [vmem:[#allocation37_spill] sm:$0xff] %v11955_v12  ;;  %v830_v8 = vld [vmem:[#allocation3 + $0xb0] sm:$0xff]  ;;  %18200 = vst [vmem:[#allocation41_spill] sm:$0xff] %v11979_v61  ;;  %v11995_v44 = vsel %vm392_vm1, %v342_v6, %v343_v56 }
  0x91   : > { %10698 = vmatpush1.bf16.msra.mxu1 %v10697_v37  ;;  %9739 = vmatprep.mubr.f32.mxu1 %v11924_v32  ;;  %v831_v37 = vld [vmem:[#allocation3 + $0xb8] sm:$0xff]  ;;  %v545_v32 = vrot.slane %v11937_v47, 1  ;;  %18203 = vst [vmem:[#allocation44_spill] sm:$0xff] %v11995_v44  ;;  %v2280_v47 = vld [vmem:[#allocation3 + $0x308] sm:$0xff] }
  0x92   : > { %989 = vmatmul.mubr.f32.gmra.mrb[4].mxu0 %v11933_v46  ;;  %10699 = vmatprep.subr.bf16.mxu1 %v18189_v3  ;;  %v10703_v28 = vpack.c.bf16 %v831_v37, %v830_v8  ;;  %v344_v8 = vrot.slane %v11973_v20, 7  ;;  %v11999_v37 = vld [vmem:[%s11636_s27 + $0x180] sm:$0xff] }
  0x93   : > { %993 = vmatprep.mubr.f32.mxu0 %v11911_v49  ;;  %10648 = vmatpush3.bf16.msra.mxu0 %v11631_v18  ;;  %v11986_v18 = vsel %vm555_vm0, %v544_v45, %v545_v32  ;;  %18204 = vst [vmem:[#allocation45_spill] sm:$0xff] %v11999_v37  ;;  %v12004_v45 = vld [vmem:[%s11636_s27 + $0x48] sm:$0xff]  ;;  %v12010_v6 = vsel %vm555_vm0, %v545_v32, %v546_v23 }
  0x94   : > { %9740 = vmatmul.mubr.f32.gmra.mrb[20].mxu1 %v11948_v15  ;;  %10650 = vmatprep.subr.bf16.mxu0 %v11643_v25  ;;  %18201 = vst [vmem:[#allocation42_spill] sm:$0xff] %v11986_v18  ;;  %v832_v15 = vld [vmem:[#allocation3 + $0xc0] sm:$0xff]  ;;  %18205 = vst [vmem:[#allocation46_spill] sm:$0xff] %v12010_v6  ;;  %v12026_v32 = vsel %vm392_vm1, %v343_v56, %v344_v8 }
  0x95   : > { %10701 = vmatpush1.bf16.msra.mxu1 %v10700_v59  ;;  %9742 = vmatprep.mubr.f32.mxu1 %v11955_v12  ;;  %v833_v59 = vld [vmem:[#allocation3 + $0xc8] sm:$0xff]  ;;  %v547_v12 = vrot.slane %v11968_v0, 1 }
  0x96   : > { %994 = vmatmul.mubr.f32.gmra.mrb[6].mxu0 %v11964_v14  ;;  %10702 = vmatprep.subr.bf16.mxu1 %v18189_v3  ;;  %v10706_v7 = vpack.c.bf16 %v833_v59, %v832_v15  ;;  %v12021_v0 = vld [vmem:[%s11636_s27 + $0x188] sm:$0xff]  ;;  %v345_v15 = vrot.slane %v12004_v45, 7  ;;  %v12030_v59 = vld [vmem:[%s11636_s27 + $0x190] sm:$0xff] }
  0x97   : > { %998 = vmatprep.mubr.f32.mxu0 %v11942_v13  ;;  %10652 = vmatpush3.bf16.msra.mxu0 %v11643_v25  ;;  %v12017_v25 = vsel %vm555_vm0, %v546_v23, %v547_v12  ;;  %18207 = vst [vmem:[#allocation48_spill] sm:$0xff] %v12021_v0  ;;  %18208 = vst [vmem:[#allocation49_spill] sm:$0xff] %v12030_v59  ;;  %v12035_v23 = vld [vmem:[%s11636_s27 + $0x50] sm:$0xff]  ;;  %v12041_v56 = vsel %vm555_vm0, %v547_v12, %v548_v36  ;;  %v550_v11 = vrot.slane %v12021_v0, 1 }
  0x98   : > { %9743 = vmatmul.mubr.f32.gmra.mrb[22].mxu1 %v11979_v61  ;;  %10654 = vmatprep.subr.bf16.mxu0 %v11657_v35  ;;  %18206 = vst [vmem:[#allocation47_spill] sm:$0xff] %v12017_v25  ;;  %v834_v61 = vld [vmem:[#allocation3 + $0xd0] sm:$0xff]  ;;  %18209 = vst [vmem:[#allocation50_spill] sm:$0xff] %v12041_v56  ;;  %v12055_v12 = vsel %vm392_vm1, %v344_v8, %v345_v15 }
  0x99   : > { %10704 = vmatpush1.bf16.msra.mxu1 %v10703_v28  ;;  %9745 = vmatprep.mubr.f32.mxu1 %v11986_v18  ;;  %v835_v28 = vld [vmem:[#allocation3 + $0xd8] sm:$0xff]  ;;  %v549_v18 = vrot.slane %v11999_v37, 1  ;;  %v838_v0 = vld [vmem:[#allocation3 + $0xf0] sm:$0xff] }
  0x9a   : > { %999 = vmatmul.mubr.f32.gmra.mrb[8].mxu0 %v11995_v44  ;;  %10705 = vmatprep.subr.bf16.mxu1 %v18189_v3  ;;  %v10709_v37 = vpack.c.bf16 %v835_v28, %v834_v61  ;;  %v346_v61 = vrot.slane %v12035_v23, 7 }
  0x9b   : > { %1003 = vmatprep.mubr.f32.mxu0 %v11973_v20  ;;  %10656 = vmatpush3.bf16.msra.mxu0 %v11657_v35  ;;  %v12048_v35 = vsel %vm555_vm0, %v548_v36, %v549_v18  ;;  %v12061_v36 = vld [vmem:[%s11636_s27 + $0x58] sm:$0xff]  ;;  %v12067_v8 = vsel %vm555_vm0, %v549_v18, %v550_v11 }
  0x9c   : > { %9746 = vmatmul.mubr.f32.gmra.mrb[24].mxu1 %v12010_v6  ;;  %10658 = vmatprep.subr.bf16.mxu0 %v11669_v42  ;;  %18210 = vst [vmem:[#allocation51_spill] sm:$0xff] %v12048_v35  ;;  %v836_v6 = vld [vmem:[#allocation3 + $0xe0] sm:$0xff]  ;;  %18211 = vst [vmem:[#allocation52_spill] sm:$0xff] %v12067_v8  ;;  %v347_v18 = vrot.slane %v12061_v36, 7 }
  0x9d   : > { %10707 = vmatpush1.bf16.msra.mxu1 %v10706_v7  ;;  %9748 = vmatprep.mubr.f32.mxu1 %v12017_v25  ;;  %v837_v7 = vld [vmem:[#allocation3 + $0xe8] sm:$0xff]  ;;  %v551_v25 = vrot.slane %v12030_v59, 1  ;;  %v12069_v59 = vrot.slane %v279_v41, 1  ;;  %v12086_v41 = vsel %vm392_vm1, %v345_v15, %v346_v61 }
  0x9e   : > { %1004 = vmatmul.mubr.f32.gmra.mrb[10].mxu0 %v12026_v32  ;;  %10708 = vmatprep.subr.bf16.mxu1 %v18189_v3  ;;  %v10712_v28 = vpack.c.bf16 %v837_v7, %v836_v6 }
  0x9f   : > { %1008 = vmatprep.mubr.f32.mxu0 %v12004_v45  ;;  %10660 = vmatpush3.bf16.msra.mxu0 %v11669_v42  ;;  %18212 = vst [vmem:[#allocation53_spill] sm:$0xff] %v12069_v59  ;;  %v12075_v42 = vsel %vm555_vm0, %v550_v11, %v551_v25  ;;  %v12092_v11 = vld [vmem:[%s11636_s27 + $0x60] sm:$0xff]  ;;  %v12099_v6 = vsel %vm555_vm0, %v551_v25, %v12069_v59  ;;  %v12117_v25 = vld [vmem:[%s11636_s27 + $0x68] sm:$0xff] }
  0xa0   : > { %9749 = vmatmul.mubr.f32.gmra.mrb[26].mxu1 %v12041_v56  ;;  %10662 = vmatprep.subr.bf16.mxu0 %v11674_v48  ;;  %18213 = vst [vmem:[#allocation54_spill] sm:$0xff] %v12075_v42  ;;  %v12078_v56 = vld [vmem:[%s11636_s27] sm:$0xff]  ;;  %18216 = vst [vmem:[#allocation57_spill] sm:$0xff] %v12099_v6 }
  0xa1   : > { %10710 = vmatpush1.bf16.msra.mxu1 %v10709_v37  ;;  %9751 = vmatprep.mubr.f32.mxu1 %v12048_v35  ;;  %v839_v37 = vld [vmem:[#allocation3 + $0xf8] sm:$0xff]  ;;  %18214 = vst [vmem:[#allocation55_spill] sm:$0xff] %v12078_v56  ;;  %v12081_v35 = vld [vmem:[%s11636_s27 + $0x1a8] sm:$0xff]  ;;  %v336_v7 = vrot.slane %v12078_v56, 7 }
  0xa2   : > { %1009 = vmatmul.mubr.f32.gmra.mrb[12].mxu0 %v12055_v12  ;;  %10711 = vmatprep.subr.bf16.mxu1 %v18189_v3  ;;  %18215 = vst [vmem:[#allocation56_spill] sm:$0xff] %v12081_v35  ;;  %v10715_v15 = vpack.c.bf16 %v839_v37, %v838_v0  ;;  %v348_v0 = vrot.slane %v12092_v11, 7 }
  0xa3   : > { %1013 = vmatprep.mubr.f32.mxu0 %v12035_v23  ;;  %10664 = vmatpush3.bf16.msra.mxu0 %v11674_v48  ;;  %v17639_v48 = vrot.slane %v12081_v35, 7  ;;  %v349_v35 = vrot.slane %v12117_v25, 7 }
  0xa4   : > { %9752 = vmatmul.mubr.f32.gmra.mrb[28].mxu1 %v12067_v8  ;;  %10666 = vmatprep.subr.bf16.mxu0 %v11679_v54  ;;  %v12106_v8 = vld [vmem:[%s11636_s27 + $0x8] sm:$0xff] }
  0xa5   : > { %10713 = vmatpush1.bf16.msra.mxu1 %v10712_v28  ;;  %9754 = vmatprep.mubr.f32.mxu1 %v12075_v42  ;;  %18217 = vst [vmem:[#allocation58_spill] sm:$0xff] %v12106_v8  ;;  %v2279_v28 = vld [vmem:[#allocation3 + $0x300] sm:$0xff]  ;;  %v12111_v42 = vsel %vm392_vm1, %v346_v61, %v347_v18  ;;  %v12124_v37 = vsel %vm392_vm1, %v17639_v48, %v336_v7  ;;  %v337_v61 = vrot.slane %v12106_v8, 7  ;;  %v12137_v48 = vld [vmem:[%s11636_s27 + $0x70] sm:$0xff] }
  0xa6   : > { %1014 = vmatmul.mubr.f32.gmra.mrb[14].mxu0 %v12086_v41  ;;  %10714 = vmatprep.subr.bf16.mxu1 %v18189_v3  ;;  %18218 = vst [vmem:[#allocation59_spill] sm:$0xff] %v12124_v37  ;;  %v10750_v59 = vpack.c.bf16 %v2280_v47, %v2279_v28 }
  0xa7   : > { %1018 = vmatprep.mubr.f32.mxu0 %v12061_v36  ;;  %10668 = vmatpush3.bf16.msra.mxu0 %v11679_v54  ;;  %v2281_v54 = vld [vmem:[#allocation3 + $0x310] sm:$0xff]  ;;  %v12142_v47 = vsel %vm392_vm1, %v336_v7, %v337_v61  ;;  %v12154_v7 = vld [vmem:[%s11636_s27 + $0x78] sm:$0xff] }
  0xa8   : > { %9755 = vmatmul.mubr.f32.gmra.mrb[30].mxu1 %v12099_v6  ;;  %v2282_v6 = vld [vmem:[#allocation3 + $0x318] sm:$0xff]  ;;  %18219 = vst [vmem:[#allocation60_spill] sm:$0xff] %v12142_v47 }
  0xa9   : > { %10716 = vmatpush1.bf16.msra.mxu1 %v10715_v15  ;;  %1588 = vmatprep.mubr.f32.mxu1 %v12078_v56  ;;  %v12132_v15 = vsel %vm392_vm1, %v347_v18, %v348_v0  ;;  %v10753_v28 = vpack.c.bf16 %v2282_v6, %v2281_v54  ;;  %v2283_v18 = vld [vmem:[#allocation3 + $0x320] sm:$0xff]  ;;  %v2284_v56 = vld [vmem:[#allocation3 + $0x328] sm:$0xff]  ;;  %v2286_v54 = vld [vmem:[#allocation3 + $0x338] sm:$0xff] }
  0xaa   : > { %1019 = vmatmul.mubr.f32.gmra.mrb[16].mxu0 %v12111_v42  ;;  %10749 = vmatprep.subr.bf16.mxu1 %v18189_v3  ;;  %v10756_v6 = vpack.c.bf16 %v2284_v56, %v2283_v18  ;;  %v2288_v18 = vld [vmem:[#allocation3 + $0x348] sm:$0xff] }
  0xab   : > { %1023 = vmatprep.mubr.f32.mxu0 %v12092_v11 }
  0xac   : > { %1589 = vmatmul.mubr.f32.vlgmr.msra.gmra.mrb[32].mxu1 %v12124_v37  ;;  %v12149_v37 = vsel %vm392_vm1, %v348_v0, %v349_v35  ;;  %v2285_v0 = vld [vmem:[#allocation3 + $0x330] sm:$0xff] }
  0xad   : > { %1593 = vmatprep.mubr.f32.mxu1 %v12106_v8  ;;  %10751 = vmatpush1.bf16.msra.mxu1 %v10750_v59  ;;  %v350_v8 = vrot.slane %v12137_v48, 7  ;;  %v12160_v59 = vsel %vm392_vm1, %v337_v61, %v11842_v27  ;;  %v12172_v61 = vld [vmem:[%s11636_s27 + $0x80] sm:$0xff]  ;;  %v10759_v56 = vpack.c.bf16 %v2286_v54, %v2285_v0  ;;  %v2289_v0 = vld [vmem:[#allocation3 + $0x350] sm:$0xff]  ;;  %v2290_v54 = vld [vmem:[#allocation3 + $0x358] sm:$0xff] }
  0xae   : > { %1024 = vmatmul.mubr.f32.gmra.mrb[18].mxu0 %v12132_v15  ;;  %10752 = vmatprep.subr.bf16.mxu1 %v18189_v3  ;;  %18220 = vst [vmem:[#allocation61_spill] sm:$0xff] %v12160_v59  ;;  %v12198_v27 = vld [vmem:[%s11636_s27 + $0x90] sm:$0xff] }
  0xaf   : > { %1028 = vmatprep.mubr.f32.mxu0 %v12117_v25 }
  0xb0   : > { %1594 = vmatmul.mubr.f32.gmra.mrb[34].mxu1 %v12142_v47  ;;  %v12167_v47 = vsel %vm392_vm1, %v349_v35, %v350_v8 }
  0xb1   : > { %1598 = vmatprep.mubr.f32.mxu1 %v11824_v1  ;;  %10754 = vmatpush1.bf16.msra.mxu1 %v10753_v28  ;;  %v351_v1 = vrot.slane %v12154_v7, 7  ;;  %v2287_v28 = vld [vmem:[#allocation3 + $0x340] sm:$0xff] }
  0xb2   : > { %1029 = vmatmul.mubr.f32.gmra.mrb[20].mxu0 %v12149_v37  ;;  %10755 = vmatprep.subr.bf16.mxu1 %v18189_v3 }
  0xb3   : > { %1033 = vmatprep.mubr.f32.mxu0 %v12137_v48  ;;  %v12180_v35 = vsel %vm392_vm1, %v350_v8, %v351_v1 }
  0xb4   : > { %1599 = vmatmul.mubr.f32.gmra.mrb[36].mxu1 %v12160_v59  ;;  %v352_v59 = vrot.slane %v12172_v61, 7 }
  0xb5   : > { %1603 = vmatprep.mubr.f32.mxu1 %v11688_v58  ;;  %10757 = vmatpush1.bf16.msra.mxu1 %v10756_v6  ;;  %v12185_v58 = vld [vmem:[%s11636_s27 + $0x88] sm:$0xff]  ;;  %v10762_v6 = vpack.c.bf16 %v2288_v18, %v2287_v28  ;;  %v2291_v28 = vld [vmem:[#allocation3 + $0x360] sm:$0xff] }
  0xb6   : > { %1034 = vmatmul.mubr.f32.gmra.mrb[22].mxu0 %v12167_v47  ;;  %10758 = vmatprep.subr.bf16.mxu1 %v18189_v3  ;;  %v12193_v8 = vsel %vm392_vm1, %v351_v1, %v352_v59  ;;  %v2292_v18 = vld [vmem:[#allocation3 + $0x368] sm:$0xff] }
  0xb7   : > { %1038 = vmatprep.mubr.f32.mxu0 %v12154_v7 }
  0xb8   : > { %1604 = vmatmul.mubr.f32.gmra.mrb[38].mxu1 %v11872_v51  ;;  %v353_v51 = vrot.slane %v12185_v58, 7 }
  0xb9   : > { %1608 = vmatprep.mubr.f32.mxu1 %v11852_v43  ;;  %10760 = vmatpush1.bf16.msra.mxu1 %v10759_v56  ;;  %v10765_v56 = vpack.c.bf16 %v2290_v54, %v2289_v0  ;;  %v2293_v0 = vld [vmem:[#allocation3 + $0x370] sm:$0xff]  ;;  %v2294_v54 = vld [vmem:[#allocation3 + $0x378] sm:$0xff] }
  0xba   : > { %1039 = vmatmul.mubr.f32.gmra.mrb[24].mxu0 %v12180_v35  ;;  %10761 = vmatprep.subr.bf16.mxu1 %v18189_v3  ;;  %v12206_v1 = vsel %vm392_vm1, %v352_v59, %v353_v51 }
  0xbb   : > { %1043 = vmatprep.mubr.f32.mxu0 %v12172_v61 }
  0xbc   : > { %1609 = vmatmul.mubr.f32.gmra.mrb[40].mxu1 %v11903_v21  ;;  %v354_v21 = vrot.slane %v12198_v27, 7 }
  0xbd   : > { %1613 = vmatprep.mubr.f32.mxu1 %v11881_v10  ;;  %10763 = vmatpush1.bf16.msra.mxu1 %v10762_v6  ;;  %v10768_v6 = vpack.c.bf16 %v2292_v18, %v2291_v28  ;;  %v355_v10 = vrot.slane %v11646_v26, 7  ;;  %v2296_v28 = vld [vmem:[#allocation3 + $0x388] sm:$0xff]  ;;  %v356_v18 = vrot.slane %v11649_v30, 7 }
  0xbe   : > { %1044 = vmatmul.mubr.f32.gmra.mrb[26].mxu0 %v12193_v8  ;;  %10764 = vmatprep.subr.bf16.mxu1 %v18189_v3  ;;  %v12216_v59 = vsel %vm392_vm1, %v353_v51, %v354_v21 }
  0xbf   : > { %1048 = vmatprep.mubr.f32.mxu0 %v12185_v58  ;;  %v12226_v51 = vsel %vm392_vm1, %v354_v21, %v355_v10  ;;  %v12238_v21 = vsel %vm392_vm1, %v355_v10, %v356_v18 }
  0xc0   : > { %1614 = vmatmul.mubr.f32.gmra.mrb[42].mxu1 %v11933_v46  ;;  %v10771_v46 = vpack.c.bf16 %v2294_v54, %v2293_v0  ;;  %v2297_v54 = vld [vmem:[#allocation3 + $0x390] sm:$0xff] }
  0xc1   : > { %1618 = vmatprep.mubr.f32.mxu1 %v11911_v49  ;;  %10766 = vmatpush1.bf16.msra.mxu1 %v10765_v56  ;;  %v2295_v56 = vld [vmem:[#allocation3 + $0x380] sm:$0xff] }
  0xc2   : > { %1049 = vmatmul.mubr.f32.gmra.mrb[28].mxu0 %v12206_v1  ;;  %10767 = vmatprep.subr.bf16.mxu1 %v18189_v3 }
  0xc3   : > { %1053 = vmatprep.mubr.f32.mxu0 %v12198_v27 }
  0xc4   : > { %1619 = vmatmul.mubr.f32.gmra.mrb[44].mxu1 %v11964_v14  ;;  %v840_v14 = vld [vmem:[#allocation3 + $0x100] sm:$0xff] }
  0xc5   : > { %1623 = vmatprep.mubr.f32.mxu1 %v11942_v13  ;;  %10769 = vmatpush1.bf16.msra.mxu1 %v10768_v6  ;;  %v841_v13 = vld [vmem:[#allocation3 + $0x108] sm:$0xff]  ;;  %v10774_v6 = vpack.c.bf16 %v2296_v28, %v2295_v56  ;;  %v2301_v56 = vld [vmem:[#allocation3 + $0x3b0] sm:$0xff]  ;;  %v2302_v28 = vld [vmem:[#allocation3 + $0x3b8] sm:$0xff] }
  0xc6   : > { %1054 = vmatmul.mubr.f32.gmra.mrb[30].mxu0 %v12216_v59  ;;  %10770 = vmatprep.subr.bf16.mxu1 %v18189_v3  ;;  %v12231_v0 = vpack.c.bf16 %v841_v13, %v840_v14  ;;  %v2299_v14 = vld [vmem:[#allocation3 + $0x3a0] sm:$0xff] }
  0xc7   : > { %1058 = vmatprep.mubr.f32.mxu0 %v11646_v26  ;;  %v2298_v26 = vld [vmem:[#allocation3 + $0x398] sm:$0xff] }
  0xc8   : > { %1624 = vmatmul.mubr.f32.gmra.mrb[46].mxu1 %v11995_v44  ;;  %v357_v44 = vrot.slane %v11682_v55, 7  ;;  %10718 = vmatprep.subr.bf16.mxu0 %v12231_v0  ;;  %v10777_v13 = vpack.c.bf16 %v2298_v26, %v2297_v54  ;;  %v2303_v54 = vld [vmem:[#allocation3 + $0x3c0] sm:$0xff] }
  0xc9   : > { %1628 = vmatprep.mubr.f32.mxu1 %v11973_v20  ;;  %10772 = vmatpush1.bf16.msra.mxu1 %v10771_v46  ;;  %v358_v46 = vrot.slane %v11685_v57, 7 }
  0xca   : > { %1059 = vmatmul.mubr.f32.gmra.mrb[32].mxu0 %v12226_v51  ;;  %10773 = vmatprep.subr.bf16.mxu1 %v18189_v3  ;;  %v12249_v10 = vsel %vm392_vm1, %v356_v18, %v357_v44  ;;  %v359_v18 = vrot.slane %v11697_v2, 7 }
  0xcb   : > { %1063 = vmatprep.mubr.f32.mxu0 %v11649_v30  ;;  %v2300_v30 = vld [vmem:[#allocation3 + $0x3a8] sm:$0xff] }
  0xcc   : > { %1629 = vmatmul.mubr.f32.gmra.mrb[48].mxu1 %v12026_v32  ;;  %v10780_v26 = vpack.c.bf16 %v2300_v30, %v2299_v14  ;;  %v2305_v30 = vld [vmem:[#allocation3 + $0x3d0] sm:$0xff] }
  0xcd   : > { %1633 = vmatprep.mubr.f32.mxu1 %v12004_v45  ;;  %10775 = vmatpush1.bf16.msra.mxu1 %v10774_v6  ;;  %v10783_v6 = vpack.c.bf16 %v2302_v28, %v2301_v56  ;;  %v2307_v28 = vld [vmem:[#allocation3 + $0x3e0] sm:$0xff] }
  0xce   : > { %1064 = vmatmul.mubr.f32.gmra.mrb[34].mxu0 %v12238_v21  ;;  %10776 = vmatprep.subr.bf16.mxu1 %v18189_v3 }
  0xcf   : > { %1068 = vmatprep.mubr.f32.mxu0 %v11682_v55  ;;  %v12259_v55 = vsel %vm392_vm1, %v357_v44, %v358_v46  ;;  %v360_v44 = vrot.slane %v11700_v4, 7 }
  0xd0   : > { %1634 = vmatmul.mubr.f32.gmra.mrb[50].mxu1 %v12055_v12 }
  0xd1   : > { %1638 = vmatprep.mubr.f32.mxu1 %v12035_v23  ;;  %10778 = vmatpush1.bf16.msra.mxu1 %v10777_v13  ;;  %v2304_v13 = vld [vmem:[#allocation3 + $0x3c8] sm:$0xff] }
  0xd2   : > { %1069 = vmatmul.mubr.f32.gmra.mrb[36].mxu0 %v12249_v10  ;;  %10779 = vmatprep.subr.bf16.mxu1 %v18189_v3  ;;  %v10786_v14 = vpack.c.bf16 %v2304_v13, %v2303_v54  ;;  %v363_v13 = vrot.slane %v11736_v34, 7 }
  0xd3   : > { %1073 = vmatprep.mubr.f32.mxu0 %v11685_v57  ;;  %v12269_v57 = vsel %vm392_vm1, %v358_v46, %v359_v18  ;;  %v361_v46 = vrot.slane %v11716_v16, 7 }
  0xd4   : > { %1639 = vmatmul.mubr.f32.gmra.mrb[52].mxu1 %v12086_v41  ;;  %18221 = vst [vmem:[#allocation62_spill] sm:$0xff] %v12269_v57 }
  0xd5   : > { %1643 = vmatprep.mubr.f32.mxu1 %v12061_v36  ;;  %10781 = vmatpush1.bf16.msra.mxu1 %v10780_v26  ;;  %v2306_v26 = vld [vmem:[#allocation3 + $0x3d8] sm:$0xff] }
  0xd6   : > { %1074 = vmatmul.mubr.f32.gmra.mrb[38].mxu0 %v12259_v55  ;;  %10782 = vmatprep.subr.bf16.mxu1 %v18189_v3  ;;  %v10789_v56 = vpack.c.bf16 %v2306_v26, %v2305_v30  ;;  %v364_v26 = vrot.slane %v11739_v38, 7 }
  0xd7   : > { %1078 = vmatprep.mubr.f32.mxu0 %v11697_v2  ;;  %v12279_v2 = vsel %vm392_vm1, %v359_v18, %v360_v44  ;;  %v362_v18 = vrot.slane %v11719_v19, 7 }
  0xd8   : > { %1644 = vmatmul.mubr.f32.gmra.mrb[54].mxu1 %v12111_v42  ;;  %18222 = vst [vmem:[#allocation63_spill] sm:$0xff] %v12279_v2 }
  0xd9   : > { %1648 = vmatprep.mubr.f32.mxu1 %v12092_v11  ;;  %10784 = vmatpush1.bf16.msra.mxu1 %v10783_v6  ;;  %v2308_v6 = vld [vmem:[#allocation3 + $0x3e8] sm:$0xff] }
  0xda   : > { %1079 = vmatmul.mubr.f32.gmra.mrb[40].mxu0 %v12269_v57  ;;  %10785 = vmatprep.subr.bf16.mxu1 %v18189_v3  ;;  %v10792_v54 = vpack.c.bf16 %v2308_v6, %v2307_v28  ;;  %v12341_v6 = vld [vmem:[%s11636_s27 + $0x98] sm:$0xff] }
  0xdb   : > { %1083 = vmatprep.mubr.f32.mxu0 %v11700_v4  ;;  %v12289_v4 = vsel %vm392_vm1, %v360_v44, %v361_v46  ;;  %v2309_v44 = vld [vmem:[#allocation3 + $0x3f0] sm:$0xff] }
  0xdc   : > { %1649 = vmatmul.mubr.f32.gmra.mrb[56].mxu1 %v12132_v15  ;;  %18223 = vst [vmem:[#allocation64_spill] sm:$0xff] %v12289_v4 }
  0xdd   : > { %1653 = vmatprep.mubr.f32.mxu1 %v12117_v25  ;;  %10787 = vmatpush1.bf16.msra.mxu1 %v10786_v14  ;;  %v2310_v14 = vld [vmem:[#allocation3 + $0x3f8] sm:$0xff] }
  0xde   : > { %1084 = vmatmul.mubr.f32.gmra.mrb[42].mxu0 %v12279_v2  ;;  %10788 = vmatprep.subr.bf16.mxu1 %v18189_v3  ;;  %v10795_v30 = vpack.c.bf16 %v2310_v14, %v2309_v44  ;;  %v12365_v44 = vld [vmem:[%s11636_s27 + $0xa8] sm:$0xff]  ;;  %v370_v14 = vrot.slane %v11799_v33, 7 }
  0xdf   : > { %1088 = vmatprep.mubr.f32.mxu0 %v11716_v16  ;;  %v12299_v16 = vsel %vm392_vm1, %v361_v46, %v362_v18  ;;  %v12318_v46 = vsel %vm392_vm1, %v363_v13, %v364_v26 }
  0xe0   : > { %1654 = vmatmul.mubr.f32.gmra.mrb[58].mxu1 %v12149_v37  ;;  %18224 = vst [vmem:[#allocation65_spill] sm:$0xff] %v12299_v16  ;;  %18226 = vst [vmem:[#allocation67_spill] sm:$0xff] %v12318_v46 }
  0xe1   : > { %1658 = vmatprep.mubr.f32.mxu1 %v12137_v48  ;;  %10790 = vmatpush1.bf16.msra.mxu1 %v10789_v56 }
  0xe2   : > { %1089 = vmatmul.mubr.f32.gmra.mrb[44].mxu0 %v12289_v4  ;;  %10791 = vmatprep.subr.bf16.mxu1 %v18189_v3 }
  0xe3   : > { %1093 = vmatprep.mubr.f32.mxu0 %v11719_v19  ;;  %v12309_v19 = vsel %vm392_vm1, %v362_v18, %v363_v13  ;;  %v368_v18 = vrot.slane %v11779_v9, 7  ;;  %v369_v13 = vrot.slane %v11796_v29, 7 }
  0xe4   : > { %1659 = vmatmul.mubr.f32.gmra.mrb[60].mxu1 %v12167_v47  ;;  %18225 = vst [vmem:[#allocation66_spill] sm:$0xff] %v12309_v19 }
  0xe5   : > { %1663 = vmatprep.mubr.f32.mxu1 %v12154_v7  ;;  %10793 = vmatpush1.bf16.msra.mxu1 %v10792_v54  ;;  %v12353_v54 = vld [vmem:[%s11636_s27 + $0xa0] sm:$0xff] }
  0xe6   : > { %1094 = vmatmul.mubr.f32.gmra.mrb[46].mxu0 %v12299_v16  ;;  %10794 = vmatprep.subr.bf16.mxu1 %v18189_v3 }
  0xe7   : > { %1098 = vmatprep.mubr.f32.mxu0 %v11736_v34  ;;  %v365_v34 = vrot.slane %v11756_v50, 7 }
  0xe8   : > { %1664 = vmatmul.mubr.f32.gmra.mrb[62].mxu1 %v12180_v35 }
  0xe9   : > { %1668 = vmatprep.mubr.f32.mxu1 %v12172_v61  ;;  %10796 = vmatpush1.bf16.msra.mxu1 %v10795_v30  ;;  %v12327_v56 = vsel %vm392_vm1, %v364_v26, %v365_v34  ;;  %v12377_v30 = vld [vmem:[%s11636_s27 + $0xb0] sm:$0xff]  ;;  %v12384_v26 = vsel %vm392_vm1, %v369_v13, %v370_v14 }
  0xea   : > { %1099 = vmatmul.mubr.f32.gmra.mrb[48].mxu0 %v12309_v19  ;;  %18227 = vst [vmem:[#allocation68_spill] sm:$0xff] %v12327_v56  ;;  %18232 = vst [vmem:[#allocation73_spill] sm:$0xff] %v12384_v26 }
  0xeb   : > { %1103 = vmatprep.mubr.f32.mxu0 %v11739_v38  ;;  %v366_v38 = vrot.slane %v11759_v52, 7 }
  0xec   : > { %1669 = vmatmul.mubr.f32.gmra.mrb[64].mxu1 %v12193_v8 }
  0xed   : > { %1673 = vmatprep.mubr.f32.mxu1 %v12185_v58  ;;  %v12336_v28 = vsel %vm392_vm1, %v365_v34, %v366_v38  ;;  %v371_v34 = vrot.slane %v11816_v53, 7 }
  0xee   : > { %1104 = vmatmul.mubr.f32.gmra.mrb[50].mxu0 %v12318_v46  ;;  %18228 = vst [vmem:[#allocation69_spill] sm:$0xff] %v12336_v28 }
  0xef   : > { %1108 = vmatprep.mubr.f32.mxu0 %v11756_v50  ;;  %v367_v50 = vrot.slane %v11776_v5, 7 }
  0xf0   : > { %1674 = vmatmul.mubr.f32.gmra.mrb[66].mxu1 %v12206_v1 }
  0xf1   : > { %1678 = vmatprep.mubr.f32.mxu1 %v12198_v27 }
  0xf2   : > { %1109 = vmatmul.mubr.f32.gmra.mrb[52].mxu0 %v12327_v56 }
  0xf3   : > { %1113 = vmatprep.mubr.f32.mxu0 %v11759_v52  ;;  %v12348_v52 = vsel %vm392_vm1, %v366_v38, %v367_v50  ;;  %v12389_v38 = vld [vmem:[%s11636_s27 + $0xb8] sm:$0xff] }
  0xf4   : > { %1679 = vmatmul.mubr.f32.gmra.mrb[68].mxu1 %v12216_v59  ;;  %18229 = vst [vmem:[#allocation70_spill] sm:$0xff] %v12348_v52  ;;  %18233 = vst [vmem:[#allocation74_spill] sm:$0xff] %v12389_v38 }
  0xf5   : > { %1683 = vmatprep.mubr.f32.mxu1 %v12341_v6 }
  0xf6   : > { %1114 = vmatmul.mubr.f32.gmra.mrb[54].mxu0 %v12336_v28 }
  0xf7   : > { %1118 = vmatprep.mubr.f32.mxu0 %v11776_v5  ;;  %v12360_v5 = vsel %vm392_vm1, %v367_v50, %v368_v18  ;;  %v372_v50 = vrot.slane %v11819_v60, 7 }
  0xf8   : > { %1684 = vmatmul.mubr.f32.gmra.mrb[70].mxu1 %v12226_v51  ;;  %18230 = vst [vmem:[#allocation71_spill] sm:$0xff] %v12360_v5 }
  0xf9   : > { %1688 = vmatprep.mubr.f32.mxu1 %v12353_v54 }
  0xfa   : > { %1119 = vmatmul.mubr.f32.gmra.mrb[56].mxu0 %v12348_v52 }
  0xfb   : > { %1123 = vmatprep.mubr.f32.mxu0 %v11779_v9  ;;  %v12372_v9 = vsel %vm392_vm1, %v368_v18, %v369_v13  ;;  %v12401_v18 = vld [vmem:[%s11636_s27 + $0xc0] sm:$0xff]  ;;  %v12408_v13 = vsel %vm392_vm1, %v371_v34, %v372_v50 }
  0xfc   : > { %1689 = vmatmul.mubr.f32.gmra.mrb[72].mxu1 %v12238_v21  ;;  %18231 = vst [vmem:[#allocation72_spill] sm:$0xff] %v12372_v9  ;;  %18235 = vst [vmem:[#allocation76_spill] sm:$0xff] %v12401_v18 }
  0xfd   : > { %1693 = vmatprep.mubr.f32.mxu1 %v12365_v44  ;;  %18236 = vst [vmem:[#allocation77_spill] sm:$0xff] %v12408_v13 }
  0xfe   : > { %1124 = vmatmul.mubr.f32.gmra.mrb[58].mxu0 %v12360_v5 }
  0xff   : > { %1128 = vmatprep.mubr.f32.mxu0 %v11796_v29 }
 0x100   : > { %1694 = vmatmul.mubr.f32.gmra.mrb[74].mxu1 %v12249_v10 }
 0x101   : > { %1698 = vmatprep.mubr.f32.mxu1 %v12377_v30 }
 0x102   : > { %1129 = vmatmul.mubr.f32.gmra.mrb[60].mxu0 %v12372_v9 }
 0x103   : > { %1133 = vmatprep.mubr.f32.mxu0 %v11799_v33  ;;  %v12396_v33 = vsel %vm392_vm1, %v370_v14, %v371_v34  ;;  %v373_v14 = vrot.slane %v11839_v24, 7  ;;  %v374_v34 = vrot.slane %v11846_v39, 7 }
 0x104   : > { %1699 = vmatmul.mubr.f32.gmra.mrb[76].mxu1 %v12259_v55  ;;  %18234 = vst [vmem:[#allocation75_spill] sm:$0xff] %v12396_v33 }
 0x105   : > { %1703 = vmatprep.mubr.f32.mxu1 %v12389_v38  ;;  %v12413_v38 = vld [vmem:[%s11636_s27 + $0xc8] sm:$0xff] }
 0x106   : > { %1134 = vmatmul.mubr.f32.gmra.mrb[62].mxu0 %v12384_v26  ;;  %18237 = vst [vmem:[#allocation78_spill] sm:$0xff] %v12413_v38 }
 0x107   : > { %1138 = vmatprep.mubr.f32.mxu0 %v11816_v53 }
 0x108   : > { %1704 = vmatmul.mubr.f32.gmra.mrb[78].mxu1 %v12269_v57  ;;  %v12425_v57 = vld [vmem:[%s11636_s27 + $0xd0] sm:$0xff] }
 0x109   : > { %1708 = vmatprep.mubr.f32.mxu1 %v12401_v18  ;;  %v12420_v18 = vsel %vm392_vm1, %v372_v50, %v373_v14  ;;  %18239 = vst [vmem:[#allocation80_spill] sm:$0xff] %v12425_v57  ;;  %v375_v50 = vrot.slane %v11867_v31, 7 }
 0x10a   : > { %1139 = vmatmul.mubr.f32.gmra.mrb[64].mxu0 %v12396_v33  ;;  %18238 = vst [vmem:[#allocation79_spill] sm:$0xff] %v12420_v18 }
 0x10b   : > { %1143 = vmatprep.mubr.f32.mxu0 %v11819_v60 }
 0x10c   : > { %1709 = vmatmul.mubr.f32.gmra.mrb[80].mxu1 %v12279_v2  ;;  %v12437_v2 = vld [vmem:[%s11636_s27 + $0xd8] sm:$0xff] }
 0x10d   : > { %1713 = vmatprep.mubr.f32.mxu1 %v12413_v38  ;;  %v12432_v38 = vsel %vm392_vm1, %v373_v14, %v374_v34  ;;  %18241 = vst [vmem:[#allocation82_spill] sm:$0xff] %v12437_v2  ;;  %v376_v14 = vrot.slane %v11876_v17, 7 }
 0x10e   : > { %1144 = vmatmul.mubr.f32.gmra.mrb[66].mxu0 %v12408_v13  ;;  %18240 = vst [vmem:[#allocation81_spill] sm:$0xff] %v12432_v38 }
 0x10f   : > { %1148 = vmatprep.mubr.f32.mxu0 %v11839_v24 }
 0x110   : > { %1714 = vmatmul.mubr.f32.gmra.mrb[82].mxu1 %v12289_v4  ;;  %v12449_v4 = vld [vmem:[%s11636_s27 + $0xe0] sm:$0xff] }
 0x111   : > { %1718 = vmatprep.mubr.f32.mxu1 %v12425_v57  ;;  %v12444_v57 = vsel %vm392_vm1, %v374_v34, %v375_v50  ;;  %18243 = vst [vmem:[#allocation84_spill] sm:$0xff] %v12449_v4  ;;  %v377_v34 = vrot.slane %v11897_v40, 7 }
 0x112   : > { %1149 = vmatmul.mubr.f32.gmra.mrb[68].mxu0 %v12420_v18  ;;  %18242 = vst [vmem:[#allocation83_spill] sm:$0xff] %v12444_v57 }
 0x113   : > { %1153 = vmatprep.mubr.f32.mxu0 %v11846_v39 }
 0x114   : > { %1719 = vmatmul.mubr.f32.gmra.mrb[84].mxu1 %v12299_v16  ;;  %v12461_v16 = vld [vmem:[%s11636_s27 + $0xe8] sm:$0xff] }
 0x115   : > { %1723 = vmatprep.mubr.f32.mxu1 %v12437_v2  ;;  %v12456_v2 = vsel %vm392_vm1, %v375_v50, %v376_v14  ;;  %18245 = vst [vmem:[#allocation86_spill] sm:$0xff] %v12461_v16  ;;  %v378_v50 = vrot.slane %v11907_v63, 7 }
 0x116   : > { %1154 = vmatmul.mubr.f32.gmra.mrb[70].mxu0 %v12432_v38  ;;  %18244 = vst [vmem:[#allocation85_spill] sm:$0xff] %v12456_v2 }
 0x117   : > { %1158 = vmatprep.mubr.f32.mxu0 %v11867_v31 }
 0x118   : > { %1724 = vmatmul.mubr.f32.gmra.mrb[86].mxu1 %v12309_v19  ;;  %v12473_v19 = vld [vmem:[%s11636_s27 + $0xf0] sm:$0xff] }
 0x119   : > { %1728 = vmatprep.mubr.f32.mxu1 %v12449_v4  ;;  %v12468_v4 = vsel %vm392_vm1, %v376_v14, %v377_v34  ;;  %18247 = vst [vmem:[#allocation88_spill] sm:$0xff] %v12473_v19  ;;  %v379_v14 = vrot.slane %v11928_v62, 7 }
 0x11a   : > { %1159 = vmatmul.mubr.f32.gmra.mrb[72].mxu0 %v12444_v57  ;;  %18246 = vst [vmem:[#allocation87_spill] sm:$0xff] %v12468_v4 }
 0x11b   : > { %1163 = vmatprep.mubr.f32.mxu0 %v11876_v17 }
 0x11c   : > { %1729 = vmatmul.mubr.f32.gmra.mrb[88].mxu1 %v12318_v46  ;;  %v12485_v46 = vld [vmem:[%s11636_s27 + $0xf8] sm:$0xff] }
 0x11d   : > { %1733 = vmatprep.mubr.f32.mxu1 %v12461_v16  ;;  %v12480_v16 = vsel %vm392_vm1, %v377_v34, %v378_v50  ;;  %18249 = vst [vmem:[#allocation90_spill] sm:$0xff] %v12485_v46 }
 0x11e   : > { %1164 = vmatmul.mubr.f32.gmra.mrb[74].mxu0 %v12456_v2  ;;  %18248 = vst [vmem:[#allocation89_spill] sm:$0xff] %v12480_v16 }
 0x11f   : > { %1168 = vmatprep.mubr.f32.mxu0 %v11897_v40 }
 0x120   : > { %1734 = vmatmul.mubr.f32.gmra.mrb[90].mxu1 %v12327_v56  ;;  %v12497_v56 = vld [vmem:[%s11636_s27 + $0x100] sm:$0xff] }
 0x121   : > { %1738 = vmatprep.mubr.f32.mxu1 %v12473_v19  ;;  %v12492_v19 = vsel %vm392_vm1, %v378_v50, %v379_v14 }
 0x122   : > { %1169 = vmatmul.mubr.f32.gmra.mrb[76].mxu0 %v12468_v4  ;;  %18250 = vst [vmem:[#allocation91_spill] sm:$0xff] %v12492_v19 }
 0x123   : > { %1173 = vmatprep.mubr.f32.mxu0 %v11907_v63  ;;  %v18251_v63 = vld [vmem:[#allocation34_spill] sm:$0xff] }
 0x124   : > { %1739 = vmatmul.mubr.f32.gmra.mrb[92].mxu1 %v12336_v28  ;;  %v380_v34 = vrot.slane %v18251_v63, 7  ;;  %18252 = vst [vmem:[#allocation34_spill] sm:$0xff] %v12497_v56  ;;  %v844_v28 = vld [vmem:[#allocation3 + $0x120] sm:$0xff] }
 0x125   : > { %1743 = vmatprep.mubr.f32.mxu1 %v12485_v46  ;;  %v18254_v46 = vld [vmem:[#allocation38_spill] sm:$0xff] }
 0x126   : > { %1174 = vmatmul.mubr.f32.gmra.mrb[78].mxu0 %v12480_v16  ;;  %v381_v50 = vrot.slane %v18254_v46, 7 }
 0x127   : > { %1178 = vmatprep.mubr.f32.mxu0 %v11928_v62  ;;  %v12504_v62 = vsel %vm392_vm1, %v379_v14, %v380_v34  ;;  %v12518_v14 = vld [vmem:[%s11636_s27 + $0x110] sm:$0xff] }
 0x128   : > { %1744 = vmatmul.mubr.f32.gmra.mrb[94].mxu1 %v12348_v52  ;;  %18253 = vst [vmem:[#allocation92_spill] sm:$0xff] %v12504_v62  ;;  %v18256_v52 = vld [vmem:[#allocation40_spill] sm:$0xff] }
 0x129   : > { %1748 = vmatprep.mubr.f32.mxu1 %v12497_v56  ;;  %v12513_v56 = vsel %vm392_vm1, %v380_v34, %v381_v50  ;;  %18257 = vst [vmem:[#allocation40_spill] sm:$0xff] %v12518_v14 }
 0x12a   : > { %1179 = vmatmul.mubr.f32.gmra.mrb[80].mxu0 %v12492_v19  ;;  %18255 = vst [vmem:[#allocation38_spill] sm:$0xff] %v12513_v56 }
 0x12b   : > { %1183 = vmatprep.mubr.f32.mxu0 %v18251_v63  ;;  %v382_v63 = vrot.slane %v18256_v52, 7 }
 0x12c   : > { %1749 = vmatmul.mubr.f32.gmra.mrb[96].mxu1 %v12360_v5 }
 0x12d   : > { %1753 = vmatprep.mubr.f32.mxu1 %v11796_v29  ;;  %v12525_v29 = vsel %vm392_vm1, %v381_v50, %v382_v63  ;;  %v18263_v50 = vld [vmem:[#allocation48_spill] sm:$0xff] }
 0x12e   : > { %1184 = vmatmul.mubr.f32.gmra.mrb[82].mxu0 %v12504_v62  ;;  %18258 = vst [vmem:[#allocation93_spill] sm:$0xff] %v12525_v29 }
 0x12f   : > { %1188 = vmatprep.mubr.f32.mxu0 %v18254_v46  ;;  %v18259_v46 = vld [vmem:[#allocation43_spill] sm:$0xff] }
 0x130   : > { %1754 = vmatmul.mubr.f32.gmra.mrb[98].mxu1 %v12372_v9  ;;  %v383_v5 = vrot.slane %v18259_v46, 7 }
 0x131   : > { %1758 = vmatprep.mubr.f32.mxu1 %v12518_v14  ;;  %v18261_v14 = vld [vmem:[#allocation45_spill] sm:$0xff] }
 0x132   : > { %1189 = vmatmul.mubr.f32.gmra.mrb[84].mxu0 %v12513_v56  ;;  %v12534_v34 = vsel %vm392_vm1, %v382_v63, %v383_v5 }
 0x133   : > { %1193 = vmatprep.mubr.f32.mxu0 %v18256_v52  ;;  %18260 = vst [vmem:[#allocation43_spill] sm:$0xff] %v12534_v34  ;;  %v384_v52 = vrot.slane %v18261_v14, 7 }
 0x134   : > { %1759 = vmatmul.mubr.f32.gmra.mrb[100].mxu1 %v12384_v26  ;;  %v12561_v26 = vld [vmem:[%s11636_s27 + $0x18] sm:$0xff] }
 0x135   : > { %1763 = vmatprep.mubr.f32.mxu1 %v11816_v53  ;;  %v12543_v53 = vsel %vm392_vm1, %v383_v5, %v384_v52 }
 0x136   : > { %1194 = vmatmul.mubr.f32.gmra.mrb[86].mxu0 %v12525_v29  ;;  %18262 = vst [vmem:[#allocation45_spill] sm:$0xff] %v12543_v53 }
 0x137   : > { %1198 = vmatprep.mubr.f32.mxu0 %v18259_v46  ;;  %v385_v46 = vrot.slane %v18263_v50, 7 }
 0x138   : > { %1764 = vmatmul.mubr.f32.gmra.mrb[102].mxu1 %v12396_v33 }
 0x139   : > { %1768 = vmatprep.mubr.f32.mxu1 %v11819_v60  ;;  %v12554_v60 = vsel %vm392_vm1, %v384_v52, %v385_v46 }
 0x13a   : > { %1199 = vmatmul.mubr.f32.gmra.mrb[88].mxu0 %v12534_v34  ;;  %18264 = vst [vmem:[#allocation48_spill] sm:$0xff] %v12554_v60 }
 0x13b   : > { %1203 = vmatprep.mubr.f32.mxu0 %v18261_v14  ;;  %v18265_v14 = vld [vmem:[#allocation49_spill] sm:$0xff] }
 0x13c   : > { %1769 = vmatmul.mubr.f32.gmra.mrb[104].mxu1 %v12408_v13  ;;  %v17683_v33 = vrot.slane %v18265_v14, 7 }
 0x13d   : > { %1773 = vmatprep.mubr.f32.mxu1 %v11839_v24 }
 0x13e   : > { %1204 = vmatmul.mubr.f32.gmra.mrb[90].mxu0 %v12543_v53  ;;  %v505_v53 = vrot.slane %v11852_v43, 1 }
 0x13f   : > { %1208 = vmatprep.mubr.f32.mxu0 %v18263_v50  ;;  %v12550_v63 = vpop.f32.mrb[0].mxu1  ;;  %v18266_v50 = vld [vmem:[#allocation29_spill] sm:$0xff] }
 0x140   : > { %1774 = vmatmul.mubr.f32.gmra.mrb[106].mxu1 %v12420_v18  ;;  %v12558_v5 = vpop.f32.mrb[1].mxu1  ;;  %v506_v13 = vrot.slane %v18266_v50, 1  ;;  %v12575_v18 = vsel %vm392_vm1, %v385_v46, %v17683_v33  ;;  %v507_v50 = vrot.slane %v11911_v49, 1 }
 0x141   : > { %1778 = vmatprep.mubr.f32.mxu1 %v11846_v39  ;;  %18267 = vst [vmem:[#allocation29_spill] sm:$0xff] %v12575_v18  ;;  %v18268_v39 = vrot.slane %v12561_v26, 1 }
 0x142   : > { %1209 = vmatmul.mubr.f32.gmra.mrb[92].mxu0 %v12554_v60  ;;  %v842_v60 = vld [vmem:[#allocation3 + $0x110] sm:$0xff]  ;;  %v12594_v33 = vsel %vm555_vm0, %v505_v53, %v506_v13 }
 0x143   : > { %1213 = vmatprep.mubr.f32.mxu0 %v18265_v14  ;;  %v12569_v52 = vpop.f32.mrb[2].mxu1  ;;  %v12584_v43 = vsel %vm555_vm0, %v18268_v39, %v505_v53  ;;  %v843_v14 = vld [vmem:[#allocation3 + $0x118] sm:$0xff] }
 0x144   : > { %1779 = vmatmul.mubr.f32.gmra.mrb[108].mxu1 %v12432_v38  ;;  %v12578_v24 = vpop.f32.mrb[3].mxu1  ;;  %v18270_v38 = vld [vmem:[#allocation35_spill] sm:$0xff]  ;;  %v10721_v49 = vpack.c.bf16 %v843_v14, %v842_v60  ;;  %v511_v60 = vrot.slane %v12035_v23, 1 }
 0x145   : > { %1783 = vmatprep.mubr.f32.mxu1 %v11867_v31  ;;  %v508_v9 = vrot.slane %v18270_v38, 1  ;;  %v12602_v31 = vsel %vm555_vm0, %v506_v13, %v507_v50  ;;  %v510_v13 = vrot.slane %v12004_v45, 1  ;;  %v846_v14 = vld [vmem:[#allocation3 + $0x130] sm:$0xff] }
 0x146   : > { %1214 = vmatmul.mubr.f32.gmra.mrb[94].mxu0 %v12575_v18  ;;  %v509_v18 = vrot.slane %v11973_v20, 1 }
 0x147   : > { %9685 = vmatprep.mubr.f32.mxu0 %v12584_v43  ;;  %v12590_v46 = vpop.f32.mrb[4].mxu1  ;;  %v12613_v53 = vsel %vm555_vm0, %v507_v50, %v508_v9  ;;  %v847_v50 = vld [vmem:[#allocation3 + $0x138] sm:$0xff] }
 0x148   : > { %18269 = vst [vmem:[#allocation94_spill] sm:$0xff] %v12590_v46  ;;  %1784 = vmatmul.mubr.f32.gmra.mrb[110].mxu1 %v12444_v57  ;;  %v12598_v39 = vpop.f32.mrb[5].mxu1  ;;  %v845_v46 = vld [vmem:[#allocation3 + $0x128] sm:$0xff]  ;;  %v848_v57 = vld [vmem:[#allocation3 + $0x140] sm:$0xff] }
 0x149   : > { %1788 = vmatprep.mubr.f32.mxu1 %v11876_v17  ;;  %v12621_v17 = vsel %vm555_vm0, %v508_v9, %v509_v18  ;;  %v10729_v9 = vpack.c.bf16 %v847_v50, %v846_v14  ;;  %v515_v50 = vrot.slane %v12137_v48, 1 }
 0x14a   : > { %9686 = vmatmul.mubr.f32.vlgmr.msra.gmra.mrb[96].mxu0 %v12594_v33 }
 0x14b   : > { %10720 = vmatpush3.bf16.msra.mxu0 %v12231_v0  ;;  %9688 = vmatprep.mubr.f32.mxu0 %v12602_v31  ;;  %v12609_v38 = vpop.f32.mrb[6].mxu1  ;;  %v10725_v0 = vpack.c.bf16 %v845_v46, %v844_v28  ;;  %v512_v28 = vrot.slane %v12061_v36, 1  ;;  %v513_v46 = vrot.slane %v12092_v11, 1 }
 0x14c   : > { %1789 = vmatmul.mubr.f32.gmra.mrb[112].mxu1 %v12456_v2  ;;  %v12617_v20 = vpop.f32.mrb[7].mxu1  ;;  %10722 = vmatprep.subr.bf16.mxu0 %v10721_v49  ;;  %v12631_v2 = vsel %vm555_vm0, %v509_v18, %v510_v13  ;;  %v849_v18 = vld [vmem:[#allocation3 + $0x148] sm:$0xff] }
 0x14d   : > { %1793 = vmatprep.mubr.f32.mxu1 %v11897_v40  ;;  %v12639_v40 = vsel %vm555_vm0, %v510_v13, %v511_v60  ;;  %v514_v13 = vrot.slane %v12117_v25, 1  ;;  %v12657_v14 = vsel %vm555_vm0, %v512_v28, %v513_v46 }
 0x14e   : > { %9689 = vmatmul.mubr.f32.gmra.mrb[98].mxu0 %v12613_v53 }
 0x14f   : > { %10724 = vmatpush3.bf16.msra.mxu0 %v10721_v49  ;;  %9691 = vmatprep.mubr.f32.mxu0 %v12621_v17  ;;  %v12627_v45 = vpop.f32.mrb[8].mxu1  ;;  %v11377_v49 = vld [vmem:[%s11636_s27 + $0x150] sm:$0xff] }
 0x150   : > { %1794 = vmatmul.mubr.f32.gmra.mrb[114].mxu1 %v12468_v4  ;;  %v12635_v23 = vpop.f32.mrb[9].mxu1  ;;  %10726 = vmatprep.subr.bf16.mxu0 %v10725_v0  ;;  %v12649_v4 = vsel %vm555_vm0, %v511_v60, %v512_v28  ;;  %v851_v60 = vld [vmem:[#allocation3 + $0x158] sm:$0xff]  ;;  %v12675_v28 = vsel %vm555_vm0, %v514_v13, %v515_v50 }
 0x151   : > { %1798 = vmatprep.mubr.f32.mxu1 %v11377_v49  ;;  %v11378_v49 = vld [vmem:[%s11636_s27 + $0x158] sm:$0xff] }
 0x152   : > { %9692 = vmatmul.mubr.f32.gmra.mrb[100].mxu0 %v12631_v2 }
 0x153   : > { %10728 = vmatpush3.bf16.msra.mxu0 %v10725_v0  ;;  %9694 = vmatprep.mubr.f32.mxu0 %v12639_v40  ;;  %v12645_v36 = vpop.f32.mrb[10].mxu1  ;;  %v10733_v0 = vpack.c.bf16 %v849_v18, %v848_v57  ;;  %v516_v57 = vrot.slane %v12154_v7, 1  ;;  %v517_v18 = vrot.slane %v12172_v61, 1 }
 0x154   : > { %18271 = vst [vmem:[#allocation35_spill] sm:$0xff] %v12645_v36  ;;  %1799 = vmatmul.mubr.f32.gmra.mrb[116].mxu1 %v12480_v16  ;;  %v12653_v11 = vpop.f32.mrb[11].mxu1  ;;  %10730 = vmatprep.subr.bf16.mxu0 %v10729_v9  ;;  %v850_v36 = vld [vmem:[#allocation3 + $0x150] sm:$0xff]  ;;  %v12667_v16 = vsel %vm555_vm0, %v513_v46, %v514_v13  ;;  %v853_v46 = vld [vmem:[#allocation3 + $0x168] sm:$0xff] }
 0x155   : > { %18272 = vst [vmem:[#allocation95_spill] sm:$0xff] %v12653_v11  ;;  %1803 = vmatprep.mubr.f32.mxu1 %v11378_v49  ;;  %v11379_v49 = vld [vmem:[%s11636_s27 + $0x160] sm:$0xff]  ;;  %v12693_v13 = vsel %vm555_vm0, %v516_v57, %v517_v18 }
 0x156   : > { %9695 = vmatmul.mubr.f32.gmra.mrb[102].mxu0 %v12649_v4 }
 0x157   : > { %10732 = vmatpush3.bf16.msra.mxu0 %v10729_v9  ;;  %9697 = vmatprep.mubr.f32.mxu0 %v12657_v14  ;;  %v12663_v25 = vpop.f32.mrb[12].mxu1  ;;  %v10737_v9 = vpack.c.bf16 %v851_v60, %v850_v36  ;;  %v518_v36 = vrot.slane %v12185_v58, 1  ;;  %v519_v60 = vrot.slane %v12198_v27, 1 }
 0x158   : > { %18273 = vst [vmem:[#allocation96_spill] sm:$0xff] %v12663_v25  ;;  %1804 = vmatmul.mubr.f32.gmra.mrb[118].mxu1 %v12492_v19  ;;  %v12671_v48 = vpop.f32.mrb[13].mxu1  ;;  %10734 = vmatprep.subr.bf16.mxu0 %v10733_v0  ;;  %v852_v25 = vld [vmem:[#allocation3 + $0x160] sm:$0xff]  ;;  %v12685_v19 = vsel %vm555_vm0, %v515_v50, %v516_v57  ;;  %v854_v50 = vld [vmem:[#allocation3 + $0x170] sm:$0xff] }
 0x159   : > { %18274 = vst [vmem:[#allocation97_spill] sm:$0xff] %v12671_v48  ;;  %1808 = vmatprep.mubr.f32.mxu1 %v11379_v49  ;;  %v855_v48 = vld [vmem:[#allocation3 + $0x178] sm:$0xff]  ;;  %v12712_v57 = vsel %vm555_vm0, %v518_v36, %v519_v60 }
 0x15a   : > { %9698 = vmatmul.mubr.f32.gmra.mrb[104].mxu0 %v12667_v16 }
 0x15b   : > { %10736 = vmatpush3.bf16.msra.mxu0 %v10733_v0  ;;  %9700 = vmatprep.mubr.f32.mxu0 %v12675_v28  ;;  %v12681_v7 = vpop.f32.mrb[14].mxu1  ;;  %v10741_v0 = vpack.c.bf16 %v853_v46, %v852_v25  ;;  %v12705_v25 = vsel %vm555_vm0, %v517_v18, %v518_v36  ;;  %v10745_v46 = vpack.c.bf16 %v855_v48, %v854_v50  ;;  %v2311_v18 = vld [vmem:[#allocation3 + $0x400] sm:$0xff]  ;;  %v18284_v48 = vld [vmem:[#allocation10_spill] sm:$0xff] }
 0x15c   : > { %18275 = vst [vmem:[#allocation98_spill] sm:$0xff] %v12681_v7  ;;  %1809 = vmatmul.mubr.f32.gmra.mrb[120].mxu1 %v12504_v62  ;;  %v12689_v61 = vpop.f32.mrb[15].mxu1  ;;  %10738 = vmatprep.subr.bf16.mxu0 %v10737_v9  ;;  %v11380_v7 = vld [vmem:[%s11636_s27 + $0x168] sm:$0xff]  ;;  %v18285_v50 = vrot.slane %v18284_v48, 1 }
 0x15d   : > { %18276 = vst [vmem:[#allocation99_spill] sm:$0xff] %v12689_v61  ;;  %v12696_v49 = vpop.f32.mrb[0].mxu0  ;;  %1813 = vmatprep.mubr.f32.mxu1 %v11380_v7  ;;  %v11381_v61 = vld [vmem:[%s11636_s27 + $0x170] sm:$0xff] }
 0x15e   : > { %18277 = vst [vmem:[#allocation100_spill] sm:$0xff] %v12696_v49  ;;  %v982_v58 = vpop.f32.mrb[1].mxu0  ;;  %9701 = vmatmul.mubr.f32.gmra.mrb[106].mxu0 %v12685_v19  ;;  %v11382_v7 = vld [vmem:[%s11636_s27 + $0x10] sm:$0xff] }
 0x15f   : > { %10740 = vmatpush3.bf16.msra.mxu0 %v10737_v9  ;;  %9703 = vmatprep.mubr.f32.mxu0 %v12693_v13  ;;  %v12701_v62 = vpop.f32.mrb[16].mxu1  ;;  %v18280_v9 = vld [vmem:[#allocation55_spill] sm:$0xff]  ;;  %v18281_v58 = vld [vmem:[#allocation58_spill] sm:$0xff] }
 0x160   : > { %18278 = vst [vmem:[#allocation101_spill] sm:$0xff] %v12701_v62  ;;  %1814 = vmatmul.mubr.f32.gmra.mrb[122].mxu1 %v12513_v56  ;;  %v12708_v27 = vpop.f32.mrb[17].mxu1  ;;  %10742 = vmatprep.subr.bf16.mxu0 %v10741_v0  ;;  %v502_v49 = vrot.slane %v18281_v58, 1  ;;  %v2312_v56 = vld [vmem:[#allocation3 + $0x408] sm:$0xff]  ;;  %v12727_v58 = vsel %vm555_vm0, %v519_v60, %v18285_v50  ;;  %v2313_v60 = vld [vmem:[#allocation3 + $0x410] sm:$0xff] }
 0x161   : > { %18279 = vst [vmem:[#allocation102_spill] sm:$0xff] %v12708_v27  ;;  %v12716_v62 = vpop.f32.mrb[2].mxu0  ;;  %1818 = vmatprep.mubr.f32.mxu1 %v11381_v61  ;;  %v11383_v27 = vld [vmem:[%s11636_s27 + $0x178] sm:$0xff] }
 0x162   : > { %18282 = vst [vmem:[#allocation58_spill] sm:$0xff] %v12716_v62  ;;  %v987_v11 = vpop.f32.mrb[3].mxu0  ;;  %9704 = vmatmul.mubr.f32.gmra.mrb[108].mxu0 %v12705_v25  ;;  %v12730_v62 = vrot.slane %v11382_v7, 1  ;;  %v2314_v7 = vld [vmem:[#allocation3 + $0x418] sm:$0xff] }
 0x163   : > { %10744 = vmatpush3.bf16.msra.mxu0 %v10741_v0  ;;  %9706 = vmatprep.mubr.f32.mxu0 %v12712_v57  ;;  %v12721_v36 = vpop.f32.mrb[18].mxu1  ;;  %v18287_v11 = vrot.slane %v18280_v9, 1  ;;  %v2315_v9 = vld [vmem:[#allocation3 + $0x420] sm:$0xff] }
 0x164   : > { %18283 = vst [vmem:[#allocation103_spill] sm:$0xff] %v12721_v36  ;;  %18286 = vst [vmem:[#allocation10_spill] sm:$0xff] %v12730_v62  ;;  %1819 = vmatmul.mubr.f32.gmra.mrb[124].mxu1 %v12525_v29  ;;  %v12733_v61 = vpop.f32.mrb[19].mxu1  ;;  %10746 = vmatprep.subr.bf16.mxu0 %v10745_v46  ;;  %v10797_v36 = vpack.c.bf16 %v2312_v56, %v2311_v18  ;;  %v10801_v18 = vpack.c.bf16 %v2314_v7, %v2313_v60 }
 0x165   : > { %v12739_v0 = vsel %vm555_vm0, %v18287_v11, %v502_v49  ;;  %v12741_v48 = vpop.f32.mrb[4].mxu0  ;;  %1823 = vmatprep.mubr.f32.mxu1 %v11383_v27  ;;  %v12751_v11 = vsel %vm555_vm0, %v502_v49, %v12730_v62  ;;  %v18292_v27 = vrot.slane %v12561_v26, 1  ;;  %v2316_v49 = vld [vmem:[#allocation3 + $0x428] sm:$0xff]  ;;  %v18294_v26 = vld [vmem:[#allocation39_spill] sm:$0xff] }
 0x166   : > { %18288 = vst [vmem:[#allocation104_spill] sm:$0xff] %v12739_v0  ;;  %18289 = vst [vmem:[#allocation105_spill] sm:$0xff] %v12741_v48  ;;  %v992_v50 = vpop.f32.mrb[5].mxu0  ;;  %9707 = vmatmul.mubr.f32.gmra.mrb[110].mxu0 %v12727_v58  ;;  %v10805_v60 = vpack.c.bf16 %v2316_v49, %v2315_v9  ;;  %v3845_v49 = vld [vmem:[#allocation3 + $0x700] sm:$0xff] }
 0x167   : > { %10748 = vmatpush3.bf16.msra.mxu0 %v10745_v46  ;;  %v12745_v29 = vpop.f32.mrb[20].mxu1  ;;  %9789 = vmatprep.mubr.f32.mxu0 %v12739_v0  ;;  %18291 = vst [vmem:[#allocation107_spill] sm:$0xff] %v12751_v11  ;;  %v606_v46 = vsel %vm555_vm0, %v12730_v62, %v18292_v27  ;;  %v11384_v0 = vld [vmem:[%s11636_s27 + $0x30] sm:$0xff]  ;;  %v11385_v27 = vld [vmem:[%s11636_s27 + $0x38] sm:$0xff] }
 0x168   : > { %18290 = vst [vmem:[#allocation106_spill] sm:$0xff] %v12745_v29  ;;  %1824 = vmatmul.mubr.f32.gmra.mrb[126].mxu1 %v12534_v34  ;;  %v12754_v56 = vpop.f32.mrb[21].mxu1  ;;  %10798 = vmatprep.subr.bf16.mxu0 %v10797_v36  ;;  %v2318_v62 = vld [vmem:[#allocation3 + $0x438] sm:$0xff] }
 0x169   : > { %v12761_v50 = vpop.f32.mrb[6].mxu0  ;;  %2391 = vmatprep.mubr.f32.mxu1 %v11384_v0  ;;  %v2317_v0 = vld [vmem:[#allocation3 + $0x430] sm:$0xff] }
 0x16a   : > { %18293 = vst [vmem:[#allocation108_spill] sm:$0xff] %v12761_v50  ;;  %v997_v48 = vpop.f32.mrb[7].mxu0  ;;  %9790 = vmatmul.mubr.f32.vlgmr.msra.gmra.mrb[112].mxu0 %v12751_v11  ;;  %v10809_v9 = vpack.c.bf16 %v2318_v62, %v2317_v0  ;;  %v3846_v11 = vld [vmem:[#allocation3 + $0x708] sm:$0xff] }
 0x16b   : > { %10800 = vmatpush3.bf16.msra.mxu0 %v10797_v36  ;;  %v12765_v34 = vpop.f32.mrb[22].mxu1  ;;  %9792 = vmatprep.mubr.f32.mxu0 %v606_v46  ;;  %v18296_v46 = vld [vmem:[#allocation44_spill] sm:$0xff]  ;;  %v10877_v50 = vpack.c.bf16 %v3846_v11, %v3845_v49  ;;  %v2321_v11 = vld [vmem:[#allocation3 + $0x450] sm:$0xff] }
 0x16c   : > { %2392 = vmatmul.mubr.f32.vlgmr.msra.gmra.mrb[128].mxu1 %v18294_v26  ;;  %v12768_v29 = vpop.f32.mrb[23].mxu1  ;;  %10802 = vmatprep.subr.bf16.mxu0 %v10801_v18 }
 0x16d   : > { %v12770_v7 = vpop.f32.mrb[8].mxu0  ;;  %2396 = vmatprep.mubr.f32.mxu1 %v11385_v27  ;;  %v11386_v27 = vld [vmem:[%s11636_s27 + $0x40] sm:$0xff]  ;;  %10878 = vmatprep.subr.bf16.mxu1 %v10877_v50 }
 0x16e   : > { %18295 = vst [vmem:[#allocation39_spill] sm:$0xff] %v12770_v7  ;;  %v1002_v48 = vpop.f32.mrb[9].mxu0  ;;  %9793 = vmatmul.mubr.f32.gmra.mrb[114].mxu0 %v12584_v43  ;;  %v2320_v43 = vld [vmem:[#allocation3 + $0x448] sm:$0xff]  ;;  %10880 = vmatpush3.bf16.msra.mxu1 %v10877_v50 }
 0x16f   : > { %v12774_v36 = vpop.f32.mrb[24].mxu1  ;;  %9795 = vmatprep.mubr.f32.mxu0 %v12594_v33  ;;  %10804 = vmatpush3.bf16.msra.mxu0 %v10801_v18  ;;  %v2319_v48 = vld [vmem:[#allocation3 + $0x440] sm:$0xff] }
 0x170   : > { %2397 = vmatmul.mubr.f32.gmra.mrb[130].mxu1 %v18296_v46  ;;  %v12778_v26 = vpop.f32.mrb[25].mxu1  ;;  %10806 = vmatprep.subr.bf16.mxu0 %v10805_v60  ;;  %v10813_v18 = vpack.c.bf16 %v2320_v43, %v2319_v48  ;;  %v11387_v46 = vld [vmem:[%s11636_s27 + $0x48] sm:$0xff]  ;;  %v11388_v48 = vld [vmem:[%s11636_s27 + $0x50] sm:$0xff]  ;;  %v2323_v43 = vld [vmem:[#allocation3 + $0x460] sm:$0xff] }
 0x171   : > { %v12780_v7 = vpop.f32.mrb[10].mxu0  ;;  %2401 = vmatprep.mubr.f32.mxu1 %v11386_v27 }
 0x172   : > { %18297 = vst [vmem:[#allocation44_spill] sm:$0xff] %v12780_v7  ;;  %v1007_v22 = vpop.f32.mrb[11].mxu0  ;;  %9796 = vmatmul.mubr.f32.gmra.mrb[116].mxu0 %v12602_v31  ;;  %v11396_v7 = vld [vmem:[%s11636_s27 + $0x90] sm:$0xff] }
 0x173   : > { %v12784_v33 = vpop.f32.mrb[26].mxu1  ;;  %9798 = vmatprep.mubr.f32.mxu0 %v12613_v53  ;;  %10808 = vmatpush3.bf16.msra.mxu0 %v10805_v60  ;;  %v2322_v22 = vld [vmem:[#allocation3 + $0x458] sm:$0xff] }
 0x174   : > { %18298 = vst [vmem:[#allocation109_spill] sm:$0xff] %v12784_v33  ;;  %2402 = vmatmul.mubr.f32.gmra.mrb[132].mxu1 %v12026_v32  ;;  %v12788_v62 = vpop.f32.mrb[27].mxu1  ;;  %10810 = vmatprep.subr.bf16.mxu0 %v10809_v9  ;;  %v10817_v60 = vpack.c.bf16 %v2322_v22, %v2321_v11  ;;  %v11389_v22 = vld [vmem:[%s11636_s27 + $0x58] sm:$0xff] }
 0x175   : > { %v12790_v0 = vpop.f32.mrb[12].mxu0  ;;  %2406 = vmatprep.mubr.f32.mxu1 %v11387_v46  ;;  %v2324_v46 = vld [vmem:[#allocation3 + $0x468] sm:$0xff]  ;;  %v3852_v33 = vld [vmem:[#allocation3 + $0x738] sm:$0xff] }
 0x176   : > { %18299 = vst [vmem:[#allocation110_spill] sm:$0xff] %v12790_v0  ;;  %v1012_v31 = vpop.f32.mrb[13].mxu0  ;;  %9799 = vmatmul.mubr.f32.gmra.mrb[118].mxu0 %v12621_v17 }
 0x177   : > { %v12794_v49 = vpop.f32.mrb[28].mxu1  ;;  %9801 = vmatprep.mubr.f32.mxu0 %v12631_v2  ;;  %10812 = vmatpush3.bf16.msra.mxu0 %v10809_v9  ;;  %v10821_v9 = vpack.c.bf16 %v2324_v46, %v2323_v43  ;;  %v11390_v46 = vld [vmem:[%s11636_s27 + $0x60] sm:$0xff] }
 0x178   : > { %18300 = vst [vmem:[#allocation111_spill] sm:$0xff] %v12794_v49  ;;  %2407 = vmatmul.mubr.f32.gmra.mrb[134].mxu1 %v12055_v12  ;;  %v12798_v32 = vpop.f32.mrb[29].mxu1  ;;  %10814 = vmatprep.subr.bf16.mxu0 %v10813_v18  ;;  %v18352_v49 = vld [vmem:[#allocation78_spill] sm:$0xff] }
 0x179   : > { %18301 = vst [vmem:[#allocation112_spill] sm:$0xff] %v12798_v32  ;;  %v12800_v27 = vpop.f32.mrb[14].mxu0  ;;  %2411 = vmatprep.mubr.f32.mxu1 %v11388_v48  ;;  %v2325_v48 = vld [vmem:[#allocation3 + $0x470] sm:$0xff] }
 0x17a   : > { %18302 = vst [vmem:[#allocation113_spill] sm:$0xff] %v12800_v27  ;;  %v1017_v31 = vpop.f32.mrb[15].mxu0  ;;  %9802 = vmatmul.mubr.f32.gmra.mrb[120].mxu0 %v12639_v40  ;;  %v3851_v32 = vld [vmem:[#allocation3 + $0x730] sm:$0xff] }
 0x17b   : > { %v12804_v50 = vpop.f32.mrb[30].mxu1  ;;  %9804 = vmatprep.mubr.f32.mxu0 %v12649_v4  ;;  %10816 = vmatpush3.bf16.msra.mxu0 %v10813_v18  ;;  %v2326_v31 = vld [vmem:[#allocation3 + $0x478] sm:$0xff] }
 0x17c   : > { %18303 = vst [vmem:[#allocation114_spill] sm:$0xff] %v12804_v50  ;;  %2412 = vmatmul.mubr.f32.gmra.mrb[136].mxu1 %v12086_v41  ;;  %v12808_v12 = vpop.f32.mrb[31].mxu1  ;;  %10818 = vmatprep.subr.bf16.mxu0 %v10817_v60  ;;  %v10825_v18 = vpack.c.bf16 %v2326_v31, %v2325_v48  ;;  %v11391_v48 = vld [vmem:[%s11636_s27 + $0x68] sm:$0xff]  ;;  %v18348_v50 = vld [vmem:[#allocation31_spill] sm:$0xff] }
 0x17d   : > { %18304 = vst [vmem:[#allocation115_spill] sm:$0xff] %v12808_v12  ;;  %v12810_v11 = vpop.f32.mrb[16].mxu0  ;;  %2416 = vmatprep.mubr.f32.mxu1 %v11389_v22 }
 0x17e   : > { %18305 = vst [vmem:[#allocation116_spill] sm:$0xff] %v12810_v11  ;;  %v1022_v0 = vpop.f32.mrb[17].mxu0  ;;  %9805 = vmatmul.mubr.f32.gmra.mrb[122].mxu0 %v12657_v14 }
 0x17f   : > { %v12814_v27 = vpop.f32.mrb[32].mxu1  ;;  %9807 = vmatprep.mubr.f32.mxu0 %v12667_v16  ;;  %10820 = vmatpush3.bf16.msra.mxu0 %v10817_v60 }
 0x180   : > { %18306 = vst [vmem:[#allocation117_spill] sm:$0xff] %v12814_v27  ;;  %2417 = vmatmul.mubr.f32.gmra.mrb[138].mxu1 %v12111_v42  ;;  %v1592_v41 = vpop.f32.mrb[33].mxu1  ;;  %10822 = vmatprep.subr.bf16.mxu0 %v10821_v9 }
 0x181   : > { %v12818_v43 = vpop.f32.mrb[18].mxu0  ;;  %2421 = vmatprep.mubr.f32.mxu1 %v11390_v46  ;;  %v3848_v46 = vld [vmem:[#allocation3 + $0x718] sm:$0xff] }
 0x182   : > { %18307 = vst [vmem:[#allocation118_spill] sm:$0xff] %v12818_v43  ;;  %v1027_v22 = vpop.f32.mrb[19].mxu0  ;;  %9808 = vmatmul.mubr.f32.gmra.mrb[124].mxu0 %v12675_v28 }
 0x183   : > { %v12822_v0 = vpop.f32.mrb[34].mxu1  ;;  %9810 = vmatprep.mubr.f32.mxu0 %v12685_v19  ;;  %10824 = vmatpush3.bf16.msra.mxu0 %v10821_v9 }
 0x184   : > { %18308 = vst [vmem:[#allocation119_spill] sm:$0xff] %v12822_v0  ;;  %2422 = vmatmul.mubr.f32.gmra.mrb[140].mxu1 %v12132_v15  ;;  %v1597_v60 = vpop.f32.mrb[35].mxu1  ;;  %10826 = vmatprep.subr.bf16.mxu0 %v10825_v18  ;;  %v3847_v15 = vld [vmem:[#allocation3 + $0x710] sm:$0xff]  ;;  %v18346_v0 = vld [vmem:[#allocation76_spill] sm:$0xff] }
 0x185   : > { %v12826_v42 = vpop.f32.mrb[20].mxu0  ;;  %2426 = vmatprep.mubr.f32.mxu1 %v11391_v48  ;;  %v11392_v60 = vld [vmem:[%s11636_s27 + $0x70] sm:$0xff]  ;;  %v10881_v48 = vpack.c.bf16 %v3848_v46, %v3847_v15  ;;  %v18316_v46 = vld [vmem:[#allocation12_spill] sm:$0xff] }
 0x186   : > { %18309 = vst [vmem:[#allocation120_spill] sm:$0xff] %v12826_v42  ;;  %v1032_v31 = vpop.f32.mrb[21].mxu0  ;;  %9811 = vmatmul.mubr.f32.gmra.mrb[126].mxu0 %v12693_v13 }
 0x187   : > { %v12830_v41 = vpop.f32.mrb[36].mxu1  ;;  %9813 = vmatprep.mubr.f32.mxu0 %v12705_v25  ;;  %10828 = vmatpush3.bf16.msra.mxu0 %v10825_v18 }
 0x188   : > { %18310 = vst [vmem:[#allocation121_spill] sm:$0xff] %v12830_v41  ;;  %2427 = vmatmul.mubr.f32.gmra.mrb[142].mxu1 %v12149_v37  ;;  %v1602_v9 = vpop.f32.mrb[37].mxu1  ;;  %10829 = vmatprep.subr.bf16.mxu0 %v18189_v3  ;;  %v3849_v41 = vld [vmem:[#allocation3 + $0x720] sm:$0xff] }
 0x189   : > { %v12835_v22 = vpop.f32.mrb[22].mxu0  ;;  %2431 = vmatprep.mubr.f32.mxu1 %v11392_v60  ;;  %10882 = vmatprep.subr.bf16.mxu1 %v10881_v48  ;;  %v11393_v9 = vld [vmem:[%s11636_s27 + $0x78] sm:$0xff] }
 0x18a   : > { %18311 = vst [vmem:[#allocation122_spill] sm:$0xff] %v12835_v22  ;;  %v1037_v31 = vpop.f32.mrb[23].mxu0  ;;  %9814 = vmatmul.mubr.f32.gmra.mrb[128].mxu0 %v12712_v57  ;;  %10884 = vmatpush3.bf16.msra.mxu1 %v10881_v48  ;;  %v18314_v60 = vld [vmem:[#allocation11_spill] sm:$0xff] }
 0x18b   : > { %v12839_v42 = vpop.f32.mrb[38].mxu1  ;;  %9816 = vmatprep.mubr.f32.mxu0 %v12727_v58 }
 0x18c   : > { %18312 = vst [vmem:[#allocation123_spill] sm:$0xff] %v12839_v42  ;;  %2432 = vmatmul.mubr.f32.gmra.mrb[144].mxu1 %v12167_v47  ;;  %v1607_v37 = vpop.f32.mrb[39].mxu1  ;;  %v11394_v47 = vld [vmem:[%s11636_s27 + $0x80] sm:$0xff]  ;;  %v3850_v42 = vld [vmem:[#allocation3 + $0x728] sm:$0xff] }
 0x18d   : > { %v12843_v18 = vpop.f32.mrb[24].mxu0  ;;  %2436 = vmatprep.mubr.f32.mxu1 %v11393_v9 }
 0x18e   : > { %18313 = vst [vmem:[#allocation124_spill] sm:$0xff] %v12843_v18  ;;  %v1042_v22 = vpop.f32.mrb[25].mxu0  ;;  %9817 = vmatmul.mubr.f32.gmra.mrb[130].mxu0 %v18314_v60  ;;  %v18318_v18 = vld [vmem:[#allocation13_spill] sm:$0xff] }
 0x18f   : > { %v12847_v15 = vpop.f32.mrb[40].mxu1  ;;  %9819 = vmatprep.mubr.f32.mxu0 %v18316_v46  ;;  %v18320_v22 = vld [vmem:[#allocation14_spill] sm:$0xff] }
 0x190   : > { %18315 = vst [vmem:[#allocation11_spill] sm:$0xff] %v12847_v15  ;;  %2437 = vmatmul.mubr.f32.gmra.mrb[146].mxu1 %v12180_v35  ;;  %v1612_v31 = vpop.f32.mrb[41].mxu1  ;;  %v11395_v15 = vld [vmem:[%s11636_s27 + $0x88] sm:$0xff] }
 0x191   : > { %v12851_v11 = vpop.f32.mrb[26].mxu0  ;;  %2441 = vmatprep.mubr.f32.mxu1 %v11394_v47  ;;  %v18322_v31 = vld [vmem:[#allocation15_spill] sm:$0xff]  ;;  %v18324_v47 = vld [vmem:[#allocation16_spill] sm:$0xff] }
 0x192   : > { %18317 = vst [vmem:[#allocation12_spill] sm:$0xff] %v12851_v11  ;;  %v1047_v37 = vpop.f32.mrb[27].mxu0  ;;  %9820 = vmatmul.mubr.f32.gmra.mrb[132].mxu0 %v18318_v18 }
 0x193   : > { %v12855_v48 = vpop.f32.mrb[42].mxu1  ;;  %9822 = vmatprep.mubr.f32.mxu0 %v18320_v22 }
 0x194   : > { %18319 = vst [vmem:[#allocation13_spill] sm:$0xff] %v12855_v48  ;;  %2442 = vmatmul.mubr.f32.gmra.mrb[148].mxu1 %v12193_v8  ;;  %v1617_v9 = vpop.f32.mrb[43].mxu1 }
 0x195   : > { %v12859_v43 = vpop.f32.mrb[28].mxu0  ;;  %2446 = vmatprep.mubr.f32.mxu1 %v11395_v15  ;;  %v18326_v9 = vld [vmem:[#allocation17_spill] sm:$0xff]  ;;  %v18328_v15 = vld [vmem:[#allocation18_spill] sm:$0xff] }
 0x196   : > { %18321 = vst [vmem:[#allocation14_spill] sm:$0xff] %v12859_v43  ;;  %v1052_v35 = vpop.f32.mrb[29].mxu0  ;;  %9823 = vmatmul.mubr.f32.gmra.mrb[134].mxu0 %v18322_v31 }
 0x197   : > { %v12863_v11 = vpop.f32.mrb[44].mxu1  ;;  %9825 = vmatprep.mubr.f32.mxu0 %v18324_v47 }
 0x198   : > { %18323 = vst [vmem:[#allocation15_spill] sm:$0xff] %v12863_v11  ;;  %2447 = vmatmul.mubr.f32.gmra.mrb[150].mxu1 %v12206_v1  ;;  %v1622_v37 = vpop.f32.mrb[45].mxu1 }
 0x199   : > { %v12867_v48 = vpop.f32.mrb[30].mxu0  ;;  %2451 = vmatprep.mubr.f32.mxu1 %v11396_v7 }
 0x19a   : > { %18325 = vst [vmem:[#allocation16_spill] sm:$0xff] %v12867_v48  ;;  %v1057_v8 = vpop.f32.mrb[31].mxu0  ;;  %9826 = vmatmul.mubr.f32.gmra.mrb[136].mxu0 %v18326_v9  ;;  %v18329_v48 = vld [vmem:[#allocation19_spill] sm:$0xff] }
 0x19b   : > { %v12871_v43 = vpop.f32.mrb[46].mxu1  ;;  %9828 = vmatprep.mubr.f32.mxu0 %v18328_v15  ;;  %v18331_v8 = vld [vmem:[#allocation20_spill] sm:$0xff] }
 0x19c   : > { %18327 = vst [vmem:[#allocation17_spill] sm:$0xff] %v12871_v43  ;;  %2452 = vmatmul.mubr.f32.gmra.mrb[152].mxu1 %v12216_v59  ;;  %v1627_v35 = vpop.f32.mrb[47].mxu1 }
 0x19d   : > { %v1060_v11 = vpop.f32.mrb[32].mxu0  ;;  %2456 = vmatprep.mubr.f32.mxu1 %v12341_v6  ;;  %v10885_v35 = vpack.c.bf16 %v3850_v42, %v3849_v41  ;;  %v18335_v42 = vld [vmem:[#allocation23_spill] sm:$0xff] }
 0x19e   : > { %v12877_v1 = vadd.f32 %v12558_v5, %v1060_v11  ;;  %v1062_v37 = vpop.f32.mrb[33].mxu0  ;;  %9829 = vmatmul.mubr.f32.gmra.mrb[138].mxu0 %v18329_v48  ;;  %v18332_v11 = vld [vmem:[#allocation21_spill] sm:$0xff] }
 0x19f   : > { %v12880_v7 = vpop.f32.mrb[48].mxu1  ;;  %9831 = vmatprep.mubr.f32.mxu0 %v18331_v8  ;;  %10886 = vmatprep.subr.bf16.mxu1 %v10885_v35 }
 0x1a0   : > { %18330 = vst [vmem:[#allocation18_spill] sm:$0xff] %v12880_v7  ;;  %2457 = vmatmul.mubr.f32.gmra.mrb[154].mxu1 %v12226_v51  ;;  %v1632_v43 = vpop.f32.mrb[49].mxu1  ;;  %v18334_v7 = vld [vmem:[#allocation22_spill] sm:$0xff] }
 0x1a1   : > { %v1065_v59 = vpop.f32.mrb[34].mxu0  ;;  %2461 = vmatprep.mubr.f32.mxu1 %v12353_v54  ;;  %10888 = vmatpush3.bf16.msra.mxu1 %v10885_v35  ;;  %v18338_v35 = vld [vmem:[#allocation25_spill] sm:$0xff] }
 0x1a2   : > { %v12886_v6 = vadd.f32 %v12550_v63, %v1065_v59  ;;  %v1067_v5 = vpop.f32.mrb[35].mxu0  ;;  %9832 = vmatmul.mubr.f32.gmra.mrb[140].mxu0 %v18332_v11  ;;  %v18337_v59 = vld [vmem:[#allocation24_spill] sm:$0xff] }
 0x1a3   : > { %v12889_v37 = vpop.f32.mrb[50].mxu1  ;;  %9834 = vmatprep.mubr.f32.mxu0 %v18334_v7 }
 0x1a4   : > { %18333 = vst [vmem:[#allocation19_spill] sm:$0xff] %v12889_v37  ;;  %2462 = vmatmul.mubr.f32.gmra.mrb[156].mxu1 %v12238_v21  ;;  %v1637_v51 = vpop.f32.mrb[51].mxu1 }
 0x1a5   : > { %v1070_v43 = vpop.f32.mrb[36].mxu0  ;;  %2466 = vmatprep.mubr.f32.mxu1 %v12365_v44  ;;  %v18340_v51 = vld [vmem:[#allocation27_spill] sm:$0xff] }
 0x1a6   : > { %v12895_v54 = vadd.f32 %v12578_v24, %v1070_v43  ;;  %v1072_v63 = vpop.f32.mrb[37].mxu0  ;;  %9835 = vmatmul.mubr.f32.gmra.mrb[142].mxu0 %v18335_v42 }
 0x1a7   : > { %v12898_v41 = vpop.f32.mrb[52].mxu1  ;;  %9837 = vmatprep.mubr.f32.mxu0 %v18337_v59 }
 0x1a8   : > { %18336 = vst [vmem:[#allocation20_spill] sm:$0xff] %v12898_v41  ;;  %2467 = vmatmul.mubr.f32.gmra.mrb[158].mxu1 %v12249_v10  ;;  %v1642_v5 = vpop.f32.mrb[53].mxu1  ;;  %v18341_v41 = vld [vmem:[#allocation74_spill] sm:$0xff] }
 0x1a9   : > { %v1075_v37 = vpop.f32.mrb[38].mxu0  ;;  %2471 = vmatprep.mubr.f32.mxu1 %v12377_v30  ;;  %v18342_v5 = vld [vmem:[#allocation28_spill] sm:$0xff] }
 0x1aa   : > { %v12904_v21 = vadd.f32 %v12569_v52, %v1075_v37  ;;  %v1077_v44 = vpop.f32.mrb[39].mxu0  ;;  %9838 = vmatmul.mubr.f32.gmra.mrb[144].mxu0 %v18338_v35  ;;  %v18344_v37 = vld [vmem:[#allocation30_spill] sm:$0xff] }
 0x1ab   : > { %v12907_v24 = vpop.f32.mrb[54].mxu1  ;;  %9840 = vmatprep.mubr.f32.mxu0 %v18340_v51  ;;  %v18345_v44 = vld [vmem:[#allocation62_spill] sm:$0xff] }
 0x1ac   : > { %18339 = vst [vmem:[#allocation21_spill] sm:$0xff] %v12907_v24  ;;  %2472 = vmatmul.mubr.f32.gmra.mrb[160].mxu1 %v12259_v55  ;;  %v1647_v43 = vpop.f32.mrb[55].mxu1  ;;  %v18347_v55 = vld [vmem:[#allocation94_spill] sm:$0xff] }
 0x1ad   : > { %v1080_v63 = vpop.f32.mrb[40].mxu0  ;;  %2476 = vmatprep.mubr.f32.mxu1 %v18341_v41 }
 0x1ae   : > { %v12913_v10 = vadd.f32 %v12598_v39, %v1080_v63  ;;  %v1082_v30 = vpop.f32.mrb[41].mxu0  ;;  %9841 = vmatmul.mubr.f32.gmra.mrb[146].mxu0 %v18342_v5  ;;  %v18350_v63 = vld [vmem:[#allocation32_spill] sm:$0xff] }
 0x1af   : > { %v12916_v52 = vpop.f32.mrb[56].mxu1  ;;  %9843 = vmatprep.mubr.f32.mxu0 %v18344_v37  ;;  %v18351_v30 = vld [vmem:[#allocation63_spill] sm:$0xff] }
 0x1b0   : > { %18343 = vst [vmem:[#allocation22_spill] sm:$0xff] %v12916_v52  ;;  %2477 = vmatmul.mubr.f32.gmra.mrb[162].mxu1 %v18345_v44  ;;  %v1652_v24 = vpop.f32.mrb[57].mxu1  ;;  %v18353_v44 = vld [vmem:[#allocation33_spill] sm:$0xff] }
 0x1b1   : > { %v1085_v27 = vpop.f32.mrb[42].mxu0  ;;  %2481 = vmatprep.mubr.f32.mxu1 %v18346_v0 }
 0x1b2   : > { %v12922_v43 = vadd.f32 %v18347_v55, %v1085_v27  ;;  %v1087_v41 = vpop.f32.mrb[43].mxu0  ;;  %9844 = vmatmul.mubr.f32.gmra.mrb[148].mxu0 %v18348_v50  ;;  %v18355_v55 = vld [vmem:[#allocation36_spill] sm:$0xff] }
 0x1b3   : > { %v12925_v39 = vpop.f32.mrb[58].mxu1  ;;  %9846 = vmatprep.mubr.f32.mxu0 %v18350_v63  ;;  %v18356_v41 = vld [vmem:[#allocation64_spill] sm:$0xff]  ;;  %v10889_v63 = vpack.c.bf16 %v3852_v33, %v3851_v32  ;;  %v18363_v32 = vld [vmem:[#allocation42_spill] sm:$0xff] }
 0x1b4   : > { %18349 = vst [vmem:[#allocation23_spill] sm:$0xff] %v12925_v39  ;;  %2482 = vmatmul.mubr.f32.gmra.mrb[164].mxu1 %v18351_v30  ;;  %v1657_v52 = vpop.f32.mrb[59].mxu1 }
 0x1b5   : > { %v1090_v12 = vpop.f32.mrb[44].mxu0  ;;  %2486 = vmatprep.mubr.f32.mxu1 %v18352_v49  ;;  %v18357_v52 = vld [vmem:[#allocation80_spill] sm:$0xff]  ;;  %10890 = vmatprep.subr.bf16.mxu1 %v10889_v63 }
 0x1b6   : > { %v12931_v24 = vadd.f32 %v12617_v20, %v1090_v12  ;;  %v1092_v0 = vpop.f32.mrb[45].mxu0  ;;  %9847 = vmatmul.mubr.f32.gmra.mrb[150].mxu0 %v18353_v44  ;;  %v18358_v12 = vld [vmem:[#allocation37_spill] sm:$0xff]  ;;  %v18362_v44 = vld [vmem:[#allocation82_spill] sm:$0xff]  ;;  %10892 = vmatpush3.bf16.msra.mxu1 %v10889_v63 }
 0x1b7   : > { %v12934_v27 = vpop.f32.mrb[60].mxu1  ;;  %9849 = vmatprep.mubr.f32.mxu0 %v18355_v55  ;;  %v18361_v55 = vld [vmem:[#allocation65_spill] sm:$0xff] }
 0x1b8   : > { %18354 = vst [vmem:[#allocation24_spill] sm:$0xff] %v12934_v27  ;;  %2487 = vmatmul.mubr.f32.gmra.mrb[166].mxu1 %v18356_v41  ;;  %v1662_v39 = vpop.f32.mrb[61].mxu1  ;;  %v18360_v27 = vld [vmem:[#allocation41_spill] sm:$0xff] }
 0x1b9   : > { %v1095_v30 = vpop.f32.mrb[46].mxu0  ;;  %2491 = vmatprep.mubr.f32.mxu1 %v18357_v52  ;;  %v18364_v52 = vld [vmem:[#allocation46_spill] sm:$0xff] }
 0x1ba   : > { %v12940_v49 = vadd.f32 %v12609_v38, %v1095_v30  ;;  %v1097_v20 = vpop.f32.mrb[47].mxu0  ;;  %9850 = vmatmul.mubr.f32.gmra.mrb[152].mxu0 %v18358_v12 }
 0x1bb   : > { %v12943_v0 = vpop.f32.mrb[62].mxu1  ;;  %9852 = vmatprep.mubr.f32.mxu0 %v18360_v27  ;;  %v18367_v27 = vld [vmem:[#allocation84_spill] sm:$0xff] }
 0x1bc   : > { %18359 = vst [vmem:[#allocation25_spill] sm:$0xff] %v12943_v0  ;;  %2492 = vmatmul.mubr.f32.gmra.mrb[168].mxu1 %v18361_v55  ;;  %v1667_v39 = vpop.f32.mrb[63].mxu1  ;;  %v18366_v0 = vld [vmem:[#allocation66_spill] sm:$0xff] }
 0x1bd   : > { %v1100_v41 = vpop.f32.mrb[48].mxu0  ;;  %2496 = vmatprep.mubr.f32.mxu1 %v18362_v44  ;;  %v18368_v44 = vld [vmem:[#allocation47_spill] sm:$0xff] }
 0x1be   : > { %v12949_v33 = vadd.f32 %v12635_v23, %v1100_v41  ;;  %v1102_v38 = vpop.f32.mrb[49].mxu0  ;;  %9853 = vmatmul.mubr.f32.gmra.mrb[154].mxu0 %v18363_v32 }
 0x1bf   : > { %v1670_v30 = vpop.f32.mrb[64].mxu1  ;;  %9855 = vmatprep.mubr.f32.mxu0 %v18364_v52  ;;  %v18369_v38 = vld [vmem:[#allocation50_spill] sm:$0xff] }
 0x1c0   : > { %v12954_v20 = vadd.f32 %v1670_v30, %v12877_v1  ;;  %2497 = vmatmul.mubr.f32.gmra.mrb[170].mxu1 %v18366_v0  ;;  %v1672_v55 = vpop.f32.mrb[65].mxu1  ;;  %v18371_v1 = vld [vmem:[#allocation67_spill] sm:$0xff] }
 0x1c1   : > { %v1105_v39 = vpop.f32.mrb[50].mxu0  ;;  %2501 = vmatprep.mubr.f32.mxu1 %v18367_v27  ;;  %v18372_v55 = vld [vmem:[#allocation86_spill] sm:$0xff] }
 0x1c2   : > { %18365 = vst [vmem:[#allocation27_spill] sm:$0xff] %v12954_v20  ;;  %v12959_v63 = vadd.f32 %v12627_v45, %v1105_v39  ;;  %v1107_v23 = vpop.f32.mrb[51].mxu0  ;;  %9856 = vmatmul.mubr.f32.gmra.mrb[156].mxu0 %v18368_v44  ;;  %v18373_v20 = vld [vmem:[#allocation95_spill] sm:$0xff] }
 0x1c3   : > { %v1675_v41 = vpop.f32.mrb[66].mxu1  ;;  %9858 = vmatprep.mubr.f32.mxu0 %v18369_v38  ;;  %v18374_v39 = vld [vmem:[#allocation51_spill] sm:$0xff] }
 0x1c4   : > { %v12964_v52 = vadd.f32 %v1675_v41, %v12886_v6  ;;  %2502 = vmatmul.mubr.f32.gmra.mrb[172].mxu1 %v18371_v1  ;;  %v1677_v30 = vpop.f32.mrb[67].mxu1  ;;  %v18376_v6 = vld [vmem:[#allocation68_spill] sm:$0xff] }
 0x1c5   : > { %v1110_v0 = vpop.f32.mrb[52].mxu0  ;;  %2506 = vmatprep.mubr.f32.mxu1 %v18372_v55  ;;  %v18377_v30 = vld [vmem:[#allocation88_spill] sm:$0xff] }
 0x1c6   : > { %18370 = vst [vmem:[#allocation74_spill] sm:$0xff] %v12964_v52  ;;  %v12969_v27 = vadd.f32 %v18373_v20, %v1110_v0  ;;  %v1112_v45 = vpop.f32.mrb[53].mxu0  ;;  %9859 = vmatmul.mubr.f32.gmra.mrb[158].mxu0 %v18374_v39  ;;  %v18378_v52 = vld [vmem:[#allocation35_spill] sm:$0xff] }
 0x1c7   : > { %v1680_v23 = vpop.f32.mrb[68].mxu1  ;;  %9893 = vmatprep.mubr.f32.mxu0 %v12613_v53 }
 0x1c8   : > { %v12974_v38 = vadd.f32 %v1680_v23, %v12895_v54  ;;  %2507 = vmatmul.mubr.f32.gmra.mrb[174].mxu1 %v18376_v6  ;;  %v1682_v41 = vpop.f32.mrb[69].mxu1  ;;  %v18380_v54 = vld [vmem:[#allocation69_spill] sm:$0xff]  ;;  %v18381_v6 = vld [vmem:[#allocation90_spill] sm:$0xff] }
 0x1c9   : > { %v1115_v1 = vpop.f32.mrb[54].mxu0  ;;  %2511 = vmatprep.mubr.f32.mxu1 %v18377_v30  ;;  %v18382_v41 = vld [vmem:[#allocation97_spill] sm:$0xff] }
 0x1ca   : > { %18375 = vst [vmem:[#allocation28_spill] sm:$0xff] %v12974_v38  ;;  %v12979_v55 = vadd.f32 %v18378_v52, %v1115_v1  ;;  %v1117_v20 = vpop.f32.mrb[55].mxu0  ;;  %9894 = vmatmul.mubr.f32.vlgmr.msra.gmra.mrb[160].mxu0 %v12621_v17  ;;  %v3813_v17 = vld [vmem:[#allocation3 + $0x600] sm:$0xff] }
 0x1cb   : > { %v1685_v0 = vpop.f32.mrb[70].mxu1  ;;  %9896 = vmatprep.mubr.f32.mxu0 %v12631_v2  ;;  %v3814_v2 = vld [vmem:[#allocation3 + $0x608] sm:$0xff]  ;;  %v3853_v20 = vld [vmem:[#allocation3 + $0x740] sm:$0xff] }
 0x1cc   : > { %v12984_v53 = vadd.f32 %v1685_v0, %v12904_v21  ;;  %2512 = vmatmul.mubr.f32.gmra.mrb[176].mxu1 %v18380_v54  ;;  %v1687_v45 = vpop.f32.mrb[71].mxu1  ;;  %v18383_v0 = vld [vmem:[#allocation70_spill] sm:$0xff] }
 0x1cd   : > { %v1120_v23 = vpop.f32.mrb[56].mxu0  ;;  %2516 = vmatprep.mubr.f32.mxu1 %v18381_v6  ;;  %v10830_v45 = vpack.c.bf16 %v3814_v2, %v3813_v17  ;;  %v3854_v6 = vld [vmem:[#allocation3 + $0x748] sm:$0xff] }
 0x1ce   : > { %18379 = vst [vmem:[#allocation30_spill] sm:$0xff] %v12984_v53  ;;  %v12989_v30 = vadd.f32 %v18382_v41, %v1120_v23  ;;  %v1122_v52 = vpop.f32.mrb[57].mxu0  ;;  %9897 = vmatmul.mubr.f32.gmra.mrb[162].mxu0 %v12639_v40  ;;  %v18384_v41 = vld [vmem:[#allocation34_spill] sm:$0xff]  ;;  %v18385_v40 = vld [vmem:[#allocation96_spill] sm:$0xff] }
 0x1cf   : > { %v1690_v1 = vpop.f32.mrb[72].mxu1  ;;  %9899 = vmatprep.mubr.f32.mxu0 %v12649_v4  ;;  %v10893_v52 = vpack.c.bf16 %v3854_v6, %v3853_v20  ;;  %10831 = vmatpush1.bf16.msra.mxu0 %v10830_v45  ;;  %v18387_v20 = vld [vmem:[#allocation99_spill] sm:$0xff]  ;;  %v18388_v45 = vld [vmem:[#allocation72_spill] sm:$0xff] }
 0x1d0   : > { %v12994_v21 = vadd.f32 %v1690_v1, %v12913_v10  ;;  %2517 = vmatmul.mubr.f32.gmra.mrb[178].mxu1 %v18383_v0  ;;  %v1692_v54 = vpop.f32.mrb[73].mxu1  ;;  %v18386_v1 = vld [vmem:[#allocation71_spill] sm:$0xff]  ;;  %v11397_v0 = vld [vmem:[%s11636_s27 + $0x108] sm:$0xff]  ;;  %10832 = vmatprep.subr.bf16.mxu0 %v18189_v3 }
 0x1d1   : > { %v1125_v23 = vpop.f32.mrb[58].mxu0  ;;  %2521 = vmatprep.mubr.f32.mxu1 %v18384_v41  ;;  %10894 = vmatprep.subr.bf16.mxu1 %v10893_v52 }
 0x1d2   : > { %v12999_v38 = vadd.f32 %v18385_v40, %v1125_v23  ;;  %v1127_v4 = vpop.f32.mrb[59].mxu0  ;;  %9900 = vmatmul.mubr.f32.gmra.mrb[164].mxu0 %v12657_v14  ;;  %10896 = vmatpush3.bf16.msra.mxu1 %v10893_v52  ;;  %v3815_v14 = vld [vmem:[#allocation3 + $0x610] sm:$0xff]  ;;  %v18389_v40 = vld [vmem:[#allocation40_spill] sm:$0xff] }
 0x1d3   : > { %v1695_v53 = vpop.f32.mrb[74].mxu1  ;;  %9902 = vmatprep.mubr.f32.mxu0 %v12667_v16  ;;  %v18390_v4 = vld [vmem:[#allocation98_spill] sm:$0xff] }
 0x1d4   : > { %v13004_v10 = vadd.f32 %v1695_v53, %v12922_v43  ;;  %2522 = vmatmul.mubr.f32.gmra.mrb[180].mxu1 %v18386_v1  ;;  %v1697_v17 = vpop.f32.mrb[75].mxu1  ;;  %v3816_v43 = vld [vmem:[#allocation3 + $0x618] sm:$0xff] }
 0x1d5   : > { %v1130_v2 = vpop.f32.mrb[60].mxu0  ;;  %2526 = vmatprep.mubr.f32.mxu1 %v11397_v0  ;;  %v10833_v41 = vpack.c.bf16 %v3816_v43, %v3815_v14  ;;  %v3818_v17 = vld [vmem:[#allocation3 + $0x628] sm:$0xff]  ;;  %v11398_v14 = vld [vmem:[%s11636_s27 + $0x118] sm:$0xff] }
 0x1d6   : > { %v13009_v54 = vadd.f32 %v18387_v20, %v1130_v2  ;;  %v1132_v6 = vpop.f32.mrb[61].mxu0  ;;  %9903 = vmatmul.mubr.f32.gmra.mrb[166].mxu0 %v12675_v28  ;;  %v18391_v0 = vld [vmem:[#allocation73_spill] sm:$0xff] }
 0x1d7   : > { %v1700_v16 = vpop.f32.mrb[76].mxu1  ;;  %9905 = vmatprep.mubr.f32.mxu0 %v12685_v19  ;;  %10834 = vmatpush1.bf16.msra.mxu0 %v10833_v41 }
 0x1d8   : > { %v13015_v53 = vadd.f32 %v1700_v16, %v12931_v24  ;;  %2527 = vmatmul.mubr.f32.gmra.mrb[182].mxu1 %v18388_v45  ;;  %v1702_v23 = vpop.f32.mrb[77].mxu1  ;;  %v3817_v24 = vld [vmem:[#allocation3 + $0x620] sm:$0xff]  ;;  %10835 = vmatprep.subr.bf16.mxu0 %v18189_v3 }
 0x1d9   : > { %v1135_v52 = vpop.f32.mrb[62].mxu0  ;;  %2531 = vmatprep.mubr.f32.mxu1 %v18389_v40  ;;  %v10836_v6 = vpack.c.bf16 %v3818_v17, %v3817_v24  ;;  %v18393_v23 = vld [vmem:[#allocation75_spill] sm:$0xff]  ;;  %v11399_v40 = vld [vmem:[%s11636_s27 + $0x120] sm:$0xff] }
 0x1da   : > { %v13020_v28 = vadd.f32 %v18390_v4, %v1135_v52  ;;  %v1137_v1 = vpop.f32.mrb[63].mxu0  ;;  %9906 = vmatmul.mubr.f32.gmra.mrb[168].mxu0 %v12693_v13  ;;  %v18392_v13 = vld [vmem:[#allocation102_spill] sm:$0xff]  ;;  %v18394_v4 = vld [vmem:[#allocation101_spill] sm:$0xff] }
 0x1db   : > { %v1705_v19 = vpop.f32.mrb[78].mxu1  ;;  %9908 = vmatprep.mubr.f32.mxu0 %v12705_v25  ;;  %10837 = vmatpush1.bf16.msra.mxu0 %v10836_v6  ;;  %v18395_v17 = vld [vmem:[#allocation77_spill] sm:$0xff] }
 0x1dc   : > { %v13025_v2 = vadd.f32 %v1705_v19, %v12940_v49  ;;  %2532 = vmatmul.mubr.f32.gmra.mrb[184].mxu1 %v18391_v0  ;;  %v1707_v20 = vpop.f32.mrb[79].mxu1  ;;  %10838 = vmatprep.subr.bf16.mxu0 %v18189_v3  ;;  %v3820_v19 = vld [vmem:[#allocation3 + $0x638] sm:$0xff] }
 0x1dd   : > { %v1140_v16 = vpop.f32.mrb[64].mxu0  ;;  %2536 = vmatprep.mubr.f32.mxu1 %v11398_v14 }
 0x1de   : > { %v13031_v43 = vadd.f32 %v18392_v13, %v1140_v16  ;;  %v1142_v25 = vpop.f32.mrb[65].mxu0  ;;  %9909 = vmatmul.mubr.f32.gmra.mrb[170].mxu0 %v12712_v57  ;;  %v11400_v16 = vld [vmem:[%s11636_s27 + $0x128] sm:$0xff] }
 0x1df   : > { %v1710_v45 = vpop.f32.mrb[80].mxu1  ;;  %9911 = vmatprep.mubr.f32.mxu0 %v12727_v58  ;;  %v3822_v13 = vld [vmem:[#allocation3 + $0x648] sm:$0xff]  ;;  %v3855_v25 = vld [vmem:[#allocation3 + $0x750] sm:$0xff] }
 0x1e0   : > { %v13036_v49 = vadd.f32 %v1710_v45, %v12949_v33  ;;  %2537 = vmatmul.mubr.f32.gmra.mrb[186].mxu1 %v18393_v23  ;;  %v1712_v41 = vpop.f32.mrb[81].mxu1  ;;  %v3819_v33 = vld [vmem:[#allocation3 + $0x630] sm:$0xff] }
 0x1e1   : > { %v1145_v52 = vpop.f32.mrb[66].mxu0  ;;  %2541 = vmatprep.mubr.f32.mxu1 %v11399_v40  ;;  %v10839_v20 = vpack.c.bf16 %v3820_v19, %v3819_v33  ;;  %v18396_v23 = vld [vmem:[#allocation79_spill] sm:$0xff]  ;;  %v18398_v19 = vld [vmem:[#allocation81_spill] sm:$0xff] }
 0x1e2   : > { %v13042_v1 = vadd.f32 %v18394_v4, %v1145_v52  ;;  %v1147_v57 = vpop.f32.mrb[67].mxu0  ;;  %9912 = vmatmul.mubr.f32.gmra.mrb[172].mxu0 %v18314_v60  ;;  %v3856_v52 = vld [vmem:[#allocation3 + $0x758] sm:$0xff] }
 0x1e3   : > { %v1715_v58 = vpop.f32.mrb[82].mxu1  ;;  %9914 = vmatprep.mubr.f32.mxu0 %v18316_v46  ;;  %10840 = vmatpush1.bf16.msra.mxu0 %v10839_v20  ;;  %v10897_v4 = vpack.c.bf16 %v3856_v52, %v3855_v25  ;;  %v11402_v20 = vld [vmem:[%s11636_s27 + $0x138] sm:$0xff] }
 0x1e4   : > { %v13047_v24 = vadd.f32 %v1715_v58, %v12959_v63  ;;  %2542 = vmatmul.mubr.f32.gmra.mrb[188].mxu1 %v18395_v17  ;;  %v1717_v0 = vpop.f32.mrb[83].mxu1  ;;  %v3821_v63 = vld [vmem:[#allocation3 + $0x640] sm:$0xff]  ;;  %10841 = vmatprep.subr.bf16.mxu0 %v18189_v3 }
 0x1e5   : > { %v1150_v6 = vpop.f32.mrb[68].mxu0  ;;  %2546 = vmatprep.mubr.f32.mxu1 %v11400_v16  ;;  %10898 = vmatprep.subr.bf16.mxu1 %v10897_v4  ;;  %v3824_v16 = vld [vmem:[#allocation3 + $0x658] sm:$0xff] }
 0x1e6   : > { %v13052_v14 = vadd.f32 %v12733_v61, %v1150_v6  ;;  %v1152_v60 = vpop.f32.mrb[69].mxu0  ;;  %9915 = vmatmul.mubr.f32.gmra.mrb[174].mxu0 %v18318_v18  ;;  %v10842_v61 = vpack.c.bf16 %v3822_v13, %v3821_v63  ;;  %v11401_v18 = vld [vmem:[%s11636_s27 + $0x130] sm:$0xff]  ;;  %10900 = vmatpush3.bf16.msra.mxu1 %v10897_v4 }
 0x1e7   : > { %v1720_v46 = vpop.f32.mrb[84].mxu1  ;;  %9917 = vmatprep.mubr.f32.mxu0 %v18320_v22  ;;  %v18397_v22 = vld [vmem:[#allocation103_spill] sm:$0xff] }
 0x1e8   : > { %v13057_v45 = vadd.f32 %v1720_v46, %v12969_v27  ;;  %2547 = vmatmul.mubr.f32.gmra.mrb[190].mxu1 %v18396_v23  ;;  %v1722_v41 = vpop.f32.mrb[85].mxu1  ;;  %10843 = vmatpush1.bf16.msra.mxu0 %v10842_v61  ;;  %v18399_v46 = vld [vmem:[#allocation83_spill] sm:$0xff]  ;;  %v18400_v23 = vld [vmem:[#allocation106_spill] sm:$0xff] }
 0x1e9   : > { %v1155_v40 = vpop.f32.mrb[70].mxu0  ;;  %2551 = vmatprep.mubr.f32.mxu1 %v11401_v18  ;;  %10844 = vmatprep.subr.bf16.mxu0 %v18189_v3  ;;  %v3826_v61 = vld [vmem:[#allocation3 + $0x668] sm:$0xff] }
 0x1ea   : > { %v13063_v57 = vadd.f32 %v18397_v22, %v1155_v40  ;;  %v1157_v58 = vpop.f32.mrb[71].mxu0  ;;  %9918 = vmatmul.mubr.f32.gmra.mrb[176].mxu0 %v18322_v31  ;;  %v18401_v40 = vld [vmem:[#allocation85_spill] sm:$0xff] }
 0x1eb   : > { %v1725_v27 = vpop.f32.mrb[86].mxu1  ;;  %9920 = vmatprep.mubr.f32.mxu0 %v18324_v47  ;;  %v11404_v58 = vld [vmem:[%s11636_s27 + $0x148] sm:$0xff] }
 0x1ec   : > { %v13068_v33 = vadd.f32 %v1725_v27, %v12979_v55  ;;  %2552 = vmatmul.mubr.f32.gmra.mrb[192].mxu1 %v18398_v19  ;;  %v1727_v17 = vpop.f32.mrb[87].mxu1  ;;  %v3823_v55 = vld [vmem:[#allocation3 + $0x650] sm:$0xff] }
 0x1ed   : > { %v1160_v0 = vpop.f32.mrb[72].mxu0  ;;  %2556 = vmatprep.mubr.f32.mxu1 %v11402_v20  ;;  %v10845_v13 = vpack.c.bf16 %v3824_v16, %v3823_v55  ;;  %v18402_v19 = vld [vmem:[#allocation87_spill] sm:$0xff]  ;;  %v18403_v55 = vld [vmem:[#allocation89_spill] sm:$0xff] }
 0x1ee   : > { %v13073_v6 = vadd.f32 %v12754_v56, %v1160_v0  ;;  %v1162_v31 = vpop.f32.mrb[73].mxu0  ;;  %9921 = vmatmul.mubr.f32.gmra.mrb[178].mxu0 %v18326_v9  ;;  %v11403_v56 = vld [vmem:[%s11636_s27 + $0x140] sm:$0xff]  ;;  %v11405_v20 = vld [vmem:[%s11636_s27 + $0x150] sm:$0xff] }
 0x1ef   : > { %v1730_v47 = vpop.f32.mrb[88].mxu1  ;;  %9923 = vmatprep.mubr.f32.mxu0 %v18328_v15  ;;  %10846 = vmatpush1.bf16.msra.mxu0 %v10845_v13  ;;  %v3828_v31 = vld [vmem:[#allocation3 + $0x678] sm:$0xff] }
 0x1f0   : > { %v13079_v60 = vadd.f32 %v1730_v47, %v12989_v30  ;;  %2557 = vmatmul.mubr.f32.gmra.mrb[194].mxu1 %v18399_v46  ;;  %v1732_v63 = vpop.f32.mrb[89].mxu1  ;;  %v3825_v30 = vld [vmem:[#allocation3 + $0x660] sm:$0xff]  ;;  %10847 = vmatprep.subr.bf16.mxu0 %v18189_v3  ;;  %v11406_v13 = vld [vmem:[%s11636_s27 + $0x158] sm:$0xff] }
 0x1f1   : > { %v1165_v25 = vpop.f32.mrb[74].mxu0  ;;  %2561 = vmatprep.mubr.f32.mxu1 %v11403_v56  ;;  %v10848_v4 = vpack.c.bf16 %v3826_v61, %v3825_v30  ;;  %v3857_v56 = vld [vmem:[#allocation3 + $0x760] sm:$0xff]  ;;  %v3858_v30 = vld [vmem:[#allocation3 + $0x768] sm:$0xff] }
 0x1f2   : > { %v13084_v9 = vadd.f32 %v18400_v23, %v1165_v25  ;;  %v1167_v41 = vpop.f32.mrb[75].mxu0  ;;  %9924 = vmatmul.mubr.f32.gmra.mrb[180].mxu0 %v18329_v48  ;;  %v3830_v25 = vld [vmem:[#allocation3 + $0x688] sm:$0xff] }
 0x1f3   : > { %v1735_v15 = vpop.f32.mrb[90].mxu1  ;;  %9926 = vmatprep.mubr.f32.mxu0 %v18331_v8  ;;  %10849 = vmatpush1.bf16.msra.mxu0 %v10848_v4  ;;  %v18404_v41 = vld [vmem:[#allocation91_spill] sm:$0xff] }
 0x1f4   : > { %v13089_v52 = vadd.f32 %v1735_v15, %v12999_v38  ;;  %2562 = vmatmul.mubr.f32.gmra.mrb[196].mxu1 %v18401_v40  ;;  %v1737_v18 = vpop.f32.mrb[91].mxu1  ;;  %10850 = vmatprep.subr.bf16.mxu0 %v18189_v3  ;;  %v10901_v40 = vpack.c.bf16 %v3858_v30, %v3857_v56 }
 0x1f5   : > { %v1170_v22 = vpop.f32.mrb[76].mxu0  ;;  %2566 = vmatprep.mubr.f32.mxu1 %v11404_v58 }
 0x1f6   : > { %v13095_v48 = vadd.f32 %v12768_v29, %v1170_v22  ;;  %v1172_v8 = vpop.f32.mrb[77].mxu0  ;;  %9927 = vmatmul.mubr.f32.gmra.mrb[182].mxu0 %v18332_v11  ;;  %v18405_v22 = vld [vmem:[#allocation92_spill] sm:$0xff]  ;;  %10902 = vmatprep.subr.bf16.mxu1 %v10901_v40 }
 0x1f7   : > { %v1740_v27 = vpop.f32.mrb[92].mxu1  ;;  %9929 = vmatprep.mubr.f32.mxu0 %v18334_v7  ;;  %10904 = vmatpush3.bf16.msra.mxu1 %v10901_v40  ;;  %v18414_v40 = vld [vmem:[#allocation43_spill] sm:$0xff] }
 0x1f8   : > { %v13100_v38 = vadd.f32 %v1740_v27, %v13009_v54  ;;  %2567 = vmatmul.mubr.f32.gmra.mrb[198].mxu1 %v18402_v19  ;;  %v1742_v17 = vpop.f32.mrb[93].mxu1  ;;  %v3827_v54 = vld [vmem:[#allocation3 + $0x670] sm:$0xff]  ;;  %v11408_v27 = vld [vmem:[%s11636_s27 + $0x168] sm:$0xff] }
 0x1f9   : > { %v1175_v0 = vpop.f32.mrb[78].mxu0  ;;  %2571 = vmatprep.mubr.f32.mxu1 %v11405_v20  ;;  %v10851_v46 = vpack.c.bf16 %v3828_v31, %v3827_v54  ;;  %v3831_v19 = vld [vmem:[#allocation3 + $0x690] sm:$0xff]  ;;  %v3832_v17 = vld [vmem:[#allocation3 + $0x698] sm:$0xff]  ;;  %v18408_v31 = vld [vmem:[#allocation109_spill] sm:$0xff] }
 0x1fa   : > { %v13106_v29 = vadd.f32 %v12765_v34, %v1175_v0  ;;  %v1177_v11 = vpop.f32.mrb[79].mxu0  ;;  %9930 = vmatmul.mubr.f32.gmra.mrb[184].mxu0 %v18335_v42  ;;  %v18407_v20 = vld [vmem:[#allocation38_spill] sm:$0xff] }
 0x1fb   : > { %v1745_v7 = vpop.f32.mrb[94].mxu1  ;;  %9932 = vmatprep.mubr.f32.mxu0 %v18337_v59  ;;  %10852 = vmatpush1.bf16.msra.mxu0 %v10851_v46 }
 0x1fc   : > { %v13111_v47 = vadd.f32 %v1745_v7, %v13020_v28  ;;  %2572 = vmatmul.mubr.f32.gmra.mrb[200].mxu1 %v18403_v55  ;;  %v1747_v16 = vpop.f32.mrb[95].mxu1  ;;  %v3829_v28 = vld [vmem:[#allocation3 + $0x680] sm:$0xff]  ;;  %10853 = vmatprep.subr.bf16.mxu0 %v18189_v3  ;;  %v10857_v7 = vpack.c.bf16 %v3832_v17, %v3831_v19 }
 0x1fd   : > { %v1180_v63 = vpop.f32.mrb[80].mxu0  ;;  %2576 = vmatprep.mubr.f32.mxu1 %v11406_v13  ;;  %v18409_v16 = vld [vmem:[#allocation33_spill] sm:$0xff] }
 0x1fe   : > { %v13116_v34 = vadd.f32 %v12778_v26, %v1180_v63  ;;  %v1182_v42 = vpop.f32.mrb[81].mxu0  ;;  %9933 = vmatmul.mubr.f32.gmra.mrb[186].mxu0 %v18338_v35  ;;  %v10854_v26 = vpack.c.bf16 %v3830_v25, %v3829_v28  ;;  %v11407_v35 = vld [vmem:[%s11636_s27 + $0x160] sm:$0xff]  ;;  %v3834_v13 = vld [vmem:[#allocation3 + $0x6a8] sm:$0xff] }
 0x1ff   : > { %v1750_v59 = vpop.f32.mrb[96].mxu1  ;;  %9935 = vmatprep.mubr.f32.mxu0 %v18340_v51  ;;  %v18410_v63 = vld [vmem:[#allocation36_spill] sm:$0xff]  ;;  %v18417_v19 = vld [vmem:[#allocation45_spill] sm:$0xff] }
 0x200   : > { %v13121_v23 = vadd.f32 %v1750_v59, %v13031_v43  ;;  %2577 = vmatmul.mubr.f32.gmra.mrb[202].mxu1 %v18404_v41  ;;  %v1752_v15 = vpop.f32.mrb[97].mxu1  ;;  %10855 = vmatpush1.bf16.msra.mxu0 %v10854_v26  ;;  %v18411_v59 = vld [vmem:[#allocation93_spill] sm:$0xff]  ;;  %v11410_v41 = vld [vmem:[%s11636_s27 + $0x178] sm:$0xff] }
 0x201   : > { %v1185_v61 = vpop.f32.mrb[82].mxu0  ;;  %2581 = vmatprep.mubr.f32.mxu1 %v11407_v35  ;;  %10856 = vmatprep.subr.bf16.mxu0 %v18189_v3  ;;  %v18412_v15 = vld [vmem:[#allocation112_spill] sm:$0xff]  ;;  %v18413_v35 = vld [vmem:[#allocation41_spill] sm:$0xff] }
 0x202   : > { %v13127_v51 = vadd.f32 %v12774_v36, %v1185_v61  ;;  %v1187_v18 = vpop.f32.mrb[83].mxu0  ;;  %9936 = vmatmul.mubr.f32.gmra.mrb[188].mxu0 %v18342_v5 }
 0x203   : > { %v1755_v43 = vpop.f32.mrb[98].mxu1  ;;  %9938 = vmatprep.mubr.f32.mxu0 %v18344_v37 }
 0x204   : > { %v13132_v4 = vadd.f32 %v1755_v43, %v13042_v1  ;;  %2582 = vmatmul.mubr.f32.gmra.mrb[204].mxu1 %v18405_v22  ;;  %v1757_v58 = vpop.f32.mrb[99].mxu1  ;;  %v18406_v1 = vld [vmem:[#allocation32_spill] sm:$0xff]  ;;  %10858 = vmatpush1.bf16.msra.mxu0 %v10857_v7  ;;  %v11412_v7 = vld [vmem:[%s11636_s27 + $0x188] sm:$0xff] }
 0x205   : > { %v1190_v8 = vpop.f32.mrb[84].mxu0  ;;  %2586 = vmatprep.mubr.f32.mxu1 %v11408_v27  ;;  %10859 = vmatprep.subr.bf16.mxu0 %v18189_v3  ;;  %v11411_v22 = vld [vmem:[%s11636_s27 + $0x180] sm:$0xff]  ;;  %v18415_v58 = vld [vmem:[#allocation111_spill] sm:$0xff] }
 0x206   : > { %v13137_v36 = vadd.f32 %v12788_v62, %v1190_v8  ;;  %v1192_v5 = vpop.f32.mrb[85].mxu0  ;;  %9939 = vmatmul.mubr.f32.gmra.mrb[190].mxu0 %v18348_v50  ;;  %v11409_v62 = vld [vmem:[%s11636_s27 + $0x170] sm:$0xff] }
 0x207   : > { %v1760_v37 = vpop.f32.mrb[100].mxu1  ;;  %9941 = vmatprep.mubr.f32.mxu0 %v18406_v1  ;;  %v18416_v5 = vld [vmem:[#allocation46_spill] sm:$0xff] }
 0x208   : > { %v13143_v0 = vadd.f32 %v1760_v37, %v13052_v14  ;;  %2587 = vmatmul.mubr.f32.gmra.mrb[206].mxu1 %v18407_v20  ;;  %v1762_v11 = vpop.f32.mrb[101].mxu1  ;;  %v3833_v14 = vld [vmem:[#allocation3 + $0x6a0] sm:$0xff]  ;;  %v3836_v37 = vld [vmem:[#allocation3 + $0x6b8] sm:$0xff] }
 0x209   : > { %v1195_v54 = vpop.f32.mrb[86].mxu0  ;;  %2591 = vmatprep.mubr.f32.mxu1 %v11409_v62  ;;  %v10860_v25 = vpack.c.bf16 %v3834_v13, %v3833_v14  ;;  %v18420_v14 = vld [vmem:[#allocation48_spill] sm:$0xff] }
 0x20a   : > { %v13148_v50 = vadd.f32 %v18408_v31, %v1195_v54  ;;  %v1197_v55 = vpop.f32.mrb[87].mxu0  ;;  %9942 = vmatmul.mubr.f32.gmra.mrb[192].mxu0 %v18409_v16  ;;  %v18418_v54 = vld [vmem:[#allocation115_spill] sm:$0xff]  ;;  %v3838_v16 = vld [vmem:[#allocation3 + $0x6c8] sm:$0xff] }
 0x20b   : > { %v1765_v46 = vpop.f32.mrb[102].mxu1  ;;  %9944 = vmatprep.mubr.f32.mxu0 %v18410_v63  ;;  %10861 = vmatpush1.bf16.msra.mxu0 %v10860_v25  ;;  %v18419_v55 = vld [vmem:[#allocation50_spill] sm:$0xff] }
 0x20c   : > { %v13153_v42 = vadd.f32 %v1765_v46, %v13063_v57  ;;  %2592 = vmatmul.mubr.f32.gmra.mrb[208].mxu1 %v18411_v59  ;;  %v1767_v28 = vpop.f32.mrb[103].mxu1  ;;  %10862 = vmatprep.subr.bf16.mxu0 %v18189_v3  ;;  %v3859_v46 = vld [vmem:[#allocation3 + $0x770] sm:$0xff]  ;;  %v13189_v59 = vld [vmem:[%s11636_s27 + $0x1a0] sm:$0xff] }
 0x20d   : > { %v1200_v56 = vpop.f32.mrb[88].mxu0  ;;  %2596 = vmatprep.mubr.f32.mxu1 %v11410_v41  ;;  %v11414_v41 = vld [vmem:[%s11636_s27 + $0x198] sm:$0xff] }
 0x20e   : > { %v13159_v26 = vadd.f32 %v18412_v15, %v1200_v56  ;;  %v1202_v30 = vpop.f32.mrb[89].mxu0  ;;  %9945 = vmatmul.mubr.f32.gmra.mrb[194].mxu0 %v18358_v12  ;;  %v11413_v56 = vld [vmem:[%s11636_s27 + $0x190] sm:$0xff]  ;;  %v13194_v15 = vrot.slane %v11414_v41, 7 }
 0x20f   : > { %v1770_v61 = vpop.f32.mrb[104].mxu1  ;;  %9947 = vmatprep.mubr.f32.mxu0 %v18413_v35 }
 0x210   : > { %v13164_v57 = vadd.f32 %v1770_v61, %v13073_v6  ;;  %2597 = vmatmul.mubr.f32.gmra.mrb[210].mxu1 %v18414_v40  ;;  %v1772_v18 = vpop.f32.mrb[105].mxu1  ;;  %v3835_v6 = vld [vmem:[#allocation3 + $0x6b0] sm:$0xff]  ;;  %18421 = vst [vmem:[#allocation62_spill] sm:$0xff] %v13194_v15 }
 0x211   : > { %v1205_v43 = vpop.f32.mrb[90].mxu0  ;;  %2601 = vmatprep.mubr.f32.mxu1 %v11411_v22  ;;  %v10863_v20 = vpack.c.bf16 %v3836_v37, %v3835_v6  ;;  %v18422_v61 = vld [vmem:[#allocation114_spill] sm:$0xff]  ;;  %v18423_v18 = vld [vmem:[#allocation52_spill] sm:$0xff]  ;;  %v18425_v37 = vld [vmem:[#allocation49_spill] sm:$0xff] }
 0x212   : > { %v13170_v8 = vadd.f32 %v18415_v58, %v1205_v43  ;;  %v1207_v12 = vpop.f32.mrb[91].mxu0  ;;  %9948 = vmatmul.mubr.f32.gmra.mrb[196].mxu0 %v18363_v32  ;;  %v553_v43 = vrot.slane %v13189_v59, 1  ;;  %v18424_v58 = vld [vmem:[#allocation29_spill] sm:$0xff] }
 0x213   : > { %v1775_v27 = vpop.f32.mrb[106].mxu1  ;;  %9950 = vmatprep.mubr.f32.mxu0 %v18416_v5  ;;  %10864 = vmatpush1.bf16.msra.mxu0 %v10863_v20  ;;  %v388_v20 = vrot.slane %v13189_v59, 7 }
 0x214   : > { %v13175_v1 = vadd.f32 %v1775_v27, %v13084_v9  ;;  %2602 = vmatmul.mubr.f32.gmra.mrb[212].mxu1 %v18417_v19  ;;  %v1777_v17 = vpop.f32.mrb[107].mxu1  ;;  %v3837_v9 = vld [vmem:[#allocation3 + $0x6c0] sm:$0xff]  ;;  %10865 = vmatprep.subr.bf16.mxu0 %v18189_v3  ;;  %v11415_v27 = vld [vmem:[%s11636_s27 + $0x1a8] sm:$0xff]  ;;  %v5237_v19 = vld [vmem:[#allocation3 + $0x7d8] sm:$0xff] }
 0x215   : > { %v1210_v11 = vpop.f32.mrb[92].mxu0  ;;  %2606 = vmatprep.mubr.f32.mxu1 %v11412_v7  ;;  %v10866_v28 = vpack.c.bf16 %v3838_v16, %v3837_v9  ;;  %v554_v5 = vrot.slane %v11415_v27, 1  ;;  %v18431_v9 = vld [vmem:[#allocation57_spill] sm:$0xff] }
 0x216   : > { %v13180_v62 = vadd.f32 %v18418_v54, %v1210_v11  ;;  %v1212_v32 = vpop.f32.mrb[93].mxu0  ;;  %9951 = vmatmul.mubr.f32.gmra.mrb[198].mxu0 %v18368_v44  ;;  %v3860_v44 = vld [vmem:[#allocation3 + $0x778] sm:$0xff]  ;;  %v18428_v11 = vld [vmem:[#allocation58_spill] sm:$0xff]  ;;  %v18432_v16 = vld [vmem:[#allocation53_spill] sm:$0xff] }
 0x217   : > { %v1780_v31 = vpop.f32.mrb[108].mxu1  ;;  %9953 = vmatprep.mubr.f32.mxu0 %v18419_v55  ;;  %v10905_v30 = vpack.c.bf16 %v3860_v44, %v3859_v46  ;;  %10867 = vmatpush1.bf16.msra.mxu0 %v10866_v28  ;;  %v18429_v54 = vld [vmem:[#allocation54_spill] sm:$0xff]  ;;  %v18430_v32 = vld [vmem:[#allocation100_spill] sm:$0xff]  ;;  %v13221_v46 = vsel %vm555_vm0, %v18432_v16, %v553_v43 }
 0x218   : > { %v13185_v63 = vadd.f32 %v1780_v31, %v13095_v48  ;;  %2607 = vmatmul.mubr.f32.gmra.mrb[214].mxu1 %v18420_v14  ;;  %v1782_v13 = vpop.f32.mrb[109].mxu1  ;;  %10868 = vmatprep.subr.bf16.mxu0 %v18189_v3  ;;  %18433 = vst [vmem:[#allocation76_spill] sm:$0xff] %v13221_v46  ;;  %v3839_v14 = vld [vmem:[#allocation3 + $0x6d0] sm:$0xff] }
 0x219   : > { %v1215_v25 = vpop.f32.mrb[94].mxu0  ;;  %2611 = vmatprep.mubr.f32.mxu1 %v11413_v56  ;;  %10906 = vmatprep.subr.bf16.mxu1 %v10905_v30  ;;  %v3840_v13 = vld [vmem:[#allocation3 + $0x6d8] sm:$0xff] }
 0x21a   : > { %v13197_v48 = vadd.f32 %v18422_v61, %v1215_v25  ;;  %v1217_v35 = vpop.f32.mrb[95].mxu0  ;;  %9954 = vmatmul.mubr.f32.gmra.mrb[200].mxu0 %v18374_v39  ;;  %v18426_v39 = vrot.slane %v18425_v37, 7  ;;  %10908 = vmatpush3.bf16.msra.mxu1 %v10905_v30  ;;  %v13229_v25 = vsel %vm555_vm0, %v553_v43, %v554_v5  ;;  %v18435_v56 = vld [vmem:[#allocation119_spill] sm:$0xff]  ;;  %v10869_v30 = vpack.c.bf16 %v3840_v13, %v3839_v14  ;;  %v18439_v43 = vld [vmem:[#allocation105_spill] sm:$0xff]  ;;  %v18444_v14 = vld [vmem:[#allocation56_spill] sm:$0xff] }
 0x21b   : > { %v1785_v40 = vpop.f32.mrb[110].mxu1  ;;  %9956 = vmatprep.mubr.f32.mxu0 %v18423_v18  ;;  %10909 = vmatprep.subr.bf16.mxu1 %v18189_v3  ;;  %18434 = vst [vmem:[#allocation94_spill] sm:$0xff] %v13229_v25  ;;  %v13238_v35 = vsel %vm392_vm1, %v13194_v15, %v388_v20  ;;  %v18438_v18 = vld [vmem:[#allocation108_spill] sm:$0xff] }
 0x21c   : > { %v13203_v22 = vadd.f32 %v1785_v40, %v13106_v29  ;;  %2612 = vmatmul.mubr.f32.gmra.mrb[216].mxu1 %v18424_v58  ;;  %v1787_v12 = vpop.f32.mrb[111].mxu1  ;;  %v395_v17 = vsel %vm392_vm1, %v18426_v39, %v13194_v15  ;;  %18436 = vst [vmem:[#allocation31_spill] sm:$0xff] %v13238_v35  ;;  %v18440_v39 = vld [vmem:[#allocation55_spill] sm:$0xff]  ;;  %10870 = vmatpush1.bf16.msra.mxu0 %v10869_v30  ;;  %v18465_v15 = vld [vmem:[#allocation124_spill] sm:$0xff] }
 0x21d   : > { %v9687_v6 = vpop.f32.mrb[96].mxu0  ;;  %2616 = vmatprep.mubr.f32.mxu1 %v11414_v41  ;;  %10871 = vmatprep.subr.bf16.mxu0 %v18189_v3 }
 0x21e   : > { %v1291_v29 = vadd.f32 %v9687_v6, %v18428_v11  ;;  %v1285_v7 = vpop.f32.mrb[97].mxu0  ;;  %9957 = vmatmul.mubr.f32.gmra.mrb[202].mxu0 %v18429_v54  ;;  %v3841_v11 = vld [vmem:[#allocation3 + $0x6e0] sm:$0xff] }
 0x21f   : > { %v1286_v31 = vadd.f32 %v1285_v7, %v18430_v32  ;;  %v1790_v55 = vpop.f32.mrb[112].mxu1  ;;  %9959 = vmatprep.mubr.f32.mxu0 %v18431_v9  ;;  %v18443_v32 = vld [vmem:[#allocation123_spill] sm:$0xff] }
 0x220   : > { %v13225_v28 = vadd.f32 %v1790_v55, %v13116_v34  ;;  %2617 = vmatmul.mubr.f32.gmra.mrb[218].mxu1 %v395_v17  ;;  %v1792_v44 = vpop.f32.mrb[113].mxu1  ;;  %v13232_v41 = vadd.f32 %v18435_v56, %v1291_v29  ;;  %v18437_v34 = vld [vmem:[#allocation117_spill] sm:$0xff]  ;;  %v18448_v56 = vld [vmem:[#allocation44_spill] sm:$0xff] }
 0x221   : > { %v9690_v61 = vpop.f32.mrb[98].mxu0  ;;  %2621 = vmatprep.mubr.f32.mxu1 %v13189_v59  ;;  %v13241_v40 = vadd.f32 %v18437_v34, %v1286_v31  ;;  %v18441_v59 = vrot.slane %v18440_v39, 1  ;;  %v3842_v29 = vld [vmem:[#allocation3 + $0x6e8] sm:$0xff]  ;;  %v18449_v34 = vld [vmem:[#allocation39_spill] sm:$0xff] }
 0x222   : > { %v1301_v58 = vadd.f32 %v9690_v61, %v18438_v18  ;;  %v1295_v12 = vpop.f32.mrb[99].mxu0  ;;  %9960 = vmatmul.mubr.f32.gmra.mrb[204].mxu0 %v13221_v46  ;;  %v10872_v55 = vpack.c.bf16 %v3842_v29, %v3841_v11  ;;  %v18447_v44 = vld [vmem:[#allocation121_spill] sm:$0xff]  ;;  %v18451_v11 = vld [vmem:[#allocation11_spill] sm:$0xff] }
 0x223   : > { %v1296_v6 = vadd.f32 %v1295_v12, %v18439_v43  ;;  %v1795_v37 = vpop.f32.mrb[114].mxu1  ;;  %9962 = vmatprep.mubr.f32.mxu0 %v13229_v25  ;;  %v13251_v17 = vsel %vm555_vm0, %v554_v5, %v18441_v59  ;;  %v18445_v5 = vrot.slane %v18444_v14, 7  ;;  %v3843_v12 = vld [vmem:[#allocation3 + $0x6f0] sm:$0xff] }
 0x224   : > { %18442 = vst [vmem:[#allocation63_spill] sm:$0xff] %v13251_v17  ;;  %v13254_v7 = vadd.f32 %v1795_v37, %v13127_v51  ;;  %2622 = vmatmul.mubr.f32.gmra.mrb[220].mxu1 %v13238_v35  ;;  %v1797_v54 = vpop.f32.mrb[115].mxu1  ;;  %v13258_v31 = vadd.f32 %v18443_v32, %v1301_v58  ;;  %10873 = vmatpush1.bf16.msra.mxu0 %v10872_v55  ;;  %v18450_v37 = vld [vmem:[#allocation13_spill] sm:$0xff]  ;;  %v18464_v35 = vld [vmem:[#allocation12_spill] sm:$0xff] }
 0x225   : > { %v9693_v9 = vpop.f32.mrb[100].mxu0  ;;  %2626 = vmatprep.mubr.f32.mxu1 %v11415_v27  ;;  %v13265_v13 = vsel %vm392_vm1, %v388_v20, %v18445_v5  ;;  %v13268_v51 = vadd.f32 %v18447_v44, %v1296_v6  ;;  %v3844_v27 = vld [vmem:[#allocation3 + $0x6f8] sm:$0xff]  ;;  %10874 = vmatprep.subr.bf16.mxu0 %v18189_v3  ;;  %v18452_v54 = vld [vmem:[#allocation113_spill] sm:$0xff] }
 0x226   : > { %18446 = vst [vmem:[#allocation78_spill] sm:$0xff] %v13265_v13  ;;  %v1311_v30 = vadd.f32 %v9693_v9, %v18448_v56  ;;  %v1305_v61 = vpop.f32.mrb[101].mxu0  ;;  %9963 = vmatmul.mubr.f32.gmra.mrb[206].mxu0 %v13251_v17  ;;  %v10875_v39 = vpack.c.bf16 %v3844_v27, %v3843_v12  ;;  %v18453_v9 = vld [vmem:[#allocation110_spill] sm:$0xff]  ;;  %v18454_v56 = vld [vmem:[#allocation17_spill] sm:$0xff] }
 0x227   : > { %v1306_v18 = vadd.f32 %v1305_v61, %v18449_v34  ;;  %v1800_v58 = vpop.f32.mrb[116].mxu1  ;;  %v18455_v34 = vld [vmem:[#allocation15_spill] sm:$0xff]  ;;  %v18456_v12 = vld [vmem:[#allocation118_spill] sm:$0xff] }
 0x228   : > { %v13274_v43 = vadd.f32 %v1800_v58, %v13137_v36  ;;  %2627 = vmatmul.mubr.f32.gmra.mrb[222].mxu1 %v13265_v13  ;;  %v1802_v20 = vpop.f32.mrb[117].mxu1  ;;  %v13278_v6 = vadd.f32 %v18450_v37, %v1311_v30  ;;  %10876 = vmatpush1.bf16.msra.mxu0 %v10875_v39  ;;  %v18458_v39 = vld [vmem:[#allocation19_spill] sm:$0xff]  ;;  %v18461_v13 = vld [vmem:[#allocation120_spill] sm:$0xff] }
 0x229   : > { %v9696_v59 = vpop.f32.mrb[102].mxu0  ;;  %v13282_v29 = vadd.f32 %v18451_v11, %v1306_v18  ;;  %v18457_v20 = vld [vmem:[#allocation116_spill] sm:$0xff] }
 0x22a   : > { %v1321_v32 = vadd.f32 %v9696_v59, %v18452_v54  ;;  %v1315_v55 = vpop.f32.mrb[103].mxu0 }
 0x22b   : > { %v1316_v14 = vadd.f32 %v1315_v55, %v18453_v9  ;;  %v1805_v36 = vpop.f32.mrb[118].mxu1  ;;  %v18459_v9 = vld [vmem:[#allocation18_spill] sm:$0xff] }
 0x22c   : > { %v13287_v5 = vadd.f32 %v1805_v36, %v13148_v50  ;;  %v1807_v44 = vpop.f32.mrb[119].mxu1  ;;  %v1626_v30 = vadd.f32 %v18454_v56, %v1321_v32 }
 0x22d   : > { %v9699_v61 = vpop.f32.mrb[104].mxu0  ;;  %v1621_v58 = vadd.f32 %v18455_v34, %v1316_v14  ;;  %v18460_v44 = vld [vmem:[#allocation122_spill] sm:$0xff] }
 0x22e   : > { %v1331_v27 = vadd.f32 %v9699_v61, %v18456_v12  ;;  %v1325_v18 = vpop.f32.mrb[105].mxu0 }
 0x22f   : > { %v1326_v37 = vadd.f32 %v1325_v18, %v18457_v20  ;;  %v1810_v59 = vpop.f32.mrb[120].mxu1  ;;  %v18462_v18 = vld [vmem:[#allocation21_spill] sm:$0xff] }
 0x230   : > { %v13294_v11 = vadd.f32 %v1810_v59, %v13159_v26  ;;  %v1812_v54 = vpop.f32.mrb[121].mxu1  ;;  %v1636_v55 = vadd.f32 %v18458_v39, %v1331_v27  ;;  %v18463_v59 = vld [vmem:[#allocation20_spill] sm:$0xff] }
 0x231   : > { %v9702_v50 = vpop.f32.mrb[106].mxu0  ;;  %v1631_v36 = vadd.f32 %v18459_v9, %v1326_v37 }
 0x232   : > { %v1341_v32 = vadd.f32 %v9702_v50, %v18460_v44  ;;  %v1335_v56 = vpop.f32.mrb[107].mxu0  ;;  %v3787_v50 = vld [vmem:[#allocation3 + $0x580] sm:$0xff]  ;;  %v3788_v44 = vld [vmem:[#allocation3 + $0x588] sm:$0xff] }
 0x233   : > { %v1336_v14 = vadd.f32 %v1335_v56, %v18461_v13  ;;  %v1815_v34 = vpop.f32.mrb[122].mxu1 }
 0x234   : > { %v13301_v61 = vadd.f32 %v1815_v34, %v13170_v8  ;;  %v1817_v12 = vpop.f32.mrb[123].mxu1  ;;  %v1646_v20 = vadd.f32 %v18462_v18, %v1341_v32  ;;  %v18466_v8 = vld [vmem:[#allocation23_spill] sm:$0xff]  ;;  %v18467_v18 = vld [vmem:[#allocation22_spill] sm:$0xff] }
 0x235   : > { %v9705_v26 = vpop.f32.mrb[108].mxu0  ;;  %v1641_v54 = vadd.f32 %v18463_v59, %v1336_v14  ;;  %v13311_v12 = vpack.c.bf16 %v3788_v44, %v3787_v50  ;;  %v18468_v14 = vld [vmem:[#allocation16_spill] sm:$0xff] }
 0x236   : > { %v1351_v27 = vadd.f32 %v9705_v26, %v18464_v35  ;;  %v1345_v39 = vpop.f32.mrb[109].mxu0  ;;  %v18471_v50 = vld [vmem:[#allocation24_spill] sm:$0xff] }
 0x237   : > { %v1346_v37 = vadd.f32 %v1345_v39, %v18465_v15  ;;  %v1820_v9 = vpop.f32.mrb[124].mxu1  ;;  %10958 = vmatprep.subr.bf16.mxu0 %v13311_v12  ;;  %v18469_v15 = vld [vmem:[#allocation14_spill] sm:$0xff] }
 0x238   : > { %v13308_v13 = vadd.f32 %v1820_v9, %v13180_v62  ;;  %v1822_v56 = vpop.f32.mrb[125].mxu1  ;;  %v1656_v34 = vadd.f32 %v18466_v8, %v1351_v27  ;;  %v18470_v9 = vld [vmem:[#allocation25_spill] sm:$0xff] }
 0x239   : > { %v9708_v32 = vpop.f32.mrb[110].mxu0  ;;  %v1651_v17 = vadd.f32 %v18467_v18, %v1346_v37 }
 0x23a   : > { %v1361_v59 = vadd.f32 %v9708_v32, %v18468_v14  ;;  %v1355_v35 = vpop.f32.mrb[111].mxu0 }
 0x23b   : > { %v1356_v26 = vadd.f32 %v1355_v35, %v18469_v15  ;;  %v1825_v39 = vpop.f32.mrb[126].mxu1 }
 0x23c   : > { %v13318_v25 = vadd.f32 %v1825_v39, %v13197_v48  ;;  %v1827_v62 = vpop.f32.mrb[127].mxu1  ;;  %v1666_v56 = vadd.f32 %v18470_v9, %v1361_v59 }
 0x23d   : > { %v9791_v27 = vpop.f32.mrb[112].mxu0  ;;  %v1661_v44 = vadd.f32 %v18471_v50, %v1356_v26 }
 0x23e   : > { %v13323_v8 = vadd.f32 %v9791_v27, %v13232_v41  ;;  %v1895_v37 = vpop.f32.mrb[113].mxu0 }
 0x23f   : > { %v13326_v32 = vadd.f32 %v1895_v37, %v13241_v40  ;;  %v13328_v18 = vpop.f32.mrb[128].mxu1 }
 0x240   : > { %v2395_v14 = vpop.f32.mrb[129].mxu1 }
 0x241   : > { %v9794_v35 = vpop.f32.mrb[114].mxu0 }
 0x242   : > { %v13331_v48 = vadd.f32 %v9794_v35, %v13258_v31  ;;  %v1905_v15 = vpop.f32.mrb[115].mxu0 }
 0x243   : > { %v13334_v59 = vadd.f32 %v1905_v15, %v13268_v51  ;;  %v13336_v39 = vpop.f32.mrb[130].mxu1 }
 0x244   : > { %v2400_v26 = vpop.f32.mrb[131].mxu1 }
 0x245   : > { %v9797_v41 = vpop.f32.mrb[116].mxu0 }
 0x246   : > { %v13339_v62 = vadd.f32 %v9797_v41, %v13278_v6  ;;  %v1915_v40 = vpop.f32.mrb[117].mxu0 }
 0x247   : > { %v13342_v9 = vadd.f32 %v1915_v40, %v13282_v29  ;;  %v13344_v27 = vpop.f32.mrb[132].mxu1 }
 0x248   : > { %v2405_v50 = vpop.f32.mrb[133].mxu1 }
 0x249   : > { %v9800_v31 = vpop.f32.mrb[118].mxu0 }
 0x24a   : > { %v13346_v37 = vadd.f32 %v9800_v31, %v1626_v30  ;;  %v1925_v14 = vpop.f32.mrb[119].mxu0 }
 0x24b   : > { %v13348_v51 = vadd.f32 %v1925_v14, %v1621_v58  ;;  %v13350_v35 = vpop.f32.mrb[134].mxu1 }
 0x24c   : > { %v2410_v15 = vpop.f32.mrb[135].mxu1 }
 0x24d   : > { %v9803_v26 = vpop.f32.mrb[120].mxu0 }
 0x24e   : > { %v13352_v46 = vadd.f32 %v9803_v26, %v1636_v55  ;;  %v1935_v6 = vpop.f32.mrb[121].mxu0 }
 0x24f   : > { %v13354_v41 = vadd.f32 %v1935_v6, %v1631_v36  ;;  %v13356_v29 = vpop.f32.mrb[136].mxu1 }
 0x250   : > { %v2415_v40 = vpop.f32.mrb[137].mxu1 }
 0x251   : > { %18472 = vst [vmem:[#allocation64_spill] sm:$0xff] %v13354_v41  ;;  %v9806_v16 = vpop.f32.mrb[122].mxu0 }
 0x252   : > { %v13358_v50 = vadd.f32 %v9806_v16, %v1646_v20  ;;  %v1945_v30 = vpop.f32.mrb[123].mxu0 }
 0x253   : > { %v13360_v31 = vadd.f32 %v1945_v30, %v1641_v54  ;;  %v13362_v58 = vpop.f32.mrb[138].mxu1 }
 0x254   : > { %18473 = vst [vmem:[#allocation80_spill] sm:$0xff] %v13358_v50  ;;  %v2420_v14 = vpop.f32.mrb[139].mxu1 }
 0x255   : > { %18474 = vst [vmem:[#allocation37_spill] sm:$0xff] %v13360_v31  ;;  %v9809_v3 = vpop.f32.mrb[124].mxu0  ;;  %v18478_v14 = vld [vmem:[#allocation74_spill] sm:$0xff] }
 0x256   : > { %v13364_v15 = vadd.f32 %v9809_v3, %v1656_v34  ;;  %v1955_v55 = vpop.f32.mrb[125].mxu0  ;;  %v18480_v34 = vld [vmem:[#allocation27_spill] sm:$0xff] }
 0x257   : > { %v13366_v26 = vadd.f32 %v1955_v55, %v1651_v17  ;;  %v13368_v36 = vpop.f32.mrb[140].mxu1 }
 0x258   : > { %v2425_v6 = vpop.f32.mrb[141].mxu1 }
 0x259   : > { %18475 = vst [vmem:[#allocation65_spill] sm:$0xff] %v13366_v26  ;;  %v9812_v41 = vpop.f32.mrb[126].mxu0 }
 0x25a   : > { %v13370_v40 = vadd.f32 %v9812_v41, %v1666_v56  ;;  %v1965_v16 = vpop.f32.mrb[127].mxu0  ;;  %v18482_v56 = vld [vmem:[#allocation30_spill] sm:$0xff] }
 0x25b   : > { %v13372_v20 = vadd.f32 %v1965_v16, %v1661_v44  ;;  %v13374_v54 = vpop.f32.mrb[142].mxu1  ;;  %v18484_v16 = vld [vmem:[#allocation28_spill] sm:$0xff] }
 0x25c   : > { %18476 = vst [vmem:[#allocation82_spill] sm:$0xff] %v13370_v40  ;;  %v2430_v30 = vpop.f32.mrb[143].mxu1 }
 0x25d   : > { %18477 = vst [vmem:[#allocation42_spill] sm:$0xff] %v13372_v20  ;;  %v9815_v31 = vpop.f32.mrb[128].mxu0 }
 0x25e   : > { %v13377_v50 = vadd.f32 %v9815_v31, %v18478_v14  ;;  %v1975_v3 = vpop.f32.mrb[129].mxu0 }
 0x25f   : > { %v13380_v17 = vadd.f32 %v1975_v3, %v18480_v34  ;;  %v13382_v55 = vpop.f32.mrb[144].mxu1 }
 0x260   : > { %18479 = vst [vmem:[#allocation66_spill] sm:$0xff] %v13377_v50  ;;  %v2435_v6 = vpop.f32.mrb[145].mxu1 }
 0x261   : > { %18481 = vst [vmem:[#allocation84_spill] sm:$0xff] %v13380_v17  ;;  %v9818_v26 = vpop.f32.mrb[130].mxu0 }
 0x262   : > { %v13385_v41 = vadd.f32 %v9818_v26, %v18482_v56  ;;  %v1985_v44 = vpop.f32.mrb[131].mxu0 }
 0x263   : > { %v13388_v20 = vadd.f32 %v1985_v44, %v18484_v16  ;;  %v13390_v30 = vpop.f32.mrb[146].mxu1 }
 0x264   : > { %18483 = vst [vmem:[#allocation47_spill] sm:$0xff] %v13385_v41  ;;  %v2440_v40 = vpop.f32.mrb[147].mxu1  ;;  %v13551_v41 = vld [vmem:[#allocation3 + $0x520] sm:$0xff] }
 0x265   : > { %18485 = vst [vmem:[#allocation67_spill] sm:$0xff] %v13388_v20  ;;  %v9821_v31 = vpop.f32.mrb[132].mxu0  ;;  %18532 = vst [vmem:[#allocation48_spill] sm:$0xff] %v13551_v41  ;;  %v3795_v41 = vld [vmem:[#allocation3 + $0x5c0] sm:$0xff] }
 0x266   : > { %v13393_v14 = vadd.f32 %v9821_v31, %v13004_v10  ;;  %v1995_v3 = vpop.f32.mrb[133].mxu0 }
 0x267   : > { %v13396_v34 = vadd.f32 %v1995_v3, %v12994_v21  ;;  %v13398_v6 = vpop.f32.mrb[148].mxu1 }
 0x268   : > { %18486 = vst [vmem:[#allocation86_spill] sm:$0xff] %v13393_v14  ;;  %v2445_v17 = vpop.f32.mrb[149].mxu1 }
 0x269   : > { %18487 = vst [vmem:[#allocation95_spill] sm:$0xff] %v13396_v34  ;;  %v9824_v26 = vpop.f32.mrb[134].mxu0 }
 0x26a   : > { %v13401_v56 = vadd.f32 %v9824_v26, %v13025_v2  ;;  %v2005_v44 = vpop.f32.mrb[135].mxu0 }
 0x26b   : > { %v13404_v16 = vadd.f32 %v2005_v44, %v13015_v53  ;;  %v13406_v40 = vpop.f32.mrb[150].mxu1 }
 0x26c   : > { %18488 = vst [vmem:[#allocation51_spill] sm:$0xff] %v13401_v56  ;;  %v2450_v20 = vpop.f32.mrb[151].mxu1  ;;  %v13540_v56 = vld [vmem:[#allocation3 + $0x508] sm:$0xff] }
 0x26d   : > { %18489 = vst [vmem:[#allocation68_spill] sm:$0xff] %v13404_v16  ;;  %v9827_v10 = vpop.f32.mrb[136].mxu0  ;;  %18529 = vst [vmem:[#allocation45_spill] sm:$0xff] %v13540_v56 }
 0x26e   : > { %v13409_v31 = vadd.f32 %v9827_v10, %v13047_v24  ;;  %v2015_v21 = vpop.f32.mrb[137].mxu0 }
 0x26f   : > { %v13412_v3 = vadd.f32 %v2015_v21, %v13036_v49  ;;  %v13414_v17 = vpop.f32.mrb[152].mxu1 }
 0x270   : > { %18490 = vst [vmem:[#allocation88_spill] sm:$0xff] %v13409_v31  ;;  %v2455_v34 = vpop.f32.mrb[153].mxu1  ;;  %v13538_v31 = vld [vmem:[#allocation3 + $0x500] sm:$0xff] }
 0x271   : > { %18491 = vst [vmem:[#allocation35_spill] sm:$0xff] %v13412_v3  ;;  %v9830_v2 = vpop.f32.mrb[138].mxu0  ;;  %18528 = vst [vmem:[#allocation46_spill] sm:$0xff] %v13538_v31  ;;  %v3089_v31 = vld [vmem:[%s17554_s3 + $0x8] sm:$0xff] }
 0x272   : > { %v13417_v26 = vadd.f32 %v9830_v2, %v13068_v33  ;;  %v2025_v53 = vpop.f32.mrb[139].mxu0 }
 0x273   : > { %v13420_v44 = vadd.f32 %v2025_v53, %v13057_v45  ;;  %v13422_v20 = vpop.f32.mrb[154].mxu1 }
 0x274   : > { %18492 = vst [vmem:[#allocation69_spill] sm:$0xff] %v13417_v26  ;;  %v2460_v16 = vpop.f32.mrb[155].mxu1  ;;  %v13536_v26 = vld [vmem:[#allocation5] ss:$0 sm:$0xff] }
 0x275   : > { %18493 = vst [vmem:[#allocation90_spill] sm:$0xff] %v13420_v44  ;;  %v9833_v24 = vpop.f32.mrb[140].mxu0 }
 0x276   : > { %v13425_v10 = vadd.f32 %v9833_v24, %v13089_v52  ;;  %v2035_v49 = vpop.f32.mrb[141].mxu0 }
 0x277   : > { %v13428_v21 = vadd.f32 %v2035_v49, %v13079_v60  ;;  %v13430_v34 = vpop.f32.mrb[156].mxu1 }
 0x278   : > { %18494 = vst [vmem:[#allocation97_spill] sm:$0xff] %v13425_v10  ;;  %18496 = vst [vmem:[#allocation34_spill] sm:$0xff] %v13430_v34  ;;  %v2465_v3 = vpop.f32.mrb[157].mxu1  ;;  %v13534_v10 = vld [vmem:[#allocation3 + $0x4f8] sm:$0xff] }
 0x279   : > { %18495 = vst [vmem:[#allocation70_spill] sm:$0xff] %v13428_v21  ;;  %v9836_v33 = vpop.f32.mrb[142].mxu0 }
 0x27a   : > { %v13433_v2 = vadd.f32 %v9836_v33, %v13111_v47  ;;  %v2045_v45 = vpop.f32.mrb[143].mxu0 }
 0x27b   : > { %v13436_v53 = vadd.f32 %v2045_v45, %v13100_v38  ;;  %v13438_v16 = vpop.f32.mrb[158].mxu1 }
 0x27c   : > { %18497 = vst [vmem:[#allocation96_spill] sm:$0xff] %v13433_v2  ;;  %18499 = vst [vmem:[#allocation99_spill] sm:$0xff] %v13438_v16  ;;  %v2470_v44 = vpop.f32.mrb[159].mxu1  ;;  %v13532_v2 = vld [vmem:[#allocation3 + $0x4f0] sm:$0xff] }
 0x27d   : > { %18498 = vst [vmem:[#allocation71_spill] sm:$0xff] %v13436_v53  ;;  %v9839_v52 = vpop.f32.mrb[144].mxu0  ;;  %18527 = vst [vmem:[#allocation111_spill] sm:$0xff] %v13532_v2  ;;  %v3088_v2 = vld [vmem:[%s17554_s3] sm:$0xff] }
 0x27e   : > { %v13441_v24 = vadd.f32 %v9839_v52, %v13132_v4  ;;  %v2055_v60 = vpop.f32.mrb[145].mxu0 }
 0x27f   : > { %v13444_v49 = vadd.f32 %v2055_v60, %v13121_v23  ;;  %v13446_v3 = vpop.f32.mrb[160].mxu1 }
 0x280   : > { %18500 = vst [vmem:[#allocation72_spill] sm:$0xff] %v13441_v24  ;;  %18502 = vst [vmem:[#allocation98_spill] sm:$0xff] %v13446_v3  ;;  %v2475_v21 = vpop.f32.mrb[161].mxu1  ;;  %v13564_v3 = vld [vmem:[#allocation3 + $0x530] sm:$0xff] }
 0x281   : > { %18501 = vst [vmem:[#allocation40_spill] sm:$0xff] %v13444_v49  ;;  %v9842_v47 = vpop.f32.mrb[146].mxu0  ;;  %18535 = vst [vmem:[#allocation29_spill] sm:$0xff] %v13564_v3 }
 0x282   : > { %v13449_v33 = vadd.f32 %v9842_v47, %v13153_v42  ;;  %v2065_v38 = vpop.f32.mrb[147].mxu0 }
 0x283   : > { %v13452_v45 = vadd.f32 %v2065_v38, %v13143_v0  ;;  %v13454_v44 = vpop.f32.mrb[162].mxu1 }
 0x284   : > { %18503 = vst [vmem:[#allocation73_spill] sm:$0xff] %v13449_v33  ;;  %18505 = vst [vmem:[#allocation75_spill] sm:$0xff] %v13454_v44  ;;  %v2480_v53 = vpop.f32.mrb[163].mxu1  ;;  %v13530_v33 = vld [vmem:[#allocation3 + $0x4e8] sm:$0xff]  ;;  %v3793_v44 = vld [vmem:[#allocation3 + $0x5b0] sm:$0xff] }
 0x285   : > { %18504 = vst [vmem:[#allocation102_spill] sm:$0xff] %v13452_v45  ;;  %v9845_v4 = vpop.f32.mrb[148].mxu0  ;;  %18526 = vst [vmem:[#allocation43_spill] sm:$0xff] %v13530_v33 }
 0x286   : > { %v13457_v52 = vadd.f32 %v9845_v4, %v13175_v1  ;;  %v2075_v23 = vpop.f32.mrb[149].mxu0 }
 0x287   : > { %v13460_v60 = vadd.f32 %v2075_v23, %v13164_v57  ;;  %v13462_v21 = vpop.f32.mrb[164].mxu1 }
 0x288   : > { %18506 = vst [vmem:[#allocation101_spill] sm:$0xff] %v13457_v52  ;;  %18508 = vst [vmem:[#allocation79_spill] sm:$0xff] %v13462_v21  ;;  %v2485_v49 = vpop.f32.mrb[165].mxu1  ;;  %v13528_v52 = vld [vmem:[#allocation3 + $0x4e0] sm:$0xff]  ;;  %v13553_v21 = vld [vmem:[#allocation3 + $0x528] sm:$0xff] }
 0x289   : > { %18507 = vst [vmem:[#allocation77_spill] sm:$0xff] %v13460_v60  ;;  %v9848_v42 = vpop.f32.mrb[150].mxu0  ;;  %18525 = vst [vmem:[#allocation41_spill] sm:$0xff] %v13528_v52 }
 0x28a   : > { %v13465_v47 = vadd.f32 %v9848_v42, %v13203_v22  ;;  %v2085_v0 = vpop.f32.mrb[151].mxu0  ;;  %18533 = vst [vmem:[#allocation114_spill] sm:$0xff] %v13553_v21  ;;  %v3796_v21 = vld [vmem:[#allocation3 + $0x5c8] sm:$0xff] }
 0x28b   : > { %v13468_v38 = vadd.f32 %v2085_v0, %v13185_v63  ;;  %v13470_v53 = vpop.f32.mrb[166].mxu1 }
 0x28c   : > { %18509 = vst [vmem:[#allocation103_spill] sm:$0xff] %v13465_v47  ;;  %18511 = vst [vmem:[#allocation83_spill] sm:$0xff] %v13470_v53  ;;  %v2490_v45 = vpop.f32.mrb[167].mxu1  ;;  %v13520_v47 = vld [vmem:[#allocation3 + $0x4c0] sm:$0xff] }
 0x28d   : > { %18510 = vst [vmem:[#allocation81_spill] sm:$0xff] %v13468_v38  ;;  %v9851_v1 = vpop.f32.mrb[152].mxu0 }
 0x28e   : > { %v13473_v4 = vadd.f32 %v9851_v1, %v13254_v7  ;;  %v2095_v57 = vpop.f32.mrb[153].mxu0 }
 0x28f   : > { %v13476_v23 = vadd.f32 %v2095_v57, %v13225_v28  ;;  %v13478_v49 = vpop.f32.mrb[168].mxu1 }
 0x290   : > { %18512 = vst [vmem:[#allocation106_spill] sm:$0xff] %v13473_v4  ;;  %18514 = vst [vmem:[#allocation87_spill] sm:$0xff] %v13478_v49  ;;  %v2495_v60 = vpop.f32.mrb[169].mxu1  ;;  %v13566_v49 = vld [vmem:[#allocation3 + $0x538] sm:$0xff] }
 0x291   : > { %18513 = vst [vmem:[#allocation85_spill] sm:$0xff] %v13476_v23  ;;  %v9854_v22 = vpop.f32.mrb[154].mxu0 }
 0x292   : > { %v13481_v42 = vadd.f32 %v9854_v22, %v13287_v5  ;;  %v2105_v63 = vpop.f32.mrb[155].mxu0  ;;  %v13496_v22 = vld [vmem:[#allocation3 + $0x480] sm:$0xff] }
 0x293   : > { %v13484_v0 = vadd.f32 %v2105_v63, %v13274_v43  ;;  %v13486_v45 = vpop.f32.mrb[170].mxu1  ;;  %v13500_v43 = vld [vmem:[#allocation3 + $0x490] sm:$0xff]  ;;  %v13502_v63 = vld [vmem:[#allocation3 + $0x498] sm:$0xff] }
 0x294   : > { %18515 = vst [vmem:[#allocation89_spill] sm:$0xff] %v13481_v42  ;;  %18517 = vst [vmem:[#allocation92_spill] sm:$0xff] %v13486_v45  ;;  %v2500_v38 = vpop.f32.mrb[171].mxu1  ;;  %v13498_v42 = vld [vmem:[#allocation3 + $0x488] sm:$0xff]  ;;  %v13549_v45 = vld [vmem:[#allocation3 + $0x518] sm:$0xff] }
 0x295   : > { %18516 = vst [vmem:[#allocation91_spill] sm:$0xff] %v13484_v0  ;;  %v9857_v7 = vpop.f32.mrb[156].mxu0  ;;  %18531 = vst [vmem:[#allocation50_spill] sm:$0xff] %v13549_v45 }
 0x296   : > { %v13489_v1 = vadd.f32 %v9857_v7, %v13301_v61  ;;  %v2115_v28 = vpop.f32.mrb[157].mxu0  ;;  %v13507_v7 = vld [vmem:[#allocation3 + $0x4a0] sm:$0xff] }
 0x297   : > { %v13492_v57 = vadd.f32 %v2115_v28, %v13294_v11  ;;  %v13494_v60 = vpop.f32.mrb[172].mxu1  ;;  %v13509_v11 = vld [vmem:[#allocation3 + $0x4a8] sm:$0xff]  ;;  %v13511_v28 = vld [vmem:[#allocation3 + $0x4b0] sm:$0xff] }
 0x298   : > { %18518 = vst [vmem:[#allocation32_spill] sm:$0xff] %v13489_v1  ;;  %18520 = vst [vmem:[#allocation109_spill] sm:$0xff] %v13494_v60  ;;  %v2505_v23 = vpop.f32.mrb[173].mxu1  ;;  %v3790_v1 = vld [vmem:[#allocation3 + $0x598] sm:$0xff]  ;;  %v13542_v60 = vld [vmem:[#allocation3 + $0x510] sm:$0xff] }
 0x299   : > { %18519 = vst [vmem:[#allocation38_spill] sm:$0xff] %v13492_v57  ;;  %v9860_v5 = vpop.f32.mrb[158].mxu0  ;;  %18522 = vst [vmem:[#allocation36_spill] sm:$0xff] %v13511_v28  ;;  %v13513_v23 = vld [vmem:[#allocation3 + $0x4b8] sm:$0xff]  ;;  %v3789_v57 = vld [vmem:[#allocation3 + $0x590] sm:$0xff] }
 0x29a   : > { %v13505_v38 = vadd.f32 %v9860_v5, %v13318_v25  ;;  %v2125_v61 = vpop.f32.mrb[159].mxu0  ;;  %v13522_v25 = vld [vmem:[#allocation3 + $0x4c8] sm:$0xff]  ;;  %v13524_v5 = vld [vmem:[#allocation3 + $0x4d0] sm:$0xff]  ;;  %18530 = vst [vmem:[#allocation115_spill] sm:$0xff] %v13542_v60 }
 0x29b   : > { %v13516_v0 = vadd.f32 %v2125_v61, %v13308_v13  ;;  %v13518_v4 = vpop.f32.mrb[174].mxu1  ;;  %v3791_v13 = vld [vmem:[#allocation3 + $0x5a0] sm:$0xff]  ;;  %v3792_v61 = vld [vmem:[#allocation3 + $0x5a8] sm:$0xff] }
 0x29c   : > { %18521 = vst [vmem:[#allocation33_spill] sm:$0xff] %v13505_v38  ;;  %18524 = vst [vmem:[#allocation112_spill] sm:$0xff] %v13518_v4  ;;  %v13526_v38 = vld [vmem:[#allocation3 + $0x4d8] sm:$0xff]  ;;  %v2510_v24 = vpop.f32.mrb[175].mxu1 }
 0x29d   : > { %18523 = vst [vmem:[#allocation93_spill] sm:$0xff] %v13516_v0  ;;  %v9895_v0 = vpop.f32.mrb[160].mxu0  ;;  %v13562_v24 = vpack.c.bf16 %v3790_v1, %v3789_v57  ;;  %v13575_v1 = vld [vmem:[#allocation3 + $0x540] sm:$0xff]  ;;  %v13577_v57 = vld [vmem:[#allocation3 + $0x548] sm:$0xff] }
 0x29e   : > { %v2704_v4 = vadd.f32 %v9895_v0, %v13336_v39  ;;  %v2698_v14 = vpop.f32.mrb[161].mxu0  ;;  %v3794_v0 = vld [vmem:[#allocation3 + $0x5b8] sm:$0xff]  ;;  %18536 = vst [vmem:[#allocation49_spill] sm:$0xff] %v13575_v1  ;;  %v13590_v39 = vld [vmem:[#allocation3 + $0x560] sm:$0xff] }
 0x29f   : > { %v2699_v53 = vadd.f32 %v2698_v14, %v13328_v18  ;;  %v13556_v50 = vpop.f32.mrb[176].mxu1  ;;  %v13586_v14 = vld [vmem:[#allocation3 + $0x550] sm:$0xff]  ;;  %v13588_v18 = vld [vmem:[#allocation3 + $0x558] sm:$0xff] }
 0x2a0   : > { %18534 = vst [vmem:[#allocation52_spill] sm:$0xff] %v13556_v50  ;;  %v2938_v34 = vadd.f32 %v2704_v4, %v13323_v8  ;;  %v2515_v16 = vpop.f32.mrb[177].mxu1  ;;  %v13600_v4 = vld [vmem:[#allocation3 + $0x570] sm:$0xff]  ;;  %v13602_v8 = vld [vmem:[#allocation3 + $0x578] sm:$0xff] }
 0x2a1   : > { %v2937_v50 = vadd.f32 %v2699_v53, %v13326_v32  ;;  %v9898_v28 = vpop.f32.mrb[162].mxu0  ;;  %v13582_v16 = vpack.c.bf16 %v3792_v61, %v3791_v13  ;;  %v13598_v61 = vld [vmem:[#allocation3 + $0x568] sm:$0xff]  ;;  %18537 = vst [vmem:[#allocation58_spill] sm:$0xff] %v13600_v4  ;;  %v13613_v13 = vpack.c.bf16 %v3794_v0, %v3793_v44 }
 0x2a2   : > { %v2993_v52 = vadd.f32 %v13536_v26, %v2938_v34  ;;  %v2714_v33 = vadd.f32 %v9898_v28, %v13350_v35  ;;  %v2708_v32 = vpop.f32.mrb[163].mxu0  ;;  %v5259_v53 = vld [vmem:[#allocation3 + $0x888] sm:$0xff] }
 0x2a3   : > { %v2992_v34 = vadd.f32 %v13536_v26, %v2937_v50  ;;  %v2709_v35 = vadd.f32 %v2708_v32, %v13344_v27  ;;  %v13609_v28 = vpop.f32.mrb[178].mxu1  ;;  %v5258_v32 = vld [vmem:[#allocation3 + $0x880] sm:$0xff]  ;;  %v13632_v50 = vpack.c.bf16 %v3796_v21, %v3795_v41  ;;  %v3090_v41 = vld [vmem:[%s17554_s3 + $0x10] sm:$0xff] }
 0x2a4   : > { %v3041_v60 = vmax.f32 %v2993_v52, 0.0  ;;  %v2940_v45 = vadd.f32 %v2714_v33, %v13331_v48  ;;  %v2520_v56 = vpop.f32.mrb[179].mxu1 }
 0x2a5   : > { %v3040_v44 = vmax.f32 %v2992_v34, 0.0  ;;  %v2939_v0 = vadd.f32 %v2709_v35, %v13334_v59  ;;  %v9901_v3 = vpop.f32.mrb[164].mxu0  ;;  %v3091_v59 = vld [vmem:[%s17554_s3 + $0x18] sm:$0xff] }
 0x2a6   : > { %v13628_v33 = vmul.f32 %v3089_v31, %v3041_v60  ;;  %v2995_v52 = vadd.f32 %v13536_v26, %v2940_v45  ;;  %v2724_v27 = vadd.f32 %v9901_v3, %v13362_v58  ;;  %v2718_v1 = vpop.f32.mrb[165].mxu0  ;;  %v13643_v31 = vpack.c.bf16 %v5259_v53, %v5258_v32  ;;  %v3797_v45 = vld [vmem:[#allocation3 + $0x5d0] sm:$0xff]  ;;  %v3798_v60 = vld [vmem:[#allocation3 + $0x5d8] sm:$0xff] }
 0x2a7   : > { %v2994_v34 = vadd.f32 %v13536_v26, %v2939_v0  ;;  %v2719_v35 = vadd.f32 %v2718_v1, %v13356_v29  ;;  %v13639_v48 = vpop.f32.mrb[180].mxu1  ;;  %v13641_v56 = vmul.f32 %v3088_v2, %v3040_v44  ;;  %v18539_v32 = vld [vmem:[#allocation26_spill] sm:$0xff] }
 0x2a8   : > { %18538 = vst [vmem:[#allocation54_spill] sm:$0xff] %v13643_v31  ;;  %v3043_v58 = vmax.f32 %v2995_v52, 0.0  ;;  %v2942_v3 = vadd.f32 %v2724_v27, %v13339_v62  ;;  %v2525_v21 = vpop.f32.mrb[181].mxu1  ;;  %v3452_v0 = vrot.slane %v13628_v33, 1  ;;  %v3290_v29 = vrot.slane %v13628_v33, 7 }
 0x2a9   : > { %v3042_v1 = vmax.f32 %v2994_v34, 0.0  ;;  %v2941_v2 = vadd.f32 %v2719_v35, %v13342_v9  ;;  %v9904_v44 = vpop.f32.mrb[166].mxu0  ;;  %3925 = vmatprep.mubr.f32.mxu0 %v13641_v56  ;;  %v3289_v53 = vrot.slane %v13641_v56, 7  ;;  %v13659_v21 = vpack.c.bf16 %v3798_v60, %v3797_v45  ;;  %v3093_v9 = vld [vmem:[%s17554_s3 + $0x28] sm:$0xff]  ;;  %v3092_v45 = vld [vmem:[%s17554_s3 + $0x20] sm:$0xff] }
 0x2aa   : > { %v13655_v52 = vmul.f32 %v3091_v59, %v3043_v58  ;;  %v2997_v31 = vadd.f32 %v13536_v26, %v2942_v3  ;;  %v2734_v62 = vadd.f32 %v9904_v44, %v13374_v54  ;;  %v2728_v27 = vpop.f32.mrb[167].mxu0 }
 0x2ab   : > { %v13661_v4 = vmul.f32 %v3090_v41, %v3042_v1  ;;  %v2996_v34 = vadd.f32 %v13536_v26, %v2941_v2  ;;  %v2729_v35 = vadd.f32 %v2728_v27, %v13368_v36  ;;  %v13671_v59 = vsel %vm392_vm1, %v18539_v32, %v3289_v53  ;;  %v13673_v58 = vpop.f32.mrb[182].mxu1 }
 0x2ac   : > { %v3045_v54 = vmax.f32 %v2997_v31, 0.0  ;;  %v2944_v60 = vadd.f32 %v2734_v62, %v13346_v37  ;;  %3926 = vmatmul.mubr.f32.vlgmr.msra.gmra.mrb[208].mxu0 %v13671_v59  ;;  %v18540_v41 = vrot.slane %v13641_v56, 1  ;;  %v2530_v3 = vpop.f32.mrb[183].mxu1  ;;  %v13688_v1 = vsel %vm392_vm1, %v3289_v53, %v3290_v29 }
 0x2ad   : > { %v3044_v31 = vmax.f32 %v2996_v34, 0.0  ;;  %v2943_v2 = vadd.f32 %v2729_v35, %v13348_v51  ;;  %v9907_v44 = vpop.f32.mrb[168].mxu0  ;;  %3930 = vmatprep.mubr.f32.mxu0 %v13628_v33  ;;  %v3453_v37 = vrot.slane %v13661_v4, 1  ;;  %v3454_v62 = vrot.slane %v13655_v52, 1  ;;  %10960 = vmatpush3.bf16.msra.mxu0 %v13311_v12  ;;  %v3095_v35 = vld [vmem:[%s17554_s3 + $0x38] sm:$0xff] }
 0x2ae   : > { %v13684_v36 = vsel %vm555_vm0, %v18540_v41, %v3452_v0  ;;  %v13695_v27 = vmul.f32 %v3093_v9, %v3045_v54  ;;  %v2999_v41 = vadd.f32 %v13536_v26, %v2944_v60  ;;  %v2744_v3 = vadd.f32 %v9907_v44, %v13390_v30  ;;  %v2738_v53 = vpop.f32.mrb[169].mxu0  ;;  %10962 = vmatprep.subr.bf16.mxu0 %v13562_v24  ;;  %v18546_v44 = vld [vmem:[#allocation64_spill] sm:$0xff] }
 0x2af   : > { %18541 = vst [vmem:[#allocation100_spill] sm:$0xff] %v13684_v36  ;;  %9997 = vmatprep.mubr.f32.mxu1 %v13684_v36  ;;  %v3291_v51 = vrot.slane %v13661_v4, 7  ;;  %v13701_v34 = vmul.f32 %v3092_v45, %v3044_v31  ;;  %v2998_v32 = vadd.f32 %v13536_v26, %v2943_v2  ;;  %v2739_v9 = vadd.f32 %v2738_v53, %v13382_v55  ;;  %v13712_v30 = vpop.f32.mrb[184].mxu1  ;;  %v3094_v45 = vld [vmem:[%s17554_s3 + $0x30] sm:$0xff] }
 0x2b0   : > { %18542 = vst [vmem:[#allocation57_spill] sm:$0xff] %v13695_v27  ;;  %v13710_v54 = vsel %vm555_vm0, %v3452_v0, %v3453_v37  ;;  %v3047_v12 = vmax.f32 %v2999_v41, 0.0  ;;  %v2946_v60 = vadd.f32 %v2744_v3, %v13352_v46  ;;  %3931 = vmatmul.mubr.f32.gmra.mrb[210].mxu0 %v13688_v1  ;;  %v13723_v55 = vsel %vm555_vm0, %v3453_v37, %v3454_v62  ;;  %v2535_v0 = vpop.f32.mrb[185].mxu1 }
 0x2b1   : > { %18543 = vst [vmem:[#allocation119_spill] sm:$0xff] %v13701_v34  ;;  %18544 = vst [vmem:[#allocation117_spill] sm:$0xff] %v13710_v54  ;;  %9998 = vmatmul.mubr.f32.vlgmr.msra.gmra.mrb[224].mxu1 %v13710_v54  ;;  %v13727_v31 = vsel %vm392_vm1, %v3290_v29, %v3291_v51  ;;  %v3046_v2 = vmax.f32 %v2998_v32, 0.0  ;;  %v2945_v41 = vadd.f32 %v2739_v9, %v18546_v44  ;;  %v9910_v53 = vpop.f32.mrb[170].mxu0  ;;  %3935 = vmatprep.mubr.f32.mxu0 %v13661_v4 }
 0x2b2   : > { %18545 = vst [vmem:[#allocation108_spill] sm:$0xff] %v13723_v55  ;;  %10000 = vmatprep.mubr.f32.mxu1 %v13723_v55  ;;  %v3455_v46 = vrot.slane %v13701_v34, 1  ;;  %v3456_v3 = vrot.slane %v13695_v27, 1  ;;  %v13734_v54 = vmul.f32 %v3095_v35, %v3047_v12  ;;  %v3001_v37 = vadd.f32 %v13536_v26, %v2946_v60  ;;  %v2748_v32 = vpop.f32.mrb[171].mxu0  ;;  %10964 = vmatpush3.bf16.msra.mxu0 %v13562_v24  ;;  %v3097_v35 = vld [vmem:[%s17554_s3 + $0x48] sm:$0xff]  ;;  %v3096_v24 = vld [vmem:[%s17554_s3 + $0x40] sm:$0xff] }
 0x2b3   : > { %v2754_v0 = vadd.f32 %v9910_v53, %v13406_v40  ;;  %v18548_v29 = vpack.c.bf16 %v13498_v42, %v13496_v22  ;;  %v3292_v9 = vrot.slane %v13655_v52, 7  ;;  %v13743_v44 = vmul.f32 %v3094_v45, %v3046_v2  ;;  %v13754_v42 = vpop.f32.mrb[186].mxu1  ;;  %v18552_v45 = vld [vmem:[#allocation80_spill] sm:$0xff]  ;;  %10966 = vmatprep.subr.bf16.mxu0 %v13582_v16 }
 0x2b4   : > { %18547 = vst [vmem:[#allocation105_spill] sm:$0xff] %v13734_v54  ;;  %v3000_v12 = vadd.f32 %v13536_v26, %v2945_v41  ;;  %v2749_v60 = vadd.f32 %v2748_v32, %v13398_v6  ;;  %v13752_v40 = vsel %vm555_vm0, %v3454_v62, %v3455_v46  ;;  %v18551_v22 = vmov 0.0|0.0   ;;  %3936 = vmatmul.mubr.f32.gmra.mrb[212].mxu0 %v13727_v31  ;;  %v2540_v62 = vpop.f32.mrb[187].mxu1 }
 0x2b5   : > { %10911 = vmatpush1.bf16.msra.mxu1 %v18548_v29  ;;  %18549 = vst [vmem:[#allocation55_spill] sm:$0xff] %v13743_v44  ;;  %18550 = vst [vmem:[#allocation123_spill] sm:$0xff] %v13752_v40  ;;  %v3049_v53 = vmax.f32 %v3001_v37, 0.0  ;;  %v2948_v2 = vadd.f32 %v2754_v0, %v18552_v45  ;;  %v13765_v6 = vsel %vm555_vm0, %v3455_v46, %v3456_v3  ;;  %v18555_v29 = vld [vmem:[#allocation37_spill] sm:$0xff]  ;;  %v9913_v55 = vpop.f32.mrb[172].mxu0  ;;  %3940 = vmatprep.mubr.f32.mxu0 %v13655_v52 }
 0x2b6   : > { %10912 = vmatprep.subr.bf16.mxu1 %v18551_v22  ;;  %10001 = vmatmul.mubr.f32.gmra.mrb[226].mxu1 %v13752_v40  ;;  %18553 = vst [vmem:[#allocation56_spill] sm:$0xff] %v13765_v6  ;;  %v13769_v41 = vsel %vm392_vm1, %v3291_v51, %v3292_v9  ;;  %v3048_v37 = vmax.f32 %v3000_v12, 0.0  ;;  %v2947_v32 = vadd.f32 %v2749_v60, %v18555_v29  ;;  %v3457_v0 = vrot.slane %v13743_v44, 1  ;;  %v2758_v51 = vpop.f32.mrb[173].mxu0 }
 0x2b7   : > { %18554 = vst [vmem:[#allocation121_spill] sm:$0xff] %v13769_v41  ;;  %10003 = vmatprep.mubr.f32.mxu1 %v13765_v6  ;;  %v3458_v45 = vrot.slane %v13734_v54, 1  ;;  %v13776_v40 = vmul.f32 %v3097_v35, %v3049_v53  ;;  %v3003_v46 = vadd.f32 %v13536_v26, %v2948_v2  ;;  %v2764_v62 = vadd.f32 %v9913_v55, %v13422_v20  ;;  %v3099_v35 = vld [vmem:[%s17554_s3 + $0x58] sm:$0xff]  ;;  %v3098_v55 = vld [vmem:[%s17554_s3 + $0x50] sm:$0xff] }
 0x2b8   : > { %v18557_v12 = vpack.c.bf16 %v13502_v63, %v13500_v43  ;;  %v3293_v60 = vrot.slane %v13701_v34, 7  ;;  %v13785_v29 = vmul.f32 %v3096_v24, %v3048_v37  ;;  %v3002_v53 = vadd.f32 %v13536_v26, %v2947_v32  ;;  %v13796_v43 = vpop.f32.mrb[188].mxu1  ;;  %3941 = vmatmul.mubr.f32.gmra.mrb[214].mxu0 %v13769_v41 }
 0x2b9   : > { %18556 = vst [vmem:[#allocation44_spill] sm:$0xff] %v13776_v40  ;;  %v2759_v2 = vadd.f32 %v2758_v51, %v13414_v17  ;;  %v13794_v20 = vsel %vm555_vm0, %v3456_v3, %v3457_v0  ;;  %v3051_v63 = vmax.f32 %v3003_v46, 0.0  ;;  %v2950_v24 = vadd.f32 %v2764_v62, %v13364_v15  ;;  %v2545_v3 = vpop.f32.mrb[189].mxu1  ;;  %v18562_v46 = vld [vmem:[#allocation65_spill] sm:$0xff]  ;;  %3945 = vmatprep.mubr.f32.mxu0 %v13701_v34 }
 0x2ba   : > { %10914 = vmatpush1.bf16.msra.mxu1 %v18557_v12  ;;  %18558 = vst [vmem:[#allocation39_spill] sm:$0xff] %v13785_v29  ;;  %18559 = vst [vmem:[#allocation13_spill] sm:$0xff] %v13794_v20  ;;  %v13807_v17 = vsel %vm555_vm0, %v3457_v0, %v3458_v45  ;;  %v13811_v37 = vsel %vm392_vm1, %v3292_v9, %v3293_v60  ;;  %v3050_v32 = vmax.f32 %v3002_v53, 0.0  ;;  %v9916_v12 = vpop.f32.mrb[174].mxu0  ;;  %v3459_v15 = vrot.slane %v13785_v29, 1  ;;  %v18564_v3 = vld [vmem:[#allocation99_spill] sm:$0xff] }
 0x2bb   : > { %10915 = vmatprep.subr.bf16.mxu1 %v18551_v22  ;;  %10004 = vmatmul.mubr.f32.gmra.mrb[228].mxu1 %v13794_v20  ;;  %18560 = vst [vmem:[#allocation11_spill] sm:$0xff] %v13807_v17  ;;  %18561 = vst [vmem:[#allocation113_spill] sm:$0xff] %v13811_v37  ;;  %v2949_v51 = vadd.f32 %v2759_v2, %v18562_v46  ;;  %v3460_v62 = vrot.slane %v13776_v40, 1  ;;  %v13818_v20 = vmul.f32 %v3099_v35, %v3051_v63  ;;  %v2768_v9 = vpop.f32.mrb[175].mxu0  ;;  %v3101_v35 = vld [vmem:[%s17554_s3 + $0x68] sm:$0xff] }
 0x2bc   : > { %10006 = vmatprep.mubr.f32.mxu1 %v13807_v17  ;;  %v3005_v0 = vadd.f32 %v13536_v26, %v2950_v24  ;;  %v2774_v6 = vadd.f32 %v9916_v12, %v18564_v3  ;;  %v18565_v53 = vpack.c.bf16 %v13509_v11, %v13507_v7  ;;  %v3294_v2 = vrot.slane %v13695_v27, 7  ;;  %10968 = vmatpush3.bf16.msra.mxu0 %v13582_v16  ;;  %v18567_v24 = vld [vmem:[#allocation34_spill] sm:$0xff]  ;;  %v13838_v7 = vpop.f32.mrb[190].mxu1  ;;  %v3100_v16 = vld [vmem:[%s17554_s3 + $0x60] sm:$0xff] }
 0x2bd   : > { %18563 = vst [vmem:[#allocation110_spill] sm:$0xff] %v13818_v20  ;;  %v13827_v46 = vmul.f32 %v3098_v55, %v3050_v32  ;;  %v3004_v63 = vadd.f32 %v13536_v26, %v2949_v51  ;;  %v2769_v17 = vadd.f32 %v2768_v9, %v18567_v24  ;;  %v13836_v12 = vsel %vm555_vm0, %v3458_v45, %v3459_v15  ;;  %v18569_v55 = vld [vmem:[#allocation82_spill] sm:$0xff]  ;;  %v2550_v45 = vpop.f32.mrb[191].mxu1  ;;  %v9919_v24 = vpop.f32.mrb[176].mxu0 }
 0x2be   : > { %10917 = vmatpush1.bf16.msra.mxu1 %v18565_v53  ;;  %18568 = vst [vmem:[#allocation15_spill] sm:$0xff] %v13836_v12  ;;  %v3053_v11 = vmax.f32 %v3005_v0, 0.0  ;;  %v2952_v32 = vadd.f32 %v2774_v6, %v18569_v55  ;;  %3946 = vmatmul.mubr.f32.gmra.mrb[216].mxu0 %v13811_v37  ;;  %v13849_v51 = vsel %vm555_vm0, %v3459_v15, %v3460_v62  ;;  %v18572_v9 = vld [vmem:[#allocation42_spill] sm:$0xff]  ;;  %v3462_v55 = vrot.slane %v13818_v20, 1  ;;  %v18574_v45 = vld [vmem:[#allocation75_spill] sm:$0xff] }
 0x2bf   : > { %18566 = vst [vmem:[#allocation17_spill] sm:$0xff] %v13827_v46  ;;  %10918 = vmatprep.subr.bf16.mxu1 %v18551_v22  ;;  %10007 = vmatmul.mubr.f32.gmra.mrb[230].mxu1 %v13836_v12  ;;  %18570 = vst [vmem:[#allocation118_spill] sm:$0xff] %v13849_v51  ;;  %v13853_v3 = vsel %vm392_vm1, %v3293_v60, %v3294_v2  ;;  %v3052_v0 = vmax.f32 %v3004_v63, 0.0  ;;  %v2951_v53 = vadd.f32 %v2769_v17, %v18572_v9  ;;  %v2778_v60 = vpop.f32.mrb[177].mxu0  ;;  %v18575_v63 = vld [vmem:[#allocation36_spill] sm:$0xff] }
 0x2c0   : > { %18571 = vst [vmem:[#allocation116_spill] sm:$0xff] %v13853_v3  ;;  %3950 = vmatprep.mubr.f32.mxu0 %v13695_v27  ;;  %10009 = vmatprep.mubr.f32.mxu1 %v13849_v51  ;;  %v3461_v6 = vrot.slane %v13827_v46, 1  ;;  %v13860_v12 = vmul.f32 %v3101_v35, %v3053_v11  ;;  %v3007_v15 = vadd.f32 %v13536_v26, %v2952_v32  ;;  %v3295_v17 = vrot.slane %v13743_v44, 7  ;;  %v3103_v35 = vld [vmem:[%s17554_s3 + $0x78] sm:$0xff]  ;;  %v18578_v32 = vld [vmem:[#allocation98_spill] sm:$0xff] }
 0x2c1   : > { %v2784_v36 = vadd.f32 %v9919_v24, %v18574_v45  ;;  %v18576_v37 = vpack.c.bf16 %v13513_v23, %v18575_v63  ;;  %10970 = vmatprep.subr.bf16.mxu0 %v13613_v13  ;;  %v13869_v9 = vmul.f32 %v3100_v16, %v3052_v0  ;;  %v3006_v11 = vadd.f32 %v13536_v26, %v2951_v53  ;;  %v13880_v23 = vpop.f32.mrb[192].mxu1  ;;  %v3102_v16 = vld [vmem:[%s17554_s3 + $0x70] sm:$0xff]  ;;  %v18583_v63 = vld [vmem:[#allocation84_spill] sm:$0xff]  ;;  %v9922_v27 = vpop.f32.mrb[178].mxu0 }
 0x2c2   : > { %18573 = vst [vmem:[#allocation19_spill] sm:$0xff] %v13860_v12  ;;  %v2779_v51 = vadd.f32 %v2778_v60, %v18578_v32  ;;  %v13878_v24 = vsel %vm555_vm0, %v3460_v62, %v3461_v6  ;;  %v18580_v0 = vld [vmem:[#allocation66_spill] sm:$0xff]  ;;  %3951 = vmatmul.mubr.f32.gmra.mrb[218].mxu0 %v13853_v3  ;;  %v13891_v53 = vsel %vm555_vm0, %v3461_v6, %v3462_v55  ;;  %v2555_v62 = vpop.f32.mrb[193].mxu1 }
 0x2c3   : > { %10920 = vmatpush1.bf16.msra.mxu1 %v18576_v37  ;;  %18577 = vst [vmem:[#allocation18_spill] sm:$0xff] %v13869_v9  ;;  %18579 = vst [vmem:[#allocation122_spill] sm:$0xff] %v13878_v24  ;;  %v3055_v37 = vmax.f32 %v3007_v15, 0.0  ;;  %v2954_v45 = vadd.f32 %v2784_v36, %v18580_v0  ;;  %v13895_v60 = vsel %vm392_vm1, %v3294_v2, %v3295_v17  ;;  %v3054_v15 = vmax.f32 %v3006_v11, 0.0  ;;  %v18585_v62 = vld [vmem:[#allocation83_spill] sm:$0xff]  ;;  %v2788_v2 = vpop.f32.mrb[179].mxu0 }
 0x2c4   : > { %10921 = vmatprep.subr.bf16.mxu1 %v18551_v22  ;;  %10010 = vmatmul.mubr.f32.gmra.mrb[232].mxu1 %v13878_v24  ;;  %18581 = vst [vmem:[#allocation120_spill] sm:$0xff] %v13891_v53  ;;  %18582 = vst [vmem:[#allocation21_spill] sm:$0xff] %v13895_v60  ;;  %v2953_v32 = vadd.f32 %v2779_v51, %v18583_v63  ;;  %v3463_v36 = vrot.slane %v13869_v9, 1  ;;  %v3464_v0 = vrot.slane %v13860_v12, 1  ;;  %v3296_v11 = vrot.slane %v13734_v54, 7 }
 0x2c5   : > { %3955 = vmatprep.mubr.f32.mxu0 %v13743_v44  ;;  %10012 = vmatprep.mubr.f32.mxu1 %v13891_v53  ;;  %v13902_v24 = vmul.f32 %v3103_v35, %v3055_v37  ;;  %v3009_v6 = vadd.f32 %v13536_v26, %v2954_v45  ;;  %v2794_v3 = vadd.f32 %v9922_v27, %v18585_v62  ;;  %v3105_v35 = vld [vmem:[%s17554_s3 + $0x88] sm:$0xff]  ;;  %v18588_v45 = vld [vmem:[#allocation79_spill] sm:$0xff]  ;;  %v13922_v62 = vpop.f32.mrb[194].mxu1 }
 0x2c6   : > { %v18586_v51 = vpack.c.bf16 %v13522_v25, %v13520_v47  ;;  %10972 = vmatpush3.bf16.msra.mxu0 %v13613_v13  ;;  %v13911_v63 = vmul.f32 %v3102_v16, %v3054_v15  ;;  %v3008_v37 = vadd.f32 %v13536_v26, %v2953_v32  ;;  %v2789_v53 = vadd.f32 %v2788_v2, %v18588_v45  ;;  %v3104_v25 = vld [vmem:[%s17554_s3 + $0x80] sm:$0xff]  ;;  %v18590_v13 = vld [vmem:[#allocation47_spill] sm:$0xff]  ;;  %v9925_v45 = vpop.f32.mrb[180].mxu0 }
 0x2c7   : > { %18584 = vst [vmem:[#allocation20_spill] sm:$0xff] %v13902_v24  ;;  %v13920_v27 = vsel %vm555_vm0, %v3462_v55, %v3463_v36  ;;  %v3057_v47 = vmax.f32 %v3009_v6, 0.0  ;;  %v2956_v16 = vadd.f32 %v2794_v3, %v18590_v13  ;;  %3956 = vmatmul.mubr.f32.gmra.mrb[220].mxu0 %v13895_v60  ;;  %v13933_v15 = vsel %vm555_vm0, %v3463_v36, %v3464_v0  ;;  %v2560_v55 = vpop.f32.mrb[195].mxu1  ;;  %v18593_v2 = vld [vmem:[#allocation67_spill] sm:$0xff] }
 0x2c8   : > { %10923 = vmatpush1.bf16.msra.mxu1 %v18586_v51  ;;  %18587 = vst [vmem:[#allocation12_spill] sm:$0xff] %v13911_v63  ;;  %18589 = vst [vmem:[#allocation124_spill] sm:$0xff] %v13920_v27  ;;  %v13937_v32 = vsel %vm392_vm1, %v3295_v17, %v3296_v11  ;;  %v3056_v6 = vmax.f32 %v3008_v37, 0.0  ;;  %v2955_v51 = vadd.f32 %v2789_v53, %v18593_v2  ;;  %3960 = vmatprep.mubr.f32.mxu0 %v13734_v54  ;;  %v18595_v55 = vld [vmem:[#allocation92_spill] sm:$0xff]  ;;  %v2798_v17 = vpop.f32.mrb[181].mxu0  ;;  %v18606_v44 = vld [vmem:[#allocation43_spill] sm:$0xff] }
 0x2c9   : > { %10924 = vmatprep.subr.bf16.mxu1 %v18551_v22  ;;  %10013 = vmatmul.mubr.f32.gmra.mrb[234].mxu1 %v13920_v27  ;;  %18591 = vst [vmem:[#allocation23_spill] sm:$0xff] %v13933_v15  ;;  %18592 = vst [vmem:[#allocation22_spill] sm:$0xff] %v13937_v32  ;;  %v3465_v3 = vrot.slane %v13911_v63, 1  ;;  %v3466_v13 = vrot.slane %v13902_v24, 1  ;;  %v13944_v27 = vmul.f32 %v3105_v35, %v3057_v47  ;;  %v3297_v37 = vrot.slane %v13785_v29, 7  ;;  %v3107_v35 = vld [vmem:[%s17554_s3 + $0x98] sm:$0xff] }
 0x2ca   : > { %10015 = vmatprep.mubr.f32.mxu1 %v13933_v15  ;;  %v3011_v36 = vadd.f32 %v13536_v26, %v2956_v16  ;;  %v2804_v60 = vadd.f32 %v9925_v45, %v18595_v55  ;;  %v18596_v53 = vpack.c.bf16 %v13526_v38, %v13524_v5  ;;  %10974 = vmatprep.subr.bf16.mxu0 %v13632_v50  ;;  %v18598_v16 = vld [vmem:[#allocation87_spill] sm:$0xff]  ;;  %v13964_v55 = vpop.f32.mrb[196].mxu1  ;;  %v9928_v54 = vpop.f32.mrb[182].mxu0 }
 0x2cb   : > { %18594 = vst [vmem:[#allocation16_spill] sm:$0xff] %v13944_v27  ;;  %v13953_v2 = vmul.f32 %v3104_v25, %v3056_v6  ;;  %v3010_v47 = vadd.f32 %v13536_v26, %v2955_v51  ;;  %v2799_v15 = vadd.f32 %v2798_v17, %v18598_v16  ;;  %v13962_v45 = vsel %vm555_vm0, %v3464_v0, %v3465_v3  ;;  %v3106_v5 = vld [vmem:[%s17554_s3 + $0x90] sm:$0xff]  ;;  %v2565_v0 = vpop.f32.mrb[197].mxu1 }
 0x2cc   : > { %10926 = vmatpush1.bf16.msra.mxu1 %v18596_v53  ;;  %18599 = vst [vmem:[#allocation25_spill] sm:$0xff] %v13962_v45  ;;  %v3059_v38 = vmax.f32 %v3011_v36, 0.0  ;;  %v18600_v25 = vld [vmem:[#allocation86_spill] sm:$0xff]  ;;  %3961 = vmatmul.mubr.f32.gmra.mrb[222].mxu0 %v13937_v32  ;;  %v13975_v51 = vsel %vm555_vm0, %v3465_v3, %v3466_v13  ;;  %v13979_v17 = vsel %vm392_vm1, %v3296_v11, %v3297_v37  ;;  %v18603_v53 = vld [vmem:[#allocation95_spill] sm:$0xff]  ;;  %v18605_v0 = vld [vmem:[#allocation112_spill] sm:$0xff]  ;;  %v2808_v11 = vpop.f32.mrb[183].mxu0 }
 0x2cd   : > { %18597 = vst [vmem:[#allocation14_spill] sm:$0xff] %v13953_v2  ;;  %10927 = vmatprep.subr.bf16.mxu1 %v18551_v22  ;;  %v2958_v6 = vadd.f32 %v2804_v60, %v18600_v25  ;;  %10016 = vmatmul.mubr.f32.gmra.mrb[236].mxu1 %v13962_v45  ;;  %18601 = vst [vmem:[#allocation24_spill] sm:$0xff] %v13975_v51  ;;  %v3058_v36 = vmax.f32 %v3010_v47, 0.0  ;;  %v2957_v16 = vadd.f32 %v2799_v15, %v18603_v53  ;;  %v18607_v15 = vld [vmem:[#allocation41_spill] sm:$0xff] }
 0x2ce   : > { %18602 = vst [vmem:[#allocation74_spill] sm:$0xff] %v13979_v17  ;;  %3965 = vmatprep.mubr.f32.mxu0 %v13785_v29  ;;  %10018 = vmatprep.mubr.f32.mxu1 %v13975_v51  ;;  %v3467_v60 = vrot.slane %v13953_v2, 1  ;;  %v3468_v25 = vrot.slane %v13944_v27, 1  ;;  %v13986_v45 = vmul.f32 %v3107_v35, %v3059_v38  ;;  %v2814_v32 = vadd.f32 %v9928_v54, %v18605_v0  ;;  %v3109_v35 = vld [vmem:[%s17554_s3 + $0xa8] sm:$0xff]  ;;  %v14006_v0 = vpop.f32.mrb[198].mxu1 }
 0x2cf   : > { %v3013_v3 = vadd.f32 %v13536_v26, %v2958_v6  ;;  %v3298_v47 = vrot.slane %v13776_v40, 7  ;;  %v18608_v53 = vpack.c.bf16 %v18606_v44, %v18607_v15  ;;  %10976 = vmatpush3.bf16.msra.mxu0 %v13632_v50  ;;  %v13995_v51 = vmul.f32 %v3106_v5, %v3058_v36  ;;  %v18610_v6 = vld [vmem:[#allocation109_spill] sm:$0xff]  ;;  %v18612_v5 = vld [vmem:[#allocation51_spill] sm:$0xff]  ;;  %v18615_v15 = vld [vmem:[#allocation68_spill] sm:$0xff] }
 0x2d0   : > { %18604 = vst [vmem:[#allocation27_spill] sm:$0xff] %v13986_v45  ;;  %v3012_v38 = vadd.f32 %v13536_v26, %v2957_v16  ;;  %v2809_v29 = vadd.f32 %v2808_v11, %v18610_v6  ;;  %v14004_v54 = vsel %vm555_vm0, %v3466_v13, %v3467_v60  ;;  %v3108_v50 = vld [vmem:[%s17554_s3 + $0xa0] sm:$0xff]  ;;  %v2960_v36 = vadd.f32 %v2814_v32, %v18612_v5  ;;  %v2570_v13 = vpop.f32.mrb[199].mxu1  ;;  %v9931_v6 = vpop.f32.mrb[184].mxu0 }
 0x2d1   : > { %10929 = vmatpush1.bf16.msra.mxu1 %v18608_v53  ;;  %18609 = vst [vmem:[#allocation30_spill] sm:$0xff] %v13995_v51  ;;  %18611 = vst [vmem:[#allocation28_spill] sm:$0xff] %v14004_v54  ;;  %v3061_v44 = vmax.f32 %v3013_v3, 0.0  ;;  %3966 = vmatmul.mubr.f32.gmra.mrb[224].mxu0 %v13979_v17  ;;  %v14017_v16 = vsel %vm555_vm0, %v3467_v60, %v3468_v25  ;;  %v14021_v11 = vsel %vm392_vm1, %v3297_v37, %v3298_v47  ;;  %v2818_v37 = vpop.f32.mrb[185].mxu0 }
 0x2d2   : > { %10930 = vmatprep.subr.bf16.mxu1 %v18551_v22  ;;  %10019 = vmatmul.mubr.f32.gmra.mrb[238].mxu1 %v14004_v54  ;;  %18613 = vst [vmem:[#allocation64_spill] sm:$0xff] %v14017_v16  ;;  %18614 = vst [vmem:[#allocation80_spill] sm:$0xff] %v14021_v11  ;;  %v3060_v3 = vmax.f32 %v3012_v38, 0.0  ;;  %v2959_v53 = vadd.f32 %v2809_v29, %v18615_v15  ;;  %v3469_v32 = vrot.slane %v13995_v51, 1  ;;  %v3470_v5 = vrot.slane %v13986_v45, 1  ;;  %v18617_v29 = vld [vmem:[#allocation111_spill] sm:$0xff] }
 0x2d3   : > { %3970 = vmatprep.mubr.f32.mxu0 %v13776_v40  ;;  %10021 = vmatprep.mubr.f32.mxu1 %v14017_v16  ;;  %v14028_v54 = vmul.f32 %v3109_v35, %v3061_v44  ;;  %v3015_v60 = vadd.f32 %v13536_v26, %v2960_v36  ;;  %v2824_v13 = vadd.f32 %v9931_v6, %v13609_v28  ;;  %v3299_v38 = vrot.slane %v13827_v46, 7  ;;  %v3111_v35 = vld [vmem:[%s17554_s3 + $0xb8] sm:$0xff]  ;;  %v14048_v6 = vpop.f32.mrb[200].mxu1  ;;  %v9934_v17 = vpop.f32.mrb[186].mxu0 }
 0x2d4   : > { %v18618_v15 = vpack.c.bf16 %v13534_v10, %v18617_v29  ;;  %10978 = vmatprep.subr.bf16.mxu0 %v13659_v21  ;;  %v14037_v16 = vmul.f32 %v3108_v50, %v3060_v3  ;;  %v3014_v44 = vadd.f32 %v13536_v26, %v2959_v53  ;;  %v18620_v36 = vld [vmem:[#allocation52_spill] sm:$0xff]  ;;  %v14046_v28 = vsel %vm555_vm0, %v3468_v25, %v3469_v32  ;;  %v3110_v50 = vld [vmem:[%s17554_s3 + $0xb0] sm:$0xff]  ;;  %v2575_v25 = vpop.f32.mrb[201].mxu1 }
 0x2d5   : > { %18616 = vst [vmem:[#allocation37_spill] sm:$0xff] %v14028_v54  ;;  %v2819_v40 = vadd.f32 %v2818_v37, %v18620_v36  ;;  %18621 = vst [vmem:[#allocation99_spill] sm:$0xff] %v14046_v28  ;;  %v3063_v10 = vmax.f32 %v3015_v60, 0.0  ;;  %v18622_v3 = vld [vmem:[#allocation88_spill] sm:$0xff]  ;;  %3971 = vmatmul.mubr.f32.gmra.mrb[226].mxu0 %v14021_v11  ;;  %v14059_v53 = vsel %vm555_vm0, %v3469_v32, %v3470_v5  ;;  %v18627_v11 = vld [vmem:[#allocation45_spill] sm:$0xff] }
 0x2d6   : > { %10932 = vmatpush1.bf16.msra.mxu1 %v18618_v15  ;;  %18619 = vst [vmem:[#allocation65_spill] sm:$0xff] %v14037_v16  ;;  %v2962_v29 = vadd.f32 %v2824_v13, %v18622_v3  ;;  %18623 = vst [vmem:[#allocation34_spill] sm:$0xff] %v14059_v53  ;;  %v14063_v37 = vsel %vm392_vm1, %v3298_v47, %v3299_v38  ;;  %v3062_v60 = vmax.f32 %v3014_v44, 0.0  ;;  %v18625_v15 = vld [vmem:[#allocation35_spill] sm:$0xff]  ;;  %3975 = vmatprep.mubr.f32.mxu0 %v13827_v46  ;;  %v2828_v47 = vpop.f32.mrb[187].mxu0 }
 0x2d7   : > { %10933 = vmatprep.subr.bf16.mxu1 %v18551_v22  ;;  %10022 = vmatmul.mubr.f32.gmra.mrb[240].mxu1 %v14046_v28  ;;  %18624 = vst [vmem:[#allocation82_spill] sm:$0xff] %v14063_v37  ;;  %v2961_v36 = vadd.f32 %v2819_v40, %v18625_v15  ;;  %v3471_v13 = vrot.slane %v14037_v16, 1  ;;  %v3472_v3 = vrot.slane %v14028_v54, 1  ;;  %v14070_v28 = vmul.f32 %v3111_v35, %v3063_v10  ;;  %v18628_v40 = vld [vmem:[#allocation46_spill] sm:$0xff] }
 0x2d8   : > { %10024 = vmatprep.mubr.f32.mxu1 %v14059_v53  ;;  %v3017_v32 = vadd.f32 %v13536_v26, %v2962_v29  ;;  %v2834_v25 = vadd.f32 %v9934_v17, %v13673_v58  ;;  %v3300_v44 = vrot.slane %v13818_v20, 7  ;;  %v18629_v15 = vpack.c.bf16 %v18627_v11, %v18628_v40  ;;  %10980 = vmatpush3.bf16.msra.mxu0 %v13659_v21  ;;  %v3113_v35 = vld [vmem:[%s17554_s3 + $0xc8] sm:$0xff]  ;;  %v14090_v17 = vpop.f32.mrb[202].mxu1  ;;  %v3112_v21 = vld [vmem:[%s17554_s3 + $0xc0] sm:$0xff] }
 0x2d9   : > { %18626 = vst [vmem:[#allocation42_spill] sm:$0xff] %v14070_v28  ;;  %v14079_v53 = vmul.f32 %v3110_v50, %v3062_v60  ;;  %v3016_v10 = vadd.f32 %v13536_v26, %v2961_v36  ;;  %v2829_v29 = vadd.f32 %v2828_v47, %v13639_v48  ;;  %v14088_v58 = vsel %vm555_vm0, %v3470_v5, %v3471_v13  ;;  %v18632_v50 = vld [vmem:[#allocation69_spill] sm:$0xff]  ;;  %v2580_v5 = vpop.f32.mrb[203].mxu1  ;;  %v18635_v47 = vld [vmem:[#allocation90_spill] sm:$0xff] }
 0x2da   : > { %10935 = vmatpush1.bf16.msra.mxu1 %v18629_v15  ;;  %18631 = vst [vmem:[#allocation36_spill] sm:$0xff] %v14088_v58  ;;  %v3065_v11 = vmax.f32 %v3017_v32, 0.0  ;;  %v2964_v60 = vadd.f32 %v2834_v25, %v18632_v50  ;;  %3976 = vmatmul.mubr.f32.gmra.mrb[228].mxu0 %v14063_v37  ;;  %v14101_v48 = vsel %vm555_vm0, %v3471_v13, %v3472_v3  ;;  %v9937_v15 = vpop.f32.mrb[188].mxu0  ;;  %v3474_v50 = vrot.slane %v14070_v28, 1  ;;  %v18637_v37 = vld [vmem:[#allocation50_spill] sm:$0xff] }
 0x2db   : > { %18630 = vst [vmem:[#allocation75_spill] sm:$0xff] %v14079_v53  ;;  %10936 = vmatprep.subr.bf16.mxu1 %v18551_v22  ;;  %10025 = vmatmul.mubr.f32.gmra.mrb[242].mxu1 %v14088_v58  ;;  %18633 = vst [vmem:[#allocation98_spill] sm:$0xff] %v14101_v48  ;;  %v14105_v36 = vsel %vm392_vm1, %v3299_v38, %v3300_v44  ;;  %v3064_v32 = vmax.f32 %v3016_v10, 0.0  ;;  %v2963_v40 = vadd.f32 %v2829_v29, %v18635_v47  ;;  %v2838_v38 = vpop.f32.mrb[189].mxu0  ;;  %v18638_v29 = vld [vmem:[#allocation115_spill] sm:$0xff] }
 0x2dc   : > { %18634 = vst [vmem:[#allocation66_spill] sm:$0xff] %v14105_v36  ;;  %3980 = vmatprep.mubr.f32.mxu0 %v13818_v20  ;;  %10027 = vmatprep.mubr.f32.mxu1 %v14101_v48  ;;  %v3473_v25 = vrot.slane %v14079_v53, 1  ;;  %v14112_v58 = vmul.f32 %v3113_v35, %v3065_v11  ;;  %v3019_v13 = vadd.f32 %v13536_v26, %v2964_v60  ;;  %v3301_v10 = vrot.slane %v13869_v9, 7  ;;  %v3115_v48 = vld [vmem:[%s17554_s3 + $0xd8] sm:$0xff]  ;;  %v14131_v60 = vpop.f32.mrb[204].mxu1 }
 0x2dd   : > { %v2844_v5 = vadd.f32 %v9937_v15, %v13754_v42  ;;  %v18639_v47 = vpack.c.bf16 %v18637_v37, %v18638_v29  ;;  %v14120_v20 = vmul.f32 %v3112_v21, %v3064_v32  ;;  %v3018_v35 = vadd.f32 %v13536_v26, %v2963_v40  ;;  %v3114_v21 = vld [vmem:[%s17554_s3 + $0xd0] sm:$0xff]  ;;  %v18642_v32 = vld [vmem:[#allocation97_spill] sm:$0xff] }
 0x2de   : > { %18636 = vst [vmem:[#allocation84_spill] sm:$0xff] %v14112_v58  ;;  %v2839_v11 = vadd.f32 %v2838_v38, %v13712_v30  ;;  %v14129_v42 = vsel %vm555_vm0, %v3472_v3, %v3473_v25  ;;  %v3067_v37 = vmax.f32 %v3019_v13, 0.0  ;;  %3981 = vmatmul.mubr.f32.gmra.mrb[230].mxu0 %v14105_v36  ;;  %v14142_v30 = vsel %vm555_vm0, %v3473_v25, %v3474_v50  ;;  %v2585_v3 = vpop.f32.mrb[205].mxu1  ;;  %v18645_v38 = vld [vmem:[#allocation70_spill] sm:$0xff] }
 0x2df   : > { %10938 = vmatpush1.bf16.msra.mxu1 %v18639_v47  ;;  %18640 = vst [vmem:[#allocation83_spill] sm:$0xff] %v14120_v20  ;;  %18641 = vst [vmem:[#allocation79_spill] sm:$0xff] %v14129_v42  ;;  %v2966_v15 = vadd.f32 %v2844_v5, %v18642_v32  ;;  %v14146_v40 = vsel %vm392_vm1, %v3300_v44, %v3301_v10  ;;  %v3066_v13 = vmax.f32 %v3018_v35, 0.0  ;;  %v9940_v47 = vpop.f32.mrb[190].mxu0  ;;  %3985 = vmatprep.mubr.f32.mxu0 %v13869_v9  ;;  %v18647_v36 = vld [vmem:[#allocation114_spill] sm:$0xff] }
 0x2e0   : > { %10939 = vmatprep.subr.bf16.mxu1 %v18551_v22  ;;  %10028 = vmatmul.mubr.f32.gmra.mrb[244].mxu1 %v14129_v42  ;;  %18643 = vst [vmem:[#allocation47_spill] sm:$0xff] %v14142_v30  ;;  %18644 = vst [vmem:[#allocation67_spill] sm:$0xff] %v14146_v40  ;;  %v2965_v29 = vadd.f32 %v2839_v11, %v18645_v38  ;;  %v3475_v5 = vrot.slane %v14120_v20, 1  ;;  %v3476_v32 = vrot.slane %v14112_v58, 1  ;;  %v2848_v44 = vpop.f32.mrb[191].mxu0  ;;  %v3302_v35 = vrot.slane %v13860_v12, 7 }
 0x2e1   : > { %10030 = vmatprep.mubr.f32.mxu1 %v14142_v30  ;;  %v14153_v42 = vmul.f32 %v3115_v48, %v3067_v37  ;;  %v3021_v25 = vadd.f32 %v13536_v26, %v2966_v15  ;;  %v2854_v3 = vadd.f32 %v9940_v47, %v13838_v7  ;;  %v18648_v11 = vld [vmem:[#allocation48_spill] sm:$0xff]  ;;  %v14161_v9 = vmul.f32 %v3114_v21, %v3066_v13  ;;  %v3117_v30 = vld [vmem:[%s17554_s3 + $0xe8] sm:$0xff]  ;;  %v14172_v15 = vpop.f32.mrb[206].mxu1 }
 0x2e2   : > { %v18649_v38 = vpack.c.bf16 %v18647_v36, %v18648_v11  ;;  %v3020_v48 = vadd.f32 %v13536_v26, %v2965_v29  ;;  %v2849_v37 = vadd.f32 %v2848_v44, %v13796_v43  ;;  %v14170_v7 = vsel %vm555_vm0, %v3474_v50, %v3475_v5  ;;  %v3116_v21 = vld [vmem:[%s17554_s3 + $0xe0] sm:$0xff]  ;;  %3986 = vmatmul.mubr.f32.gmra.mrb[232].mxu0 %v14146_v40  ;;  %v2590_v50 = vpop.f32.mrb[207].mxu1  ;;  %v18655_v44 = vld [vmem:[#allocation71_spill] sm:$0xff] }
 0x2e3   : > { %18646 = vst [vmem:[#allocation92_spill] sm:$0xff] %v14153_v42  ;;  %18650 = vst [vmem:[#allocation87_spill] sm:$0xff] %v14161_v9  ;;  %v3069_v36 = vmax.f32 %v3021_v25, 0.0  ;;  %v18652_v13 = vld [vmem:[#allocation96_spill] sm:$0xff]  ;;  %v14183_v43 = vsel %vm555_vm0, %v3475_v5, %v3476_v32  ;;  %v14187_v29 = vsel %vm392_vm1, %v3301_v10, %v3302_v35  ;;  %3990 = vmatprep.mubr.f32.mxu0 %v13860_v12 }
 0x2e4   : > { %10941 = vmatpush1.bf16.msra.mxu1 %v18649_v38  ;;  %18651 = vst [vmem:[#allocation86_spill] sm:$0xff] %v14170_v7  ;;  %v2968_v47 = vadd.f32 %v2854_v3, %v18652_v13  ;;  %18653 = vst [vmem:[#allocation95_spill] sm:$0xff] %v14183_v43  ;;  %v3068_v25 = vmax.f32 %v3020_v48, 0.0  ;;  %v2967_v11 = vadd.f32 %v2849_v37, %v18655_v44  ;;  %v9943_v38 = vpop.f32.mrb[192].mxu0  ;;  %v3477_v3 = vrot.slane %v14161_v9, 1  ;;  %v18657_v37 = vld [vmem:[#allocation29_spill] sm:$0xff] }
 0x2e5   : > { %10942 = vmatprep.subr.bf16.mxu1 %v18551_v22  ;;  %10031 = vmatmul.mubr.f32.gmra.mrb[246].mxu1 %v14170_v7  ;;  %18654 = vst [vmem:[#allocation112_spill] sm:$0xff] %v14187_v29  ;;  %v3478_v13 = vrot.slane %v14153_v42, 1  ;;  %v14194_v7 = vmul.f32 %v3117_v30, %v3069_v36  ;;  %v2864_v50 = vadd.f32 %v9943_v38, %v13922_v62  ;;  %v2858_v10 = vpop.f32.mrb[193].mxu0  ;;  %v3303_v48 = vrot.slane %v13911_v63, 7 }
 0x2e6   : > { %10033 = vmatprep.mubr.f32.mxu1 %v14183_v43  ;;  %v3023_v5 = vadd.f32 %v13536_v26, %v2968_v47  ;;  %v18658_v44 = vpack.c.bf16 %v13566_v49, %v18657_v37  ;;  %v14202_v12 = vmul.f32 %v3116_v21, %v3068_v25  ;;  %v3119_v43 = vld [vmem:[%s17554_s3 + $0xf8] sm:$0xff]  ;;  %v3022_v30 = vadd.f32 %v13536_v26, %v2967_v11  ;;  %v14213_v47 = vpop.f32.mrb[208].mxu1  ;;  %v3118_v21 = vld [vmem:[%s17554_s3 + $0xf0] sm:$0xff] }
 0x2e7   : > { %18656 = vst [vmem:[#allocation43_spill] sm:$0xff] %v14194_v7  ;;  %v2859_v36 = vadd.f32 %v2858_v10, %v13880_v23  ;;  %v14211_v62 = vsel %vm555_vm0, %v3476_v32, %v3477_v3  ;;  %v18661_v25 = vld [vmem:[#allocation72_spill] sm:$0xff]  ;;  %3991 = vmatmul.mubr.f32.gmra.mrb[234].mxu0 %v14187_v29  ;;  %v14224_v23 = vsel %vm555_vm0, %v3477_v3, %v3478_v13  ;;  %v2595_v32 = vpop.f32.mrb[209].mxu1 }
 0x2e8   : > { %10944 = vmatpush1.bf16.msra.mxu1 %v18658_v44  ;;  %18659 = vst [vmem:[#allocation41_spill] sm:$0xff] %v14202_v12  ;;  %18660 = vst [vmem:[#allocation109_spill] sm:$0xff] %v14211_v62  ;;  %v3071_v49 = vmax.f32 %v3023_v5, 0.0  ;;  %v2970_v38 = vadd.f32 %v2864_v50, %v18661_v25  ;;  %v14228_v11 = vsel %vm392_vm1, %v3302_v35, %v3303_v48  ;;  %v3070_v5 = vmax.f32 %v3022_v30, 0.0  ;;  %v18664_v10 = vld [vmem:[#allocation40_spill] sm:$0xff]  ;;  %v9946_v44 = vpop.f32.mrb[194].mxu0 }
 0x2e9   : > { %10945 = vmatprep.subr.bf16.mxu1 %v18551_v22  ;;  %10034 = vmatmul.mubr.f32.gmra.mrb[248].mxu1 %v14211_v62  ;;  %18662 = vst [vmem:[#allocation51_spill] sm:$0xff] %v14224_v23  ;;  %18663 = vst [vmem:[#allocation68_spill] sm:$0xff] %v14228_v11  ;;  %v2969_v37 = vadd.f32 %v2859_v36, %v18664_v10  ;;  %v3479_v50 = vrot.slane %v14202_v12, 1  ;;  %v3480_v25 = vrot.slane %v14194_v7, 1  ;;  %v2868_v35 = vpop.f32.mrb[195].mxu0  ;;  %v3304_v30 = vrot.slane %v13902_v24, 7 }
 0x2ea   : > { %3995 = vmatprep.mubr.f32.mxu0 %v13911_v63  ;;  %10036 = vmatprep.mubr.f32.mxu1 %v14224_v23  ;;  %v14235_v62 = vmul.f32 %v3119_v43, %v3071_v49  ;;  %v3025_v3 = vadd.f32 %v13536_v26, %v2970_v38  ;;  %v2874_v32 = vadd.f32 %v9946_v44, %v14006_v0  ;;  %v18666_v36 = vld [vmem:[#allocation49_spill] sm:$0xff]  ;;  %v14254_v38 = vpop.f32.mrb[210].mxu1 }
 0x2eb   : > { %v18667_v10 = vpack.c.bf16 %v13577_v57, %v18666_v36  ;;  %v14243_v63 = vmul.f32 %v3118_v21, %v3070_v5  ;;  %v3121_v23 = vld [vmem:[%s17554_s3 + $0x108] sm:$0xff]  ;;  %v3024_v43 = vadd.f32 %v13536_v26, %v2969_v37  ;;  %v2869_v49 = vadd.f32 %v2868_v35, %v13964_v55  ;;  %v3120_v21 = vld [vmem:[%s17554_s3 + $0x100] sm:$0xff]  ;;  %3996 = vmatmul.mubr.f32.gmra.mrb[236].mxu0 %v14228_v11  ;;  %v2600_v55 = vpop.f32.mrb[211].mxu1  ;;  %v9949_v36 = vpop.f32.mrb[196].mxu0 }
 0x2ec   : > { %18665 = vst [vmem:[#allocation111_spill] sm:$0xff] %v14235_v62  ;;  %v14252_v0 = vsel %vm555_vm0, %v3478_v13, %v3479_v50  ;;  %v3073_v57 = vmax.f32 %v3025_v3, 0.0  ;;  %v18670_v5 = vld [vmem:[#allocation73_spill] sm:$0xff]  ;;  %v14265_v26 = vsel %vm555_vm0, %v3479_v50, %v3480_v25  ;;  %v14269_v13 = vsel %vm392_vm1, %v3303_v48, %v3304_v30  ;;  %v18673_v3 = vld [vmem:[#allocation102_spill] sm:$0xff]  ;;  %4000 = vmatprep.mubr.f32.mxu0 %v13902_v24  ;;  %v14278_v50 = vld [vmem:[#allocation5] ss:$0 sm:$0xff] }
 0x2ed   : > { %10947 = vmatpush1.bf16.msra.mxu1 %v18667_v10  ;;  %18668 = vst [vmem:[#allocation52_spill] sm:$0xff] %v14243_v63  ;;  %18669 = vst [vmem:[#allocation88_spill] sm:$0xff] %v14252_v0  ;;  %v2972_v44 = vadd.f32 %v2874_v32, %v18670_v5  ;;  %v3072_v37 = vmax.f32 %v3024_v43, 0.0  ;;  %v2971_v35 = vadd.f32 %v2869_v49, %v18673_v3  ;;  %v3481_v32 = vrot.slane %v14243_v63, 1  ;;  %v2878_v43 = vpop.f32.mrb[197].mxu0 }
 0x2ee   : > { %10948 = vmatprep.subr.bf16.mxu1 %v18551_v22  ;;  %10037 = vmatmul.mubr.f32.gmra.mrb[250].mxu1 %v14252_v0  ;;  %18671 = vst [vmem:[#allocation35_spill] sm:$0xff] %v14265_v26  ;;  %18672 = vst [vmem:[#allocation45_spill] sm:$0xff] %v14269_v13  ;;  %v3482_v10 = vrot.slane %v14235_v62, 1  ;;  %v14276_v5 = vmul.f32 %v3121_v23, %v3073_v57  ;;  %v2884_v48 = vadd.f32 %v9949_v36, %v14090_v17  ;;  %v3123_v23 = vld [vmem:[%s17554_s3 + $0x118] sm:$0xff] }
 0x2ef   : > { %10039 = vmatprep.mubr.f32.mxu1 %v14265_v26  ;;  %v3027_v55 = vadd.f32 %v14278_v50, %v2972_v44  ;;  %v3305_v49 = vrot.slane %v13953_v2, 7  ;;  %v18675_v3 = vpack.c.bf16 %v13588_v18, %v13586_v14  ;;  %v14286_v26 = vmul.f32 %v3120_v21, %v3072_v37  ;;  %v14297_v44 = vpop.f32.mrb[212].mxu1  ;;  %v3122_v14 = vld [vmem:[%s17554_s3 + $0x110] sm:$0xff]  ;;  %v18678_v21 = vld [vmem:[#allocation101_spill] sm:$0xff]  ;;  %4001 = vmatmul.mubr.f32.gmra.mrb[238].mxu0 %v14269_v13 }
 0x2f0   : > { %18674 = vst [vmem:[#allocation46_spill] sm:$0xff] %v14276_v5  ;;  %v3026_v57 = vadd.f32 %v14278_v50, %v2971_v35  ;;  %v2879_v0 = vadd.f32 %v2878_v43, %v14048_v6  ;;  %v14295_v17 = vsel %vm555_vm0, %v3480_v25, %v3481_v32  ;;  %v2974_v37 = vadd.f32 %v2884_v48, %v18678_v21  ;;  %v2605_v25 = vpop.f32.mrb[213].mxu1 }
 0x2f1   : > { %10950 = vmatpush1.bf16.msra.mxu1 %v18675_v3  ;;  %18676 = vst [vmem:[#allocation69_spill] sm:$0xff] %v14286_v26  ;;  %18677 = vst [vmem:[#allocation90_spill] sm:$0xff] %v14295_v17  ;;  %v3075_v18 = vmax.f32 %v3027_v55, 0.0  ;;  %v14308_v6 = vsel %vm555_vm0, %v3481_v32, %v3482_v10  ;;  %v14312_v35 = vsel %vm392_vm1, %v3304_v30, %v3305_v49  ;;  %v18681_v55 = vld [vmem:[#allocation77_spill] sm:$0xff]  ;;  %v9952_v3 = vpop.f32.mrb[198].mxu0  ;;  %4005 = vmatprep.mubr.f32.mxu0 %v13953_v2 }
 0x2f2   : > { %10951 = vmatprep.subr.bf16.mxu1 %v18551_v22  ;;  %10040 = vmatmul.mubr.f32.gmra.mrb[252].mxu1 %v14295_v17  ;;  %18679 = vst [vmem:[#allocation50_spill] sm:$0xff] %v14308_v6  ;;  %18680 = vst [vmem:[#allocation115_spill] sm:$0xff] %v14312_v35  ;;  %v3074_v36 = vmax.f32 %v3026_v57, 0.0  ;;  %v2973_v43 = vadd.f32 %v2879_v0, %v18681_v55  ;;  %v3483_v48 = vrot.slane %v14286_v26, 1  ;;  %v3484_v21 = vrot.slane %v14276_v5, 1  ;;  %v2888_v30 = vpop.f32.mrb[199].mxu0 }
 0x2f3   : > { %10042 = vmatprep.mubr.f32.mxu1 %v14308_v6  ;;  %v14319_v17 = vmul.f32 %v3123_v23, %v3075_v18  ;;  %v3029_v32 = vadd.f32 %v14278_v50, %v2974_v37  ;;  %v2894_v25 = vadd.f32 %v9952_v3, %v14172_v15  ;;  %v3306_v57 = vrot.slane %v13944_v27, 7  ;;  %v3125_v6 = vld [vmem:[%s17554_s3 + $0x128] sm:$0xff]  ;;  %v2608_v37 = vpop.f32.mrb[214].mxu1  ;;  %4006 = vmatmul.mubr.f32.gmra.mrb[240].mxu0 %v14312_v35 }
 0x2f4   : > { %v18683_v0 = vpack.c.bf16 %v13598_v61, %v13590_v39  ;;  %v14327_v55 = vmul.f32 %v3122_v14, %v3074_v36  ;;  %v3028_v23 = vadd.f32 %v14278_v50, %v2973_v43  ;;  %v2889_v18 = vadd.f32 %v2888_v30, %v14131_v60  ;;  %v3124_v39 = vld [vmem:[%s17554_s3 + $0x120] sm:$0xff]  ;;  %v18686_v61 = vld [vmem:[#allocation103_spill] sm:$0xff]  ;;  %4010 = vmatprep.mubr.f32.mxu0 %v13944_v27 }
 0x2f5   : > { %18682 = vst [vmem:[#allocation97_spill] sm:$0xff] %v14319_v17  ;;  %v14336_v15 = vsel %vm555_vm0, %v3482_v10, %v3483_v48  ;;  %v3077_v3 = vmax.f32 %v3029_v32, 0.0  ;;  %v2976_v14 = vadd.f32 %v2894_v25, %v18686_v61  ;;  %v14347_v60 = vsel %vm555_vm0, %v3483_v48, %v3484_v21  ;;  %v2610_v10 = vpop.f32.mrb[215].mxu1  ;;  %v18689_v32 = vld [vmem:[#allocation81_spill] sm:$0xff] }
 0x2f6   : > { %10953 = vmatpush1.bf16.msra.mxu1 %v18683_v0  ;;  %18684 = vst [vmem:[#allocation70_spill] sm:$0xff] %v14327_v55  ;;  %18685 = vst [vmem:[#allocation114_spill] sm:$0xff] %v14336_v15  ;;  %v14351_v36 = vsel %vm392_vm1, %v3305_v49, %v3306_v57  ;;  %v3076_v43 = vmax.f32 %v3028_v23, 0.0  ;;  %v2975_v30 = vadd.f32 %v2889_v18, %v18689_v32  ;;  %v9955_v0 = vpop.f32.mrb[200].mxu0  ;;  %v3485_v25 = vrot.slane %v14327_v55, 1  ;;  %v18691_v18 = vld [vmem:[#allocation58_spill] sm:$0xff] }
 0x2f7   : > { %10954 = vmatprep.subr.bf16.mxu1 %v18551_v22  ;;  %10043 = vmatmul.mubr.f32.gmra.mrb[254].mxu1 %v14336_v15  ;;  %18687 = vst [vmem:[#allocation48_spill] sm:$0xff] %v14347_v60  ;;  %18688 = vst [vmem:[#allocation96_spill] sm:$0xff] %v14351_v36  ;;  %v3486_v61 = vrot.slane %v14319_v17, 1  ;;  %v14358_v15 = vmul.f32 %v3125_v6, %v3077_v3  ;;  %v3031_v48 = vadd.f32 %v14278_v50, %v2976_v14  ;;  %v2898_v49 = vpop.f32.mrb[201].mxu0  ;;  %v2613_v14 = vpop.f32.mrb[216].mxu1 }
 0x2f8   : > { %10045 = vmatprep.mubr.f32.mxu1 %v14347_v60  ;;  %v2904_v10 = vadd.f32 %v9955_v0, %v14254_v38  ;;  %v3307_v23 = vrot.slane %v13995_v51, 7  ;;  %v18692_v32 = vpack.c.bf16 %v13602_v8, %v18691_v18  ;;  %v14366_v27 = vmul.f32 %v3124_v39, %v3076_v43  ;;  %v3127_v60 = vld [vmem:[%s17554_s3 + $0x138] sm:$0xff]  ;;  %v18695_v0 = vld [vmem:[#allocation54_spill] sm:$0xff]  ;;  %4011 = vmatmul.mubr.f32.gmra.mrb[242].mxu0 %v14351_v36 }
 0x2f9   : > { %18690 = vst [vmem:[#allocation71_spill] sm:$0xff] %v14358_v15  ;;  %v3030_v6 = vadd.f32 %v14278_v50, %v2975_v30  ;;  %v2899_v3 = vadd.f32 %v2898_v49, %v14213_v47  ;;  %v14375_v38 = vsel %vm555_vm0, %v3484_v21, %v3485_v25  ;;  %v3079_v35 = vmax.f32 %v3031_v48, 0.0  ;;  %v3126_v8 = vld [vmem:[%s17554_s3 + $0x130] sm:$0xff]  ;;  %v2615_v21 = vpop.f32.mrb[217].mxu1  ;;  %v18699_v49 = vld [vmem:[#allocation85_spill] sm:$0xff]  ;;  %4015 = vmatprep.mubr.f32.mxu0 %v13995_v51 }
 0x2fa   : > { %10956 = vmatpush1.bf16.msra.mxu1 %v18692_v32  ;;  %18693 = vst [vmem:[#allocation29_spill] sm:$0xff] %v14366_v27  ;;  %18694 = vst [vmem:[#allocation72_spill] sm:$0xff] %v14375_v38  ;;  %v18696_v39 = vld [vmem:[#allocation106_spill] sm:$0xff]  ;;  %v14386_v47 = vsel %vm555_vm0, %v3485_v25, %v3486_v61  ;;  %v14390_v30 = vsel %vm392_vm1, %v3306_v57, %v3307_v23  ;;  %v9958_v32 = vpop.f32.mrb[202].mxu0  ;;  %v3308_v57 = vrot.slane %v13986_v45, 7 }
 0x2fb   : > { %11038 = vmatprep.subr.bf16.mxu1 %v18695_v0  ;;  %v2978_v43 = vadd.f32 %v2904_v10, %v18696_v39  ;;  %10046 = vmatmul.mubr.f32.gmra.mrb[0].mxu1 %v14375_v38  ;;  %18697 = vst [vmem:[#allocation40_spill] sm:$0xff] %v14386_v47  ;;  %18698 = vst [vmem:[#allocation49_spill] sm:$0xff] %v14390_v30  ;;  %v3078_v48 = vmax.f32 %v3030_v6, 0.0  ;;  %v2977_v18 = vadd.f32 %v2899_v3, %v18699_v49  ;;  %v2908_v36 = vpop.f32.mrb[203].mxu0  ;;  %v3129_v3 = vld [vmem:[%s17554_s3 + $0x148] sm:$0xff] }
 0x2fc   : > { %10048 = vmatprep.mubr.f32.mxu1 %v14386_v47  ;;  %v3487_v10 = vrot.slane %v14366_v27, 1  ;;  %v3488_v39 = vrot.slane %v14358_v15, 1  ;;  %v14397_v38 = vmul.f32 %v3127_v60, %v3079_v35  ;;  %v2914_v21 = vadd.f32 %v9958_v32, %v2608_v37  ;;  %v2618_v60 = vpop.f32.mrb[218].mxu1  ;;  %v3128_v37 = vld [vmem:[%s17554_s3 + $0x140] sm:$0xff]  ;;  %4016 = vmatmul.mubr.f32.gmra.mrb[244].mxu0 %v14390_v30  ;;  %v18706_v32 = vld [vmem:[#allocation91_spill] sm:$0xff]  ;;  %v9961_v51 = vpop.f32.mrb[204].mxu0 }
 0x2fd   : > { %v3033_v25 = vadd.f32 %v14278_v50, %v2978_v43  ;;  %v14401_v6 = vmul.f32 %v3126_v8, %v3078_v48  ;;  %v3032_v49 = vadd.f32 %v14278_v50, %v2977_v18  ;;  %v2909_v47 = vadd.f32 %v2908_v36, %v14297_v44  ;;  %v18703_v8 = vld [vmem:[#allocation89_spill] sm:$0xff]  ;;  %v2620_v44 = vpop.f32.mrb[219].mxu1  ;;  %4020 = vmatprep.mubr.f32.mxu0 %v13986_v45  ;;  %v2918_v30 = vpop.f32.mrb[205].mxu0 }
 0x2fe   : > { %18700 = vst [vmem:[#allocation73_spill] sm:$0xff] %v14397_v38  ;;  %v14410_v35 = vsel %vm555_vm0, %v3486_v61, %v3487_v10  ;;  %v2980_v48 = vadd.f32 %v2914_v21, %v18703_v8  ;;  %v14420_v18 = vsel %vm555_vm0, %v3487_v10, %v3488_v39  ;;  %v14424_v36 = vsel %vm392_vm1, %v3307_v23, %v3308_v57  ;;  %v2623_v45 = vpop.f32.mrb[220].mxu1 }
 0x2ff   : > { %18701 = vst [vmem:[#allocation102_spill] sm:$0xff] %v14401_v6  ;;  %18702 = vst [vmem:[#allocation101_spill] sm:$0xff] %v14410_v35  ;;  %v3081_v43 = vmax.f32 %v3033_v25, 0.0  ;;  %10049 = vmatmul.mubr.f32.gmra.mrb[2].mxu1 %v14410_v35  ;;  %v3080_v61 = vmax.f32 %v3032_v49, 0.0  ;;  %v2979_v25 = vadd.f32 %v2909_v47, %v18706_v32  ;;  %v3489_v21 = vrot.slane %v14401_v6, 1  ;;  %v3131_v47 = vld [vmem:[%s17554_s3 + $0x158] sm:$0xff] }
 0x300   : > { %18704 = vst [vmem:[#allocation77_spill] sm:$0xff] %v14420_v18  ;;  %18705 = vst [vmem:[#allocation103_spill] sm:$0xff] %v14424_v36  ;;  %10051 = vmatprep.mubr.f32.mxu1 %v14420_v18  ;;  %v3490_v8 = vrot.slane %v14397_v38, 1  ;;  %v3035_v10 = vadd.f32 %v14278_v50, %v2980_v48  ;;  %v2924_v44 = vadd.f32 %v9961_v51, %v2618_v60  ;;  %v3309_v23 = vrot.slane %v14037_v16, 7  ;;  %v3130_v51 = vld [vmem:[%s17554_s3 + $0x150] sm:$0xff]  ;;  %v18710_v60 = vld [vmem:[#allocation32_spill] sm:$0xff] }
 0x301   : > { %v14431_v35 = vmul.f32 %v3129_v3, %v3081_v43  ;;  %v14435_v49 = vmul.f32 %v3128_v37, %v3080_v61  ;;  %v3034_v32 = vadd.f32 %v14278_v50, %v2979_v25  ;;  %v2919_v18 = vadd.f32 %v2918_v30, %v2613_v14  ;;  %4021 = vmatmul.mubr.f32.gmra.mrb[246].mxu0 %v14424_v36  ;;  %v2625_v48 = vpop.f32.mrb[221].mxu1  ;;  %v18712_v61 = vld [vmem:[#allocation38_spill] sm:$0xff]  ;;  %v9964_v25 = vpop.f32.mrb[206].mxu0 }
 0x302   : > { %v14443_v3 = vsel %vm555_vm0, %v3488_v39, %v3489_v21  ;;  %v3083_v43 = vmax.f32 %v3035_v10, 0.0  ;;  %v2982_v37 = vadd.f32 %v2924_v44, %v18710_v60  ;;  %v14453_v14 = vsel %vm555_vm0, %v3489_v21, %v3490_v8  ;;  %4025 = vmatprep.mubr.f32.mxu0 %v14037_v16  ;;  %v2628_v16 = vpop.f32.mrb[222].mxu1 }
 0x303   : > { %18707 = vst [vmem:[#allocation81_spill] sm:$0xff] %v14431_v35  ;;  %18708 = vst [vmem:[#allocation58_spill] sm:$0xff] %v14435_v49  ;;  %10052 = vmatmul.mubr.f32.gmra.mrb[4].mxu1 %v14443_v3  ;;  %v3082_v30 = vmax.f32 %v3034_v32, 0.0  ;;  %v2981_v39 = vadd.f32 %v2919_v18, %v18712_v61  ;;  %v3491_v10 = vrot.slane %v14435_v49, 1  ;;  %v3492_v44 = vrot.slane %v14431_v35, 1  ;;  %v3133_v61 = vld [vmem:[%s17554_s3 + $0x168] sm:$0xff] }
 0x304   : > { %18709 = vst [vmem:[#allocation54_spill] sm:$0xff] %v14443_v3  ;;  %18711 = vst [vmem:[#allocation106_spill] sm:$0xff] %v14453_v14  ;;  %10054 = vmatprep.mubr.f32.mxu1 %v14453_v14  ;;  %v14460_v60 = vmul.f32 %v3131_v47, %v3083_v43  ;;  %v3037_v48 = vadd.f32 %v14278_v50, %v2982_v37  ;;  %v2928_v3 = vpop.f32.mrb[207].mxu0  ;;  %v14465_v21 = vsel %vm392_vm1, %v3308_v57, %v3309_v23  ;;  %v3132_v57 = vld [vmem:[%s17554_s3 + $0x160] sm:$0xff] }
 0x305   : > { %18714 = vst [vmem:[#allocation89_spill] sm:$0xff] %v14465_v21  ;;  %v3310_v18 = vrot.slane %v14028_v54, 7  ;;  %v14468_v32 = vmul.f32 %v3130_v51, %v3082_v30  ;;  %v3036_v14 = vadd.f32 %v14278_v50, %v2981_v39  ;;  %v2929_v47 = vadd.f32 %v2928_v3, %v2623_v45  ;;  %4026 = vmatmul.mubr.f32.gmra.mrb[248].mxu0 %v14465_v21  ;;  %v2630_v30 = vpop.f32.mrb[223].mxu1  ;;  %v18718_v3 = vld [vmem:[#allocation93_spill] sm:$0xff] }
 0x306   : > { %18713 = vst [vmem:[#allocation85_spill] sm:$0xff] %v14460_v60  ;;  %v14476_v43 = vsel %vm555_vm0, %v3490_v8, %v3491_v10  ;;  %v3085_v37 = vmax.f32 %v3037_v48, 0.0  ;;  %v2934_v36 = vadd.f32 %v9964_v25, %v2628_v16  ;;  %v14485_v51 = vsel %vm555_vm0, %v3491_v10, %v3492_v44  ;;  %4030 = vmatprep.mubr.f32.mxu0 %v14028_v54  ;;  %v18720_v48 = vld [vmem:[#allocation33_spill] sm:$0xff] }
 0x307   : > { %18715 = vst [vmem:[#allocation91_spill] sm:$0xff] %v14468_v32  ;;  %18716 = vst [vmem:[#allocation32_spill] sm:$0xff] %v14476_v43  ;;  %10055 = vmatmul.mubr.f32.gmra.mrb[6].mxu1 %v14476_v43  ;;  %v3084_v45 = vmax.f32 %v3036_v14, 0.0  ;;  %v2983_v39 = vadd.f32 %v2929_v47, %v18718_v3  ;;  %v3493_v8 = vrot.slane %v14468_v32, 1  ;;  %v3494_v16 = vrot.slane %v14460_v60, 1 }
 0x308   : > { %18717 = vst [vmem:[#allocation38_spill] sm:$0xff] %v14485_v51  ;;  %10057 = vmatprep.mubr.f32.mxu1 %v14485_v51  ;;  %v14492_v25 = vmul.f32 %v3133_v61, %v3085_v37  ;;  %v2984_v43 = vadd.f32 %v2934_v36, %v18720_v48  ;;  %v14497_v10 = vsel %vm392_vm1, %v3309_v23, %v3310_v18  ;;  %v3311_v14 = vrot.slane %v14079_v53, 7  ;;  %v3134_v23 = vld [vmem:[%s17554_s3 + $0x170] sm:$0xff] }
 0x309   : > { %18721 = vst [vmem:[#allocation33_spill] sm:$0xff] %v14497_v10  ;;  %v14500_v30 = vmul.f32 %v3132_v57, %v3084_v45  ;;  %v3038_v47 = vadd.f32 %v14278_v50, %v2983_v39  ;;  %v14505_v3 = vsel %vm555_vm0, %v3492_v44, %v3493_v8  ;;  %v14509_v61 = vsel %vm555_vm0, %v3493_v8, %v3494_v16  ;;  %v3135_v44 = vld [vmem:[%s17554_s3 + $0x178] sm:$0xff]  ;;  %v5260_v51 = vld [vmem:[#allocation3 + $0x890] sm:$0xff] }
 0x30a   : > { %18719 = vst [vmem:[#allocation93_spill] sm:$0xff] %v14492_v25  ;;  %18723 = vst [vmem:[#allocation126_spill] sm:$0xff] %v14505_v3  ;;  %v3039_v36 = vadd.f32 %v14278_v50, %v2984_v43  ;;  %4031 = vmatmul.mubr.f32.gmra.mrb[250].mxu0 %v14497_v10  ;;  %v3496_v37 = vrot.slane %v14492_v25, 1  ;;  %v14526_v45 = vsel %vm392_vm1, %v3310_v18, %v3311_v14 }
 0x30b   : > { %18722 = vst [vmem:[#allocation125_spill] sm:$0xff] %v14500_v30  ;;  %18724 = vst [vmem:[#allocation127_spill] sm:$0xff] %v14509_v61  ;;  %10058 = vmatmul.mubr.f32.gmra.mrb[8].mxu1 %v14505_v3  ;;  %v3086_v57 = vmax.f32 %v3038_v47, 0.0  ;;  %4035 = vmatprep.mubr.f32.mxu0 %v14079_v53  ;;  %v3495_v50 = vrot.slane %v14500_v30, 1  ;;  %v3312_v47 = vrot.slane %v14070_v28, 7  ;;  %v18734_v3 = vld [vmem:[#allocation53_spill] sm:$0xff] }
 0x30c   : > { %10060 = vmatprep.mubr.f32.mxu1 %v14509_v61  ;;  %v3087_v43 = vmax.f32 %v3039_v36, 0.0  ;;  %18725 = vst [vmem:[#allocation128_spill] sm:$0xff] %v14526_v45  ;;  %v3799_v36 = vld [vmem:[#allocation3 + $0x5e0] sm:$0xff] }
 0x30d   : > { %v14528_v39 = vmul.f32 %v3134_v23, %v3086_v57  ;;  %v14532_v8 = vsel %vm555_vm0, %v3494_v16, %v3495_v50  ;;  %v14536_v48 = vsel %vm555_vm0, %v3495_v50, %v3496_v37  ;;  %v3800_v23 = vld [vmem:[#allocation3 + $0x5e8] sm:$0xff]  ;;  %v14549_v57 = vsel %vm392_vm1, %v3311_v14, %v3312_v47 }
 0x30e   : > { %18727 = vst [vmem:[#allocation130_spill] sm:$0xff] %v14532_v8  ;;  %18728 = vst [vmem:[#allocation131_spill] sm:$0xff] %v14536_v48  ;;  %v14539_v61 = vmul.f32 %v3135_v44, %v3087_v43  ;;  %4036 = vmatmul.mubr.f32.gmra.mrb[252].mxu0 %v14526_v45  ;;  %v3313_v50 = vrot.slane %v14120_v20, 7  ;;  %v10981_v14 = vpack.c.bf16 %v3800_v23, %v3799_v36 }
 0x30f   : > { %18726 = vst [vmem:[#allocation129_spill] sm:$0xff] %v14528_v39  ;;  %10061 = vmatmul.mubr.f32.gmra.mrb[10].mxu1 %v14532_v8  ;;  %4040 = vmatprep.mubr.f32.mxu0 %v14070_v28  ;;  %v3497_v18 = vrot.slane %v14528_v39, 1  ;;  %18730 = vst [vmem:[#allocation133_spill] sm:$0xff] %v14549_v57  ;;  %v3802_v8 = vld [vmem:[#allocation3 + $0x5f8] sm:$0xff] }
 0x310   : > { %18729 = vst [vmem:[#allocation132_spill] sm:$0xff] %v14539_v61  ;;  %10063 = vmatprep.mubr.f32.mxu1 %v14536_v48  ;;  %v3498_v16 = vrot.slane %v14539_v61, 1  ;;  %v3801_v48 = vld [vmem:[#allocation3 + $0x5f0] sm:$0xff]  ;;  %10982 = vmatprep.subr.bf16.mxu0 %v10981_v14 }
 0x311   : > { %v14553_v44 = vsel %vm555_vm0, %v3496_v37, %v3497_v18  ;;  %v14566_v37 = vsel %vm392_vm1, %v3312_v47, %v3313_v50  ;;  %v10985_v36 = vpack.c.bf16 %v3802_v8, %v3801_v48  ;;  %v11417_v47 = vld [vmem:[%s11636_s27] sm:$0xff]  ;;  %10984 = vmatpush3.bf16.msra.mxu0 %v10981_v14  ;;  %v5263_v8 = vld [vmem:[#allocation3 + $0x8a8] sm:$0xff] }
 0x312   : > { %18731 = vst [vmem:[#allocation134_spill] sm:$0xff] %v14553_v44  ;;  %4041 = vmatmul.mubr.f32.gmra.mrb[254].mxu0 %v14549_v57  ;;  %v14560_v43 = vsel %vm555_vm0, %v3497_v18, %v3498_v16  ;;  %18733 = vst [vmem:[#allocation136_spill] sm:$0xff] %v14566_v37  ;;  %v3314_v18 = vrot.slane %v14112_v58, 7  ;;  %v5261_v57 = vld [vmem:[#allocation3 + $0x898] sm:$0xff] }
 0x313   : > { %10064 = vmatmul.mubr.f32.gmra.mrb[12].mxu1 %v14553_v44  ;;  %18732 = vst [vmem:[#allocation135_spill] sm:$0xff] %v14560_v43  ;;  %4045 = vmatprep.mubr.f32.mxu0 %v14120_v20  ;;  %v14571_v44 = vsel %vm555_vm0, %v3498_v16, %v18734_v3  ;;  %v11041_v23 = vpack.c.bf16 %v5261_v57, %v5260_v51  ;;  %v3315_v3 = vrot.slane %v14161_v9, 7  ;;  %v11418_v51 = vld [vmem:[%s11636_s27 + $0x8] sm:$0xff]  ;;  %v3316_v57 = vrot.slane %v14153_v42, 7  ;;  %v18739_v14 = vld [vmem:[#allocation60_spill] sm:$0xff] }
 0x314   : > { %10066 = vmatprep.mubr.f32.mxu1 %v14560_v43  ;;  %18735 = vst [vmem:[#allocation137_spill] sm:$0xff] %v14571_v44  ;;  %v14580_v16 = vsel %vm392_vm1, %v3313_v50, %v3314_v18  ;;  %10986 = vmatprep.subr.bf16.mxu0 %v10985_v36  ;;  %v18737_v43 = vld [vmem:[#allocation59_spill] sm:$0xff] }
 0x315   : > { %18736 = vst [vmem:[#allocation138_spill] sm:$0xff] %v14580_v16  ;;  %v14590_v48 = vsel %vm392_vm1, %v3314_v18, %v3315_v3  ;;  %10988 = vmatpush3.bf16.msra.mxu0 %v10985_v36  ;;  %v14600_v18 = vsel %vm392_vm1, %v3315_v3, %v3316_v57  ;;  %v3318_v3 = vrot.slane %v14194_v7, 7 }
 0x316   : > { %4046 = vmatmul.mubr.f32.gmra.mrb[0].mxu0 %v14566_v37  ;;  %18738 = vst [vmem:[#allocation139_spill] sm:$0xff] %v14590_v48  ;;  %10989 = vmatprep.subr.bf16.mxu0 %v18551_v22  ;;  %18740 = vst [vmem:[#allocation140_spill] sm:$0xff] %v14600_v18 }
 0x317   : > { %10067 = vmatmul.mubr.f32.gmra.mrb[14].mxu1 %v14571_v44  ;;  %4050 = vmatprep.mubr.f32.mxu0 %v14112_v58  ;;  %v5262_v44 = vld [vmem:[#allocation3 + $0x8a0] sm:$0xff] }
 0x318   : > { %4535 = vmatprep.mubr.f32.mxu1 %v11417_v47  ;;  %v11045_v50 = vpack.c.bf16 %v5263_v8, %v5262_v44  ;;  %v5264_v47 = vld [vmem:[#allocation3 + $0x8b0] sm:$0xff]  ;;  %v3317_v44 = vrot.slane %v14202_v12, 7  ;;  %v18741_v8 = vld [vmem:[#allocation61_spill] sm:$0xff] }
 0x31a   : > { %4051 = vmatmul.mubr.f32.gmra.mrb[2].mxu0 %v14580_v16 }
 0x31b   : > { %4536 = vmatmul.mubr.f32.vlgmr.msra.gmra.mrb[16].mxu1 %v18737_v43  ;;  %4055 = vmatprep.mubr.f32.mxu0 %v14161_v9  ;;  %v5265_v43 = vld [vmem:[#allocation3 + $0x8b8] sm:$0xff] }
 0x31c   : > { %11040 = vmatpush3.bf16.msra.mxu1 %v18695_v0  ;;  %4540 = vmatprep.mubr.f32.mxu1 %v11418_v51  ;;  %v11419_v0 = vld [vmem:[%s11636_s27 + $0x10] sm:$0xff]  ;;  %v11049_v36 = vpack.c.bf16 %v5265_v43, %v5264_v47  ;;  %v5266_v51 = vld [vmem:[#allocation3 + $0x8c0] sm:$0xff]  ;;  %v5269_v47 = vld [vmem:[#allocation3 + $0x8d8] sm:$0xff] }
 0x31d   : > { %11042 = vmatprep.subr.bf16.mxu1 %v11041_v23  ;;  %v5268_v43 = vld [vmem:[#allocation3 + $0x8d0] sm:$0xff] }
 0x31e   : > { %4056 = vmatmul.mubr.f32.gmra.mrb[4].mxu0 %v14590_v48 }
 0x31f   : > { %4541 = vmatmul.mubr.f32.gmra.mrb[18].mxu1 %v18739_v14  ;;  %4060 = vmatprep.mubr.f32.mxu0 %v14153_v42  ;;  %v5267_v14 = vld [vmem:[#allocation3 + $0x8c8] sm:$0xff] }
 0x320   : > { %4545 = vmatprep.mubr.f32.mxu1 %v11419_v0  ;;  %11044 = vmatpush3.bf16.msra.mxu1 %v11041_v23  ;;  %v14609_v23 = vsel %vm392_vm1, %v3316_v57, %v3317_v44  ;;  %v11053_v0 = vpack.c.bf16 %v5267_v14, %v5266_v51  ;;  %v3319_v57 = vrot.slane %v14243_v63, 7  ;;  %v5271_v14 = vld [vmem:[#allocation3 + $0x8e8] sm:$0xff] }
 0x321   : > { %11046 = vmatprep.subr.bf16.mxu1 %v11045_v50  ;;  %18742 = vst [vmem:[#allocation141_spill] sm:$0xff] %v14609_v23  ;;  %v18747_v51 = vld [vmem:[#allocation113_spill] sm:$0xff] }
 0x322   : > { %4061 = vmatmul.mubr.f32.gmra.mrb[6].mxu0 %v14600_v18 }
 0x323   : > { %4546 = vmatmul.mubr.f32.gmra.mrb[20].mxu1 %v18741_v8  ;;  %4065 = vmatprep.mubr.f32.mxu0 %v14202_v12  ;;  %v11057_v8 = vpack.c.bf16 %v5269_v47, %v5268_v43  ;;  %v3323_v43 = vrot.slane %v14327_v55, 7  ;;  %v18750_v47 = vld [vmem:[#allocation116_spill] sm:$0xff] }
 0x324   : > { %4550 = vmatprep.mubr.f32.mxu1 %v13641_v56  ;;  %11048 = vmatpush3.bf16.msra.mxu1 %v11045_v50  ;;  %v14618_v50 = vsel %vm392_vm1, %v3317_v44, %v3318_v3  ;;  %v3320_v44 = vrot.slane %v14235_v62, 7 }
 0x325   : > { %11050 = vmatprep.subr.bf16.mxu1 %v11049_v36  ;;  %18743 = vst [vmem:[#allocation142_spill] sm:$0xff] %v14618_v50 }
 0x326   : > { %4066 = vmatmul.mubr.f32.gmra.mrb[8].mxu0 %v14609_v23 }
 0x327   : > { %4551 = vmatmul.mubr.f32.gmra.mrb[22].mxu1 %v13671_v59  ;;  %4070 = vmatprep.mubr.f32.mxu0 %v14194_v7  ;;  %v5270_v59 = vld [vmem:[#allocation3 + $0x8e0] sm:$0xff] }
 0x328   : > { %4555 = vmatprep.mubr.f32.mxu1 %v13628_v33  ;;  %11052 = vmatpush3.bf16.msra.mxu1 %v11049_v36  ;;  %v14627_v33 = vsel %vm392_vm1, %v3318_v3, %v3319_v57  ;;  %v11061_v36 = vpack.c.bf16 %v5271_v14, %v5270_v59  ;;  %v18748_v3 = vld [vmem:[#allocation57_spill] sm:$0xff]  ;;  %v3324_v14 = vrot.slane %v14319_v17, 7 }
 0x329   : > { %11054 = vmatprep.subr.bf16.mxu1 %v11053_v0  ;;  %18744 = vst [vmem:[#allocation143_spill] sm:$0xff] %v14627_v33 }
 0x32a   : > { %4071 = vmatmul.mubr.f32.gmra.mrb[10].mxu0 %v14618_v50 }
 0x32b   : > { %4556 = vmatmul.mubr.f32.gmra.mrb[24].mxu1 %v13688_v1  ;;  %4075 = vmatprep.mubr.f32.mxu0 %v14243_v63  ;;  %v3321_v1 = vrot.slane %v14286_v26, 7 }
 0x32c   : > { %4560 = vmatprep.mubr.f32.mxu1 %v13661_v4  ;;  %11056 = vmatpush3.bf16.msra.mxu1 %v11053_v0  ;;  %v14636_v4 = vsel %vm392_vm1, %v3319_v57, %v3320_v44  ;;  %v18751_v57 = vld [vmem:[#allocation55_spill] sm:$0xff] }
 0x32d   : > { %11058 = vmatprep.subr.bf16.mxu1 %v11057_v8  ;;  %18745 = vst [vmem:[#allocation144_spill] sm:$0xff] %v14636_v4 }
 0x32e   : > { %4076 = vmatmul.mubr.f32.gmra.mrb[12].mxu0 %v14627_v33 }
 0x32f   : > { %4561 = vmatmul.mubr.f32.gmra.mrb[26].mxu1 %v13727_v31  ;;  %4080 = vmatprep.mubr.f32.mxu0 %v14235_v62  ;;  %v14645_v31 = vsel %vm392_vm1, %v3320_v44, %v3321_v1  ;;  %v18753_v44 = vld [vmem:[#allocation21_spill] sm:$0xff] }
 0x330   : > { %4565 = vmatprep.mubr.f32.mxu1 %v13655_v52  ;;  %11060 = vmatpush3.bf16.msra.mxu1 %v11057_v8  ;;  %18746 = vst [vmem:[#allocation145_spill] sm:$0xff] %v14645_v31  ;;  %v3322_v8 = vrot.slane %v14276_v5, 7 }
 0x331   : > { %11062 = vmatprep.subr.bf16.mxu1 %v11061_v36 }
 0x332   : > { %4081 = vmatmul.mubr.f32.gmra.mrb[14].mxu0 %v14636_v4  ;;  %v14654_v0 = vsel %vm392_vm1, %v3321_v1, %v3322_v8  ;;  %v14663_v59 = vsel %vm392_vm1, %v3322_v8, %v3323_v43  ;;  %v14672_v1 = vsel %vm392_vm1, %v3323_v43, %v3324_v14  ;;  %v18756_v8 = vld [vmem:[#allocation22_spill] sm:$0xff]  ;;  %v3326_v43 = vrot.slane %v14358_v15, 7 }
 0x333   : > { %4566 = vmatmul.mubr.f32.gmra.mrb[28].mxu1 %v13769_v41  ;;  %4085 = vmatprep.mubr.f32.mxu0 %v14286_v26  ;;  %18749 = vst [vmem:[#allocation146_spill] sm:$0xff] %v14654_v0  ;;  %18752 = vst [vmem:[#allocation147_spill] sm:$0xff] %v14663_v59  ;;  %v5228_v41 = vld [vmem:[#allocation3 + $0x790] sm:$0xff] }
 0x334   : > { %4570 = vmatprep.mubr.f32.mxu1 %v13701_v34  ;;  %11064 = vmatpush3.bf16.msra.mxu1 %v11061_v36  ;;  %v18754_v36 = vld [vmem:[#allocation105_spill] sm:$0xff]  ;;  %18755 = vst [vmem:[#allocation148_spill] sm:$0xff] %v14672_v1  ;;  %v18759_v34 = vld [vmem:[#allocation74_spill] sm:$0xff] }
 0x336   : > { %4086 = vmatmul.mubr.f32.gmra.mrb[16].mxu0 %v14645_v31 }
 0x337   : > { %4571 = vmatmul.mubr.f32.gmra.mrb[30].mxu1 %v18747_v51  ;;  %4090 = vmatprep.mubr.f32.mxu0 %v14276_v5 }
 0x338   : > { %4575 = vmatprep.mubr.f32.mxu1 %v18748_v3  ;;  %v18757_v3 = vld [vmem:[#allocation39_spill] sm:$0xff] }
 0x33a   : > { %4091 = vmatmul.mubr.f32.gmra.mrb[18].mxu0 %v14654_v0 }
 0x33b   : > { %4576 = vmatmul.mubr.f32.gmra.mrb[32].mxu1 %v18750_v47  ;;  %4095 = vmatprep.mubr.f32.mxu0 %v14327_v55  ;;  %v5272_v47 = vld [vmem:[#allocation3 + $0x8f0] sm:$0xff] }
 0x33c   : > { %4580 = vmatprep.mubr.f32.mxu1 %v18751_v57  ;;  %v3325_v57 = vrot.slane %v14366_v27, 7 }
 0x33e   : > { %4096 = vmatmul.mubr.f32.gmra.mrb[20].mxu0 %v14663_v59 }
 0x33f   : > { %4581 = vmatmul.mubr.f32.gmra.mrb[34].mxu1 %v18753_v44  ;;  %4100 = vmatprep.mubr.f32.mxu0 %v14319_v17  ;;  %v5273_v44 = vld [vmem:[#allocation3 + $0x8f8] sm:$0xff] }
 0x340   : > { %4585 = vmatprep.mubr.f32.mxu1 %v18754_v36  ;;  %v11065_v51 = vpack.c.bf16 %v5273_v44, %v5272_v47  ;;  %v14681_v36 = vsel %vm392_vm1, %v3324_v14, %v3325_v57  ;;  %v3327_v47 = vrot.slane %v14401_v6, 7  ;;  %v18762_v14 = vld [vmem:[#allocation80_spill] sm:$0xff] }
 0x341   : > { %18758 = vst [vmem:[#allocation149_spill] sm:$0xff] %v14681_v36 }
 0x342   : > { %4101 = vmatmul.mubr.f32.gmra.mrb[22].mxu0 %v14672_v1  ;;  %11066 = vmatprep.subr.bf16.mxu1 %v11065_v51  ;;  %v14700_v44 = vsel %vm392_vm1, %v3326_v43, %v3327_v47 }
 0x343   : > { %4586 = vmatmul.mubr.f32.gmra.mrb[36].mxu1 %v18756_v8  ;;  %4105 = vmatprep.mubr.f32.mxu0 %v14366_v27  ;;  %v18760_v8 = vld [vmem:[#allocation44_spill] sm:$0xff]  ;;  %18763 = vst [vmem:[#allocation151_spill] sm:$0xff] %v14700_v44 }
 0x344   : > { %4590 = vmatprep.mubr.f32.mxu1 %v18757_v3  ;;  %v14690_v3 = vsel %vm392_vm1, %v3325_v57, %v3326_v43  ;;  %11068 = vmatpush3.bf16.msra.mxu1 %v11065_v51  ;;  %v3328_v57 = vrot.slane %v14397_v38, 7  ;;  %v18765_v51 = vld [vmem:[#allocation110_spill] sm:$0xff] }
 0x345   : > { %18761 = vst [vmem:[#allocation150_spill] sm:$0xff] %v14690_v3  ;;  %11069 = vmatprep.subr.bf16.mxu1 %v18551_v22  ;;  %v18767_v43 = vld [vmem:[#allocation66_spill] sm:$0xff] }
 0x346   : > { %4106 = vmatmul.mubr.f32.gmra.mrb[24].mxu0 %v14681_v36 }
 0x347   : > { %4591 = vmatmul.mubr.f32.gmra.mrb[38].mxu1 %v18759_v34  ;;  %4110 = vmatprep.mubr.f32.mxu0 %v14358_v15  ;;  %v18768_v34 = vld [vmem:[#allocation18_spill] sm:$0xff] }
 0x348   : > { %4595 = vmatprep.mubr.f32.mxu1 %v18760_v8  ;;  %v18764_v8 = vld [vmem:[#allocation82_spill] sm:$0xff] }
 0x34a   : > { %4111 = vmatmul.mubr.f32.gmra.mrb[26].mxu0 %v14690_v3 }
 0x34b   : > { %4596 = vmatmul.mubr.f32.gmra.mrb[40].mxu1 %v18762_v14  ;;  %4115 = vmatprep.mubr.f32.mxu0 %v14401_v6  ;;  %v14709_v14 = vsel %vm392_vm1, %v3327_v47, %v3328_v57  ;;  %v18770_v47 = vld [vmem:[#allocation19_spill] sm:$0xff] }
 0x34c   : > { %4600 = vmatprep.mubr.f32.mxu1 %v13827_v46  ;;  %18766 = vst [vmem:[#allocation152_spill] sm:$0xff] %v14709_v14  ;;  %v3329_v46 = vrot.slane %v14435_v49, 7 }
 0x34e   : > { %4116 = vmatmul.mubr.f32.gmra.mrb[28].mxu0 %v14700_v44 }
 0x34f   : > { %4601 = vmatmul.mubr.f32.gmra.mrb[42].mxu1 %v18764_v8  ;;  %4120 = vmatprep.mubr.f32.mxu0 %v14397_v38  ;;  %v14718_v8 = vsel %vm392_vm1, %v3328_v57, %v3329_v46  ;;  %v18772_v57 = vld [vmem:[#allocation12_spill] sm:$0xff] }
 0x350   : > { %4605 = vmatprep.mubr.f32.mxu1 %v18765_v51  ;;  %18769 = vst [vmem:[#allocation153_spill] sm:$0xff] %v14718_v8  ;;  %v3330_v51 = vrot.slane %v14431_v35, 7 }
 0x352   : > { %4121 = vmatmul.mubr.f32.gmra.mrb[30].mxu0 %v14709_v14 }
 0x353   : > { %4606 = vmatmul.mubr.f32.gmra.mrb[44].mxu1 %v18767_v43  ;;  %4125 = vmatprep.mubr.f32.mxu0 %v14435_v49  ;;  %v14727_v43 = vsel %vm392_vm1, %v3329_v46, %v3330_v51 }
 0x354   : > { %4610 = vmatprep.mubr.f32.mxu1 %v18768_v34  ;;  %18771 = vst [vmem:[#allocation154_spill] sm:$0xff] %v14727_v43  ;;  %v3331_v34 = vrot.slane %v14468_v32, 7 }
 0x356   : > { %4126 = vmatmul.mubr.f32.gmra.mrb[32].mxu0 %v14718_v8 }
 0x357   : > { %4611 = vmatmul.mubr.f32.gmra.mrb[46].mxu1 %v14146_v40  ;;  %4130 = vmatprep.mubr.f32.mxu0 %v14431_v35  ;;  %v14736_v40 = vsel %vm392_vm1, %v3330_v51, %v3331_v34 }
 0x358   : > { %4615 = vmatprep.mubr.f32.mxu1 %v18770_v47  ;;  %18773 = vst [vmem:[#allocation155_spill] sm:$0xff] %v14736_v40  ;;  %v3332_v47 = vrot.slane %v14460_v60, 7 }
 0x35a   : > { %4131 = vmatmul.mubr.f32.gmra.mrb[34].mxu0 %v14727_v43  ;;  %v14745_v46 = vsel %vm392_vm1, %v3331_v34, %v3332_v47  ;;  %v18776_v34 = vld [vmem:[#allocation115_spill] sm:$0xff] }
 0x35b   : > { %4616 = vmatmul.mubr.f32.gmra.mrb[48].mxu1 %v14187_v29  ;;  %4135 = vmatprep.mubr.f32.mxu0 %v14468_v32  ;;  %18774 = vst [vmem:[#allocation156_spill] sm:$0xff] %v14745_v46  ;;  %v18780_v29 = vld [vmem:[#allocation30_spill] sm:$0xff] }
 0x35c   : > { %4620 = vmatprep.mubr.f32.mxu1 %v18772_v57  ;;  %v3333_v57 = vrot.slane %v14500_v30, 7 }
 0x35e   : > { %4136 = vmatmul.mubr.f32.gmra.mrb[36].mxu0 %v14736_v40  ;;  %v14754_v51 = vsel %vm392_vm1, %v3332_v47, %v3333_v57  ;;  %v18779_v47 = vld [vmem:[#allocation96_spill] sm:$0xff] }
 0x35f   : > { %4621 = vmatmul.mubr.f32.gmra.mrb[50].mxu1 %v14228_v11  ;;  %4140 = vmatprep.mubr.f32.mxu0 %v14460_v60  ;;  %18775 = vst [vmem:[#allocation157_spill] sm:$0xff] %v14754_v51  ;;  %v18777_v11 = vld [vmem:[#allocation16_spill] sm:$0xff] }
 0x360   : > { %4625 = vmatprep.mubr.f32.mxu1 %v13902_v24  ;;  %v3334_v24 = vrot.slane %v14492_v25, 7 }
 0x362   : > { %4141 = vmatmul.mubr.f32.gmra.mrb[38].mxu0 %v14745_v46 }
 0x363   : > { %4626 = vmatmul.mubr.f32.gmra.mrb[52].mxu1 %v14269_v13  ;;  %4145 = vmatprep.mubr.f32.mxu0 %v14500_v30  ;;  %v14763_v13 = vsel %vm392_vm1, %v3333_v57, %v3334_v24  ;;  %v18782_v57 = vld [vmem:[#allocation49_spill] sm:$0xff] }
 0x364   : > { %4630 = vmatprep.mubr.f32.mxu1 %v13953_v2  ;;  %18778 = vst [vmem:[#allocation158_spill] sm:$0xff] %v14763_v13  ;;  %v3335_v2 = vrot.slane %v14528_v39, 7 }
 0x366   : > { %4146 = vmatmul.mubr.f32.gmra.mrb[40].mxu0 %v14754_v51  ;;  %v5229_v51 = vld [vmem:[#allocation3 + $0x798] sm:$0xff] }
 0x367   : > { %4631 = vmatmul.mubr.f32.gmra.mrb[54].mxu1 %v18776_v34  ;;  %4150 = vmatprep.mubr.f32.mxu0 %v14492_v25  ;;  %v14772_v34 = vsel %vm392_vm1, %v3334_v24, %v3335_v2  ;;  %v17892_v25 = vrot.slane %v14539_v61, 7  ;;  %v18785_v24 = vld [vmem:[#allocation103_spill] sm:$0xff] }
 0x368   : > { %4635 = vmatprep.mubr.f32.mxu1 %v18777_v11  ;;  %18781 = vst [vmem:[#allocation159_spill] sm:$0xff] %v14772_v34  ;;  %v18783_v11 = vld [vmem:[#allocation27_spill] sm:$0xff] }
 0x36a   : > { %4151 = vmatmul.mubr.f32.gmra.mrb[42].mxu0 %v14763_v13  ;;  %v5226_v13 = vld [vmem:[#allocation3 + $0x780] sm:$0xff] }
 0x36b   : > { %4636 = vmatmul.mubr.f32.gmra.mrb[56].mxu1 %v18779_v47  ;;  %4155 = vmatprep.mubr.f32.mxu0 %v14528_v39  ;;  %v14783_v39 = vsel %vm392_vm1, %v3335_v2, %v17892_v25  ;;  %v18786_v47 = vld [vmem:[#allocation65_spill] sm:$0xff]  ;;  %v18789_v2 = vrot.slane %v13641_v56, 1  ;;  %v18790_v25 = vld [vmem:[#allocation10_spill] sm:$0xff] }
 0x36c   : > { %4640 = vmatprep.mubr.f32.mxu1 %v18780_v29  ;;  %18784 = vst [vmem:[#allocation160_spill] sm:$0xff] %v14783_v39  ;;  %v5227_v29 = vld [vmem:[#allocation3 + $0x788] sm:$0xff] }
 0x36d   : > { %v18792_v56 = vld [vmem:[#allocation117_spill] sm:$0xff] }
 0x36e   : > { %4156 = vmatmul.mubr.f32.gmra.mrb[44].mxu0 %v14772_v34  ;;  %v18787_v34 = vld [vmem:[#allocation104_spill] sm:$0xff] }
 0x36f   : > { %4641 = vmatmul.mubr.f32.gmra.mrb[58].mxu1 %v18782_v57  ;;  %4160 = vmatprep.mubr.f32.mxu0 %v14539_v61  ;;  %v10990_v57 = vpack.c.bf16 %v5227_v29, %v5226_v13  ;;  %v18788_v61 = vld [vmem:[#allocation107_spill] sm:$0xff]  ;;  %v5230_v29 = vld [vmem:[#allocation3 + $0x7a0] sm:$0xff]  ;;  %v5231_v13 = vld [vmem:[#allocation3 + $0x7a8] sm:$0xff] }
 0x370   : > { %4645 = vmatprep.mubr.f32.mxu1 %v18783_v11  ;;  %v3552_v11 = vsel %vm555_vm0, %v18790_v25, %v18789_v2  ;;  %v5232_v2 = vld [vmem:[#allocation3 + $0x7b0] sm:$0xff] }
 0x371   : > { %v5236_v25 = vld [vmem:[#allocation3 + $0x7d0] sm:$0xff] }
 0x372   : > { %4161 = vmatmul.mubr.f32.gmra.mrb[46].mxu0 %v14783_v39  ;;  %v10993_v39 = vpack.c.bf16 %v5229_v51, %v5228_v41  ;;  %v18793_v41 = vld [vmem:[#allocation108_spill] sm:$0xff]  ;;  %v18794_v51 = vld [vmem:[#allocation123_spill] sm:$0xff] }
 0x373   : > { %4646 = vmatmul.mubr.f32.gmra.mrb[60].mxu1 %v18785_v24  ;;  %10101 = vmatprep.mubr.f32.mxu0 %v18787_v34  ;;  %v18791_v34 = vld [vmem:[#allocation100_spill] sm:$0xff]  ;;  %v5247_v24 = vld [vmem:[#allocation3 + $0x828] sm:$0xff] }
 0x374   : > { %4650 = vmatprep.mubr.f32.mxu1 %v18786_v47 }
 0x376   : > { %10102 = vmatmul.mubr.f32.vlgmr.msra.gmra.mrb[48].mxu0 %v18788_v61  ;;  %v10996_v61 = vpack.c.bf16 %v5231_v13, %v5230_v29  ;;  %v18796_v29 = vld [vmem:[#allocation56_spill] sm:$0xff]  ;;  %v18797_v13 = vld [vmem:[#allocation13_spill] sm:$0xff] }
 0x377   : > { %4651 = vmatmul.mubr.f32.gmra.mrb[62].mxu1 %v14465_v21  ;;  %10104 = vmatprep.mubr.f32.mxu0 %v3552_v11  ;;  %v5233_v11 = vld [vmem:[#allocation3 + $0x7b8] sm:$0xff] }
 0x378   : > { %4655 = vmatprep.mubr.f32.mxu1 %v14028_v54  ;;  %10991 = vmatpush1.bf16.msra.mxu0 %v10990_v57  ;;  %v5234_v57 = vld [vmem:[#allocation3 + $0x7c0] sm:$0xff]  ;;  %v5245_v21 = vld [vmem:[#allocation3 + $0x818] sm:$0xff] }
 0x379   : > { %10992 = vmatprep.subr.bf16.mxu0 %v18551_v22 }
 0x37a   : > { %10105 = vmatmul.mubr.f32.gmra.mrb[50].mxu0 %v18791_v34  ;;  %v10999_v34 = vpack.c.bf16 %v5233_v11, %v5232_v2  ;;  %v18799_v2 = vld [vmem:[#allocation15_spill] sm:$0xff]  ;;  %v11005_v11 = vpack.c.bf16 %v5237_v19, %v5236_v25 }
 0x37b   : > { %4656 = vmatmul.mubr.f32.gmra.mrb[64].mxu1 %v14497_v10  ;;  %10107 = vmatprep.mubr.f32.mxu0 %v18792_v56  ;;  %v5235_v56 = vld [vmem:[#allocation3 + $0x7c8] sm:$0xff]  ;;  %v5240_v19 = vld [vmem:[#allocation3 + $0x7f0] sm:$0xff]  ;;  %v5241_v25 = vld [vmem:[#allocation3 + $0x7f8] sm:$0xff] }
 0x37c   : > { %4660 = vmatprep.mubr.f32.mxu1 %v14079_v53  ;;  %10994 = vmatpush1.bf16.msra.mxu0 %v10993_v39  ;;  %v18795_v39 = vld [vmem:[#allocation133_spill] sm:$0xff] }
 0x37d   : > { %10995 = vmatprep.subr.bf16.mxu0 %v18551_v22 }
 0x37e   : > { %10108 = vmatmul.mubr.f32.gmra.mrb[52].mxu0 %v18793_v41  ;;  %v11002_v41 = vpack.c.bf16 %v5235_v56, %v5234_v57  ;;  %v18800_v56 = vld [vmem:[#allocation118_spill] sm:$0xff] }
 0x37f   : > { %4661 = vmatmul.mubr.f32.gmra.mrb[66].mxu1 %v14526_v45  ;;  %10110 = vmatprep.mubr.f32.mxu0 %v18794_v51 }
 0x380   : > { %4665 = vmatprep.mubr.f32.mxu1 %v14070_v28  ;;  %10997 = vmatpush1.bf16.msra.mxu0 %v10996_v61  ;;  %v18798_v61 = vld [vmem:[#allocation11_spill] sm:$0xff] }
 0x381   : > { %10998 = vmatprep.subr.bf16.mxu0 %v18551_v22 }
 0x382   : > { %10111 = vmatmul.mubr.f32.gmra.mrb[54].mxu0 %v18796_v29 }
 0x383   : > { %4666 = vmatmul.mubr.f32.gmra.mrb[68].mxu1 %v18795_v39  ;;  %10113 = vmatprep.mubr.f32.mxu0 %v18797_v13  ;;  %v3927_v39 = vpop.f32.mrb[208].mxu0 }
 0x384   : > { %4670 = vmatprep.mubr.f32.mxu1 %v14120_v20  ;;  %11000 = vmatpush1.bf16.msra.mxu0 %v10999_v34  ;;  %v5238_v20 = vld [vmem:[#allocation3 + $0x7e0] sm:$0xff]  ;;  %v5239_v34 = vld [vmem:[#allocation3 + $0x7e8] sm:$0xff]  ;;  %v3929_v57 = vpop.f32.mrb[209].mxu0  ;;  %v9999_v45 = vpop.f32.mrb[224].mxu1 }
 0x385   : > { %11001 = vmatprep.subr.bf16.mxu0 %v18551_v22  ;;  %v3932_v28 = vpop.f32.mrb[210].mxu0  ;;  %v4232_v57 = vpop.f32.mrb[225].mxu1 }
 0x386   : > { %10114 = vmatmul.mubr.f32.gmra.mrb[56].mxu0 %v18798_v61  ;;  %v3934_v53 = vpop.f32.mrb[211].mxu0  ;;  %v14827_v10 = vadd.f32 %v4232_v57, %v3927_v39  ;;  %v18806_v57 = vld [vmem:[#allocation25_spill] sm:$0xff] }
 0x387   : > { %4671 = vmatmul.mubr.f32.gmra.mrb[70].mxu1 %v14566_v37  ;;  %10116 = vmatprep.mubr.f32.mxu0 %v18799_v2  ;;  %v18801_v37 = vld [vmem:[#allocation122_spill] sm:$0xff] }
 0x388   : > { %4675 = vmatprep.mubr.f32.mxu1 %v14112_v58  ;;  %11003 = vmatpush1.bf16.msra.mxu0 %v11002_v41  ;;  %v11008_v58 = vpack.c.bf16 %v5239_v34, %v5238_v20  ;;  %v14823_v41 = vadd.f32 %v9999_v45, %v3932_v28  ;;  %v11011_v20 = vpack.c.bf16 %v5241_v25, %v5240_v19  ;;  %v3937_v34 = vpop.f32.mrb[212].mxu0  ;;  %v5242_v28 = vld [vmem:[#allocation3 + $0x800] sm:$0xff]  ;;  %v5243_v45 = vld [vmem:[#allocation3 + $0x808] sm:$0xff] }
 0x389   : > { %11004 = vmatprep.subr.bf16.mxu0 %v18551_v22  ;;  %v3939_v53 = vpop.f32.mrb[213].mxu0 }
 0x38a   : > { %10117 = vmatmul.mubr.f32.gmra.mrb[58].mxu0 %v18800_v56 }
 0x38b   : > { %4676 = vmatmul.mubr.f32.gmra.mrb[72].mxu1 %v14580_v16  ;;  %10119 = vmatprep.mubr.f32.mxu0 %v18801_v37  ;;  %v18802_v16 = vld [vmem:[#allocation120_spill] sm:$0xff]  ;;  %v3942_v19 = vpop.f32.mrb[214].mxu0 }
 0x38c   : > { %4680 = vmatprep.mubr.f32.mxu1 %v14161_v9  ;;  %11006 = vmatpush1.bf16.msra.mxu0 %v11005_v11  ;;  %v18803_v11 = vld [vmem:[#allocation124_spill] sm:$0xff]  ;;  %v10002_v9 = vpop.f32.mrb[226].mxu1  ;;  %v3944_v47 = vpop.f32.mrb[215].mxu0 }
 0x38d   : > { %11007 = vmatprep.subr.bf16.mxu0 %v18551_v22  ;;  %v4242_v54 = vpop.f32.mrb[227].mxu1  ;;  %v14839_v53 = vadd.f32 %v10002_v9, %v3942_v19 }
 0x38e   : > { %10120 = vmatmul.mubr.f32.gmra.mrb[60].mxu0 %v18802_v16  ;;  %v14834_v39 = vadd.f32 %v4242_v54, %v3937_v34  ;;  %v10005_v25 = vpop.f32.mrb[228].mxu1  ;;  %v18808_v54 = vld [vmem:[#allocation24_spill] sm:$0xff] }
 0x38f   : > { %4681 = vmatmul.mubr.f32.gmra.mrb[74].mxu1 %v14590_v48  ;;  %10122 = vmatprep.mubr.f32.mxu0 %v18803_v11  ;;  %v18804_v48 = vld [vmem:[#allocation23_spill] sm:$0xff]  ;;  %18807 = vst [vmem:[#allocation117_spill] sm:$0xff] %v14839_v53  ;;  %v18809_v34 = vld [vmem:[#allocation28_spill] sm:$0xff] }
 0x390   : > { %4685 = vmatprep.mubr.f32.mxu1 %v14153_v42  ;;  %11009 = vmatpush1.bf16.msra.mxu0 %v11008_v58  ;;  %18805 = vst [vmem:[#allocation100_spill] sm:$0xff] %v14834_v39  ;;  %v11014_v58 = vpack.c.bf16 %v5243_v45, %v5242_v28  ;;  %v5244_v42 = vld [vmem:[#allocation3 + $0x810] sm:$0xff]  ;;  %v5249_v39 = vld [vmem:[#allocation3 + $0x838] sm:$0xff] }
 0x391   : > { %11010 = vmatprep.subr.bf16.mxu0 %v18551_v22  ;;  %v3947_v28 = vpop.f32.mrb[216].mxu0  ;;  %v5248_v53 = vld [vmem:[#allocation3 + $0x830] sm:$0xff] }
 0x392   : > { %10123 = vmatmul.mubr.f32.gmra.mrb[62].mxu0 %v18804_v48  ;;  %v3949_v47 = vpop.f32.mrb[217].mxu0 }
 0x393   : > { %4686 = vmatmul.mubr.f32.gmra.mrb[76].mxu1 %v14600_v18  ;;  %10125 = vmatprep.mubr.f32.mxu0 %v18806_v57  ;;  %v4252_v18 = vpop.f32.mrb[229].mxu1 }
 0x394   : > { %4690 = vmatprep.mubr.f32.mxu1 %v14202_v12  ;;  %11012 = vmatpush1.bf16.msra.mxu0 %v11011_v20  ;;  %v11017_v20 = vpack.c.bf16 %v5245_v21, %v5244_v42  ;;  %v10008_v45 = vpop.f32.mrb[230].mxu1  ;;  %v5246_v12 = vld [vmem:[#allocation3 + $0x820] sm:$0xff]  ;;  %v14846_v9 = vadd.f32 %v4252_v18, %v3947_v28 }
 0x395   : > { %11013 = vmatprep.subr.bf16.mxu0 %v18551_v22  ;;  %v4262_v19 = vpop.f32.mrb[231].mxu1  ;;  %v11020_v42 = vpack.c.bf16 %v5247_v24, %v5246_v12  ;;  %v3952_v21 = vpop.f32.mrb[218].mxu0  ;;  %v11023_v12 = vpack.c.bf16 %v5249_v39, %v5248_v53 }
 0x396   : > { %10126 = vmatmul.mubr.f32.gmra.mrb[64].mxu0 %v18808_v54  ;;  %18810 = vst [vmem:[#allocation108_spill] sm:$0xff] %v14846_v9  ;;  %v14853_v18 = vadd.f32 %v10005_v25, %v3952_v21  ;;  %v3954_v28 = vpop.f32.mrb[219].mxu0  ;;  %v5250_v9 = vld [vmem:[#allocation3 + $0x840] sm:$0xff]  ;;  %v5251_v25 = vld [vmem:[#allocation3 + $0x848] sm:$0xff] }
 0x397   : > { %4691 = vmatmul.mubr.f32.gmra.mrb[78].mxu1 %v14609_v23  ;;  %10128 = vmatprep.mubr.f32.mxu0 %v18809_v34  ;;  %v18811_v23 = vld [vmem:[#allocation64_spill] sm:$0xff]  ;;  %v11026_v39 = vpack.c.bf16 %v5251_v25, %v5250_v9 }
 0x398   : > { %4695 = vmatprep.mubr.f32.mxu1 %v14194_v7  ;;  %11015 = vmatpush1.bf16.msra.mxu0 %v11014_v58  ;;  %v18812_v7 = vld [vmem:[#allocation99_spill] sm:$0xff]  ;;  %v10011_v58 = vpop.f32.mrb[232].mxu1  ;;  %18813 = vst [vmem:[#allocation123_spill] sm:$0xff] %v14853_v18 }
 0x399   : > { %11016 = vmatprep.subr.bf16.mxu0 %v18551_v22  ;;  %v4272_v47 = vpop.f32.mrb[233].mxu1 }
 0x39a   : > { %10129 = vmatmul.mubr.f32.gmra.mrb[66].mxu0 %v18811_v23  ;;  %v3957_v24 = vpop.f32.mrb[220].mxu0 }
 0x39b   : > { %4696 = vmatmul.mubr.f32.gmra.mrb[80].mxu1 %v14618_v50  ;;  %10131 = vmatprep.mubr.f32.mxu0 %v18812_v7  ;;  %v18814_v50 = vld [vmem:[#allocation34_spill] sm:$0xff]  ;;  %v14862_v21 = vadd.f32 %v4262_v19, %v3957_v24  ;;  %v3959_v28 = vpop.f32.mrb[221].mxu0  ;;  %v5253_v19 = vld [vmem:[#allocation3 + $0x858] sm:$0xff] }
 0x39c   : > { %4700 = vmatprep.mubr.f32.mxu1 %v14243_v63  ;;  %11018 = vmatpush1.bf16.msra.mxu0 %v11017_v20  ;;  %v18815_v63 = vld [vmem:[#allocation36_spill] sm:$0xff]  ;;  %v14859_v20 = vpop.f32.mrb[234].mxu1 }
 0x39d   : > { %11019 = vmatprep.subr.bf16.mxu0 %v18551_v22  ;;  %18816 = vst [vmem:[#allocation56_spill] sm:$0xff] %v14862_v21  ;;  %v4282_v18 = vpop.f32.mrb[235].mxu1 }
 0x39e   : > { %10132 = vmatmul.mubr.f32.gmra.mrb[68].mxu0 %v18814_v50 }
 0x39f   : > { %4701 = vmatmul.mubr.f32.gmra.mrb[82].mxu1 %v14627_v33  ;;  %10134 = vmatprep.mubr.f32.mxu0 %v18815_v63  ;;  %v18817_v33 = vld [vmem:[#allocation98_spill] sm:$0xff]  ;;  %v3962_v53 = vpop.f32.mrb[222].mxu0 }
 0x3a0   : > { %4705 = vmatprep.mubr.f32.mxu1 %v14235_v62  ;;  %11021 = vmatpush1.bf16.msra.mxu0 %v11020_v42  ;;  %v18818_v62 = vld [vmem:[#allocation79_spill] sm:$0xff]  ;;  %v14868_v42 = vpop.f32.mrb[236].mxu1  ;;  %v14871_v24 = vadd.f32 %v10008_v45, %v3962_v53  ;;  %v3964_v28 = vpop.f32.mrb[223].mxu0  ;;  %v5255_v45 = vld [vmem:[#allocation3 + $0x868] sm:$0xff] }
 0x3a1   : > { %11022 = vmatprep.subr.bf16.mxu0 %v18551_v22  ;;  %v5252_v63 = vld [vmem:[#allocation3 + $0x850] sm:$0xff]  ;;  %v4292_v21 = vpop.f32.mrb[237].mxu1 }
 0x3a2   : > { %10135 = vmatmul.mubr.f32.gmra.mrb[70].mxu0 %v18817_v33  ;;  %18819 = vst [vmem:[#allocation13_spill] sm:$0xff] %v14871_v24  ;;  %v11029_v9 = vpack.c.bf16 %v5253_v19, %v5252_v63 }
 0x3a3   : > { %4706 = vmatmul.mubr.f32.gmra.mrb[84].mxu1 %v14636_v4  ;;  %10137 = vmatprep.mubr.f32.mxu0 %v18818_v62  ;;  %v18820_v4 = vld [vmem:[#allocation47_spill] sm:$0xff]  ;;  %v5254_v62 = vld [vmem:[#allocation3 + $0x860] sm:$0xff] }
 0x3a4   : > { %4710 = vmatprep.mubr.f32.mxu1 %v14286_v26  ;;  %11024 = vmatpush1.bf16.msra.mxu0 %v11023_v12  ;;  %v18821_v26 = vld [vmem:[#allocation86_spill] sm:$0xff]  ;;  %v3967_v12 = vpop.f32.mrb[224].mxu0  ;;  %v11032_v63 = vpack.c.bf16 %v5255_v45, %v5254_v62 }
 0x3a5   : > { %11025 = vmatprep.subr.bf16.mxu0 %v18551_v22  ;;  %v14877_v25 = vpop.f32.mrb[238].mxu1  ;;  %v14880_v53 = vadd.f32 %v4272_v47, %v3967_v12  ;;  %v3969_v28 = vpop.f32.mrb[225].mxu0  ;;  %v5257_v47 = vld [vmem:[#allocation3 + $0x878] sm:$0xff] }
 0x3a6   : > { %10138 = vmatmul.mubr.f32.gmra.mrb[72].mxu0 %v18820_v4  ;;  %v4302_v24 = vpop.f32.mrb[239].mxu1 }
 0x3a7   : > { %4711 = vmatmul.mubr.f32.gmra.mrb[86].mxu1 %v14645_v31  ;;  %10140 = vmatprep.mubr.f32.mxu0 %v18821_v26  ;;  %18822 = vst [vmem:[#allocation11_spill] sm:$0xff] %v14880_v53  ;;  %v18823_v31 = vld [vmem:[#allocation95_spill] sm:$0xff] }
 0x3a8   : > { %4715 = vmatprep.mubr.f32.mxu1 %v14276_v5  ;;  %11027 = vmatpush1.bf16.msra.mxu0 %v11026_v39  ;;  %v18824_v5 = vld [vmem:[#allocation109_spill] sm:$0xff]  ;;  %v3972_v39 = vpop.f32.mrb[226].mxu0  ;;  %v5256_v26 = vld [vmem:[#allocation3 + $0x870] sm:$0xff] }
 0x3a9   : > { %11028 = vmatprep.subr.bf16.mxu0 %v18551_v22  ;;  %v14889_v12 = vadd.f32 %v10011_v58, %v3972_v39  ;;  %v3974_v28 = vpop.f32.mrb[227].mxu0  ;;  %v11035_v62 = vpack.c.bf16 %v5257_v47, %v5256_v26 }
 0x3aa   : > { %10141 = vmatmul.mubr.f32.gmra.mrb[74].mxu0 %v18823_v31  ;;  %v14886_v19 = vpop.f32.mrb[240].mxu1 }
 0x3ab   : > { %4716 = vmatmul.mubr.f32.gmra.mrb[88].mxu1 %v14654_v0  ;;  %10143 = vmatprep.mubr.f32.mxu0 %v18824_v5  ;;  %18825 = vst [vmem:[#allocation15_spill] sm:$0xff] %v14889_v12  ;;  %v14891_v53 = vpop.f32.mrb[241].mxu1  ;;  %v18826_v0 = vld [vmem:[#allocation51_spill] sm:$0xff] }
 0x3ac   : > { %4720 = vmatprep.mubr.f32.mxu1 %v14327_v55  ;;  %11030 = vmatpush1.bf16.msra.mxu0 %v11029_v9  ;;  %v18827_v9 = vld [vmem:[#allocation88_spill] sm:$0xff] }
 0x3ad   : > { %11031 = vmatprep.subr.bf16.mxu0 %v18551_v22  ;;  %v3977_v45 = vpop.f32.mrb[228].mxu0 }
 0x3ae   : > { %10144 = vmatmul.mubr.f32.gmra.mrb[76].mxu0 %v18826_v0  ;;  %v14897_v55 = vpop.f32.mrb[242].mxu1  ;;  %v14900_v58 = vadd.f32 %v4282_v18, %v3977_v45  ;;  %v3979_v39 = vpop.f32.mrb[229].mxu0 }
 0x3af   : > { %4721 = vmatmul.mubr.f32.gmra.mrb[90].mxu1 %v14663_v59  ;;  %10146 = vmatprep.mubr.f32.mxu0 %v18827_v9  ;;  %v14902_v28 = vpop.f32.mrb[243].mxu1  ;;  %v18829_v59 = vld [vmem:[#allocation35_spill] sm:$0xff]  ;;  %v18832_v39 = vld [vmem:[#allocation50_spill] sm:$0xff] }
 0x3b0   : > { %4725 = vmatprep.mubr.f32.mxu1 %v14319_v17  ;;  %11033 = vmatpush1.bf16.msra.mxu0 %v11032_v63  ;;  %18828 = vst [vmem:[#allocation118_spill] sm:$0xff] %v14900_v58  ;;  %v18830_v17 = vld [vmem:[#allocation90_spill] sm:$0xff] }
 0x3b1   : > { %11034 = vmatprep.subr.bf16.mxu0 %v18551_v22  ;;  %v3982_v26 = vpop.f32.mrb[230].mxu0 }
 0x3b2   : > { %10147 = vmatmul.mubr.f32.gmra.mrb[78].mxu0 %v18829_v59  ;;  %v14911_v47 = vadd.f32 %v14859_v20, %v3982_v26  ;;  %v3984_v18 = vpop.f32.mrb[231].mxu0  ;;  %v18835_v20 = vld [vmem:[#allocation48_spill] sm:$0xff] }
 0x3b3   : > { %4726 = vmatmul.mubr.f32.gmra.mrb[92].mxu1 %v14672_v1  ;;  %10149 = vmatprep.mubr.f32.mxu0 %v18830_v17  ;;  %v14908_v63 = vpop.f32.mrb[244].mxu1  ;;  %v18833_v1 = vld [vmem:[#allocation114_spill] sm:$0xff]  ;;  %v18836_v26 = vld [vmem:[#allocation72_spill] sm:$0xff] }
 0x3b4   : > { %4730 = vmatprep.mubr.f32.mxu1 %v14366_v27  ;;  %11036 = vmatpush1.bf16.msra.mxu0 %v11035_v62  ;;  %18831 = vst [vmem:[#allocation122_spill] sm:$0xff] %v14911_v47  ;;  %v14913_v45 = vpop.f32.mrb[245].mxu1 }
 0x3b5   : > { %v3987_v27 = vpop.f32.mrb[232].mxu0 }
 0x3b6   : > { %10150 = vmatmul.mubr.f32.gmra.mrb[80].mxu0 %v18832_v39  ;;  %v14921_v62 = vadd.f32 %v4292_v21, %v3987_v27  ;;  %v3989_v12 = vpop.f32.mrb[233].mxu0  ;;  %v18838_v21 = vld [vmem:[#allocation40_spill] sm:$0xff] }
 0x3b7   : > { %4731 = vmatmul.mubr.f32.gmra.mrb[94].mxu1 %v14681_v36  ;;  %10152 = vmatprep.mubr.f32.mxu0 %v18833_v1  ;;  %v18839_v12 = vld [vmem:[#allocation101_spill] sm:$0xff] }
 0x3b8   : > { %4735 = vmatprep.mubr.f32.mxu1 %v14358_v15  ;;  %v14919_v58 = vpop.f32.mrb[246].mxu1  ;;  %18834 = vst [vmem:[#allocation120_spill] sm:$0xff] %v14921_v62 }
 0x3b9   : > { %v14923_v17 = vpop.f32.mrb[247].mxu1 }
 0x3ba   : > { %10153 = vmatmul.mubr.f32.gmra.mrb[82].mxu0 %v18835_v20  ;;  %v3992_v18 = vpop.f32.mrb[234].mxu0 }
 0x3bb   : > { %4736 = vmatmul.mubr.f32.gmra.mrb[96].mxu1 %v14690_v3  ;;  %10155 = vmatprep.mubr.f32.mxu0 %v18836_v26  ;;  %v14932_v36 = vadd.f32 %v14868_v42, %v3992_v18  ;;  %v3994_v47 = vpop.f32.mrb[235].mxu0  ;;  %v18841_v42 = vld [vmem:[#allocation77_spill] sm:$0xff] }
 0x3bc   : > { %4740 = vmatprep.mubr.f32.mxu1 %v14401_v6  ;;  %v14929_v15 = vpop.f32.mrb[248].mxu1  ;;  %v18842_v47 = vld [vmem:[#allocation54_spill] sm:$0xff] }
 0x3bd   : > { %18837 = vst [vmem:[#allocation124_spill] sm:$0xff] %v14932_v36  ;;  %v14934_v27 = vpop.f32.mrb[249].mxu1 }
 0x3be   : > { %10156 = vmatmul.mubr.f32.gmra.mrb[84].mxu0 %v18838_v21  ;;  %v3997_v6 = vpop.f32.mrb[236].mxu0 }
 0x3bf   : > { %4741 = vmatmul.mubr.f32.gmra.mrb[98].mxu1 %v14700_v44  ;;  %10158 = vmatprep.mubr.f32.mxu0 %v18839_v12  ;;  %v14942_v62 = vadd.f32 %v4302_v24, %v3997_v6  ;;  %v3999_v26 = vpop.f32.mrb[237].mxu0  ;;  %v18844_v24 = vld [vmem:[#allocation106_spill] sm:$0xff] }
 0x3c0   : > { %4745 = vmatprep.mubr.f32.mxu1 %v14397_v38  ;;  %v18845_v26 = vld [vmem:[#allocation32_spill] sm:$0xff] }
 0x3c1   : > { %v14940_v3 = vpop.f32.mrb[250].mxu1  ;;  %18840 = vst [vmem:[#allocation23_spill] sm:$0xff] %v14942_v62 }
 0x3c2   : > { %v14944_v20 = vpop.f32.mrb[251].mxu1  ;;  %10159 = vmatmul.mubr.f32.gmra.mrb[86].mxu0 %v18841_v42  ;;  %v4002_v18 = vpop.f32.mrb[238].mxu0 }
 0x3c3   : > { %4746 = vmatmul.mubr.f32.gmra.mrb[100].mxu1 %v14709_v14  ;;  %10161 = vmatprep.mubr.f32.mxu0 %v18842_v47  ;;  %v14953_v44 = vadd.f32 %v14877_v25, %v4002_v18  ;;  %v4004_v36 = vpop.f32.mrb[239].mxu0  ;;  %v18848_v18 = vld [vmem:[#allocation126_spill] sm:$0xff] }
 0x3c4   : > { %4750 = vmatprep.mubr.f32.mxu1 %v14435_v49  ;;  %v18847_v36 = vld [vmem:[#allocation38_spill] sm:$0xff] }
 0x3c5   : > { %v14950_v38 = vpop.f32.mrb[252].mxu1  ;;  %18843 = vst [vmem:[#allocation25_spill] sm:$0xff] %v14953_v44 }
 0x3c6   : > { %v14955_v6 = vpop.f32.mrb[253].mxu1  ;;  %10162 = vmatmul.mubr.f32.gmra.mrb[88].mxu0 %v18844_v24  ;;  %v4007_v49 = vpop.f32.mrb[240].mxu0 }
 0x3c7   : > { %4751 = vmatmul.mubr.f32.gmra.mrb[102].mxu1 %v14718_v8  ;;  %10164 = vmatprep.mubr.f32.mxu0 %v18845_v26  ;;  %v14964_v62 = vadd.f32 %v14891_v53, %v4007_v49  ;;  %v4009_v47 = vpop.f32.mrb[241].mxu0  ;;  %v18850_v53 = vld [vmem:[#allocation127_spill] sm:$0xff] }
 0x3c8   : > { %4755 = vmatprep.mubr.f32.mxu1 %v14431_v35  ;;  %v18851_v47 = vld [vmem:[#allocation130_spill] sm:$0xff] }
 0x3c9   : > { %18846 = vst [vmem:[#allocation24_spill] sm:$0xff] %v14964_v62 }
 0x3ca   : > { %v14961_v14 = vpop.f32.mrb[254].mxu1  ;;  %10165 = vmatmul.mubr.f32.gmra.mrb[90].mxu0 %v18847_v36 }
 0x3cb   : > { %v14966_v25 = vpop.f32.mrb[255].mxu1  ;;  %4756 = vmatmul.mubr.f32.gmra.mrb[104].mxu1 %v14727_v43  ;;  %10167 = vmatprep.mubr.f32.mxu0 %v18848_v18  ;;  %v4012_v35 = vpop.f32.mrb[242].mxu0 }
 0x3cc   : > { %4760 = vmatprep.mubr.f32.mxu1 %v14468_v32  ;;  %v14975_v44 = vadd.f32 %v14886_v19, %v4012_v35  ;;  %v4014_v26 = vpop.f32.mrb[243].mxu0  ;;  %v18853_v19 = vld [vmem:[#allocation131_spill] sm:$0xff] }
 0x3ce   : > { %v14972_v8 = vpop.f32.mrb[0].mxu1  ;;  %18849 = vst [vmem:[#allocation28_spill] sm:$0xff] %v14975_v44  ;;  %10168 = vmatmul.mubr.f32.gmra.mrb[92].mxu0 %v18850_v53 }
 0x3cf   : > { %v14977_v49 = vpop.f32.mrb[1].mxu1  ;;  %4761 = vmatmul.mubr.f32.gmra.mrb[106].mxu1 %v14736_v40  ;;  %10170 = vmatprep.mubr.f32.mxu0 %v18851_v47  ;;  %v4017_v32 = vpop.f32.mrb[244].mxu0 }
 0x3d0   : > { %4765 = vmatprep.mubr.f32.mxu1 %v14460_v60  ;;  %v14986_v62 = vadd.f32 %v14902_v28, %v4017_v32  ;;  %v4019_v18 = vpop.f32.mrb[245].mxu0  ;;  %v18855_v28 = vld [vmem:[#allocation157_spill] sm:$0xff] }
 0x3d1   : > { %v18856_v18 = vld [vmem:[#allocation121_spill] sm:$0xff] }
 0x3d2   : > { %v14983_v43 = vpop.f32.mrb[2].mxu1  ;;  %18852 = vst [vmem:[#allocation64_spill] sm:$0xff] %v14986_v62  ;;  %10171 = vmatmul.mubr.f32.gmra.mrb[94].mxu0 %v18853_v19 }
 0x3d3   : > { %v14988_v35 = vpop.f32.mrb[3].mxu1  ;;  %4766 = vmatmul.mubr.f32.gmra.mrb[108].mxu1 %v14745_v46  ;;  %5338 = vmatprep.mubr.f32.mxu0 %v13655_v52  ;;  %v18857_v46 = vld [vmem:[#allocation119_spill] sm:$0xff] }
 0x3d4   : > { %4770 = vmatprep.mubr.f32.mxu1 %v14500_v30  ;;  %v4022_v26 = vpop.f32.mrb[246].mxu0 }
 0x3d5   : > { %v14997_v40 = vadd.f32 %v14897_v55, %v4022_v26  ;;  %v4024_v44 = vpop.f32.mrb[247].mxu0  ;;  %v18860_v26 = vld [vmem:[#allocation57_spill] sm:$0xff] }
 0x3d6   : > { %v14994_v60 = vpop.f32.mrb[4].mxu1  ;;  %5339 = vmatmul.mubr.f32.vlgmr.msra.gmra.mrb[96].mxu0 %v18856_v18  ;;  %v18859_v44 = vld [vmem:[#allocation113_spill] sm:$0xff] }
 0x3d7   : > { %18854 = vst [vmem:[#allocation99_spill] sm:$0xff] %v14997_v40  ;;  %v14999_v32 = vpop.f32.mrb[5].mxu1  ;;  %4771 = vmatmul.mubr.f32.gmra.mrb[110].mxu1 %v18855_v28  ;;  %5343 = vmatprep.mubr.f32.mxu0 %v18857_v46  ;;  %v6793_v46 = vld [vmem:[#allocation3 + $0xb80] sm:$0xff]  ;;  %v6794_v18 = vld [vmem:[#allocation3 + $0xb88] sm:$0xff] }
 0x3d8   : > { %10205 = vmatprep.mubr.f32.mxu1 %v18794_v51  ;;  %v4027_v30 = vpop.f32.mrb[248].mxu0  ;;  %v11117_v51 = vpack.c.bf16 %v6794_v18, %v6793_v46 }
 0x3d9   : > { %v15008_v52 = vadd.f32 %v14913_v45, %v4027_v30  ;;  %v4029_v19 = vpop.f32.mrb[249].mxu0 }
 0x3da   : > { %v15005_v62 = vpop.f32.mrb[6].mxu1  ;;  %5344 = vmatmul.mubr.f32.gmra.mrb[98].mxu0 %v18859_v44  ;;  %v6762_v44 = vld [vmem:[#allocation3 + $0xa88] sm:$0xff]  ;;  %11118 = vmatprep.subr.bf16.mxu0 %v11117_v51 }
 0x3db   : > { %18858 = vst [vmem:[#allocation34_spill] sm:$0xff] %v15008_v52  ;;  %v15010_v55 = vpop.f32.mrb[7].mxu1  ;;  %10206 = vmatmul.mubr.f32.vlgmr.msra.gmra.mrb[112].mxu1 %v18796_v29  ;;  %5348 = vmatprep.mubr.f32.mxu0 %v18860_v26  ;;  %v18861_v52 = vld [vmem:[#allocation116_spill] sm:$0xff]  ;;  %v18862_v26 = vld [vmem:[#allocation55_spill] sm:$0xff] }
 0x3dc   : > { %10208 = vmatprep.mubr.f32.mxu1 %v18797_v13  ;;  %v6761_v29 = vld [vmem:[#allocation3 + $0xa80] sm:$0xff]  ;;  %11120 = vmatpush3.bf16.msra.mxu0 %v11117_v51 }
 0x3dd   : > { %v4032_v28 = vpop.f32.mrb[250].mxu0  ;;  %v11070_v13 = vpack.c.bf16 %v6762_v44, %v6761_v29  ;;  %v6764_v29 = vld [vmem:[#allocation3 + $0xa98] sm:$0xff] }
 0x3de   : > { %v15016_v40 = vpop.f32.mrb[8].mxu1  ;;  %v15019_v30 = vadd.f32 %v14908_v63, %v4032_v28  ;;  %v4034_v45 = vpop.f32.mrb[251].mxu0  ;;  %5349 = vmatmul.mubr.f32.gmra.mrb[100].mxu0 %v18861_v52 }
 0x3df   : > { %v15021_v19 = vpop.f32.mrb[9].mxu1  ;;  %10209 = vmatmul.mubr.f32.gmra.mrb[114].mxu1 %v18798_v61  ;;  %5353 = vmatprep.mubr.f32.mxu0 %v18862_v26  ;;  %v18863_v61 = vld [vmem:[#allocation21_spill] sm:$0xff] }
 0x3e0   : > { %10211 = vmatprep.mubr.f32.mxu1 %v18799_v2  ;;  %11071 = vmatpush1.bf16.msra.mxu1 %v11070_v13  ;;  %v18864_v45 = vld [vmem:[#allocation105_spill] sm:$0xff]  ;;  %v6763_v2 = vld [vmem:[#allocation3 + $0xa90] sm:$0xff] }
 0x3e1   : > { %v4037_v46 = vpop.f32.mrb[252].mxu0  ;;  %11072 = vmatprep.subr.bf16.mxu1 %v18551_v22  ;;  %v11073_v51 = vpack.c.bf16 %v6764_v29, %v6763_v2  ;;  %v18867_v29 = vld [vmem:[#allocation74_spill] sm:$0xff] }
 0x3e2   : > { %v15027_v18 = vpop.f32.mrb[10].mxu1  ;;  %v15030_v63 = vadd.f32 %v14923_v17, %v4037_v46  ;;  %v4039_v28 = vpop.f32.mrb[253].mxu0  ;;  %5354 = vmatmul.mubr.f32.gmra.mrb[102].mxu0 %v18863_v61 }
 0x3e3   : > { %v15032_v52 = vpop.f32.mrb[11].mxu1  ;;  %10212 = vmatmul.mubr.f32.gmra.mrb[116].mxu1 %v18800_v56  ;;  %5358 = vmatprep.mubr.f32.mxu0 %v18864_v45  ;;  %v18865_v28 = vld [vmem:[#allocation22_spill] sm:$0xff]  ;;  %v18866_v56 = vld [vmem:[#allocation39_spill] sm:$0xff] }
 0x3e4   : > { %10214 = vmatprep.mubr.f32.mxu1 %v18801_v37  ;;  %11074 = vmatpush1.bf16.msra.mxu1 %v11073_v51 }
 0x3e5   : > { %v4042_v44 = vpop.f32.mrb[254].mxu0  ;;  %11075 = vmatprep.subr.bf16.mxu1 %v18551_v22 }
 0x3e6   : > { %v15039_v26 = vpop.f32.mrb[12].mxu1  ;;  %v15042_v17 = vadd.f32 %v14919_v58, %v4042_v44  ;;  %v4044_v13 = vpop.f32.mrb[255].mxu0  ;;  %5359 = vmatmul.mubr.f32.gmra.mrb[104].mxu0 %v18865_v28  ;;  %v6766_v44 = vld [vmem:[#allocation3 + $0xaa8] sm:$0xff] }
 0x3e7   : > { %v15044_v46 = vpop.f32.mrb[13].mxu1  ;;  %10215 = vmatmul.mubr.f32.gmra.mrb[118].mxu1 %v18802_v16  ;;  %5363 = vmatprep.mubr.f32.mxu0 %v18866_v56  ;;  %v6765_v16 = vld [vmem:[#allocation3 + $0xaa0] sm:$0xff] }
 0x3e8   : > { %10217 = vmatprep.mubr.f32.mxu1 %v18803_v11  ;;  %v18868_v13 = vld [vmem:[#allocation44_spill] sm:$0xff]  ;;  %v11076_v11 = vpack.c.bf16 %v6766_v44, %v6765_v16 }
 0x3e9   : > { %v4047_v37 = vpop.f32.mrb[0].mxu0  ;;  %v6768_v16 = vld [vmem:[#allocation3 + $0xab8] sm:$0xff] }
 0x3ea   : > { %v15050_v61 = vpop.f32.mrb[14].mxu1  ;;  %v15054_v58 = vadd.f32 %v14934_v27, %v4047_v37  ;;  %v4049_v45 = vpop.f32.mrb[1].mxu0  ;;  %5364 = vmatmul.mubr.f32.gmra.mrb[106].mxu0 %v18867_v29  ;;  %11077 = vmatpush1.bf16.msra.mxu1 %v11076_v11  ;;  %v18869_v29 = vld [vmem:[#allocation80_spill] sm:$0xff] }
 0x3eb   : > { %v15056_v2 = vpop.f32.mrb[15].mxu1  ;;  %10218 = vmatmul.mubr.f32.gmra.mrb[120].mxu1 %v18804_v48  ;;  %5368 = vmatprep.mubr.f32.mxu0 %v18868_v13  ;;  %v18870_v48 = vld [vmem:[#allocation17_spill] sm:$0xff] }
 0x3ec   : > { %10220 = vmatprep.mubr.f32.mxu1 %v18806_v57  ;;  %v6767_v57 = vld [vmem:[#allocation3 + $0xab0] sm:$0xff]  ;;  %11078 = vmatprep.subr.bf16.mxu1 %v18551_v22 }
 0x3ed   : > { %v4052_v51 = vpop.f32.mrb[2].mxu0  ;;  %v11079_v44 = vpack.c.bf16 %v6768_v16, %v6767_v57  ;;  %v18873_v57 = vld [vmem:[#allocation100_spill] sm:$0xff] }
 0x3ee   : > { %v4537_v28 = vpop.f32.mrb[16].mxu1  ;;  %v15063_v27 = vadd.f32 %v14929_v15, %v4052_v51  ;;  %v4054_v37 = vpop.f32.mrb[3].mxu0  ;;  %5369 = vmatmul.mubr.f32.gmra.mrb[108].mxu0 %v18869_v29 }
 0x3ef   : > { %v15066_v56 = vadd.f32 %v4537_v28, %v14827_v10  ;;  %v4539_v45 = vpop.f32.mrb[17].mxu1  ;;  %10221 = vmatmul.mubr.f32.gmra.mrb[122].mxu1 %v18808_v54  ;;  %5373 = vmatprep.mubr.f32.mxu0 %v18870_v48  ;;  %v18871_v54 = vld [vmem:[#allocation82_spill] sm:$0xff] }
 0x3f0   : > { %10223 = vmatprep.mubr.f32.mxu1 %v18809_v34  ;;  %v18872_v34 = vld [vmem:[#allocation110_spill] sm:$0xff]  ;;  %v6796_v45 = vld [vmem:[#allocation3 + $0xb98] sm:$0xff]  ;;  %11080 = vmatpush1.bf16.msra.mxu1 %v11079_v44 }
 0x3f1   : > { %v4057_v15 = vpop.f32.mrb[4].mxu0  ;;  %v6795_v37 = vld [vmem:[#allocation3 + $0xb90] sm:$0xff]  ;;  %11081 = vmatprep.subr.bf16.mxu1 %v18551_v22 }
 0x3f2   : > { %v4542_v13 = vpop.f32.mrb[18].mxu1  ;;  %v15074_v10 = vadd.f32 %v14944_v20, %v4057_v15  ;;  %v4059_v51 = vpop.f32.mrb[5].mxu0  ;;  %5374 = vmatmul.mubr.f32.gmra.mrb[110].mxu0 %v18871_v54  ;;  %v11121_v29 = vpack.c.bf16 %v6796_v45, %v6795_v37  ;;  %v18875_v44 = vld [vmem:[#allocation18_spill] sm:$0xff]  ;;  %v18877_v45 = vld [vmem:[#allocation117_spill] sm:$0xff] }
 0x3f3   : > { %v15077_v11 = vadd.f32 %v4542_v13, %v14823_v41  ;;  %v4544_v28 = vpop.f32.mrb[19].mxu1  ;;  %10224 = vmatmul.mubr.f32.gmra.mrb[124].mxu1 %v18811_v23  ;;  %5378 = vmatprep.mubr.f32.mxu0 %v18872_v34  ;;  %v18874_v13 = vld [vmem:[#allocation66_spill] sm:$0xff] }
 0x3f4   : > { %10226 = vmatprep.mubr.f32.mxu1 %v18812_v7  ;;  %v6769_v7 = vld [vmem:[#allocation3 + $0xac0] sm:$0xff]  ;;  %v6770_v51 = vld [vmem:[#allocation3 + $0xac8] sm:$0xff]  ;;  %11122 = vmatprep.subr.bf16.mxu0 %v11121_v29 }
 0x3f5   : > { %v4062_v48 = vpop.f32.mrb[6].mxu0  ;;  %v18876_v28 = vld [vmem:[#allocation36_spill] sm:$0xff]  ;;  %v11082_v54 = vpack.c.bf16 %v6770_v51, %v6769_v7  ;;  %11124 = vmatpush3.bf16.msra.mxu0 %v11121_v29 }
 0x3f6   : > { %v4547_v20 = vpop.f32.mrb[20].mxu1  ;;  %v15085_v41 = vadd.f32 %v14940_v3, %v4062_v48  ;;  %v4064_v15 = vpop.f32.mrb[7].mxu0  ;;  %5379 = vmatmul.mubr.f32.gmra.mrb[112].mxu0 %v18874_v13  ;;  %v6771_v13 = vld [vmem:[#allocation3 + $0xad0] sm:$0xff]  ;;  %v6772_v7 = vld [vmem:[#allocation3 + $0xad8] sm:$0xff] }
 0x3f7   : > { %v15088_v16 = vadd.f32 %v4547_v20, %v18873_v57  ;;  %v4549_v23 = vpop.f32.mrb[21].mxu1  ;;  %10227 = vmatmul.mubr.f32.gmra.mrb[126].mxu1 %v18814_v50  ;;  %5383 = vmatprep.mubr.f32.mxu0 %v18875_v44  ;;  %v18878_v57 = vld [vmem:[#allocation67_spill] sm:$0xff]  ;;  %v11085_v29 = vpack.c.bf16 %v6772_v7, %v6771_v13 }
 0x3f8   : > { %10229 = vmatprep.mubr.f32.mxu1 %v18876_v28  ;;  %11083 = vmatpush1.bf16.msra.mxu1 %v11082_v54  ;;  %v18879_v15 = vld [vmem:[#allocation19_spill] sm:$0xff]  ;;  %v18881_v28 = vld [vmem:[#allocation108_spill] sm:$0xff] }
 0x3f9   : > { %v4067_v34 = vpop.f32.mrb[8].mxu0  ;;  %v18880_v23 = vld [vmem:[#allocation79_spill] sm:$0xff]  ;;  %11084 = vmatprep.subr.bf16.mxu1 %v18551_v22 }
 0x3fa   : > { %v4552_v3 = vpop.f32.mrb[22].mxu1  ;;  %v15095_v37 = vadd.f32 %v14955_v6, %v4067_v34  ;;  %v4069_v20 = vpop.f32.mrb[9].mxu0  ;;  %5384 = vmatmul.mubr.f32.gmra.mrb[114].mxu0 %v18878_v57 }
 0x3fb   : > { %v15098_v48 = vadd.f32 %v4552_v3, %v18877_v45  ;;  %v4554_v50 = vpop.f32.mrb[23].mxu1  ;;  %10230 = vmatmul.mubr.f32.gmra.mrb[128].mxu1 %v18817_v33  ;;  %5388 = vmatprep.mubr.f32.mxu0 %v18879_v15  ;;  %v18882_v33 = vld [vmem:[#allocation112_spill] sm:$0xff]  ;;  %v18884_v20 = vld [vmem:[#allocation86_spill] sm:$0xff]  ;;  %v18885_v15 = vld [vmem:[#allocation123_spill] sm:$0xff] }
 0x3fc   : > { %10232 = vmatprep.mubr.f32.mxu1 %v18880_v23  ;;  %v18883_v45 = vld [vmem:[#allocation12_spill] sm:$0xff]  ;;  %11086 = vmatpush1.bf16.msra.mxu1 %v11085_v29 }
 0x3fd   : > { %v4072_v6 = vpop.f32.mrb[10].mxu0  ;;  %11087 = vmatprep.subr.bf16.mxu1 %v18551_v22 }
 0x3fe   : > { %v4557_v51 = vpop.f32.mrb[24].mxu1  ;;  %v15106_v44 = vadd.f32 %v14950_v38, %v4072_v6  ;;  %v4074_v34 = vpop.f32.mrb[11].mxu0  ;;  %5389 = vmatmul.mubr.f32.gmra.mrb[116].mxu0 %v18882_v33  ;;  %v18886_v6 = vld [vmem:[#allocation68_spill] sm:$0xff] }
 0x3ff   : > { %v15109_v54 = vadd.f32 %v4557_v51, %v18881_v28  ;;  %v4559_v3 = vpop.f32.mrb[25].mxu1  ;;  %10233 = vmatmul.mubr.f32.gmra.mrb[130].mxu1 %v18820_v4  ;;  %5393 = vmatprep.mubr.f32.mxu0 %v18883_v45  ;;  %v6773_v4 = vld [vmem:[#allocation3 + $0xae0] sm:$0xff]  ;;  %v6774_v51 = vld [vmem:[#allocation3 + $0xae8] sm:$0xff] }
 0x400   : > { %10235 = vmatprep.mubr.f32.mxu1 %v18884_v20  ;;  %v18887_v28 = vld [vmem:[#allocation20_spill] sm:$0xff]  ;;  %v11088_v29 = vpack.c.bf16 %v6774_v51, %v6773_v4  ;;  %v18891_v4 = vld [vmem:[#allocation13_spill] sm:$0xff] }
 0x401   : > { %v4077_v50 = vpop.f32.mrb[12].mxu0  ;;  %v18888_v33 = vld [vmem:[#allocation56_spill] sm:$0xff] }
 0x402   : > { %v4562_v57 = vpop.f32.mrb[26].mxu1  ;;  %v15117_v38 = vadd.f32 %v14966_v25, %v4077_v50  ;;  %v4079_v13 = vpop.f32.mrb[13].mxu0  ;;  %5394 = vmatmul.mubr.f32.gmra.mrb[118].mxu0 %v18886_v6  ;;  %11089 = vmatpush1.bf16.msra.mxu1 %v11088_v29 }
 0x403   : > { %v15120_v23 = vadd.f32 %v4562_v57, %v18885_v15  ;;  %v4564_v7 = vpop.f32.mrb[27].mxu1  ;;  %10236 = vmatmul.mubr.f32.gmra.mrb[132].mxu1 %v18823_v31  ;;  %5398 = vmatprep.mubr.f32.mxu0 %v18887_v28  ;;  %v18889_v57 = vld [vmem:[#allocation45_spill] sm:$0xff]  ;;  %v18890_v31 = vld [vmem:[#allocation14_spill] sm:$0xff]  ;;  %v6776_v15 = vld [vmem:[#allocation3 + $0xaf8] sm:$0xff] }
 0x404   : > { %10238 = vmatprep.mubr.f32.mxu1 %v18824_v5  ;;  %v6775_v5 = vld [vmem:[#allocation3 + $0xaf0] sm:$0xff]  ;;  %11090 = vmatprep.subr.bf16.mxu1 %v18551_v22 }
 0x405   : > { %v4082_v34 = vpop.f32.mrb[14].mxu0  ;;  %v11091_v13 = vpack.c.bf16 %v6776_v15, %v6775_v5 }
 0x406   : > { %v4567_v3 = vpop.f32.mrb[28].mxu1  ;;  %v15127_v25 = vadd.f32 %v14961_v14, %v4082_v34  ;;  %v4084_v20 = vpop.f32.mrb[15].mxu0  ;;  %5399 = vmatmul.mubr.f32.gmra.mrb[120].mxu0 %v18889_v57  ;;  %v18894_v34 = vld [vmem:[#allocation90_spill] sm:$0xff] }
 0x407   : > { %v15130_v45 = vadd.f32 %v4567_v3, %v18888_v33  ;;  %v4569_v50 = vpop.f32.mrb[29].mxu1  ;;  %10239 = vmatmul.mubr.f32.gmra.mrb[134].mxu1 %v18826_v0  ;;  %5403 = vmatprep.mubr.f32.mxu0 %v18890_v31  ;;  %v18892_v0 = vld [vmem:[#allocation115_spill] sm:$0xff]  ;;  %v6797_v3 = vld [vmem:[#allocation3 + $0xba0] sm:$0xff]  ;;  %v6798_v33 = vld [vmem:[#allocation3 + $0xba8] sm:$0xff] }
 0x408   : > { %10241 = vmatprep.mubr.f32.mxu1 %v18827_v9  ;;  %v18893_v9 = vld [vmem:[#allocation16_spill] sm:$0xff]  ;;  %11092 = vmatpush1.bf16.msra.mxu1 %v11091_v13  ;;  %v11125_v20 = vpack.c.bf16 %v6798_v33, %v6797_v3  ;;  %v18895_v31 = vld [vmem:[#allocation11_spill] sm:$0xff]  ;;  %v18897_v13 = vld [vmem:[#allocation30_spill] sm:$0xff] }
 0x409   : > { %v4087_v14 = vpop.f32.mrb[16].mxu0  ;;  %11093 = vmatprep.subr.bf16.mxu1 %v18551_v22  ;;  %v18899_v33 = vld [vmem:[#allocation49_spill] sm:$0xff] }
 0x40a   : > { %v4572_v7 = vpop.f32.mrb[30].mxu1  ;;  %v15138_v6 = vadd.f32 %v14977_v49, %v4087_v14  ;;  %v4089_v28 = vpop.f32.mrb[17].mxu0  ;;  %5404 = vmatmul.mubr.f32.gmra.mrb[122].mxu0 %v18892_v0  ;;  %v18896_v14 = vld [vmem:[#allocation96_spill] sm:$0xff]  ;;  %11126 = vmatprep.subr.bf16.mxu0 %v11125_v20 }
 0x40b   : > { %v15141_v51 = vadd.f32 %v4572_v7, %v18891_v4  ;;  %v4574_v29 = vpop.f32.mrb[31].mxu1  ;;  %10242 = vmatmul.mubr.f32.gmra.mrb[136].mxu1 %v18829_v59  ;;  %5408 = vmatprep.mubr.f32.mxu0 %v18893_v9  ;;  %v6777_v7 = vld [vmem:[#allocation3 + $0xb00] sm:$0xff]  ;;  %v6778_v4 = vld [vmem:[#allocation3 + $0xb08] sm:$0xff]  ;;  %v18898_v9 = vld [vmem:[#allocation15_spill] sm:$0xff] }
 0x40c   : > { %10244 = vmatprep.mubr.f32.mxu1 %v18894_v34  ;;  %v11094_v28 = vpack.c.bf16 %v6778_v4, %v6777_v7  ;;  %11128 = vmatpush3.bf16.msra.mxu0 %v11125_v20  ;;  %v18903_v7 = vld [vmem:[#allocation118_spill] sm:$0xff] }
 0x40d   : > { %v4092_v50 = vpop.f32.mrb[18].mxu0 }
 0x40e   : > { %v4577_v49 = vpop.f32.mrb[32].mxu1  ;;  %v15149_v57 = vadd.f32 %v14972_v8, %v4092_v50  ;;  %v4094_v15 = vpop.f32.mrb[19].mxu0  ;;  %5409 = vmatmul.mubr.f32.gmra.mrb[124].mxu0 %v18896_v14  ;;  %11095 = vmatpush1.bf16.msra.mxu1 %v11094_v28  ;;  %v18900_v50 = vld [vmem:[#allocation48_spill] sm:$0xff] }
 0x40f   : > { %v15152_v5 = vadd.f32 %v4577_v49, %v18895_v31  ;;  %v4579_v59 = vpop.f32.mrb[33].mxu1  ;;  %10245 = vmatmul.mubr.f32.gmra.mrb[138].mxu1 %v18832_v39  ;;  %5413 = vmatprep.mubr.f32.mxu0 %v18897_v13  ;;  %v18901_v49 = vld [vmem:[#allocation27_spill] sm:$0xff] }
 0x410   : > { %10247 = vmatprep.mubr.f32.mxu1 %v18833_v1  ;;  %v18902_v1 = vld [vmem:[#allocation72_spill] sm:$0xff]  ;;  %v6779_v31 = vld [vmem:[#allocation3 + $0xb10] sm:$0xff]  ;;  %11096 = vmatprep.subr.bf16.mxu1 %v18551_v22 }
 0x411   : > { %v4097_v29 = vpop.f32.mrb[20].mxu0  ;;  %v6780_v15 = vld [vmem:[#allocation3 + $0xb18] sm:$0xff] }
 0x412   : > { %v4582_v8 = vpop.f32.mrb[34].mxu1  ;;  %v15159_v0 = vadd.f32 %v14988_v35, %v4097_v29  ;;  %v4099_v3 = vpop.f32.mrb[21].mxu0  ;;  %5414 = vmatmul.mubr.f32.gmra.mrb[126].mxu0 %v18899_v33  ;;  %v11097_v20 = vpack.c.bf16 %v6780_v15, %v6779_v31  ;;  %v18904_v29 = vld [vmem:[#allocation103_spill] sm:$0xff]  ;;  %v6782_v31 = vld [vmem:[#allocation3 + $0xb28] sm:$0xff] }
 0x413   : > { %v15162_v34 = vadd.f32 %v4582_v8, %v18898_v9  ;;  %v4584_v39 = vpop.f32.mrb[35].mxu1  ;;  %10248 = vmatmul.mubr.f32.gmra.mrb[140].mxu1 %v18900_v50  ;;  %5418 = vmatprep.mubr.f32.mxu0 %v18901_v49  ;;  %v18905_v8 = vld [vmem:[#allocation65_spill] sm:$0xff]  ;;  %v18909_v15 = vld [vmem:[#allocation54_spill] sm:$0xff] }
 0x414   : > { %10250 = vmatprep.mubr.f32.mxu1 %v18902_v1  ;;  %11098 = vmatpush1.bf16.msra.mxu1 %v11097_v20  ;;  %v18906_v39 = vld [vmem:[#allocation122_spill] sm:$0xff]  ;;  %v18907_v1 = vld [vmem:[#allocation89_spill] sm:$0xff] }
 0x415   : > { %v4102_v35 = vpop.f32.mrb[22].mxu0  ;;  %11099 = vmatprep.subr.bf16.mxu1 %v18551_v22 }
 0x416   : > { %v4587_v59 = vpop.f32.mrb[36].mxu1  ;;  %v15170_v14 = vadd.f32 %v14983_v43, %v4102_v35  ;;  %v4104_v13 = vpop.f32.mrb[23].mxu0  ;;  %5419 = vmatmul.mubr.f32.gmra.mrb[128].mxu0 %v18904_v29 }
 0x417   : > { %v15173_v4 = vadd.f32 %v4587_v59, %v18903_v7  ;;  %v4589_v28 = vpop.f32.mrb[37].mxu1  ;;  %10251 = vmatmul.mubr.f32.gmra.mrb[142].mxu1 %v18838_v21  ;;  %5423 = vmatprep.mubr.f32.mxu0 %v18905_v8  ;;  %v6781_v21 = vld [vmem:[#allocation3 + $0xb20] sm:$0xff] }
 0x418   : > { %10253 = vmatprep.mubr.f32.mxu1 %v18839_v12  ;;  %v18908_v12 = vld [vmem:[#allocation37_spill] sm:$0xff]  ;;  %v11100_v20 = vpack.c.bf16 %v6782_v31, %v6781_v21  ;;  %v18910_v7 = vld [vmem:[#allocation120_spill] sm:$0xff] }
 0x419   : > { %v4107_v9 = vpop.f32.mrb[24].mxu0  ;;  %v18911_v8 = vld [vmem:[#allocation33_spill] sm:$0xff]  ;;  %v18914_v21 = vld [vmem:[#allocation124_spill] sm:$0xff] }
 0x41a   : > { %v4592_v3 = vpop.f32.mrb[38].mxu1  ;;  %v15181_v43 = vadd.f32 %v14999_v32, %v4107_v9  ;;  %v4109_v50 = vpop.f32.mrb[25].mxu0  ;;  %5424 = vmatmul.mubr.f32.gmra.mrb[130].mxu0 %v18907_v1  ;;  %11101 = vmatpush1.bf16.msra.mxu1 %v11100_v20  ;;  %v18913_v9 = vld [vmem:[#allocation32_spill] sm:$0xff]  ;;  %v18916_v20 = vld [vmem:[#allocation42_spill] sm:$0xff] }
 0x41b   : > { %v15184_v33 = vadd.f32 %v4592_v3, %v18906_v39  ;;  %v4594_v49 = vpop.f32.mrb[39].mxu1  ;;  %10254 = vmatmul.mubr.f32.gmra.mrb[144].mxu1 %v18841_v42  ;;  %5428 = vmatprep.mubr.f32.mxu0 %v18908_v12  ;;  %v18912_v42 = vld [vmem:[#allocation75_spill] sm:$0xff] }
 0x41c   : > { %10256 = vmatprep.mubr.f32.mxu1 %v18909_v15  ;;  %v6783_v3 = vld [vmem:[#allocation3 + $0xb30] sm:$0xff]  ;;  %v6784_v39 = vld [vmem:[#allocation3 + $0xb38] sm:$0xff]  ;;  %11102 = vmatprep.subr.bf16.mxu1 %v18551_v22 }
 0x41d   : > { %v4112_v35 = vpop.f32.mrb[26].mxu0  ;;  %v11103_v50 = vpack.c.bf16 %v6784_v39, %v6783_v3  ;;  %v18919_v39 = vld [vmem:[#allocation133_spill] sm:$0xff] }
 0x41e   : > { %v4597_v59 = vpop.f32.mrb[40].mxu1  ;;  %v15191_v32 = vadd.f32 %v14994_v60, %v4112_v35  ;;  %v4114_v28 = vpop.f32.mrb[27].mxu0  ;;  %5429 = vmatmul.mubr.f32.gmra.mrb[132].mxu0 %v18911_v8  ;;  %v18917_v35 = vld [vmem:[#allocation126_spill] sm:$0xff] }
 0x41f   : > { %v15194_v13 = vadd.f32 %v4597_v59, %v18910_v7  ;;  %v4599_v29 = vpop.f32.mrb[41].mxu1  ;;  %10257 = vmatmul.mubr.f32.gmra.mrb[146].mxu1 %v18844_v24  ;;  %5433 = vmatprep.mubr.f32.mxu0 %v18912_v42  ;;  %v18915_v24 = vld [vmem:[#allocation128_spill] sm:$0xff]  ;;  %v6799_v59 = vld [vmem:[#allocation3 + $0xbb0] sm:$0xff] }
 0x420   : > { %10259 = vmatprep.mubr.f32.mxu1 %v18913_v9  ;;  %11104 = vmatpush1.bf16.msra.mxu1 %v11103_v50  ;;  %v6800_v7 = vld [vmem:[#allocation3 + $0xbb8] sm:$0xff]  ;;  %v6785_v50 = vld [vmem:[#allocation3 + $0xb40] sm:$0xff] }
 0x421   : > { %v4117_v60 = vpop.f32.mrb[28].mxu0  ;;  %11105 = vmatprep.subr.bf16.mxu1 %v18551_v22  ;;  %v18918_v42 = vld [vmem:[#allocation23_spill] sm:$0xff] }
 0x422   : > { %v4602_v49 = vpop.f32.mrb[42].mxu1  ;;  %v15202_v1 = vadd.f32 %v15010_v55, %v4117_v60  ;;  %v4119_v12 = vpop.f32.mrb[29].mxu0  ;;  %5434 = vmatmul.mubr.f32.gmra.mrb[134].mxu0 %v18915_v24  ;;  %v11129_v55 = vpack.c.bf16 %v6800_v7, %v6799_v59  ;;  %v6786_v60 = vld [vmem:[#allocation3 + $0xb48] sm:$0xff]  ;;  %v18922_v59 = vld [vmem:[#allocation136_spill] sm:$0xff]  ;;  %v18923_v7 = vld [vmem:[#allocation131_spill] sm:$0xff] }
 0x423   : > { %v15205_v31 = vadd.f32 %v4602_v49, %v18914_v21  ;;  %v4604_v15 = vpop.f32.mrb[43].mxu1  ;;  %10260 = vmatmul.mubr.f32.gmra.mrb[148].mxu1 %v18847_v36  ;;  %5438 = vmatprep.mubr.f32.mxu0 %v18916_v20  ;;  %v18920_v49 = vld [vmem:[#allocation83_spill] sm:$0xff]  ;;  %v11106_v21 = vpack.c.bf16 %v6786_v60, %v6785_v50  ;;  %v18921_v24 = vld [vmem:[#allocation25_spill] sm:$0xff] }
 0x424   : > { %10262 = vmatprep.mubr.f32.mxu1 %v18917_v35  ;;  %11130 = vmatprep.subr.bf16.mxu0 %v11129_v55 }
 0x425   : > { %v4122_v28 = vpop.f32.mrb[30].mxu0  ;;  %11132 = vmatpush3.bf16.msra.mxu0 %v11129_v55  ;;  %11107 = vmatpush1.bf16.msra.mxu1 %v11106_v21  ;;  %v18927_v21 = vld [vmem:[#allocation138_spill] sm:$0xff] }
 0x426   : > { %v4607_v29 = vpop.f32.mrb[44].mxu1  ;;  %v15213_v8 = vadd.f32 %v15005_v62, %v4122_v28  ;;  %v4124_v3 = vpop.f32.mrb[31].mxu0  ;;  %5439 = vmatmul.mubr.f32.gmra.mrb[136].mxu0 %v18919_v39  ;;  %v6787_v28 = vld [vmem:[#allocation3 + $0xb50] sm:$0xff]  ;;  %11108 = vmatprep.subr.bf16.mxu1 %v18551_v22  ;;  %v18926_v39 = vld [vmem:[#allocation24_spill] sm:$0xff] }
 0x427   : > { %v15216_v9 = vadd.f32 %v4607_v29, %v18918_v42  ;;  %v4609_v36 = vpop.f32.mrb[45].mxu1  ;;  %10263 = vmatmul.mubr.f32.gmra.mrb[150].mxu1 %v18850_v53  ;;  %5443 = vmatprep.mubr.f32.mxu0 %v18920_v49  ;;  %v18924_v29 = vld [vmem:[#allocation84_spill] sm:$0xff]  ;;  %v18925_v42 = vld [vmem:[#allocation134_spill] sm:$0xff] }
 0x428   : > { %10265 = vmatprep.mubr.f32.mxu1 %v18851_v47  ;;  %v6788_v47 = vld [vmem:[#allocation3 + $0xb58] sm:$0xff] }
 0x429   : > { %v4127_v12 = vpop.f32.mrb[32].mxu0  ;;  %v11109_v55 = vpack.c.bf16 %v6788_v47, %v6787_v28 }
 0x42a   : > { %v4612_v62 = vpop.f32.mrb[46].mxu1  ;;  %v15223_v15 = vadd.f32 %v15021_v19, %v4127_v12  ;;  %v4129_v35 = vpop.f32.mrb[33].mxu0  ;;  %5444 = vmatmul.mubr.f32.gmra.mrb[138].mxu0 %v18922_v59  ;;  %v18928_v12 = vld [vmem:[#allocation135_spill] sm:$0xff]  ;;  %v18931_v59 = vld [vmem:[#allocation28_spill] sm:$0xff] }
 0x42b   : > { %v15226_v20 = vadd.f32 %v4612_v62, %v18921_v24  ;;  %v4614_v53 = vpop.f32.mrb[47].mxu1  ;;  %10266 = vmatmul.mubr.f32.gmra.mrb[152].mxu1 %v18923_v7  ;;  %5448 = vmatprep.mubr.f32.mxu0 %v18924_v29  ;;  %v18929_v62 = vld [vmem:[#allocation87_spill] sm:$0xff]  ;;  %v18930_v24 = vld [vmem:[#allocation137_spill] sm:$0xff] }
 0x42c   : > { %10268 = vmatprep.mubr.f32.mxu1 %v18925_v42  ;;  %11110 = vmatpush1.bf16.msra.mxu1 %v11109_v55  ;;  %v18932_v29 = vld [vmem:[#allocation139_spill] sm:$0xff]  ;;  %v18933_v42 = vld [vmem:[#allocation76_spill] sm:$0xff] }
 0x42d   : > { %v4132_v19 = vpop.f32.mrb[34].mxu0  ;;  %11111 = vmatprep.subr.bf16.mxu1 %v18551_v22  ;;  %v18934_v55 = vld [vmem:[#allocation92_spill] sm:$0xff] }
 0x42e   : > { %v4617_v3 = vpop.f32.mrb[48].mxu1  ;;  %v15234_v36 = vadd.f32 %v15016_v40, %v4132_v19  ;;  %v4134_v60 = vpop.f32.mrb[35].mxu0  ;;  %5449 = vmatmul.mubr.f32.gmra.mrb[140].mxu0 %v18927_v21  ;;  %v18935_v19 = vld [vmem:[#allocation94_spill] sm:$0xff] }
 0x42f   : > { %v15237_v50 = vadd.f32 %v4617_v3, %v18926_v39  ;;  %v4619_v49 = vpop.f32.mrb[49].mxu1  ;;  %10269 = vmatmul.mubr.f32.gmra.mrb[154].mxu1 %v18928_v12  ;;  %5453 = vmatprep.mubr.f32.mxu0 %v18929_v62  ;;  %v18937_v62 = vld [vmem:[#allocation140_spill] sm:$0xff] }
 0x430   : > { %10271 = vmatprep.mubr.f32.mxu1 %v18930_v24  ;;  %v18938_v24 = vld [vmem:[#allocation63_spill] sm:$0xff] }
 0x431   : > { %v4137_v35 = vpop.f32.mrb[36].mxu0 }
 0x432   : > { %v4622_v53 = vpop.f32.mrb[50].mxu1  ;;  %v15245_v40 = vadd.f32 %v15032_v52, %v4137_v35  ;;  %v4139_v28 = vpop.f32.mrb[37].mxu0  ;;  %5454 = vmatmul.mubr.f32.gmra.mrb[142].mxu0 %v18932_v29  ;;  %v18936_v52 = vld [vmem:[#allocation64_spill] sm:$0xff]  ;;  %v6790_v29 = vld [vmem:[#allocation3 + $0xb68] sm:$0xff] }
 0x433   : > { %v15248_v7 = vadd.f32 %v4622_v53, %v18931_v59  ;;  %v4624_v47 = vpop.f32.mrb[51].mxu1  ;;  %10272 = vmatmul.mubr.f32.gmra.mrb[156].mxu1 %v18933_v42  ;;  %5458 = vmatprep.mubr.f32.mxu0 %v18934_v55  ;;  %v6801_v35 = vld [vmem:[#allocation3 + $0xbc0] sm:$0xff]  ;;  %v6802_v53 = vld [vmem:[#allocation3 + $0xbc8] sm:$0xff] }
 0x434   : > { %10274 = vmatprep.mubr.f32.mxu1 %v18935_v19  ;;  %v6789_v59 = vld [vmem:[#allocation3 + $0xb60] sm:$0xff]  ;;  %v11133_v47 = vpack.c.bf16 %v6802_v53, %v6801_v35  ;;  %v6803_v35 = vld [vmem:[#allocation3 + $0xbd0] sm:$0xff]  ;;  %v6804_v53 = vld [vmem:[#allocation3 + $0xbd8] sm:$0xff] }
 0x435   : > { %v4142_v3 = vpop.f32.mrb[38].mxu0  ;;  %v18939_v28 = vld [vmem:[#allocation41_spill] sm:$0xff]  ;;  %v11112_v55 = vpack.c.bf16 %v6790_v29, %v6789_v59  ;;  %v11137_v59 = vpack.c.bf16 %v6804_v53, %v6803_v35 }
 0x436   : > { %v4627_v39 = vpop.f32.mrb[52].mxu1  ;;  %v15255_v60 = vadd.f32 %v15027_v18, %v4142_v3  ;;  %v4144_v21 = vpop.f32.mrb[39].mxu0  ;;  %5459 = vmatmul.mubr.f32.gmra.mrb[144].mxu0 %v18937_v62  ;;  %11134 = vmatprep.subr.bf16.mxu0 %v11133_v47  ;;  %v18942_v62 = vld [vmem:[#allocation141_spill] sm:$0xff] }
 0x437   : > { %v15258_v49 = vadd.f32 %v4627_v39, %v18936_v52  ;;  %v4629_v12 = vpop.f32.mrb[53].mxu1  ;;  %10275 = vmatmul.mubr.f32.gmra.mrb[158].mxu1 %v18938_v24  ;;  %5463 = vmatprep.mubr.f32.mxu0 %v18939_v28  ;;  %v18941_v39 = vld [vmem:[#allocation99_spill] sm:$0xff]  ;;  %v6806_v53 = vld [vmem:[#allocation3 + $0xbe8] sm:$0xff] }
 0x438   : > { %11113 = vmatpush1.bf16.msra.mxu1 %v11112_v55  ;;  %v18943_v24 = vld [vmem:[#allocation43_spill] sm:$0xff]  ;;  %11136 = vmatpush3.bf16.msra.mxu0 %v11133_v47  ;;  %v6805_v55 = vld [vmem:[#allocation3 + $0xbe0] sm:$0xff] }
 0x439   : > { %v4147_v19 = vpop.f32.mrb[40].mxu0  ;;  %11114 = vmatprep.subr.bf16.mxu1 %v18551_v22  ;;  %11138 = vmatprep.subr.bf16.mxu0 %v11137_v59  ;;  %v6792_v47 = vld [vmem:[#allocation3 + $0xb78] sm:$0xff]  ;;  %v11141_v42 = vpack.c.bf16 %v6806_v53, %v6805_v55  ;;  %v6736_v55 = vld [vmem:[#allocation3 + $0xa08] sm:$0xff] }
 0x43a   : > { %v4632_v18 = vpop.f32.mrb[54].mxu1  ;;  %v15264_v3 = vadd.f32 %v15044_v46, %v4147_v19  ;;  %v4149_v21 = vpop.f32.mrb[41].mxu0  ;;  %5464 = vmatmul.mubr.f32.gmra.mrb[146].mxu0 %v18942_v62  ;;  %v18944_v19 = vld [vmem:[#allocation34_spill] sm:$0xff]  ;;  %v18946_v62 = vld [vmem:[#allocation52_spill] sm:$0xff] }
 0x43b   : > { %v15267_v52 = vadd.f32 %v4632_v18, %v18941_v39  ;;  %v4634_v12 = vpop.f32.mrb[55].mxu1  ;;  %5468 = vmatprep.mubr.f32.mxu0 %v18943_v24  ;;  %v6791_v24 = vld [vmem:[#allocation3 + $0xb70] sm:$0xff] }
 0x43c   : > { %18940 = vst [vmem:[#allocation98_spill] sm:$0xff] %v15264_v3  ;;  %v18945_v12 = vld [vmem:[#allocation142_spill] sm:$0xff]  ;;  %11140 = vmatpush3.bf16.msra.mxu0 %v11137_v59  ;;  %v11115_v35 = vpack.c.bf16 %v6792_v47, %v6791_v24  ;;  %v18948_v59 = vld [vmem:[#allocation111_spill] sm:$0xff]  ;;  %v6735_v47 = vld [vmem:[#allocation3 + $0xa00] sm:$0xff] }
 0x43d   : > { %v4152_v28 = vpop.f32.mrb[42].mxu0  ;;  %11142 = vmatprep.subr.bf16.mxu0 %v11141_v42 }
 0x43e   : > { %v4637_v29 = vpop.f32.mrb[56].mxu1  ;;  %v15273_v46 = vadd.f32 %v15039_v26, %v4152_v28  ;;  %v4154_v39 = vpop.f32.mrb[43].mxu0  ;;  %5469 = vmatmul.mubr.f32.gmra.mrb[148].mxu0 %v18945_v12  ;;  %11116 = vmatpush1.bf16.msra.mxu1 %v11115_v35  ;;  %v6807_v12 = vld [vmem:[#allocation3 + $0xbf0] sm:$0xff]  ;;  %v15288_v35 = vpack.c.bf16 %v6736_v55, %v6735_v47  ;;  %v18951_v47 = vld [vmem:[#allocation145_spill] sm:$0xff] }
 0x43f   : > { %v15276_v18 = vadd.f32 %v4637_v29, %v18944_v19  ;;  %v4639_v21 = vpop.f32.mrb[57].mxu1  ;;  %5473 = vmatprep.mubr.f32.mxu0 %v18946_v62  ;;  %v6808_v62 = vld [vmem:[#allocation3 + $0xbf8] sm:$0xff] }
 0x440   : > { %v18947_v21 = vld [vmem:[#allocation143_spill] sm:$0xff]  ;;  %11144 = vmatpush3.bf16.msra.mxu0 %v11141_v42  ;;  %v11145_v24 = vpack.c.bf16 %v6808_v62, %v6807_v12  ;;  %11198 = vmatprep.subr.bf16.mxu1 %v15288_v35  ;;  %v18950_v42 = vld [vmem:[#allocation69_spill] sm:$0xff] }
 0x441   : > { %v4157_v3 = vpop.f32.mrb[44].mxu0 }
 0x442   : > { %v4642_v26 = vpop.f32.mrb[58].mxu1  ;;  %v15281_v28 = vadd.f32 %v15056_v2, %v4157_v3  ;;  %v4159_v19 = vpop.f32.mrb[45].mxu0  ;;  %5474 = vmatmul.mubr.f32.gmra.mrb[150].mxu0 %v18947_v21  ;;  %11146 = vmatprep.subr.bf16.mxu0 %v11145_v24 }
 0x443   : > { %v15284_v29 = vadd.f32 %v4642_v26, %v15019_v30  ;;  %v4644_v39 = vpop.f32.mrb[59].mxu1  ;;  %5478 = vmatprep.mubr.f32.mxu0 %v18948_v59 }
 0x444   : > { %v18949_v39 = vld [vmem:[#allocation144_spill] sm:$0xff]  ;;  %11148 = vmatpush3.bf16.msra.mxu0 %v11145_v24 }
 0x445   : > { %v4162_v2 = vpop.f32.mrb[46].mxu0  ;;  %11149 = vmatprep.subr.bf16.mxu0 %v18551_v22 }
 0x446   : > { %v4647_v3 = vpop.f32.mrb[60].mxu1  ;;  %v15291_v30 = vadd.f32 %v15050_v61, %v4162_v2  ;;  %v4164_v26 = vpop.f32.mrb[47].mxu0  ;;  %5479 = vmatmul.mubr.f32.gmra.mrb[152].mxu0 %v18949_v39  ;;  %v18952_v2 = vld [vmem:[#allocation46_spill] sm:$0xff] }
 0x447   : > { %v15294_v53 = vadd.f32 %v4647_v3, %v15030_v63  ;;  %v4649_v19 = vpop.f32.mrb[61].mxu1  ;;  %5483 = vmatprep.mubr.f32.mxu0 %v18950_v42  ;;  %v18953_v39 = vld [vmem:[#allocation146_spill] sm:$0xff] }
 0x449   : > { %v10103_v12 = vpop.f32.mrb[48].mxu0 }
 0x44a   : > { %v4652_v21 = vpop.f32.mrb[62].mxu1  ;;  %v15304_v61 = vadd.f32 %v10103_v12, %v15077_v11  ;;  %v4842_v59 = vpop.f32.mrb[49].mxu0  ;;  %5484 = vmatmul.mubr.f32.gmra.mrb[154].mxu0 %v18951_v47  ;;  %v18955_v47 = vld [vmem:[#allocation147_spill] sm:$0xff] }
 0x44b   : > { %v15301_v62 = vadd.f32 %v4652_v21, %v15042_v17  ;;  %v4654_v63 = vpop.f32.mrb[63].mxu1  ;;  %v15308_v55 = vadd.f32 %v4842_v59, %v15066_v56  ;;  %5488 = vmatprep.mubr.f32.mxu0 %v18952_v2  ;;  %v18954_v21 = vld [vmem:[#allocation70_spill] sm:$0xff] }
 0x44d   : > { %v10106_v3 = vpop.f32.mrb[50].mxu0 }
 0x44e   : > { %v4657_v24 = vpop.f32.mrb[64].mxu1  ;;  %v15315_v17 = vadd.f32 %v10106_v3, %v15098_v48  ;;  %v4852_v11 = vpop.f32.mrb[51].mxu0  ;;  %5489 = vmatmul.mubr.f32.gmra.mrb[156].mxu0 %v18953_v39  ;;  %v18957_v39 = vld [vmem:[#allocation148_spill] sm:$0xff] }
 0x44f   : > { %v15312_v26 = vadd.f32 %v4657_v24, %v15054_v58  ;;  %v4659_v19 = vpop.f32.mrb[65].mxu1  ;;  %v15319_v42 = vadd.f32 %v4852_v11, %v15088_v16  ;;  %5493 = vmatprep.mubr.f32.mxu0 %v18954_v21  ;;  %v18956_v24 = vld [vmem:[#allocation97_spill] sm:$0xff] }
 0x451   : > { %v10109_v12 = vpop.f32.mrb[52].mxu0 }
 0x452   : > { %v4662_v56 = vpop.f32.mrb[66].mxu1  ;;  %v15326_v58 = vadd.f32 %v10109_v12, %v15120_v23  ;;  %v4862_v48 = vpop.f32.mrb[53].mxu0  ;;  %5494 = vmatmul.mubr.f32.gmra.mrb[158].mxu0 %v18955_v47  ;;  %v18959_v47 = vld [vmem:[#allocation149_spill] sm:$0xff] }
 0x453   : > { %v15323_v63 = vadd.f32 %v4662_v56, %v15063_v27  ;;  %v4664_v59 = vpop.f32.mrb[67].mxu1  ;;  %v15330_v2 = vadd.f32 %v4862_v48, %v15109_v54  ;;  %5498 = vmatprep.mubr.f32.mxu0 %v18956_v24  ;;  %v18958_v56 = vld [vmem:[#allocation29_spill] sm:$0xff] }
 0x455   : > { %v10112_v3 = vpop.f32.mrb[54].mxu0 }
 0x456   : > { %v4667_v16 = vpop.f32.mrb[68].mxu1  ;;  %v15337_v27 = vadd.f32 %v10112_v3, %v15141_v51  ;;  %v4872_v23 = vpop.f32.mrb[55].mxu0  ;;  %5499 = vmatmul.mubr.f32.gmra.mrb[160].mxu0 %v18957_v39  ;;  %v18961_v39 = vld [vmem:[#allocation150_spill] sm:$0xff] }
 0x457   : > { %v15334_v19 = vadd.f32 %v4667_v16, %v15074_v10  ;;  %v4669_v11 = vpop.f32.mrb[69].mxu1  ;;  %v15341_v21 = vadd.f32 %v4872_v23, %v15130_v45  ;;  %5503 = vmatprep.mubr.f32.mxu0 %v18958_v56  ;;  %v18960_v16 = vld [vmem:[#allocation71_spill] sm:$0xff] }
 0x459   : > { %v10115_v12 = vpop.f32.mrb[56].mxu0 }
 0x45a   : > { %v4672_v54 = vpop.f32.mrb[70].mxu1  ;;  %v15348_v10 = vadd.f32 %v10115_v12, %v15162_v34  ;;  %v4882_v51 = vpop.f32.mrb[57].mxu0  ;;  %5504 = vmatmul.mubr.f32.gmra.mrb[162].mxu0 %v18959_v47  ;;  %v18963_v47 = vld [vmem:[#allocation151_spill] sm:$0xff] }
 0x45b   : > { %v15345_v59 = vadd.f32 %v4672_v54, %v15085_v41  ;;  %v4674_v48 = vpop.f32.mrb[71].mxu1  ;;  %v15352_v24 = vadd.f32 %v4882_v51, %v15152_v5  ;;  %5508 = vmatprep.mubr.f32.mxu0 %v18960_v16  ;;  %v18962_v54 = vld [vmem:[#allocation102_spill] sm:$0xff] }
 0x45d   : > { %v10118_v3 = vpop.f32.mrb[58].mxu0 }
 0x45e   : > { %v4677_v45 = vpop.f32.mrb[72].mxu1  ;;  %v15359_v41 = vadd.f32 %v10118_v3, %v15184_v33  ;;  %v4892_v34 = vpop.f32.mrb[59].mxu0  ;;  %5509 = vmatmul.mubr.f32.gmra.mrb[164].mxu0 %v18961_v39  ;;  %v18965_v39 = vld [vmem:[#allocation152_spill] sm:$0xff] }
 0x45f   : > { %v15356_v11 = vadd.f32 %v4677_v45, %v15095_v37  ;;  %v4679_v23 = vpop.f32.mrb[73].mxu1  ;;  %v15363_v56 = vadd.f32 %v4892_v34, %v15173_v4  ;;  %5513 = vmatprep.mubr.f32.mxu0 %v18962_v54  ;;  %v18964_v45 = vld [vmem:[#allocation73_spill] sm:$0xff] }
 0x461   : > { %v10121_v12 = vpop.f32.mrb[60].mxu0 }
 0x462   : > { %v4682_v5 = vpop.f32.mrb[74].mxu1  ;;  %v15370_v37 = vadd.f32 %v10121_v12, %v15205_v31  ;;  %v4902_v33 = vpop.f32.mrb[61].mxu0  ;;  %5514 = vmatmul.mubr.f32.gmra.mrb[166].mxu0 %v18963_v47  ;;  %v18967_v47 = vld [vmem:[#allocation153_spill] sm:$0xff] }
 0x463   : > { %v15367_v48 = vadd.f32 %v4682_v5, %v15106_v44  ;;  %v4684_v51 = vpop.f32.mrb[75].mxu1  ;;  %v15374_v16 = vadd.f32 %v4902_v33, %v15194_v13  ;;  %5518 = vmatprep.mubr.f32.mxu0 %v18964_v45  ;;  %v18966_v5 = vld [vmem:[#allocation58_spill] sm:$0xff] }
 0x465   : > { %v10124_v3 = vpop.f32.mrb[62].mxu0 }
 0x466   : > { %v4687_v4 = vpop.f32.mrb[76].mxu1  ;;  %v15381_v44 = vadd.f32 %v10124_v3, %v15226_v20  ;;  %v4912_v31 = vpop.f32.mrb[63].mxu0  ;;  %5519 = vmatmul.mubr.f32.gmra.mrb[168].mxu0 %v18965_v39  ;;  %v18969_v39 = vld [vmem:[#allocation154_spill] sm:$0xff] }
 0x467   : > { %v15378_v23 = vadd.f32 %v4687_v4, %v15117_v38  ;;  %v4689_v34 = vpop.f32.mrb[77].mxu1  ;;  %v15385_v54 = vadd.f32 %v4912_v31, %v15216_v9  ;;  %5523 = vmatprep.mubr.f32.mxu0 %v18966_v5  ;;  %v18968_v4 = vld [vmem:[#allocation81_spill] sm:$0xff] }
 0x469   : > { %v10127_v12 = vpop.f32.mrb[64].mxu0 }
 0x46a   : > { %v4692_v13 = vpop.f32.mrb[78].mxu1  ;;  %v15392_v38 = vadd.f32 %v10127_v12, %v15248_v7  ;;  %v4922_v20 = vpop.f32.mrb[65].mxu0  ;;  %5524 = vmatmul.mubr.f32.gmra.mrb[170].mxu0 %v18967_v47 }
 0x46b   : > { %v15389_v51 = vadd.f32 %v4692_v13, %v15127_v25  ;;  %v4694_v33 = vpop.f32.mrb[79].mxu1  ;;  %v15396_v45 = vadd.f32 %v4922_v20, %v15237_v50  ;;  %5528 = vmatprep.mubr.f32.mxu0 %v18968_v4  ;;  %v18970_v13 = vld [vmem:[#allocation91_spill] sm:$0xff] }
 0x46d   : > { %v10130_v3 = vpop.f32.mrb[66].mxu0 }
 0x46e   : > { %v4697_v9 = vpop.f32.mrb[80].mxu1  ;;  %v15403_v25 = vadd.f32 %v10130_v3, %v15267_v52  ;;  %v4932_v7 = vpop.f32.mrb[67].mxu0  ;;  %5529 = vmatmul.mubr.f32.gmra.mrb[172].mxu0 %v18969_v39  ;;  %v18971_v52 = vld [vmem:[#allocation155_spill] sm:$0xff] }
 0x46f   : > { %v15400_v34 = vadd.f32 %v4697_v9, %v15138_v6  ;;  %v4699_v31 = vpop.f32.mrb[81].mxu1  ;;  %v15407_v5 = vadd.f32 %v4932_v7, %v15258_v49  ;;  %5533 = vmatprep.mubr.f32.mxu0 %v18970_v13  ;;  %v18972_v9 = vld [vmem:[#allocation85_spill] sm:$0xff] }
 0x471   : > { %v10133_v12 = vpop.f32.mrb[68].mxu0 }
 0x472   : > { %v4702_v50 = vpop.f32.mrb[82].mxu1  ;;  %v15412_v20 = vadd.f32 %v10133_v12, %v15284_v29  ;;  %v4942_v47 = vpop.f32.mrb[69].mxu0  ;;  %5534 = vmatmul.mubr.f32.gmra.mrb[174].mxu0 %v18971_v52  ;;  %v18973_v29 = vld [vmem:[#allocation156_spill] sm:$0xff] }
 0x473   : > { %v4703_v33 = vadd.f32 %v4702_v50, %v15149_v57  ;;  %v4704_v6 = vpop.f32.mrb[83].mxu1  ;;  %v15416_v4 = vadd.f32 %v4942_v47, %v15276_v18  ;;  %5538 = vmatprep.mubr.f32.mxu0 %v18972_v9  ;;  %v18974_v50 = vld [vmem:[#allocation125_spill] sm:$0xff] }
 0x475   : > { %v10136_v3 = vpop.f32.mrb[70].mxu0 }
 0x476   : > { %v4707_v49 = vpop.f32.mrb[84].mxu1  ;;  %v15421_v7 = vadd.f32 %v10136_v3, %v15301_v62  ;;  %v4952_v39 = vpop.f32.mrb[71].mxu0  ;;  %5539 = vmatmul.mubr.f32.gmra.mrb[176].mxu0 %v18973_v29  ;;  %v18975_v62 = vld [vmem:[#allocation157_spill] sm:$0xff] }
 0x477   : > { %v4708_v31 = vadd.f32 %v4707_v49, %v15159_v0  ;;  %v4709_v57 = vpop.f32.mrb[85].mxu1  ;;  %v15425_v13 = vadd.f32 %v4952_v39, %v15294_v53  ;;  %5543 = vmatprep.mubr.f32.mxu0 %v18974_v50  ;;  %v18976_v49 = vld [vmem:[#allocation93_spill] sm:$0xff] }
 0x479   : > { %v10139_v12 = vpop.f32.mrb[72].mxu0 }
 0x47a   : > { %v4712_v18 = vpop.f32.mrb[86].mxu1  ;;  %v15430_v47 = vadd.f32 %v10139_v12, %v15323_v63  ;;  %v4962_v52 = vpop.f32.mrb[73].mxu0  ;;  %5544 = vmatmul.mubr.f32.gmra.mrb[178].mxu0 %v18975_v62  ;;  %v18977_v63 = vld [vmem:[#allocation158_spill] sm:$0xff]  ;;  %v18979_v62 = vld [vmem:[#allocation159_spill] sm:$0xff] }
 0x47b   : > { %v4713_v6 = vadd.f32 %v4712_v18, %v15170_v14  ;;  %v4714_v0 = vpop.f32.mrb[87].mxu1  ;;  %v15434_v9 = vadd.f32 %v4962_v52, %v15312_v26  ;;  %5548 = vmatprep.mubr.f32.mxu0 %v18976_v49  ;;  %v18978_v18 = vld [vmem:[#allocation129_spill] sm:$0xff] }
 0x47d   : > { %v10142_v3 = vpop.f32.mrb[74].mxu0 }
 0x47e   : > { %v4717_v53 = vpop.f32.mrb[88].mxu1  ;;  %v15439_v39 = vadd.f32 %v10142_v3, %v15345_v59  ;;  %v4972_v29 = vpop.f32.mrb[75].mxu0  ;;  %5549 = vmatmul.mubr.f32.gmra.mrb[180].mxu0 %v18977_v63  ;;  %v18982_v63 = vld [vmem:[#allocation160_spill] sm:$0xff] }
 0x47f   : > { %v4718_v57 = vadd.f32 %v4717_v53, %v15181_v43  ;;  %v4719_v14 = vpop.f32.mrb[89].mxu1  ;;  %v15443_v50 = vadd.f32 %v4972_v29, %v15334_v19  ;;  %5553 = vmatprep.mubr.f32.mxu0 %v18978_v18  ;;  %v18980_v53 = vld [vmem:[#allocation132_spill] sm:$0xff] }
 0x481   : > { %v10145_v12 = vpop.f32.mrb[76].mxu0 }
 0x482   : > { %v4722_v26 = vpop.f32.mrb[90].mxu1  ;;  %v15448_v52 = vadd.f32 %v10145_v12, %v15367_v48  ;;  %v4982_v59 = vpop.f32.mrb[77].mxu0  ;;  %5554 = vmatmul.mubr.f32.gmra.mrb[182].mxu0 %v18979_v62 }
 0x483   : > { %v4723_v0 = vadd.f32 %v4722_v26, %v15191_v32  ;;  %v4724_v43 = vpop.f32.mrb[91].mxu1  ;;  %v15452_v49 = vadd.f32 %v4982_v59, %v15356_v11  ;;  %5558 = vmatprep.mubr.f32.mxu0 %v18980_v53  ;;  %v11420_v26 = vld [vmem:[%s11636_s27 + $0x198] sm:$0xff]  ;;  %v18984_v59 = vrot.slane %v18980_v53, 7 }
 0x484   : > { %v18983_v43 = vld [vmem:[#allocation62_spill] sm:$0xff] }
 0x485   : > { %v10148_v3 = vpop.f32.mrb[78].mxu0 }
 0x486   : > { %v4727_v19 = vpop.f32.mrb[92].mxu1  ;;  %v15457_v29 = vadd.f32 %v10148_v3, %v15389_v51  ;;  %v4992_v48 = vpop.f32.mrb[79].mxu0  ;;  %5559 = vmatmul.mubr.f32.gmra.mrb[184].mxu0 %v18982_v63 }
 0x487   : > { %v4728_v14 = vadd.f32 %v4727_v19, %v15202_v1  ;;  %v4729_v32 = vpop.f32.mrb[93].mxu1  ;;  %v15461_v18 = vadd.f32 %v4992_v48, %v15378_v23  ;;  %5563 = vmatprep.mubr.f32.mxu0 %v11420_v26  ;;  %v3342_v1 = vsel %vm392_vm1, %v18984_v59, %v18983_v43  ;;  %v11421_v48 = vld [vmem:[%s11636_s27 + $0x1a0] sm:$0xff] }
 0x488   : > { %18981 = vst [vmem:[#allocation47_spill] sm:$0xff] %v15457_v29 }
 0x489   : > { %v10151_v12 = vpop.f32.mrb[80].mxu0 }
 0x48a   : > { %v4732_v11 = vpop.f32.mrb[94].mxu1  ;;  %v15470_v19 = vadd.f32 %v10151_v12, %v4703_v33  ;;  %v5002_v32 = vpop.f32.mrb[81].mxu0  ;;  %5564 = vmatmul.mubr.f32.gmra.mrb[186].mxu0 %v3342_v1 }
 0x48b   : > { %v4733_v51 = vadd.f32 %v4732_v11, %v15213_v8  ;;  %v4734_v3 = vpop.f32.mrb[95].mxu1  ;;  %v15473_v23 = vadd.f32 %v5002_v32, %v15400_v34  ;;  %5568 = vmatprep.mubr.f32.mxu0 %v11421_v48  ;;  %v18987_v8 = vld [vmem:[#allocation31_spill] sm:$0xff]  ;;  %v11422_v11 = vld [vmem:[%s11636_s27 + $0x1a8] sm:$0xff] }
 0x48c   : > { %18986 = vst [vmem:[#allocation95_spill] sm:$0xff] %v15470_v19  ;;  %v18989_v19 = vld [vmem:[#allocation78_spill] sm:$0xff] }
 0x48d   : > { %v10154_v26 = vpop.f32.mrb[82].mxu0 }
 0x48e   : > { %v4737_v63 = vpop.f32.mrb[96].mxu1  ;;  %v15477_v29 = vadd.f32 %v10154_v26, %v4713_v6  ;;  %v5012_v43 = vpop.f32.mrb[83].mxu0  ;;  %5569 = vmatmul.mubr.f32.gmra.mrb[188].mxu0 %v18987_v8 }
 0x48f   : > { %v4738_v53 = vadd.f32 %v4737_v63, %v15223_v15  ;;  %v4739_v59 = vpop.f32.mrb[97].mxu1  ;;  %v15480_v33 = vadd.f32 %v5012_v43, %v4708_v31  ;;  %5573 = vmatprep.mubr.f32.mxu0 %v11422_v11 }
 0x491   : > { %v10157_v1 = vpop.f32.mrb[84].mxu0 }
 0x492   : > { %v4742_v12 = vpop.f32.mrb[98].mxu1  ;;  %v15484_v3 = vadd.f32 %v10157_v1, %v4723_v0  ;;  %v5022_v48 = vpop.f32.mrb[85].mxu0  ;;  %5574 = vmatmul.mubr.f32.gmra.mrb[190].mxu0 %v18989_v19 }
 0x493   : > { %v4743_v34 = vadd.f32 %v4742_v12, %v15234_v36  ;;  %v4744_v32 = vpop.f32.mrb[99].mxu1  ;;  %v15487_v15 = vadd.f32 %v5022_v48, %v4718_v57 }
 0x494   : > { %18988 = vst [vmem:[#allocation109_spill] sm:$0xff] %v15484_v3  ;;  %v18993_v3 = vld [vmem:[#allocation98_spill] sm:$0xff] }
 0x495   : > { %v10160_v63 = vpop.f32.mrb[86].mxu0 }
 0x496   : > { %v4747_v6 = vpop.f32.mrb[100].mxu1  ;;  %v15490_v31 = vadd.f32 %v10160_v63, %v4733_v51  ;;  %v5032_v59 = vpop.f32.mrb[87].mxu0 }
 0x497   : > { %v4748_v26 = vadd.f32 %v4747_v6, %v15245_v40  ;;  %v4749_v43 = vpop.f32.mrb[101].mxu1  ;;  %v15492_v11 = vadd.f32 %v5032_v59, %v4728_v14 }
 0x498   : > { %18990 = vst [vmem:[#allocation51_spill] sm:$0xff] %v15490_v31 }
 0x499   : > { %v10163_v36 = vpop.f32.mrb[88].mxu0 }
 0x49a   : > { %v4752_v8 = vpop.f32.mrb[102].mxu1  ;;  %v15495_v12 = vadd.f32 %v10163_v36, %v4743_v34  ;;  %v5042_v32 = vpop.f32.mrb[89].mxu0 }
 0x49b   : > { %v4753_v0 = vadd.f32 %v4752_v8, %v15255_v60  ;;  %v4754_v1 = vpop.f32.mrb[103].mxu1  ;;  %v15497_v57 = vadd.f32 %v5042_v32, %v4738_v53 }
 0x49c   : > { %18991 = vst [vmem:[#allocation88_spill] sm:$0xff] %v15495_v12  ;;  %v6742_v12 = vld [vmem:[#allocation3 + $0xa38] sm:$0xff] }
 0x49d   : > { %18992 = vst [vmem:[#allocation35_spill] sm:$0xff] %v15497_v57  ;;  %v10166_v19 = vpop.f32.mrb[90].mxu0  ;;  %v6040_v57 = vld [vmem:[%s17554_s3 + $0x20] sm:$0xff] }
 0x49e   : > { %v4757_v48 = vpop.f32.mrb[104].mxu1  ;;  %v15500_v51 = vadd.f32 %v10166_v19, %v4753_v0  ;;  %v5052_v63 = vpop.f32.mrb[91].mxu0 }
 0x49f   : > { %v4758_v40 = vadd.f32 %v4757_v48, %v18993_v3  ;;  %v4759_v6 = vpop.f32.mrb[105].mxu1  ;;  %v15502_v14 = vadd.f32 %v5052_v63, %v4748_v26 }
 0x4a0   : > { %18994 = vst [vmem:[#allocation50_spill] sm:$0xff] %v15500_v51 }
 0x4a1   : > { %18995 = vst [vmem:[#allocation114_spill] sm:$0xff] %v15502_v14  ;;  %v10169_v59 = vpop.f32.mrb[92].mxu0  ;;  %v6741_v14 = vld [vmem:[#allocation3 + $0xa30] sm:$0xff] }
 0x4a2   : > { %v4762_v43 = vpop.f32.mrb[106].mxu1  ;;  %v5062_v34 = vpop.f32.mrb[93].mxu0 }
 0x4a3   : > { %v4763_v60 = vadd.f32 %v4762_v43, %v15273_v46  ;;  %v4764_v8 = vpop.f32.mrb[107].mxu1  ;;  %v15505_v36 = vadd.f32 %v5062_v34, %v4758_v40 }
 0x4a5   : > { %18996 = vst [vmem:[#allocation40_spill] sm:$0xff] %v15505_v36  ;;  %v15507_v53 = vadd.f32 %v10169_v59, %v4763_v60  ;;  %v10172_v32 = vpop.f32.mrb[94].mxu0 }
 0x4a6   : > { %v4767_v1 = vpop.f32.mrb[108].mxu1  ;;  %v5072_v0 = vpop.f32.mrb[95].mxu0 }
 0x4a7   : > { %18997 = vst [vmem:[#allocation101_spill] sm:$0xff] %v15507_v53  ;;  %v4768_v3 = vadd.f32 %v4767_v1, %v15281_v28  ;;  %v4769_v19 = vpop.f32.mrb[109].mxu1  ;;  %v15515_v53 = vld [vmem:[#allocation5 + $0x1] ss:$0 sm:$0xff] }
 0x4a9   : > { %v15510_v48 = vadd.f32 %v5072_v0, %v4768_v3  ;;  %v5340_v6 = vpop.f32.mrb[96].mxu0 }
 0x4aa   : > { %v4772_v26 = vpop.f32.mrb[110].mxu1  ;;  %v5342_v46 = vpop.f32.mrb[97].mxu0 }
 0x4ab   : > { %18998 = vst [vmem:[#allocation77_spill] sm:$0xff] %v15510_v48  ;;  %v4773_v63 = vadd.f32 %v4772_v26, %v15291_v30  ;;  %v4774_v51 = vpop.f32.mrb[111].mxu1 }
 0x4ad   : > { %v15513_v43 = vadd.f32 %v10172_v32, %v4773_v63  ;;  %v5345_v40 = vpop.f32.mrb[98].mxu0  ;;  %v6037_v32 = vld [vmem:[%s17554_s3 + $0x8] sm:$0xff] }
 0x4ae   : > { %v10207_v8 = vpop.f32.mrb[112].mxu1  ;;  %v5347_v60 = vpop.f32.mrb[99].mxu0 }
 0x4af   : > { %18999 = vst [vmem:[#allocation106_spill] sm:$0xff] %v15513_v43  ;;  %v5651_v59 = vadd.f32 %v10207_v8, %v5345_v40  ;;  %v5645_v34 = vpop.f32.mrb[113].mxu1 }
 0x4b0   : > { %v5646_v28 = vadd.f32 %v5645_v34, %v5340_v6 }
 0x4b1   : > { %v5885_v1 = vadd.f32 %v5651_v59, %v15304_v61  ;;  %v5350_v19 = vpop.f32.mrb[100].mxu0  ;;  %v6036_v61 = vld [vmem:[%s17554_s3] sm:$0xff] }
 0x4b2   : > { %v5884_v3 = vadd.f32 %v5646_v28, %v15308_v55  ;;  %v10210_v0 = vpop.f32.mrb[114].mxu1  ;;  %v5352_v51 = vpop.f32.mrb[101].mxu0 }
 0x4b3   : > { %v5941_v30 = vadd.f32 %v15515_v53, %v5885_v1  ;;  %v5655_v26 = vpop.f32.mrb[115].mxu1 }
 0x4b4   : > { %v5940_v63 = vadd.f32 %v15515_v53, %v5884_v3  ;;  %v5656_v46 = vadd.f32 %v5655_v26, %v5350_v19  ;;  %v6737_v3 = vld [vmem:[#allocation3 + $0xa10] sm:$0xff]  ;;  %v6738_v19 = vld [vmem:[#allocation3 + $0xa18] sm:$0xff] }
 0x4b5   : > { %v5989_v40 = vmax.f32 %v5941_v30, 0.0  ;;  %v5355_v8 = vpop.f32.mrb[102].mxu0  ;;  %v6038_v30 = vld [vmem:[%s17554_s3 + $0x10] sm:$0xff] }
 0x4b6   : > { %v5988_v6 = vmax.f32 %v5940_v63, 0.0  ;;  %v5886_v55 = vadd.f32 %v5656_v46, %v15319_v42  ;;  %v10213_v59 = vpop.f32.mrb[116].mxu1  ;;  %v5661_v34 = vadd.f32 %v10210_v0, %v5355_v8  ;;  %v5357_v28 = vpop.f32.mrb[103].mxu0 }
 0x4b7   : > { %v15528_v60 = vmul.f32 %v6037_v32, %v5989_v40  ;;  %v5665_v1 = vpop.f32.mrb[117].mxu1  ;;  %v11201_v28 = vpack.c.bf16 %v6738_v19, %v6737_v3  ;;  %v6739_v3 = vld [vmem:[#allocation3 + $0xa20] sm:$0xff]  ;;  %v6740_v19 = vld [vmem:[#allocation3 + $0xa28] sm:$0xff] }
 0x4b8   : > { %v5942_v51 = vadd.f32 %v15515_v53, %v5886_v55  ;;  %v15531_v43 = vmul.f32 %v6036_v61, %v5988_v6  ;;  %v5887_v26 = vadd.f32 %v5661_v34, %v15315_v17  ;;  %v6039_v17 = vld [vmem:[%s17554_s3 + $0x18] sm:$0xff]  ;;  %v19003_v34 = vld [vmem:[#allocation26_spill] sm:$0xff] }
 0x4b9   : > { %19000 = vst [vmem:[#allocation38_spill] sm:$0xff] %v15528_v60  ;;  %v6400_v42 = vrot.slane %v15528_v60, 1  ;;  %v5360_v32 = vpop.f32.mrb[104].mxu0 }
 0x4ba   : > { %19001 = vst [vmem:[#allocation127_spill] sm:$0xff] %v15531_v43  ;;  %v5990_v63 = vmax.f32 %v5942_v51, 0.0  ;;  %v15538_v46 = vpop.f32.mrb[118].mxu1  ;;  %v6237_v0 = vrot.slane %v15531_v43, 7  ;;  %6873 = vmatprep.mubr.f32.mxu1 %v15531_v43  ;;  %v17944_v40 = vrot.slane %v15531_v43, 1  ;;  %v5943_v61 = vadd.f32 %v15515_v53, %v5887_v26  ;;  %v5362_v55 = vpop.f32.mrb[105].mxu0 }
 0x4bb   : > { %v5666_v6 = vadd.f32 %v5665_v1, %v5360_v32  ;;  %v5675_v8 = vpop.f32.mrb[119].mxu1  ;;  %v6238_v1 = vrot.slane %v15528_v60, 7  ;;  %v6703_v32 = vld [vmem:[#allocation3 + $0x900] sm:$0xff]  ;;  %v6704_v55 = vld [vmem:[#allocation3 + $0x908] sm:$0xff] }
 0x4bc   : > { %v15544_v48 = vmul.f32 %v6038_v30, %v5990_v63  ;;  %v15552_v51 = vsel %vm392_vm1, %v19003_v34, %v6237_v0  ;;  %v15558_v26 = vsel %vm555_vm0, %v17944_v40, %v6400_v42  ;;  %v5991_v30 = vmax.f32 %v5943_v61, 0.0 }
 0x4bd   : > { %19004 = vst [vmem:[#allocation121_spill] sm:$0xff] %v15552_v51  ;;  %19005 = vst [vmem:[#allocation119_spill] sm:$0xff] %v15558_v26  ;;  %v5888_v63 = vadd.f32 %v5666_v6, %v15330_v2  ;;  %6874 = vmatmul.mubr.f32.vlgmr.msra.gmra.mrb[160].mxu1 %v15552_v51  ;;  %10309 = vmatprep.mubr.f32.mxu0 %v15558_v26  ;;  %v5365_v43 = vpop.f32.mrb[106].mxu0  ;;  %v11205_v26 = vpack.c.bf16 %v6740_v19, %v6739_v3 }
 0x4be   : > { %19002 = vst [vmem:[#allocation130_spill] sm:$0xff] %v15544_v48  ;;  %v6401_v34 = vrot.slane %v15544_v48, 1  ;;  %v15565_v36 = vpop.f32.mrb[120].mxu1  ;;  %6878 = vmatprep.mubr.f32.mxu1 %v15528_v60  ;;  %11200 = vmatpush3.bf16.msra.mxu1 %v15288_v35  ;;  %v15569_v40 = vmul.f32 %v6039_v17, %v5991_v30  ;;  %v5671_v2 = vadd.f32 %v10213_v59, %v5365_v43  ;;  %v5367_v6 = vpop.f32.mrb[107].mxu0  ;;  %v6239_v43 = vrot.slane %v15544_v48, 7 }
 0x4bf   : > { %v5944_v61 = vadd.f32 %v15515_v53, %v5888_v63  ;;  %v15572_v51 = vpop.f32.mrb[121].mxu1  ;;  %11202 = vmatprep.subr.bf16.mxu1 %v11201_v28  ;;  %v15583_v35 = vsel %vm392_vm1, %v6237_v0, %v6238_v1  ;;  %v11150_v59 = vpack.c.bf16 %v6704_v55, %v6703_v32  ;;  %v6705_v0 = vld [vmem:[#allocation3 + $0x910] sm:$0xff]  ;;  %v6706_v6 = vld [vmem:[#allocation3 + $0x918] sm:$0xff] }
 0x4c0   : > { %19006 = vst [vmem:[#allocation113_spill] sm:$0xff] %v15569_v40  ;;  %v15579_v60 = vsel %vm555_vm0, %v6400_v42, %v6401_v34  ;;  %19008 = vst [vmem:[#allocation116_spill] sm:$0xff] %v15583_v35  ;;  %v5889_v3 = vadd.f32 %v5671_v2, %v15326_v58  ;;  %v6402_v19 = vrot.slane %v15569_v40, 1  ;;  %v11209_v42 = vpack.c.bf16 %v6742_v12, %v6741_v14  ;;  %v6041_v12 = vld [vmem:[%s17554_s3 + $0x28] sm:$0xff] }
 0x4c1   : > { %19007 = vst [vmem:[#allocation57_spill] sm:$0xff] %v15579_v60  ;;  %v5992_v17 = vmax.f32 %v5944_v61, 0.0  ;;  %6879 = vmatmul.mubr.f32.gmra.mrb[162].mxu1 %v15583_v35  ;;  %10310 = vmatmul.mubr.f32.vlgmr.msra.gmra.mrb[192].mxu0 %v15579_v60  ;;  %v5370_v30 = vpop.f32.mrb[108].mxu0  ;;  %v6743_v35 = vld [vmem:[#allocation3 + $0xa40] sm:$0xff]  ;;  %v6744_v60 = vld [vmem:[#allocation3 + $0xa48] sm:$0xff]  ;;  %v6240_v14 = vrot.slane %v15569_v40, 7 }
 0x4c2   : > { %v15590_v63 = vpop.f32.mrb[122].mxu1  ;;  %6883 = vmatprep.mubr.f32.mxu1 %v15544_v48  ;;  %11204 = vmatpush3.bf16.msra.mxu1 %v11201_v28  ;;  %v5945_v32 = vadd.f32 %v15515_v53, %v5889_v3  ;;  %v5676_v58 = vadd.f32 %v5675_v8, %v5370_v30  ;;  %v5372_v55 = vpop.f32.mrb[109].mxu0  ;;  %v15600_v2 = vsel %vm555_vm0, %v6401_v34, %v6402_v19  ;;  %v6708_v48 = vld [vmem:[#allocation3 + $0x928] sm:$0xff] }
 0x4c3   : > { %v15593_v31 = vmul.f32 %v6040_v57, %v5992_v17  ;;  %v15596_v61 = vpop.f32.mrb[123].mxu1  ;;  %11206 = vmatprep.subr.bf16.mxu1 %v11205_v26  ;;  %10312 = vmatprep.mubr.f32.mxu0 %v15600_v2  ;;  %v15608_v57 = vsel %vm392_vm1, %v6238_v1, %v6239_v43  ;;  %v11153_v17 = vpack.c.bf16 %v6706_v6, %v6705_v0  ;;  %v6707_v55 = vld [vmem:[#allocation3 + $0x920] sm:$0xff] }
 0x4c4   : > { %19010 = vst [vmem:[#allocation21_spill] sm:$0xff] %v15608_v57  ;;  %11151 = vmatpush1.bf16.msra.mxu0 %v11150_v59  ;;  %v5993_v8 = vmax.f32 %v5945_v32, 0.0  ;;  %v5890_v28 = vadd.f32 %v5676_v58, %v15341_v21  ;;  %v11213_v1 = vpack.c.bf16 %v6744_v60, %v6743_v35  ;;  %v6042_v60 = vld [vmem:[%s17554_s3 + $0x30] sm:$0xff] }
 0x4c5   : > { %19009 = vst [vmem:[#allocation55_spill] sm:$0xff] %v15593_v31  ;;  %6884 = vmatmul.mubr.f32.gmra.mrb[164].mxu1 %v15608_v57  ;;  %v6403_v34 = vrot.slane %v15593_v31, 1  ;;  %11152 = vmatprep.subr.bf16.mxu0 %v18551_v22  ;;  %v5375_v3 = vpop.f32.mrb[110].mxu0 }
 0x4c6   : > { %v15615_v30 = vpop.f32.mrb[124].mxu1  ;;  %6888 = vmatprep.mubr.f32.mxu1 %v15569_v40  ;;  %11208 = vmatpush3.bf16.msra.mxu1 %v11205_v26  ;;  %v15618_v59 = vmul.f32 %v6041_v12, %v5993_v8  ;;  %v5946_v21 = vadd.f32 %v15515_v53, %v5890_v28  ;;  %v5681_v32 = vadd.f32 %v15538_v46, %v5375_v3  ;;  %v5377_v58 = vpop.f32.mrb[111].mxu0  ;;  %v6241_v46 = vrot.slane %v15593_v31, 7  ;;  %v6745_v8 = vld [vmem:[#allocation3 + $0xa50] sm:$0xff]  ;;  %v6746_v28 = vld [vmem:[#allocation3 + $0xa58] sm:$0xff] }
 0x4c7   : > { %v15622_v57 = vpop.f32.mrb[125].mxu1  ;;  %v15626_v0 = vsel %vm555_vm0, %v6402_v19, %v6403_v34  ;;  %11210 = vmatprep.subr.bf16.mxu1 %v11209_v42  ;;  %v15634_v26 = vsel %vm392_vm1, %v6239_v43, %v6240_v14  ;;  %v11156_v12 = vpack.c.bf16 %v6708_v48, %v6707_v55  ;;  %v6709_v43 = vld [vmem:[#allocation3 + $0x930] sm:$0xff]  ;;  %v6710_v40 = vld [vmem:[#allocation3 + $0x938] sm:$0xff]  ;;  %v11217_v55 = vpack.c.bf16 %v6746_v28, %v6745_v8 }
 0x4c8   : > { %19011 = vst [vmem:[#allocation105_spill] sm:$0xff] %v15618_v59  ;;  %19012 = vst [vmem:[#allocation22_spill] sm:$0xff] %v15626_v0  ;;  %10313 = vmatmul.mubr.f32.gmra.mrb[194].mxu0 %v15626_v0  ;;  %v5994_v35 = vmax.f32 %v5946_v21, 0.0  ;;  %v5891_v6 = vadd.f32 %v5681_v32, %v15337_v27  ;;  %v6404_v19 = vrot.slane %v15618_v59, 1 }
 0x4c9   : > { %19013 = vst [vmem:[#allocation39_spill] sm:$0xff] %v15634_v26  ;;  %6889 = vmatmul.mubr.f32.gmra.mrb[166].mxu1 %v15634_v26  ;;  %11154 = vmatpush1.bf16.msra.mxu0 %v11153_v17  ;;  %v5380_v3 = vpop.f32.mrb[112].mxu0  ;;  %v15659_v17 = vsel %vm392_vm1, %v6240_v14, %v6241_v46  ;;  %v6711_v14 = vld [vmem:[#allocation3 + $0x940] sm:$0xff] }
 0x4ca   : > { %v15640_v58 = vpop.f32.mrb[126].mxu1  ;;  %6893 = vmatprep.mubr.f32.mxu1 %v15593_v31  ;;  %11212 = vmatpush3.bf16.msra.mxu1 %v11209_v42  ;;  %v15643_v0 = vmul.f32 %v6042_v60, %v5994_v35  ;;  %v5947_v27 = vadd.f32 %v15515_v53, %v5891_v6  ;;  %v5686_v21 = vadd.f32 %v15572_v51, %v5380_v3  ;;  %v5382_v32 = vpop.f32.mrb[113].mxu0  ;;  %v6043_v42 = vld [vmem:[%s17554_s3 + $0x38] sm:$0xff]  ;;  %v6242_v51 = vrot.slane %v15618_v59, 7  ;;  %v6712_v31 = vld [vmem:[#allocation3 + $0x948] sm:$0xff] }
 0x4cb   : > { %v15647_v26 = vpop.f32.mrb[127].mxu1  ;;  %v15651_v48 = vsel %vm555_vm0, %v6403_v34, %v6404_v19  ;;  %11214 = vmatprep.subr.bf16.mxu1 %v11213_v1  ;;  %19016 = vst [vmem:[#allocation80_spill] sm:$0xff] %v15659_v17  ;;  %11155 = vmatprep.subr.bf16.mxu0 %v18551_v22  ;;  %v11159_v6 = vpack.c.bf16 %v6710_v40, %v6709_v43 }
 0x4cc   : > { %19014 = vst [vmem:[#allocation74_spill] sm:$0xff] %v15643_v0  ;;  %19015 = vst [vmem:[#allocation44_spill] sm:$0xff] %v15651_v48  ;;  %10315 = vmatprep.mubr.f32.mxu0 %v15651_v48  ;;  %v5995_v60 = vmax.f32 %v5947_v27, 0.0  ;;  %v5892_v34 = vadd.f32 %v5686_v21, %v15352_v24  ;;  %v6405_v35 = vrot.slane %v15643_v0, 1 }
 0x4cd   : > { %6894 = vmatmul.mubr.f32.gmra.mrb[168].mxu1 %v15659_v17  ;;  %11157 = vmatpush1.bf16.msra.mxu0 %v11156_v12  ;;  %v5385_v3 = vpop.f32.mrb[114].mxu0  ;;  %v15686_v12 = vsel %vm392_vm1, %v6241_v46, %v6242_v51  ;;  %v6713_v46 = vld [vmem:[#allocation3 + $0x950] sm:$0xff] }
 0x4ce   : > { %v15666_v32 = vpop.f32.mrb[128].mxu1  ;;  %6898 = vmatprep.mubr.f32.mxu1 %v15618_v59  ;;  %11216 = vmatpush3.bf16.msra.mxu1 %v11213_v1  ;;  %v15669_v48 = vmul.f32 %v6043_v42, %v5995_v60  ;;  %v5948_v8 = vadd.f32 %v15515_v53, %v5892_v34  ;;  %v5691_v24 = vadd.f32 %v15565_v36, %v5385_v3  ;;  %v5387_v28 = vpop.f32.mrb[115].mxu0  ;;  %v6044_v1 = vld [vmem:[%s17554_s3 + $0x40] sm:$0xff]  ;;  %v6243_v36 = vrot.slane %v15643_v0, 7  ;;  %v6714_v3 = vld [vmem:[#allocation3 + $0x958] sm:$0xff]  ;;  %v6716_v59 = vld [vmem:[#allocation3 + $0x968] sm:$0xff] }
 0x4cf   : > { %v15673_v27 = vpop.f32.mrb[129].mxu1  ;;  %v15677_v40 = vsel %vm555_vm0, %v6404_v19, %v6405_v35  ;;  %11158 = vmatprep.subr.bf16.mxu0 %v18551_v22  ;;  %19019 = vst [vmem:[#allocation110_spill] sm:$0xff] %v15686_v12  ;;  %11218 = vmatprep.subr.bf16.mxu1 %v11217_v55  ;;  %v11162_v42 = vpack.c.bf16 %v6712_v31, %v6711_v14  ;;  %v6045_v14 = vld [vmem:[%s17554_s3 + $0x48] sm:$0xff] }
 0x4d0   : > { %19017 = vst [vmem:[#allocation17_spill] sm:$0xff] %v15669_v48  ;;  %19018 = vst [vmem:[#allocation82_spill] sm:$0xff] %v15677_v40  ;;  %10316 = vmatmul.mubr.f32.gmra.mrb[196].mxu0 %v15677_v40  ;;  %v5996_v43 = vmax.f32 %v5948_v8, 0.0  ;;  %v5893_v21 = vadd.f32 %v5691_v24, %v15348_v10  ;;  %v6406_v19 = vrot.slane %v15669_v48, 1 }
 0x4d1   : > { %6899 = vmatmul.mubr.f32.gmra.mrb[170].mxu1 %v15686_v12  ;;  %11160 = vmatpush1.bf16.msra.mxu0 %v11159_v6  ;;  %v5390_v60 = vpop.f32.mrb[116].mxu0  ;;  %v6747_v6 = vld [vmem:[#allocation3 + $0xa60] sm:$0xff] }
 0x4d2   : > { %v15692_v34 = vpop.f32.mrb[130].mxu1  ;;  %6903 = vmatprep.mubr.f32.mxu1 %v15643_v0  ;;  %11161 = vmatprep.subr.bf16.mxu0 %v18551_v22  ;;  %v15696_v28 = vmul.f32 %v6044_v1, %v5996_v43  ;;  %v5949_v8 = vadd.f32 %v15515_v53, %v5893_v21  ;;  %v5696_v10 = vadd.f32 %v15596_v61, %v5390_v60  ;;  %v5392_v24 = vpop.f32.mrb[117].mxu0  ;;  %v6244_v61 = vrot.slane %v15669_v48, 7  ;;  %v6748_v43 = vld [vmem:[#allocation3 + $0xa68] sm:$0xff] }
 0x4d3   : > { %v15700_v12 = vpop.f32.mrb[131].mxu1  ;;  %v15704_v31 = vsel %vm555_vm0, %v6405_v35, %v6406_v19  ;;  %11220 = vmatpush3.bf16.msra.mxu1 %v11217_v55  ;;  %v15712_v1 = vsel %vm392_vm1, %v6242_v51, %v6243_v36  ;;  %v11165_v35 = vpack.c.bf16 %v6714_v3, %v6713_v46  ;;  %v6715_v51 = vld [vmem:[#allocation3 + $0x960] sm:$0xff]  ;;  %v11221_v17 = vpack.c.bf16 %v6748_v43, %v6747_v6  ;;  %v6046_v46 = vld [vmem:[%s17554_s3 + $0x50] sm:$0xff] }
 0x4d4   : > { %19020 = vst [vmem:[#allocation100_spill] sm:$0xff] %v15696_v28  ;;  %19021 = vst [vmem:[#allocation66_spill] sm:$0xff] %v15704_v31  ;;  %10318 = vmatprep.mubr.f32.mxu0 %v15704_v31  ;;  %v5997_v21 = vmax.f32 %v5949_v8, 0.0  ;;  %v5894_v60 = vadd.f32 %v5696_v10, %v15363_v56  ;;  %v6407_v55 = vrot.slane %v15696_v28, 1  ;;  %v15738_v3 = vsel %vm392_vm1, %v6243_v36, %v6244_v61  ;;  %v6717_v36 = vld [vmem:[#allocation3 + $0x970] sm:$0xff] }
 0x4d5   : > { %19022 = vst [vmem:[#allocation18_spill] sm:$0xff] %v15712_v1  ;;  %6904 = vmatmul.mubr.f32.gmra.mrb[172].mxu1 %v15712_v1  ;;  %11163 = vmatpush1.bf16.msra.mxu0 %v11162_v42  ;;  %v5395_v24 = vpop.f32.mrb[118].mxu0  ;;  %19025 = vst [vmem:[#allocation67_spill] sm:$0xff] %v15738_v3  ;;  %v6245_v6 = vrot.slane %v15696_v28, 7  ;;  %v11168_v43 = vpack.c.bf16 %v6716_v59, %v6715_v51 }
 0x4d6   : > { %v15718_v0 = vpop.f32.mrb[132].mxu1  ;;  %6908 = vmatprep.mubr.f32.mxu1 %v15669_v48  ;;  %11164 = vmatprep.subr.bf16.mxu0 %v18551_v22  ;;  %v15722_v31 = vmul.f32 %v6045_v14, %v5997_v21  ;;  %v5950_v56 = vadd.f32 %v15515_v53, %v5894_v60  ;;  %v5701_v8 = vadd.f32 %v15590_v63, %v5395_v24  ;;  %v5397_v10 = vpop.f32.mrb[119].mxu0  ;;  %v6718_v24 = vld [vmem:[#allocation3 + $0x978] sm:$0xff] }
 0x4d7   : > { %v15726_v1 = vpop.f32.mrb[133].mxu1  ;;  %v15730_v42 = vsel %vm555_vm0, %v6406_v19, %v6407_v55  ;;  %11222 = vmatprep.subr.bf16.mxu1 %v11221_v17  ;;  %v15764_v51 = vsel %vm392_vm1, %v6244_v61, %v6245_v6  ;;  %v6719_v61 = vld [vmem:[#allocation3 + $0x980] sm:$0xff] }
 0x4d8   : > { %19023 = vst [vmem:[#allocation36_spill] sm:$0xff] %v15722_v31  ;;  %19024 = vst [vmem:[#allocation117_spill] sm:$0xff] %v15730_v42  ;;  %10319 = vmatmul.mubr.f32.gmra.mrb[198].mxu0 %v15730_v42  ;;  %v5998_v63 = vmax.f32 %v5950_v56, 0.0  ;;  %v5895_v14 = vadd.f32 %v5701_v8, %v15359_v41  ;;  %v6408_v19 = vrot.slane %v15722_v31, 1  ;;  %11224 = vmatpush3.bf16.msra.mxu1 %v11221_v17 }
 0x4d9   : > { %6909 = vmatmul.mubr.f32.gmra.mrb[174].mxu1 %v15738_v3  ;;  %11166 = vmatpush1.bf16.msra.mxu0 %v11165_v35  ;;  %v5400_v21 = vpop.f32.mrb[120].mxu0  ;;  %v6047_v35 = vld [vmem:[%s17554_s3 + $0x58] sm:$0xff]  ;;  %19028 = vst [vmem:[#allocation108_spill] sm:$0xff] %v15764_v51  ;;  %v11171_v17 = vpack.c.bf16 %v6718_v24, %v6717_v36  ;;  %v6048_v36 = vld [vmem:[%s17554_s3 + $0x60] sm:$0xff] }
 0x4da   : > { %v15744_v60 = vpop.f32.mrb[134].mxu1  ;;  %6913 = vmatprep.mubr.f32.mxu1 %v15696_v28  ;;  %11167 = vmatprep.subr.bf16.mxu0 %v18551_v22  ;;  %v15748_v10 = vmul.f32 %v6046_v46, %v5998_v63  ;;  %v5951_v56 = vadd.f32 %v15515_v53, %v5895_v14  ;;  %v5706_v41 = vadd.f32 %v15622_v57, %v5400_v21  ;;  %v5402_v8 = vpop.f32.mrb[121].mxu0  ;;  %v6246_v57 = vrot.slane %v15722_v31, 7 }
 0x4db   : > { %v15752_v3 = vpop.f32.mrb[135].mxu1  ;;  %v15756_v59 = vsel %vm555_vm0, %v6407_v55, %v6408_v19  ;;  %v6720_v8 = vld [vmem:[#allocation3 + $0x988] sm:$0xff] }
 0x4dc   : > { %19026 = vst [vmem:[#allocation19_spill] sm:$0xff] %v15748_v10  ;;  %19027 = vst [vmem:[#allocation79_spill] sm:$0xff] %v15756_v59  ;;  %10321 = vmatprep.mubr.f32.mxu0 %v15756_v59  ;;  %v5999_v46 = vmax.f32 %v5951_v56, 0.0  ;;  %v5896_v63 = vadd.f32 %v5706_v41, %v15374_v16  ;;  %v6409_v55 = vrot.slane %v15748_v10, 1  ;;  %v15790_v24 = vsel %vm392_vm1, %v6245_v6, %v6246_v57  ;;  %v6721_v6 = vld [vmem:[#allocation3 + $0x990] sm:$0xff] }
 0x4dd   : > { %6914 = vmatmul.mubr.f32.gmra.mrb[176].mxu1 %v15764_v51  ;;  %11169 = vmatpush1.bf16.msra.mxu0 %v11168_v43  ;;  %v5405_v14 = vpop.f32.mrb[122].mxu0  ;;  %19031 = vst [vmem:[#allocation86_spill] sm:$0xff] %v15790_v24 }
 0x4de   : > { %v15770_v21 = vpop.f32.mrb[136].mxu1  ;;  %6918 = vmatprep.mubr.f32.mxu1 %v15722_v31  ;;  %11170 = vmatprep.subr.bf16.mxu0 %v18551_v22  ;;  %v15774_v28 = vmul.f32 %v6047_v35, %v5999_v46  ;;  %v5952_v56 = vadd.f32 %v15515_v53, %v5896_v63  ;;  %v5711_v16 = vadd.f32 %v15615_v30, %v5405_v14  ;;  %v5407_v41 = vpop.f32.mrb[123].mxu0  ;;  %v6247_v35 = vrot.slane %v15748_v10, 7  ;;  %v6722_v31 = vld [vmem:[#allocation3 + $0x998] sm:$0xff] }
 0x4df   : > { %v15778_v51 = vpop.f32.mrb[137].mxu1  ;;  %v15782_v43 = vsel %vm555_vm0, %v6408_v19, %v6409_v55  ;;  %v11174_v63 = vpack.c.bf16 %v6720_v8, %v6719_v61  ;;  %v6049_v61 = vld [vmem:[%s17554_s3 + $0x68] sm:$0xff] }
 0x4e0   : > { %19029 = vst [vmem:[#allocation112_spill] sm:$0xff] %v15774_v28  ;;  %19030 = vst [vmem:[#allocation12_spill] sm:$0xff] %v15782_v43  ;;  %10322 = vmatmul.mubr.f32.gmra.mrb[200].mxu0 %v15782_v43  ;;  %v6000_v30 = vmax.f32 %v5952_v56, 0.0  ;;  %v5897_v46 = vadd.f32 %v5711_v16, %v15370_v37  ;;  %v6410_v19 = vrot.slane %v15774_v28, 1  ;;  %v15816_v8 = vsel %vm392_vm1, %v6246_v57, %v6247_v35  ;;  %v6723_v57 = vld [vmem:[#allocation3 + $0x9a0] sm:$0xff] }
 0x4e1   : > { %6919 = vmatmul.mubr.f32.gmra.mrb[178].mxu1 %v15790_v24  ;;  %11172 = vmatpush1.bf16.msra.mxu0 %v11171_v17  ;;  %v5410_v14 = vpop.f32.mrb[124].mxu0  ;;  %19034 = vst [vmem:[#allocation20_spill] sm:$0xff] %v15816_v8 }
 0x4e2   : > { %v15796_v41 = vpop.f32.mrb[138].mxu1  ;;  %6923 = vmatprep.mubr.f32.mxu1 %v15748_v10  ;;  %11173 = vmatprep.subr.bf16.mxu0 %v18551_v22  ;;  %v15800_v48 = vmul.f32 %v6048_v36, %v6000_v30  ;;  %v5953_v56 = vadd.f32 %v15515_v53, %v5897_v46  ;;  %v5716_v37 = vadd.f32 %v15647_v26, %v5410_v14  ;;  %v5412_v16 = vpop.f32.mrb[125].mxu0  ;;  %v6248_v36 = vrot.slane %v15774_v28, 7  ;;  %v6724_v10 = vld [vmem:[#allocation3 + $0x9a8] sm:$0xff] }
 0x4e3   : > { %v15804_v24 = vpop.f32.mrb[139].mxu1  ;;  %v15808_v17 = vsel %vm555_vm0, %v6409_v55, %v6410_v19  ;;  %v11177_v46 = vpack.c.bf16 %v6722_v31, %v6721_v6 }
 0x4e4   : > { %19032 = vst [vmem:[#allocation123_spill] sm:$0xff] %v15800_v48  ;;  %19033 = vst [vmem:[#allocation68_spill] sm:$0xff] %v15808_v17  ;;  %10324 = vmatprep.mubr.f32.mxu0 %v15808_v17  ;;  %v6001_v26 = vmax.f32 %v5953_v56, 0.0  ;;  %v5898_v30 = vadd.f32 %v5716_v37, %v15385_v54  ;;  %v6411_v55 = vrot.slane %v15800_v48, 1  ;;  %v15842_v6 = vsel %vm392_vm1, %v6247_v35, %v6248_v36  ;;  %v6725_v35 = vld [vmem:[#allocation3 + $0x9b0] sm:$0xff] }
 0x4e5   : > { %6924 = vmatmul.mubr.f32.gmra.mrb[180].mxu1 %v15816_v8  ;;  %11175 = vmatpush1.bf16.msra.mxu0 %v11174_v63  ;;  %v5415_v14 = vpop.f32.mrb[126].mxu0  ;;  %v6050_v63 = vld [vmem:[%s17554_s3 + $0x70] sm:$0xff]  ;;  %19037 = vst [vmem:[#allocation14_spill] sm:$0xff] %v15842_v6 }
 0x4e6   : > { %v15822_v16 = vpop.f32.mrb[140].mxu1  ;;  %6928 = vmatprep.mubr.f32.mxu1 %v15774_v28  ;;  %11176 = vmatprep.subr.bf16.mxu0 %v18551_v22  ;;  %v15826_v17 = vmul.f32 %v6049_v61, %v6001_v26  ;;  %v5954_v56 = vadd.f32 %v15515_v53, %v5898_v30  ;;  %v5721_v54 = vadd.f32 %v15640_v58, %v5415_v14  ;;  %v5417_v37 = vpop.f32.mrb[127].mxu0  ;;  %v6249_v61 = vrot.slane %v15800_v48, 7  ;;  %v6726_v28 = vld [vmem:[#allocation3 + $0x9b8] sm:$0xff] }
 0x4e7   : > { %v15830_v8 = vpop.f32.mrb[141].mxu1  ;;  %v15834_v31 = vsel %vm555_vm0, %v6410_v19, %v6411_v55  ;;  %v11180_v30 = vpack.c.bf16 %v6724_v10, %v6723_v57  ;;  %v6051_v57 = vld [vmem:[%s17554_s3 + $0x78] sm:$0xff] }
 0x4e8   : > { %19035 = vst [vmem:[#allocation56_spill] sm:$0xff] %v15826_v17  ;;  %19036 = vst [vmem:[#allocation45_spill] sm:$0xff] %v15834_v31  ;;  %10325 = vmatmul.mubr.f32.gmra.mrb[202].mxu0 %v15834_v31  ;;  %v6002_v58 = vmax.f32 %v5954_v56, 0.0  ;;  %v5899_v26 = vadd.f32 %v5721_v54, %v15381_v44  ;;  %v6412_v19 = vrot.slane %v15826_v17, 1  ;;  %v19163_v62 = vld [vmem:[#allocation12_spill] sm:$0xff] }
 0x4e9   : > { %6929 = vmatmul.mubr.f32.gmra.mrb[182].mxu1 %v15842_v6  ;;  %11178 = vmatpush1.bf16.msra.mxu0 %v11177_v46  ;;  %v5420_v14 = vpop.f32.mrb[128].mxu0  ;;  %v6749_v46 = vld [vmem:[#allocation3 + $0xa70] sm:$0xff] }
 0x4ea   : > { %v15848_v37 = vpop.f32.mrb[142].mxu1  ;;  %6933 = vmatprep.mubr.f32.mxu1 %v15800_v48  ;;  %11179 = vmatprep.subr.bf16.mxu0 %v18551_v22  ;;  %v15852_v31 = vmul.f32 %v6050_v63, %v6002_v58  ;;  %v5955_v56 = vadd.f32 %v15515_v53, %v5899_v26  ;;  %v5726_v44 = vadd.f32 %v15673_v27, %v5420_v14  ;;  %v5422_v54 = vpop.f32.mrb[129].mxu0  ;;  %v6250_v27 = vrot.slane %v15826_v17, 7  ;;  %v6750_v58 = vld [vmem:[#allocation3 + $0xa78] sm:$0xff] }
 0x4eb   : > { %v15856_v6 = vpop.f32.mrb[143].mxu1  ;;  %v15860_v10 = vsel %vm555_vm0, %v6411_v55, %v6412_v19  ;;  %v15868_v63 = vsel %vm392_vm1, %v6248_v36, %v6249_v61  ;;  %v11183_v54 = vpack.c.bf16 %v6726_v28, %v6725_v35  ;;  %v6727_v36 = vld [vmem:[#allocation3 + $0x9c0] sm:$0xff]  ;;  %v11225_v59 = vpack.c.bf16 %v6750_v58, %v6749_v46 }
 0x4ec   : > { %19038 = vst [vmem:[#allocation13_spill] sm:$0xff] %v15852_v31  ;;  %19039 = vst [vmem:[#allocation115_spill] sm:$0xff] %v15860_v10  ;;  %10327 = vmatprep.mubr.f32.mxu0 %v15860_v10  ;;  %v6003_v26 = vmax.f32 %v5955_v56, 0.0  ;;  %v5900_v14 = vadd.f32 %v5726_v44, %v15396_v45  ;;  %v6413_v55 = vrot.slane %v15852_v31, 1  ;;  %v6728_v10 = vld [vmem:[#allocation3 + $0x9c8] sm:$0xff]  ;;  %v15894_v35 = vsel %vm392_vm1, %v6249_v61, %v6250_v27  ;;  %v6729_v61 = vld [vmem:[#allocation3 + $0x9d0] sm:$0xff] }
 0x4ed   : > { %19040 = vst [vmem:[#allocation16_spill] sm:$0xff] %v15868_v63  ;;  %6934 = vmatmul.mubr.f32.gmra.mrb[184].mxu1 %v15868_v63  ;;  %11181 = vmatpush1.bf16.msra.mxu0 %v11180_v30  ;;  %v5425_v48 = vpop.f32.mrb[130].mxu0  ;;  %v6052_v30 = vld [vmem:[%s17554_s3 + $0x80] sm:$0xff]  ;;  %19043 = vst [vmem:[#allocation96_spill] sm:$0xff] %v15894_v35  ;;  %v6251_v46 = vrot.slane %v15852_v31, 7 }
 0x4ee   : > { %v15874_v43 = vpop.f32.mrb[144].mxu1  ;;  %6938 = vmatprep.mubr.f32.mxu1 %v15826_v17  ;;  %11182 = vmatprep.subr.bf16.mxu0 %v18551_v22  ;;  %v15878_v42 = vmul.f32 %v6051_v57, %v6003_v26  ;;  %v5956_v45 = vadd.f32 %v15515_v53, %v5900_v14  ;;  %v5731_v56 = vadd.f32 %v15666_v32, %v5425_v48  ;;  %v5427_v44 = vpop.f32.mrb[131].mxu0  ;;  %v6730_v14 = vld [vmem:[#allocation3 + $0x9d8] sm:$0xff] }
 0x4ef   : > { %v15882_v63 = vpop.f32.mrb[145].mxu1  ;;  %v15886_v28 = vsel %vm555_vm0, %v6412_v19, %v6413_v55  ;;  %11226 = vmatprep.subr.bf16.mxu1 %v11225_v59  ;;  %v11186_v57 = vpack.c.bf16 %v6728_v10, %v6727_v36  ;;  %v15920_v36 = vsel %vm392_vm1, %v6250_v27, %v6251_v46  ;;  %v6731_v27 = vld [vmem:[#allocation3 + $0x9e0] sm:$0xff] }
 0x4f0   : > { %19041 = vst [vmem:[#allocation90_spill] sm:$0xff] %v15878_v42  ;;  %19042 = vst [vmem:[#allocation11_spill] sm:$0xff] %v15886_v28  ;;  %10328 = vmatmul.mubr.f32.gmra.mrb[204].mxu0 %v15886_v28  ;;  %v6004_v48 = vmax.f32 %v5956_v45, 0.0  ;;  %v5901_v32 = vadd.f32 %v5731_v56, %v15392_v38  ;;  %v6414_v19 = vrot.slane %v15878_v42, 1  ;;  %11228 = vmatpush3.bf16.msra.mxu1 %v11225_v59 }
 0x4f1   : > { %6939 = vmatmul.mubr.f32.gmra.mrb[186].mxu1 %v15894_v35  ;;  %11184 = vmatpush1.bf16.msra.mxu0 %v11183_v54  ;;  %v5430_v58 = vpop.f32.mrb[132].mxu0  ;;  %v6053_v54 = vld [vmem:[%s17554_s3 + $0x88] sm:$0xff]  ;;  %19046 = vst [vmem:[#allocation49_spill] sm:$0xff] %v15920_v36 }
 0x4f2   : > { %v15900_v26 = vpop.f32.mrb[146].mxu1  ;;  %6943 = vmatprep.mubr.f32.mxu1 %v15852_v31  ;;  %11185 = vmatprep.subr.bf16.mxu0 %v18551_v22  ;;  %v15904_v44 = vmul.f32 %v6052_v30, %v6004_v48  ;;  %v5957_v45 = vadd.f32 %v15515_v53, %v5901_v32  ;;  %v5736_v38 = vadd.f32 %v15700_v12, %v5430_v58  ;;  %v5432_v56 = vpop.f32.mrb[133].mxu0  ;;  %v6252_v12 = vrot.slane %v15878_v42, 7 }
 0x4f3   : > { %v15908_v35 = vpop.f32.mrb[147].mxu1  ;;  %v15912_v10 = vsel %vm555_vm0, %v6413_v55, %v6414_v19  ;;  %11229 = vmatprep.subr.bf16.mxu1 %v18551_v22  ;;  %v11189_v55 = vpack.c.bf16 %v6730_v14, %v6729_v61  ;;  %v6732_v56 = vld [vmem:[#allocation3 + $0x9e8] sm:$0xff]  ;;  %v6054_v61 = vld [vmem:[%s17554_s3 + $0x90] sm:$0xff] }
 0x4f4   : > { %19044 = vst [vmem:[#allocation30_spill] sm:$0xff] %v15904_v44  ;;  %19045 = vst [vmem:[#allocation15_spill] sm:$0xff] %v15912_v10  ;;  %10330 = vmatprep.mubr.f32.mxu0 %v15912_v10  ;;  %v6005_v30 = vmax.f32 %v5957_v45, 0.0  ;;  %v5902_v48 = vadd.f32 %v5736_v38, %v15407_v5  ;;  %v6415_v59 = vrot.slane %v15904_v44, 1  ;;  %v15947_v14 = vsel %vm392_vm1, %v6251_v46, %v6252_v12  ;;  %v6733_v46 = vld [vmem:[#allocation3 + $0x9f0] sm:$0xff] }
 0x4f5   : > { %6944 = vmatmul.mubr.f32.gmra.mrb[188].mxu1 %v15920_v36  ;;  %11187 = vmatpush1.bf16.msra.mxu0 %v11186_v57  ;;  %v5435_v32 = vpop.f32.mrb[134].mxu0  ;;  %19049 = vst [vmem:[#allocation72_spill] sm:$0xff] %v15947_v14 }
 0x4f6   : > { %v15927_v58 = vpop.f32.mrb[148].mxu1  ;;  %6948 = vmatprep.mubr.f32.mxu1 %v15878_v42  ;;  %11188 = vmatprep.subr.bf16.mxu0 %v18551_v22  ;;  %v15931_v31 = vmul.f32 %v6053_v54, %v6005_v30  ;;  %v5958_v45 = vadd.f32 %v15515_v53, %v5902_v48  ;;  %v5741_v5 = vadd.f32 %v15692_v34, %v5435_v32  ;;  %v5437_v38 = vpop.f32.mrb[135].mxu0  ;;  %v6253_v54 = vrot.slane %v15904_v44, 7  ;;  %v6734_v42 = vld [vmem:[#allocation3 + $0x9f8] sm:$0xff] }
 0x4f7   : > { %v15935_v36 = vpop.f32.mrb[149].mxu1  ;;  %v15939_v57 = vsel %vm555_vm0, %v6414_v19, %v6415_v59  ;;  %v11192_v48 = vpack.c.bf16 %v6732_v56, %v6731_v27  ;;  %v8206_v27 = vld [vmem:[#allocation3 + $0xd00] sm:$0xff]  ;;  %v8207_v56 = vld [vmem:[#allocation3 + $0xd08] sm:$0xff] }
 0x4f8   : > { %19047 = vst [vmem:[#allocation48_spill] sm:$0xff] %v15931_v31  ;;  %19048 = vst [vmem:[#allocation27_spill] sm:$0xff] %v15939_v57  ;;  %10331 = vmatmul.mubr.f32.gmra.mrb[206].mxu0 %v15939_v57  ;;  %v6006_v34 = vmax.f32 %v5958_v45, 0.0  ;;  %v5903_v30 = vadd.f32 %v5741_v5, %v15403_v25  ;;  %v6416_v19 = vrot.slane %v15931_v31, 1 }
 0x4f9   : > { %6949 = vmatmul.mubr.f32.gmra.mrb[190].mxu1 %v15947_v14  ;;  %11190 = vmatpush1.bf16.msra.mxu0 %v11189_v55  ;;  %v5440_v32 = vpop.f32.mrb[136].mxu0 }
 0x4fa   : > { %v15953_v38 = vpop.f32.mrb[150].mxu1  ;;  %6953 = vmatprep.mubr.f32.mxu1 %v15904_v44  ;;  %11191 = vmatprep.subr.bf16.mxu0 %v18551_v22  ;;  %v15957_v17 = vmul.f32 %v6054_v61, %v6006_v34  ;;  %v5959_v45 = vadd.f32 %v15515_v53, %v5903_v30  ;;  %v5746_v25 = vadd.f32 %v15726_v1, %v5440_v32  ;;  %v5442_v5 = vpop.f32.mrb[137].mxu0  ;;  %v6055_v44 = vld [vmem:[%s17554_s3 + $0x98] sm:$0xff]  ;;  %v6254_v1 = vrot.slane %v15931_v31, 7 }
 0x4fb   : > { %v15961_v14 = vpop.f32.mrb[151].mxu1  ;;  %v15965_v55 = vsel %vm555_vm0, %v6415_v59, %v6416_v19  ;;  %v15973_v61 = vsel %vm392_vm1, %v6252_v12, %v6253_v54  ;;  %v11195_v32 = vpack.c.bf16 %v6734_v42, %v6733_v46  ;;  %v15983_v12 = vpack.c.bf16 %v8207_v56, %v8206_v27 }
 0x4fc   : > { %19050 = vst [vmem:[#allocation118_spill] sm:$0xff] %v15957_v17  ;;  %19051 = vst [vmem:[#allocation103_spill] sm:$0xff] %v15965_v55  ;;  %10333 = vmatprep.mubr.f32.mxu0 %v15965_v55  ;;  %v6007_v34 = vmax.f32 %v5959_v45, 0.0  ;;  %v5904_v30 = vadd.f32 %v5746_v25, %v15416_v4  ;;  %v6417_v59 = vrot.slane %v15957_v17, 1  ;;  %v6255_v46 = vrot.slane %v15957_v17, 7 }
 0x4fd   : > { %19052 = vst [vmem:[#allocation65_spill] sm:$0xff] %v15973_v61  ;;  %6954 = vmatmul.mubr.f32.gmra.mrb[192].mxu1 %v15973_v61  ;;  %11193 = vmatpush1.bf16.msra.mxu0 %v11192_v48  ;;  %v5445_v5 = vpop.f32.mrb[138].mxu0  ;;  %v6056_v48 = vld [vmem:[%s17554_s3 + $0xa0] sm:$0xff] }
 0x4fe   : > { %v15979_v57 = vpop.f32.mrb[152].mxu1  ;;  %6958 = vmatprep.mubr.f32.mxu1 %v15931_v31  ;;  %11194 = vmatprep.subr.bf16.mxu0 %v18551_v22  ;;  %v15985_v55 = vmul.f32 %v6055_v44, %v6007_v34  ;;  %v5960_v45 = vadd.f32 %v15515_v53, %v5904_v30  ;;  %v5751_v4 = vadd.f32 %v15718_v0, %v5445_v5  ;;  %v5447_v25 = vpop.f32.mrb[139].mxu0 }
 0x4ff   : > { %v15989_v61 = vpop.f32.mrb[153].mxu1  ;;  %v15993_v42 = vsel %vm555_vm0, %v6416_v19, %v6417_v59  ;;  %v16001_v44 = vsel %vm392_vm1, %v6253_v54, %v6254_v1  ;;  %v16027_v25 = vsel %vm392_vm1, %v6254_v1, %v6255_v46 }
 0x500   : > { %19053 = vst [vmem:[#allocation122_spill] sm:$0xff] %v15985_v55  ;;  %19054 = vst [vmem:[#allocation89_spill] sm:$0xff] %v15993_v42  ;;  %10334 = vmatmul.mubr.f32.gmra.mrb[208].mxu0 %v15993_v42  ;;  %v6008_v0 = vmax.f32 %v5960_v45, 0.0  ;;  %v5905_v27 = vadd.f32 %v5751_v4, %v15412_v20  ;;  %v6418_v19 = vrot.slane %v15985_v55, 1 }
 0x501   : > { %19055 = vst [vmem:[#allocation37_spill] sm:$0xff] %v16001_v44  ;;  %6959 = vmatmul.mubr.f32.gmra.mrb[194].mxu1 %v16001_v44  ;;  %11196 = vmatpush1.bf16.msra.mxu0 %v11195_v32  ;;  %v5450_v56 = vpop.f32.mrb[140].mxu0  ;;  %v6057_v32 = vld [vmem:[%s17554_s3 + $0xa8] sm:$0xff]  ;;  %19058 = vst [vmem:[#allocation33_spill] sm:$0xff] %v16027_v25 }
 0x502   : > { %v16007_v34 = vpop.f32.mrb[154].mxu1  ;;  %6963 = vmatprep.mubr.f32.mxu1 %v15957_v17  ;;  %11278 = vmatprep.subr.bf16.mxu0 %v15983_v12  ;;  %v16011_v30 = vmul.f32 %v6056_v48, %v6008_v0  ;;  %v5961_v54 = vadd.f32 %v15515_v53, %v5905_v27  ;;  %v5756_v5 = vadd.f32 %v15752_v3, %v5450_v56  ;;  %v5452_v45 = vpop.f32.mrb[141].mxu0  ;;  %v6256_v48 = vrot.slane %v15985_v55, 7 }
 0x503   : > { %v16015_v20 = vpop.f32.mrb[155].mxu1  ;;  %v16019_v4 = vsel %vm555_vm0, %v6417_v59, %v6418_v19 }
 0x504   : > { %19056 = vst [vmem:[#allocation54_spill] sm:$0xff] %v16011_v30  ;;  %19057 = vst [vmem:[#allocation120_spill] sm:$0xff] %v16019_v4  ;;  %10336 = vmatprep.mubr.f32.mxu0 %v16019_v4  ;;  %v6009_v3 = vmax.f32 %v5961_v54, 0.0  ;;  %v5906_v0 = vadd.f32 %v5756_v5, %v15425_v13  ;;  %v6419_v59 = vrot.slane %v16011_v30, 1  ;;  %v6058_v5 = vld [vmem:[%s17554_s3 + $0xb0] sm:$0xff] }
 0x505   : > { %6964 = vmatmul.mubr.f32.gmra.mrb[196].mxu1 %v16027_v25  ;;  %v5455_v27 = vpop.f32.mrb[142].mxu0 }
 0x506   : > { %6968 = vmatprep.mubr.f32.mxu1 %v15985_v55  ;;  %v16034_v56 = vpop.f32.mrb[156].mxu1  ;;  %v16036_v45 = vmul.f32 %v6057_v32, %v6009_v3  ;;  %v5962_v17 = vadd.f32 %v15515_v53, %v5906_v0  ;;  %v5761_v1 = vadd.f32 %v15744_v60, %v5455_v27  ;;  %v5457_v44 = vpop.f32.mrb[143].mxu0  ;;  %v16042_v54 = vsel %vm555_vm0, %v6418_v19, %v6419_v59 }
 0x507   : > { %19059 = vst [vmem:[#allocation75_spill] sm:$0xff] %v16042_v54  ;;  %v16044_v13 = vpop.f32.mrb[157].mxu1  ;;  %10337 = vmatmul.mubr.f32.gmra.mrb[210].mxu0 %v16042_v54  ;;  %v16052_v32 = vsel %vm392_vm1, %v6255_v46, %v6256_v48  ;;  %v6257_v3 = vrot.slane %v16011_v30, 7 }
 0x508   : > { %19060 = vst [vmem:[#allocation32_spill] sm:$0xff] %v16052_v32  ;;  %v6010_v60 = vmax.f32 %v5962_v17, 0.0  ;;  %v5907_v44 = vadd.f32 %v5761_v1, %v15421_v7  ;;  %v6420_v19 = vrot.slane %v16036_v45, 1  ;;  %v6059_v1 = vld [vmem:[%s17554_s3 + $0xb8] sm:$0xff] }
 0x509   : > { %6969 = vmatmul.mubr.f32.gmra.mrb[198].mxu1 %v16052_v32  ;;  %v5460_v0 = vpop.f32.mrb[144].mxu0 }
 0x50a   : > { %6973 = vmatprep.mubr.f32.mxu1 %v16011_v30  ;;  %v16059_v27 = vpop.f32.mrb[158].mxu1  ;;  %v16061_v55 = vmul.f32 %v6058_v5, %v6010_v60  ;;  %v5963_v25 = vadd.f32 %v15515_v53, %v5907_v44  ;;  %v5766_v46 = vadd.f32 %v15778_v51, %v5460_v0  ;;  %v5462_v31 = vpop.f32.mrb[145].mxu0  ;;  %v16067_v17 = vsel %vm555_vm0, %v6419_v59, %v6420_v19 }
 0x50b   : > { %19062 = vst [vmem:[#allocation128_spill] sm:$0xff] %v16067_v17  ;;  %v16069_v7 = vpop.f32.mrb[159].mxu1  ;;  %10339 = vmatprep.mubr.f32.mxu0 %v16067_v17  ;;  %v16077_v5 = vsel %vm392_vm1, %v6256_v48, %v6257_v3  ;;  %v6258_v60 = vrot.slane %v16036_v45, 7 }
 0x50c   : > { %19061 = vst [vmem:[#allocation124_spill] sm:$0xff] %v16061_v55  ;;  %v6011_v51 = vmax.f32 %v5963_v25, 0.0  ;;  %v5908_v31 = vadd.f32 %v5766_v46, %v15434_v9  ;;  %v6421_v59 = vrot.slane %v16061_v55, 1  ;;  %v6060_v9 = vld [vmem:[%s17554_s3 + $0xc0] sm:$0xff]  ;;  %v6259_v46 = vrot.slane %v16061_v55, 7 }
 0x50d   : > { %6974 = vmatmul.mubr.f32.gmra.mrb[200].mxu1 %v16077_v5  ;;  %v5465_v44 = vpop.f32.mrb[146].mxu0  ;;  %v16098_v25 = vsel %vm392_vm1, %v6257_v3, %v6258_v60 }
 0x50e   : > { %6978 = vmatprep.mubr.f32.mxu1 %v16036_v45  ;;  %v16084_v0 = vmul.f32 %v6059_v1, %v6011_v51  ;;  %v5964_v30 = vadd.f32 %v15515_v53, %v5908_v31  ;;  %v5771_v32 = vadd.f32 %v15770_v21, %v5465_v44  ;;  %v5467_v48 = vpop.f32.mrb[147].mxu0  ;;  %v16090_v17 = vsel %vm555_vm0, %v6420_v19, %v6421_v59  ;;  %v16107_v31 = vld [vmem:[#allocation5 + $0x1] ss:$0 sm:$0xff] }
 0x50f   : > { %19064 = vst [vmem:[#allocation126_spill] sm:$0xff] %v16090_v17  ;;  %10340 = vmatmul.mubr.f32.gmra.mrb[212].mxu0 %v16090_v17  ;;  %19065 = vst [vmem:[#allocation23_spill] sm:$0xff] %v16098_v25 }
 0x510   : > { %19063 = vst [vmem:[#allocation42_spill] sm:$0xff] %v16084_v0  ;;  %v6012_v53 = vmax.f32 %v5964_v30, 0.0  ;;  %v5909_v21 = vadd.f32 %v5771_v32, %v15430_v47  ;;  %v6422_v19 = vrot.slane %v16084_v0, 1  ;;  %v6061_v47 = vld [vmem:[%s17554_s3 + $0xc8] sm:$0xff]  ;;  %v16121_v32 = vsel %vm392_vm1, %v6258_v60, %v6259_v46 }
 0x511   : > { %6979 = vmatmul.mubr.f32.gmra.mrb[202].mxu1 %v16098_v25  ;;  %v5470_v1 = vpop.f32.mrb[148].mxu0 }
 0x512   : > { %6983 = vmatprep.mubr.f32.mxu1 %v16061_v55  ;;  %v16105_v51 = vmul.f32 %v6060_v9, %v6012_v53  ;;  %v5965_v44 = vadd.f32 %v16107_v31, %v5909_v21  ;;  %v5776_v3 = vadd.f32 %v15804_v24, %v5470_v1  ;;  %v5472_v48 = vpop.f32.mrb[149].mxu0  ;;  %v16113_v30 = vsel %vm555_vm0, %v6421_v59, %v6422_v19 }
 0x513   : > { %19067 = vst [vmem:[#allocation83_spill] sm:$0xff] %v16113_v30  ;;  %10342 = vmatprep.mubr.f32.mxu0 %v16113_v30  ;;  %v6260_v9 = vrot.slane %v16084_v0, 7 }
 0x514   : > { %19066 = vst [vmem:[#allocation133_spill] sm:$0xff] %v16105_v51  ;;  %v6013_v53 = vmax.f32 %v5965_v44, 0.0  ;;  %v5910_v24 = vadd.f32 %v5776_v3, %v15443_v50  ;;  %v6423_v59 = vrot.slane %v16105_v51, 1  ;;  %v6062_v50 = vld [vmem:[%s17554_s3 + $0xd0] sm:$0xff]  ;;  %v6261_v3 = vrot.slane %v16105_v51, 7 }
 0x515   : > { %6984 = vmatmul.mubr.f32.gmra.mrb[204].mxu1 %v16121_v32  ;;  %v5475_v21 = vpop.f32.mrb[150].mxu0  ;;  %v16142_v44 = vsel %vm392_vm1, %v6259_v46, %v6260_v9 }
 0x516   : > { %6988 = vmatprep.mubr.f32.mxu1 %v16084_v0  ;;  %v16128_v1 = vmul.f32 %v6061_v47, %v6013_v53  ;;  %v5966_v48 = vadd.f32 %v16107_v31, %v5910_v24  ;;  %v5781_v55 = vadd.f32 %v15796_v41, %v5475_v21  ;;  %v5477_v60 = vpop.f32.mrb[151].mxu0  ;;  %v16134_v25 = vsel %vm555_vm0, %v6422_v19, %v6423_v59 }
 0x517   : > { %19069 = vst [vmem:[#allocation136_spill] sm:$0xff] %v16134_v25  ;;  %10343 = vmatmul.mubr.f32.gmra.mrb[214].mxu0 %v16134_v25 }
 0x518   : > { %19068 = vst [vmem:[#allocation25_spill] sm:$0xff] %v16128_v1  ;;  %v6014_v47 = vmax.f32 %v5966_v48, 0.0  ;;  %v5911_v41 = vadd.f32 %v5781_v55, %v15439_v39  ;;  %v6424_v19 = vrot.slane %v16128_v1, 1  ;;  %v6063_v39 = vld [vmem:[%s17554_s3 + $0xd8] sm:$0xff]  ;;  %v16163_v55 = vsel %vm392_vm1, %v6260_v9, %v6261_v3 }
 0x519   : > { %6989 = vmatmul.mubr.f32.gmra.mrb[206].mxu1 %v16142_v44  ;;  %v5480_v53 = vpop.f32.mrb[152].mxu0  ;;  %v6262_v48 = vrot.slane %v16128_v1, 7 }
 0x51a   : > { %6993 = vmatprep.mubr.f32.mxu1 %v16105_v51  ;;  %v16149_v24 = vmul.f32 %v6062_v50, %v6014_v47  ;;  %v5967_v21 = vadd.f32 %v16107_v31, %v5911_v41  ;;  %v5786_v60 = vadd.f32 %v15830_v8, %v5480_v53  ;;  %v5482_v46 = vpop.f32.mrb[153].mxu0  ;;  %v16155_v0 = vsel %vm555_vm0, %v6423_v59, %v6424_v19 }
 0x51b   : > { %19071 = vst [vmem:[#allocation84_spill] sm:$0xff] %v16155_v0  ;;  %10345 = vmatprep.mubr.f32.mxu0 %v16155_v0 }
 0x51c   : > { %19070 = vst [vmem:[#allocation131_spill] sm:$0xff] %v16149_v24  ;;  %v6015_v50 = vmax.f32 %v5967_v21, 0.0  ;;  %v5912_v8 = vadd.f32 %v5786_v60, %v15452_v49  ;;  %v6425_v59 = vrot.slane %v16149_v24, 1  ;;  %v6064_v49 = vld [vmem:[%s17554_s3 + $0xe0] sm:$0xff]  ;;  %v16184_v21 = vsel %vm392_vm1, %v6261_v3, %v6262_v48 }
 0x51d   : > { %6994 = vmatmul.mubr.f32.gmra.mrb[208].mxu1 %v16163_v55  ;;  %v5485_v47 = vpop.f32.mrb[154].mxu0  ;;  %v6263_v60 = vrot.slane %v16149_v24, 7 }
 0x51e   : > { %6998 = vmatprep.mubr.f32.mxu1 %v16128_v1  ;;  %v16170_v41 = vmul.f32 %v6063_v39, %v6015_v50  ;;  %v5968_v53 = vadd.f32 %v16107_v31, %v5912_v8  ;;  %v5791_v46 = vadd.f32 %v15822_v16, %v5485_v47  ;;  %v5487_v9 = vpop.f32.mrb[155].mxu0  ;;  %v16176_v51 = vsel %vm555_vm0, %v6424_v19, %v6425_v59 }
 0x51f   : > { %19073 = vst [vmem:[#allocation24_spill] sm:$0xff] %v16176_v51  ;;  %10346 = vmatmul.mubr.f32.gmra.mrb[216].mxu0 %v16176_v51 }
 0x520   : > { %19072 = vst [vmem:[#allocation134_spill] sm:$0xff] %v16170_v41  ;;  %v6016_v39 = vmax.f32 %v5968_v53, 0.0  ;;  %v5913_v16 = vadd.f32 %v5791_v46, %v15448_v52  ;;  %v6426_v19 = vrot.slane %v16170_v41, 1  ;;  %v6065_v52 = vld [vmem:[%s17554_s3 + $0xe8] sm:$0xff]  ;;  %v16205_v53 = vsel %vm392_vm1, %v6262_v48, %v6263_v60 }
 0x521   : > { %6999 = vmatmul.mubr.f32.gmra.mrb[210].mxu1 %v16184_v21  ;;  %v5490_v50 = vpop.f32.mrb[156].mxu0  ;;  %19075 = vst [vmem:[#allocation135_spill] sm:$0xff] %v16205_v53  ;;  %v6264_v46 = vrot.slane %v16170_v41, 7 }
 0x522   : > { %7003 = vmatprep.mubr.f32.mxu1 %v16149_v24  ;;  %v16191_v8 = vmul.f32 %v6064_v49, %v6016_v39  ;;  %v5969_v47 = vadd.f32 %v16107_v31, %v5913_v16  ;;  %v5796_v9 = vadd.f32 %v15856_v6, %v5490_v50  ;;  %v5492_v3 = vpop.f32.mrb[157].mxu0  ;;  %v16197_v1 = vsel %vm555_vm0, %v6425_v59, %v6426_v19 }
 0x523   : > { %10348 = vmatprep.mubr.f32.mxu0 %v16197_v1 }
 0x524   : > { %19074 = vst [vmem:[#allocation138_spill] sm:$0xff] %v16191_v8  ;;  %v6017_v49 = vmax.f32 %v5969_v47, 0.0  ;;  %v5914_v6 = vadd.f32 %v5796_v9, %v15461_v18  ;;  %v6427_v59 = vrot.slane %v16191_v8, 1  ;;  %v6066_v18 = vld [vmem:[%s17554_s3 + $0xf0] sm:$0xff]  ;;  %v16226_v47 = vsel %vm392_vm1, %v6263_v60, %v6264_v46 }
 0x525   : > { %7004 = vmatmul.mubr.f32.gmra.mrb[212].mxu1 %v16205_v53  ;;  %v5495_v39 = vpop.f32.mrb[158].mxu0  ;;  %v6265_v9 = vrot.slane %v16191_v8, 7 }
 0x526   : > { %7008 = vmatprep.mubr.f32.mxu1 %v16170_v41  ;;  %v16212_v16 = vmul.f32 %v6065_v52, %v6017_v49  ;;  %v5970_v50 = vadd.f32 %v16107_v31, %v5914_v6  ;;  %v5801_v3 = vadd.f32 %v15848_v37, %v5495_v39  ;;  %v5497_v48 = vpop.f32.mrb[159].mxu0  ;;  %v16218_v24 = vsel %vm555_vm0, %v6426_v19, %v6427_v59  ;;  %v19077_v49 = vld [vmem:[#allocation47_spill] sm:$0xff] }
 0x527   : > { %10349 = vmatmul.mubr.f32.gmra.mrb[218].mxu0 %v16218_v24 }
 0x528   : > { %19076 = vst [vmem:[#allocation87_spill] sm:$0xff] %v16212_v16  ;;  %v6018_v52 = vmax.f32 %v5970_v50, 0.0  ;;  %v5915_v37 = vadd.f32 %v5801_v3, %v19077_v49  ;;  %v6428_v19 = vrot.slane %v16212_v16, 1  ;;  %v6067_v50 = vld [vmem:[%s17554_s3 + $0xf8] sm:$0xff]  ;;  %v16247_v3 = vsel %vm392_vm1, %v6264_v46, %v6265_v9 }
 0x529   : > { %7009 = vmatmul.mubr.f32.gmra.mrb[214].mxu1 %v16226_v47  ;;  %v5500_v6 = vpop.f32.mrb[160].mxu0  ;;  %19079 = vst [vmem:[#allocation28_spill] sm:$0xff] %v16247_v3 }
 0x52a   : > { %7013 = vmatprep.mubr.f32.mxu1 %v16191_v8  ;;  %v16233_v39 = vmul.f32 %v6066_v18, %v6018_v52  ;;  %v5971_v48 = vadd.f32 %v16107_v31, %v5915_v37  ;;  %v5806_v41 = vadd.f32 %v15882_v63, %v5500_v6  ;;  %v5502_v60 = vpop.f32.mrb[161].mxu0  ;;  %v16239_v53 = vsel %vm555_vm0, %v6427_v59, %v6428_v19 }
 0x52b   : > { %10351 = vmatprep.mubr.f32.mxu0 %v16239_v53  ;;  %v6266_v18 = vrot.slane %v16212_v16, 7 }
 0x52c   : > { %19078 = vst [vmem:[#allocation137_spill] sm:$0xff] %v16233_v39  ;;  %v6019_v52 = vmax.f32 %v5971_v48, 0.0  ;;  %v5916_v63 = vadd.f32 %v5806_v41, %v15473_v23  ;;  %v6429_v59 = vrot.slane %v16233_v39, 1  ;;  %v6068_v23 = vld [vmem:[%s17554_s3 + $0x100] sm:$0xff]  ;;  %v6267_v48 = vrot.slane %v16233_v39, 7 }
 0x52d   : > { %7014 = vmatmul.mubr.f32.gmra.mrb[216].mxu1 %v16247_v3  ;;  %v5505_v49 = vpop.f32.mrb[162].mxu0  ;;  %v16268_v41 = vsel %vm392_vm1, %v6265_v9, %v6266_v18 }
 0x52e   : > { %7018 = vmatprep.mubr.f32.mxu1 %v16212_v16  ;;  %v16254_v37 = vmul.f32 %v6067_v50, %v6019_v52  ;;  %v5972_v6 = vadd.f32 %v16107_v31, %v5916_v63  ;;  %v5811_v60 = vadd.f32 %v15874_v43, %v5505_v49  ;;  %v5507_v46 = vpop.f32.mrb[163].mxu0  ;;  %v16260_v8 = vsel %vm555_vm0, %v6428_v19, %v6429_v59  ;;  %v19081_v52 = vld [vmem:[#allocation95_spill] sm:$0xff] }
 0x52f   : > { %10352 = vmatmul.mubr.f32.gmra.mrb[220].mxu0 %v16260_v8 }
 0x530   : > { %19080 = vst [vmem:[#allocation139_spill] sm:$0xff] %v16254_v37  ;;  %v6020_v50 = vmax.f32 %v5972_v6, 0.0  ;;  %v5917_v43 = vadd.f32 %v5811_v60, %v19081_v52  ;;  %v6430_v19 = vrot.slane %v16254_v37, 1  ;;  %v6069_v6 = vld [vmem:[%s17554_s3 + $0x108] sm:$0xff]  ;;  %v16289_v60 = vsel %vm392_vm1, %v6266_v18, %v6267_v48 }
 0x531   : > { %7019 = vmatmul.mubr.f32.gmra.mrb[218].mxu1 %v16268_v41  ;;  %v5510_v63 = vpop.f32.mrb[164].mxu0 }
 0x532   : > { %7023 = vmatprep.mubr.f32.mxu1 %v16233_v39  ;;  %v16275_v49 = vmul.f32 %v6068_v23, %v6020_v50  ;;  %v5973_v46 = vadd.f32 %v16107_v31, %v5917_v43  ;;  %v5816_v16 = vadd.f32 %v15908_v35, %v5510_v63  ;;  %v5512_v9 = vpop.f32.mrb[165].mxu0  ;;  %v16281_v3 = vsel %vm555_vm0, %v6429_v59, %v6430_v19 }
 0x533   : > { %19083 = vst [vmem:[#allocation64_spill] sm:$0xff] %v16281_v3  ;;  %10354 = vmatprep.mubr.f32.mxu0 %v16281_v3  ;;  %v6268_v23 = vrot.slane %v16254_v37, 7 }
 0x534   : > { %19082 = vst [vmem:[#allocation92_spill] sm:$0xff] %v16275_v49  ;;  %v6021_v50 = vmax.f32 %v5973_v46, 0.0  ;;  %v5918_v35 = vadd.f32 %v5816_v16, %v15480_v33  ;;  %v6431_v59 = vrot.slane %v16275_v49, 1  ;;  %v6070_v33 = vld [vmem:[%s17554_s3 + $0x110] sm:$0xff]  ;;  %v6269_v46 = vrot.slane %v16275_v49, 7 }
 0x535   : > { %7024 = vmatmul.mubr.f32.gmra.mrb[220].mxu1 %v16289_v60  ;;  %v5515_v52 = vpop.f32.mrb[166].mxu0  ;;  %v16310_v16 = vsel %vm392_vm1, %v6267_v48, %v6268_v23 }
 0x536   : > { %7028 = vmatprep.mubr.f32.mxu1 %v16254_v37  ;;  %v16296_v43 = vmul.f32 %v6069_v6, %v6021_v50  ;;  %v5974_v63 = vadd.f32 %v16107_v31, %v5918_v35  ;;  %v5821_v9 = vadd.f32 %v15900_v26, %v5515_v52  ;;  %v5517_v18 = vpop.f32.mrb[167].mxu0  ;;  %v16302_v39 = vsel %vm555_vm0, %v6430_v19, %v6431_v59 }
 0x537   : > { %19085 = vst [vmem:[#allocation41_spill] sm:$0xff] %v16302_v39  ;;  %10355 = vmatmul.mubr.f32.gmra.mrb[222].mxu0 %v16302_v39  ;;  %19086 = vst [vmem:[#allocation99_spill] sm:$0xff] %v16310_v16 }
 0x538   : > { %19084 = vst [vmem:[#allocation140_spill] sm:$0xff] %v16296_v43  ;;  %v6022_v6 = vmax.f32 %v5974_v63, 0.0  ;;  %v5919_v26 = vadd.f32 %v5821_v9, %v15477_v29  ;;  %v6432_v19 = vrot.slane %v16296_v43, 1  ;;  %v6071_v29 = vld [vmem:[%s17554_s3 + $0x118] sm:$0xff]  ;;  %v16331_v63 = vsel %vm392_vm1, %v6268_v23, %v6269_v46 }
 0x539   : > { %7029 = vmatmul.mubr.f32.gmra.mrb[222].mxu1 %v16310_v16  ;;  %v5520_v50 = vpop.f32.mrb[168].mxu0  ;;  %19089 = vst [vmem:[#allocation34_spill] sm:$0xff] %v16331_v63  ;;  %v6270_v9 = vrot.slane %v16296_v43, 7  ;;  %v19184_v16 = vld [vmem:[#allocation36_spill] sm:$0xff] }
 0x53a   : > { %7033 = vmatprep.mubr.f32.mxu1 %v16275_v49  ;;  %v16317_v35 = vmul.f32 %v6070_v33, %v6022_v6  ;;  %v5975_v52 = vadd.f32 %v16107_v31, %v5919_v26  ;;  %v5826_v18 = vadd.f32 %v15935_v36, %v5520_v50  ;;  %v5522_v48 = vpop.f32.mrb[169].mxu0  ;;  %v16323_v37 = vsel %vm555_vm0, %v6431_v59, %v6432_v19 }
 0x53b   : > { %19088 = vst [vmem:[#allocation43_spill] sm:$0xff] %v16323_v37  ;;  %10357 = vmatprep.mubr.f32.mxu0 %v16323_v37 }
 0x53c   : > { %19087 = vst [vmem:[#allocation141_spill] sm:$0xff] %v16317_v35  ;;  %v6023_v33 = vmax.f32 %v5975_v52, 0.0  ;;  %v5920_v36 = vadd.f32 %v5826_v18, %v15487_v15  ;;  %v6433_v59 = vrot.slane %v16317_v35, 1  ;;  %v6072_v15 = vld [vmem:[%s17554_s3 + $0x120] sm:$0xff]  ;;  %v16352_v52 = vsel %vm392_vm1, %v6269_v46, %v6270_v9 }
 0x53d   : > { %7034 = vmatmul.mubr.f32.gmra.mrb[224].mxu1 %v16331_v63  ;;  %v5525_v6 = vpop.f32.mrb[170].mxu0  ;;  %19092 = vst [vmem:[#allocation143_spill] sm:$0xff] %v16352_v52  ;;  %v6271_v18 = vrot.slane %v16317_v35, 7 }
 0x53e   : > { %7038 = vmatprep.mubr.f32.mxu1 %v16296_v43  ;;  %v16338_v26 = vmul.f32 %v6071_v29, %v6023_v33  ;;  %v5976_v50 = vadd.f32 %v16107_v31, %v5920_v36  ;;  %v5831_v48 = vadd.f32 %v15927_v58, %v5525_v6  ;;  %v5527_v23 = vpop.f32.mrb[171].mxu0  ;;  %v16344_v49 = vsel %vm555_vm0, %v6432_v19, %v6433_v59  ;;  %v19093_v33 = vld [vmem:[#allocation109_spill] sm:$0xff] }
 0x53f   : > { %19091 = vst [vmem:[#allocation52_spill] sm:$0xff] %v16344_v49  ;;  %10358 = vmatmul.mubr.f32.gmra.mrb[224].mxu0 %v16344_v49 }
 0x540   : > { %19090 = vst [vmem:[#allocation142_spill] sm:$0xff] %v16338_v26  ;;  %v6024_v29 = vmax.f32 %v5976_v50, 0.0  ;;  %v5921_v58 = vadd.f32 %v5831_v48, %v19093_v33  ;;  %v6434_v19 = vrot.slane %v16338_v26, 1  ;;  %v6073_v50 = vld [vmem:[%s17554_s3 + $0x128] sm:$0xff]  ;;  %v16373_v48 = vsel %vm392_vm1, %v6270_v9, %v6271_v18 }
 0x541   : > { %7039 = vmatmul.mubr.f32.gmra.mrb[226].mxu1 %v16352_v52  ;;  %v5530_v36 = vpop.f32.mrb[172].mxu0  ;;  %19096 = vst [vmem:[#allocation69_spill] sm:$0xff] %v16373_v48  ;;  %v19183_v52 = vld [vmem:[#allocation108_spill] sm:$0xff] }
 0x542   : > { %7043 = vmatprep.mubr.f32.mxu1 %v16317_v35  ;;  %v16359_v6 = vmul.f32 %v6072_v15, %v6024_v29  ;;  %v5977_v23 = vadd.f32 %v16107_v31, %v5921_v58  ;;  %v5836_v43 = vadd.f32 %v15961_v14, %v5530_v36  ;;  %v5532_v46 = vpop.f32.mrb[173].mxu0  ;;  %v16365_v63 = vsel %vm555_vm0, %v6433_v59, %v6434_v19 }
 0x543   : > { %19095 = vst [vmem:[#allocation144_spill] sm:$0xff] %v16365_v63  ;;  %10360 = vmatprep.mubr.f32.mxu0 %v16365_v63  ;;  %v6272_v15 = vrot.slane %v16338_v26, 7 }
 0x544   : > { %19094 = vst [vmem:[#allocation111_spill] sm:$0xff] %v16359_v6  ;;  %v6025_v29 = vmax.f32 %v5977_v23, 0.0  ;;  %v5922_v14 = vadd.f32 %v5836_v43, %v15492_v11  ;;  %v6435_v59 = vrot.slane %v16359_v6, 1  ;;  %v6074_v11 = vld [vmem:[%s17554_s3 + $0x130] sm:$0xff]  ;;  %v6273_v23 = vrot.slane %v16359_v6, 7 }
 0x545   : > { %7044 = vmatmul.mubr.f32.gmra.mrb[228].mxu1 %v16373_v48  ;;  %v5535_v33 = vpop.f32.mrb[174].mxu0  ;;  %v16394_v43 = vsel %vm392_vm1, %v6271_v18, %v6272_v15 }
 0x546   : > { %7048 = vmatprep.mubr.f32.mxu1 %v16338_v26  ;;  %v16380_v58 = vmul.f32 %v6073_v50, %v6025_v29  ;;  %v5978_v36 = vadd.f32 %v16107_v31, %v5922_v14  ;;  %v5841_v46 = vadd.f32 %v15953_v38, %v5535_v33  ;;  %v5537_v9 = vpop.f32.mrb[175].mxu0  ;;  %v16386_v35 = vsel %vm555_vm0, %v6434_v19, %v6435_v59  ;;  %v19100_v29 = vld [vmem:[#allocation51_spill] sm:$0xff] }
 0x547   : > { %19098 = vst [vmem:[#allocation46_spill] sm:$0xff] %v16386_v35  ;;  %10361 = vmatmul.mubr.f32.gmra.mrb[226].mxu0 %v16386_v35  ;;  %19099 = vst [vmem:[#allocation146_spill] sm:$0xff] %v16394_v43 }
 0x548   : > { %19097 = vst [vmem:[#allocation145_spill] sm:$0xff] %v16380_v58  ;;  %v6026_v50 = vmax.f32 %v5978_v36, 0.0  ;;  %v5923_v38 = vadd.f32 %v5841_v46, %v19100_v29  ;;  %v6436_v19 = vrot.slane %v16380_v58, 1  ;;  %v6075_v36 = vld [vmem:[%s17554_s3 + $0x138] sm:$0xff]  ;;  %v16415_v46 = vsel %vm392_vm1, %v6272_v15, %v6273_v23 }
 0x549   : > { %7049 = vmatmul.mubr.f32.gmra.mrb[230].mxu1 %v16394_v43  ;;  %v5540_v14 = vpop.f32.mrb[176].mxu0  ;;  %19103 = vst [vmem:[#allocation97_spill] sm:$0xff] %v16415_v46  ;;  %v19104_v29 = vld [vmem:[#allocation35_spill] sm:$0xff] }
 0x54a   : > { %7053 = vmatprep.mubr.f32.mxu1 %v16359_v6  ;;  %v16401_v33 = vmul.f32 %v6074_v11, %v6026_v50  ;;  %v5979_v9 = vadd.f32 %v16107_v31, %v5923_v38  ;;  %v5846_v26 = vadd.f32 %v15989_v61, %v5540_v14  ;;  %v5542_v18 = vpop.f32.mrb[177].mxu0  ;;  %v16407_v48 = vsel %vm555_vm0, %v6435_v59, %v6436_v19 }
 0x54b   : > { %19102 = vst [vmem:[#allocation147_spill] sm:$0xff] %v16407_v48  ;;  %10363 = vmatprep.mubr.f32.mxu0 %v16407_v48  ;;  %v6274_v11 = vrot.slane %v16380_v58, 7 }
 0x54c   : > { %19101 = vst [vmem:[#allocation70_spill] sm:$0xff] %v16401_v33  ;;  %v6027_v50 = vmax.f32 %v5979_v9, 0.0  ;;  %v5924_v61 = vadd.f32 %v5846_v26, %v19104_v29  ;;  %v6437_v59 = vrot.slane %v16401_v33, 1  ;;  %v6076_v26 = vld [vmem:[%s17554_s3 + $0x140] sm:$0xff] }
 0x54d   : > { %7054 = vmatmul.mubr.f32.gmra.mrb[232].mxu1 %v16415_v46  ;;  %v5545_v38 = vpop.f32.mrb[178].mxu0  ;;  %v16436_v9 = vsel %vm392_vm1, %v6273_v23, %v6274_v11  ;;  %v19108_v29 = vld [vmem:[#allocation88_spill] sm:$0xff] }
 0x54e   : > { %7058 = vmatprep.mubr.f32.mxu1 %v16380_v58  ;;  %v16422_v14 = vmul.f32 %v6075_v36, %v6027_v50  ;;  %v5980_v18 = vadd.f32 %v16107_v31, %v5924_v61  ;;  %v5851_v6 = vadd.f32 %v15979_v57, %v5545_v38  ;;  %v5547_v15 = vpop.f32.mrb[179].mxu0  ;;  %v16428_v43 = vsel %vm555_vm0, %v6436_v19, %v6437_v59 }
 0x54f   : > { %19106 = vst [vmem:[#allocation29_spill] sm:$0xff] %v16428_v43  ;;  %10364 = vmatmul.mubr.f32.gmra.mrb[228].mxu0 %v16428_v43  ;;  %19107 = vst [vmem:[#allocation149_spill] sm:$0xff] %v16436_v9  ;;  %v6275_v36 = vrot.slane %v16401_v33, 7 }
 0x550   : > { %19105 = vst [vmem:[#allocation148_spill] sm:$0xff] %v16422_v14  ;;  %v6028_v50 = vmax.f32 %v5980_v18, 0.0  ;;  %v5925_v57 = vadd.f32 %v5851_v6, %v19108_v29  ;;  %v6438_v19 = vrot.slane %v16422_v14, 1  ;;  %v6077_v6 = vld [vmem:[%s17554_s3 + $0x148] sm:$0xff] }
 0x551   : > { %7059 = vmatmul.mubr.f32.gmra.mrb[234].mxu1 %v16436_v9  ;;  %v5550_v61 = vpop.f32.mrb[180].mxu0  ;;  %v16457_v18 = vsel %vm392_vm1, %v6274_v11, %v6275_v36  ;;  %v19111_v29 = vld [vmem:[#allocation114_spill] sm:$0xff] }
 0x552   : > { %7063 = vmatprep.mubr.f32.mxu1 %v16401_v33  ;;  %v16443_v38 = vmul.f32 %v6076_v26, %v6028_v50  ;;  %v5981_v15 = vadd.f32 %v16107_v31, %v5925_v57  ;;  %v5856_v58 = vadd.f32 %v16015_v20, %v5550_v61  ;;  %v5552_v23 = vpop.f32.mrb[181].mxu0  ;;  %v16449_v46 = vsel %vm555_vm0, %v6437_v59, %v6438_v19 }
 0x553   : > { %10366 = vmatprep.mubr.f32.mxu0 %v16449_v46  ;;  %19110 = vst [vmem:[#allocation150_spill] sm:$0xff] %v16457_v18  ;;  %v6276_v26 = vrot.slane %v16422_v14, 7 }
 0x554   : > { %19109 = vst [vmem:[#allocation71_spill] sm:$0xff] %v16443_v38  ;;  %v6029_v50 = vmax.f32 %v5981_v15, 0.0  ;;  %v5926_v20 = vadd.f32 %v5856_v58, %v19111_v29  ;;  %v6439_v59 = vrot.slane %v16443_v38, 1  ;;  %v6078_v58 = vld [vmem:[%s17554_s3 + $0x150] sm:$0xff] }
 0x555   : > { %7064 = vmatmul.mubr.f32.gmra.mrb[236].mxu1 %v16457_v18  ;;  %v5555_v57 = vpop.f32.mrb[182].mxu0  ;;  %v16478_v15 = vsel %vm392_vm1, %v6275_v36, %v6276_v26  ;;  %v19114_v29 = vld [vmem:[#allocation50_spill] sm:$0xff] }
 0x556   : > { %7068 = vmatprep.mubr.f32.mxu1 %v16422_v14  ;;  %v16464_v61 = vmul.f32 %v6077_v6, %v6029_v50  ;;  %v5982_v23 = vadd.f32 %v16107_v31, %v5926_v20  ;;  %v5861_v33 = vadd.f32 %v16007_v34, %v5555_v57  ;;  %v5557_v11 = vpop.f32.mrb[183].mxu0  ;;  %v16470_v9 = vsel %vm555_vm0, %v6438_v19, %v6439_v59 }
 0x557   : > { %10367 = vmatmul.mubr.f32.gmra.mrb[230].mxu0 %v16470_v9  ;;  %19113 = vst [vmem:[#allocation151_spill] sm:$0xff] %v16478_v15  ;;  %v6277_v6 = vrot.slane %v16443_v38, 7 }
 0x558   : > { %19112 = vst [vmem:[#allocation102_spill] sm:$0xff] %v16464_v61  ;;  %v6030_v50 = vmax.f32 %v5982_v23, 0.0  ;;  %v5927_v34 = vadd.f32 %v5861_v33, %v19114_v29  ;;  %v6440_v19 = vrot.slane %v16464_v61, 1  ;;  %v6079_v33 = vld [vmem:[%s17554_s3 + $0x158] sm:$0xff] }
 0x559   : > { %7069 = vmatmul.mubr.f32.gmra.mrb[238].mxu1 %v16478_v15  ;;  %v5560_v20 = vpop.f32.mrb[184].mxu0  ;;  %v16499_v23 = vsel %vm392_vm1, %v6276_v26, %v6277_v6  ;;  %v19118_v29 = vld [vmem:[#allocation40_spill] sm:$0xff] }
 0x55a   : > { %7073 = vmatprep.mubr.f32.mxu1 %v16443_v38  ;;  %v16485_v57 = vmul.f32 %v6078_v58, %v6030_v50  ;;  %v5983_v11 = vadd.f32 %v16107_v31, %v5927_v34  ;;  %v5866_v14 = vadd.f32 %v16044_v13, %v5560_v20  ;;  %v5562_v36 = vpop.f32.mrb[185].mxu0  ;;  %v16491_v18 = vsel %vm555_vm0, %v6439_v59, %v6440_v19 }
 0x55b   : > { %19116 = vst [vmem:[#allocation152_spill] sm:$0xff] %v16491_v18  ;;  %10369 = vmatprep.mubr.f32.mxu0 %v16491_v18  ;;  %19117 = vst [vmem:[#allocation58_spill] sm:$0xff] %v16499_v23  ;;  %v6278_v58 = vrot.slane %v16464_v61, 7 }
 0x55c   : > { %19115 = vst [vmem:[#allocation73_spill] sm:$0xff] %v16485_v57  ;;  %v6031_v50 = vmax.f32 %v5983_v11, 0.0  ;;  %v5928_v13 = vadd.f32 %v5866_v14, %v19118_v29  ;;  %v6441_v59 = vrot.slane %v16485_v57, 1  ;;  %v6080_v14 = vld [vmem:[%s17554_s3 + $0x160] sm:$0xff] }
 0x55d   : > { %7074 = vmatmul.mubr.f32.gmra.mrb[240].mxu1 %v16499_v23  ;;  %v5565_v34 = vpop.f32.mrb[186].mxu0  ;;  %v16520_v11 = vsel %vm392_vm1, %v6277_v6, %v6278_v58  ;;  %v19122_v29 = vld [vmem:[#allocation101_spill] sm:$0xff] }
 0x55e   : > { %7078 = vmatprep.mubr.f32.mxu1 %v16464_v61  ;;  %v16506_v20 = vmul.f32 %v6079_v33, %v6031_v50  ;;  %v5984_v36 = vadd.f32 %v16107_v31, %v5928_v13  ;;  %v5871_v38 = vadd.f32 %v16034_v56, %v5565_v34  ;;  %v5567_v26 = vpop.f32.mrb[187].mxu0  ;;  %v16512_v15 = vsel %vm555_vm0, %v6440_v19, %v6441_v59  ;;  %v8195_v23 = vld [vmem:[#allocation3 + $0xca8] sm:$0xff] }
 0x55f   : > { %19120 = vst [vmem:[#allocation81_spill] sm:$0xff] %v16512_v15  ;;  %10370 = vmatmul.mubr.f32.gmra.mrb[232].mxu0 %v16512_v15  ;;  %19121 = vst [vmem:[#allocation154_spill] sm:$0xff] %v16520_v11  ;;  %v6279_v33 = vrot.slane %v16485_v57, 7 }
 0x560   : > { %19119 = vst [vmem:[#allocation153_spill] sm:$0xff] %v16506_v20  ;;  %v6032_v50 = vmax.f32 %v5984_v36, 0.0  ;;  %v5929_v56 = vadd.f32 %v5871_v38, %v19122_v29  ;;  %v6442_v19 = vrot.slane %v16506_v20, 1  ;;  %v6081_v38 = vld [vmem:[%s17554_s3 + $0x168] sm:$0xff] }
 0x561   : > { %7079 = vmatmul.mubr.f32.gmra.mrb[242].mxu1 %v16520_v11  ;;  %v5570_v13 = vpop.f32.mrb[188].mxu0  ;;  %v16541_v29 = vsel %vm392_vm1, %v6278_v58, %v6279_v33 }
 0x562   : > { %7083 = vmatprep.mubr.f32.mxu1 %v16485_v57  ;;  %v16527_v34 = vmul.f32 %v6080_v14, %v6032_v50  ;;  %v5985_v26 = vadd.f32 %v16107_v31, %v5929_v56  ;;  %v5876_v61 = vadd.f32 %v16069_v7, %v5570_v13  ;;  %v16533_v6 = vsel %vm555_vm0, %v6441_v59, %v6442_v19  ;;  %v5572_v36 = vpop.f32.mrb[189].mxu0  ;;  %v19125_v56 = vld [vmem:[#allocation77_spill] sm:$0xff] }
 0x563   : > { %10372 = vmatprep.mubr.f32.mxu0 %v16533_v6  ;;  %19124 = vst [vmem:[#allocation155_spill] sm:$0xff] %v16541_v29  ;;  %v6280_v14 = vrot.slane %v16506_v20, 7 }
 0x564   : > { %19123 = vst [vmem:[#allocation91_spill] sm:$0xff] %v16527_v34  ;;  %v6033_v50 = vmax.f32 %v5985_v26, 0.0  ;;  %v5930_v7 = vadd.f32 %v5876_v61, %v19125_v56  ;;  %v6443_v59 = vrot.slane %v16527_v34, 1  ;;  %v6082_v61 = vld [vmem:[%s17554_s3 + $0x170] sm:$0xff] }
 0x565   : > { %7084 = vmatmul.mubr.f32.gmra.mrb[244].mxu1 %v16541_v29  ;;  %v5575_v13 = vpop.f32.mrb[190].mxu0  ;;  %v16562_v56 = vsel %vm392_vm1, %v6279_v33, %v6280_v14  ;;  %v19148_v29 = vld [vmem:[#allocation119_spill] sm:$0xff] }
 0x566   : > { %7088 = vmatprep.mubr.f32.mxu1 %v16506_v20  ;;  %v16548_v36 = vmul.f32 %v6081_v38, %v6033_v50  ;;  %v5986_v57 = vadd.f32 %v16107_v31, %v5930_v7  ;;  %v5881_v11 = vadd.f32 %v16059_v27, %v5575_v13  ;;  %v16554_v58 = vsel %vm555_vm0, %v6442_v19, %v6443_v59  ;;  %v5577_v26 = vpop.f32.mrb[191].mxu0  ;;  %v19128_v7 = vld [vmem:[#allocation106_spill] sm:$0xff] }
 0x567   : > { %10373 = vmatmul.mubr.f32.gmra.mrb[234].mxu0 %v16554_v58  ;;  %19127 = vst [vmem:[#allocation156_spill] sm:$0xff] %v16562_v56  ;;  %v6281_v38 = vrot.slane %v16527_v34, 7 }
 0x568   : > { %19126 = vst [vmem:[#allocation85_spill] sm:$0xff] %v16548_v36  ;;  %v6034_v50 = vmax.f32 %v5986_v57, 0.0  ;;  %v5931_v27 = vadd.f32 %v5881_v11, %v19128_v7  ;;  %v6444_v19 = vrot.slane %v16548_v36, 1  ;;  %v6083_v57 = vld [vmem:[%s17554_s3 + $0x178] sm:$0xff]  ;;  %v6282_v33 = vrot.slane %v16548_v36, 7 }
 0x569   : > { %7089 = vmatmul.mubr.f32.gmra.mrb[246].mxu1 %v16562_v56  ;;  %v16582_v11 = vsel %vm392_vm1, %v6280_v14, %v6281_v38  ;;  %v8213_v56 = vld [vmem:[#allocation3 + $0xd38] sm:$0xff] }
 0x56a   : > { %7093 = vmatprep.mubr.f32.mxu1 %v16527_v34  ;;  %v16569_v13 = vmul.f32 %v6082_v61, %v6034_v50  ;;  %v5987_v26 = vadd.f32 %v16107_v31, %v5931_v27  ;;  %v16574_v20 = vsel %vm555_vm0, %v6443_v59, %v6444_v19  ;;  %19131 = vst [vmem:[#allocation93_spill] sm:$0xff] %v16582_v11  ;;  %v8211_v34 = vld [vmem:[#allocation3 + $0xd28] sm:$0xff] }
 0x56b   : > { %19130 = vst [vmem:[#allocation157_spill] sm:$0xff] %v16574_v20  ;;  %10375 = vmatprep.mubr.f32.mxu0 %v16574_v20  ;;  %v16597_v14 = vsel %vm392_vm1, %v6281_v38, %v6282_v33 }
 0x56c   : > { %19129 = vst [vmem:[#allocation125_spill] sm:$0xff] %v16569_v13  ;;  %v6035_v61 = vmax.f32 %v5987_v26, 0.0  ;;  %v6445_v31 = vrot.slane %v16569_v13, 1  ;;  %19134 = vst [vmem:[#allocation159_spill] sm:$0xff] %v16597_v14  ;;  %v6283_v7 = vrot.slane %v16569_v13, 7 }
 0x56d   : > { %7094 = vmatmul.mubr.f32.gmra.mrb[248].mxu1 %v16582_v11  ;;  %v8177_v11 = vld [vmem:[#allocation3 + $0xc18] sm:$0xff] }
 0x56e   : > { %7098 = vmatprep.mubr.f32.mxu1 %v16548_v36  ;;  %v16588_v59 = vmul.f32 %v6083_v57, %v6035_v61  ;;  %v16592_v50 = vsel %vm555_vm0, %v6444_v19, %v6445_v31  ;;  %v19136_v19 = vld [vmem:[#allocation53_spill] sm:$0xff]  ;;  %v16615_v38 = vsel %vm392_vm1, %v6282_v33, %v6283_v7 }
 0x56f   : > { %19133 = vst [vmem:[#allocation129_spill] sm:$0xff] %v16592_v50  ;;  %10376 = vmatmul.mubr.f32.gmra.mrb[236].mxu0 %v16592_v50  ;;  %19138 = vst [vmem:[#allocation98_spill] sm:$0xff] %v16615_v38  ;;  %v8209_v50 = vld [vmem:[#allocation3 + $0xd18] sm:$0xff] }
 0x570   : > { %19132 = vst [vmem:[#allocation158_spill] sm:$0xff] %v16588_v59  ;;  %v6446_v27 = vrot.slane %v16588_v59, 1  ;;  %v18125_v61 = vrot.slane %v16588_v59, 7 }
 0x571   : > { %7099 = vmatmul.mubr.f32.gmra.mrb[250].mxu1 %v16597_v14  ;;  %v19141_v14 = vld [vmem:[#allocation104_spill] sm:$0xff] }
 0x572   : > { %7103 = vmatprep.mubr.f32.mxu1 %v16569_v13  ;;  %v16605_v26 = vsel %vm555_vm0, %v6445_v31, %v6446_v27  ;;  %v16610_v57 = vsel %vm555_vm0, %v6446_v27, %v19136_v19  ;;  %v8208_v31 = vld [vmem:[#allocation3 + $0xd10] sm:$0xff]  ;;  %v11424_v13 = vld [vmem:[%s11636_s27] sm:$0xff]  ;;  %v8175_v19 = vld [vmem:[#allocation3 + $0xc08] sm:$0xff]  ;;  %v16626_v33 = vsel %vm392_vm1, %v6283_v7, %v18125_v61 }
 0x573   : > { %19135 = vst [vmem:[#allocation132_spill] sm:$0xff] %v16605_v26  ;;  %19137 = vst [vmem:[#allocation160_spill] sm:$0xff] %v16610_v57  ;;  %10378 = vmatprep.mubr.f32.mxu0 %v16605_v26  ;;  %v8174_v27 = vld [vmem:[#allocation3 + $0xc00] sm:$0xff]  ;;  %v11281_v26 = vpack.c.bf16 %v8209_v50, %v8208_v31  ;;  %v19143_v50 = vld [vmem:[#allocation107_spill] sm:$0xff] }
 0x574   : > { %10379 = vmatmul.mubr.f32.gmra.mrb[238].mxu0 %v16610_v57  ;;  %19139 = vst [vmem:[#allocation26_spill] sm:$0xff] %v16626_v33  ;;  %v11425_v57 = vld [vmem:[%s11636_s27 + $0x8] sm:$0xff]  ;;  %v11230_v36 = vpack.c.bf16 %v8175_v19, %v8174_v27  ;;  %v19142_v7 = vld [vmem:[#allocation60_spill] sm:$0xff]  ;;  %v19144_v31 = vld [vmem:[#allocation127_spill] sm:$0xff] }
 0x575   : > { %7104 = vmatmul.mubr.f32.gmra.mrb[252].mxu1 %v16615_v38  ;;  %7483 = vmatprep.mubr.f32.mxu0 %v11424_v13  ;;  %v19140_v38 = vld [vmem:[#allocation59_spill] sm:$0xff]  ;;  %v19145_v61 = vrot.slane %v19144_v31, 1  ;;  %v8178_v27 = vld [vmem:[#allocation3 + $0xc20] sm:$0xff] }
 0x576   : > { %7108 = vmatprep.mubr.f32.mxu1 %v16588_v59  ;;  %v8176_v13 = vld [vmem:[#allocation3 + $0xc10] sm:$0xff]  ;;  %v8210_v59 = vld [vmem:[#allocation3 + $0xd20] sm:$0xff] }
 0x577   : > { %v11285_v19 = vpack.c.bf16 %v8211_v34, %v8210_v59  ;;  %v8181_v34 = vld [vmem:[#allocation3 + $0xc38] sm:$0xff]  ;;  %v8215_v59 = vld [vmem:[#allocation3 + $0xd48] sm:$0xff] }
 0x578   : > { %7484 = vmatmul.mubr.f32.vlgmr.msra.gmra.mrb[240].mxu0 %v19140_v38  ;;  %v19146_v38 = vld [vmem:[#allocation10_spill] sm:$0xff] }
 0x579   : > { %7109 = vmatmul.mubr.f32.gmra.mrb[254].mxu1 %v16626_v33  ;;  %7488 = vmatprep.mubr.f32.mxu0 %v11425_v57  ;;  %v6500_v57 = vsel %vm555_vm0, %v19146_v38, %v19145_v61  ;;  %v8179_v33 = vld [vmem:[#allocation3 + $0xc28] sm:$0xff]  ;;  %v8180_v38 = vld [vmem:[#allocation3 + $0xc30] sm:$0xff] }
 0x57a   : > { %10413 = vmatprep.mubr.f32.mxu1 %v19141_v14  ;;  %11280 = vmatpush3.bf16.msra.mxu0 %v15983_v12  ;;  %v11426_v14 = vld [vmem:[%s11636_s27 + $0x10] sm:$0xff]  ;;  %v11233_v12 = vpack.c.bf16 %v8177_v11, %v8176_v13  ;;  %v19149_v61 = vld [vmem:[#allocation57_spill] sm:$0xff] }
 0x57b   : > { %11282 = vmatprep.subr.bf16.mxu0 %v11281_v26  ;;  %v8214_v11 = vld [vmem:[#allocation3 + $0xd40] sm:$0xff]  ;;  %v19152_v13 = vld [vmem:[#allocation22_spill] sm:$0xff] }
 0x57c   : > { %7489 = vmatmul.mubr.f32.gmra.mrb[242].mxu0 %v19142_v7  ;;  %v8212_v7 = vld [vmem:[#allocation3 + $0xd30] sm:$0xff] }
 0x57d   : > { %10414 = vmatmul.mubr.f32.vlgmr.msra.gmra.mrb[0].mxu1 %v19143_v50  ;;  %7493 = vmatprep.mubr.f32.mxu0 %v11426_v14  ;;  %v19147_v50 = vld [vmem:[#allocation61_spill] sm:$0xff]  ;;  %v11293_v14 = vpack.c.bf16 %v8215_v59, %v8214_v11 }
 0x57e   : > { %10416 = vmatprep.mubr.f32.mxu1 %v6500_v57  ;;  %11231 = vmatpush1.bf16.msra.mxu1 %v11230_v36  ;;  %v11236_v36 = vpack.c.bf16 %v8179_v33, %v8178_v27  ;;  %v11289_v57 = vpack.c.bf16 %v8213_v56, %v8212_v7  ;;  %v8182_v33 = vld [vmem:[#allocation3 + $0xc40] sm:$0xff]  ;;  %v8183_v56 = vld [vmem:[#allocation3 + $0xc48] sm:$0xff]  ;;  %v8217_v27 = vld [vmem:[#allocation3 + $0xd58] sm:$0xff] }
 0x57f   : > { %11232 = vmatprep.subr.bf16.mxu1 %v18551_v22  ;;  %11284 = vmatpush3.bf16.msra.mxu0 %v11281_v26  ;;  %v19150_v26 = vld [vmem:[#allocation121_spill] sm:$0xff]  ;;  %v19154_v7 = vld [vmem:[#allocation44_spill] sm:$0xff] }
 0x580   : > { %7494 = vmatmul.mubr.f32.gmra.mrb[244].mxu0 %v19147_v50  ;;  %11286 = vmatprep.subr.bf16.mxu0 %v11285_v19  ;;  %v11242_v50 = vpack.c.bf16 %v8183_v56, %v8182_v33  ;;  %v8218_v11 = vld [vmem:[#allocation3 + $0xd60] sm:$0xff]  ;;  %v8219_v59 = vld [vmem:[#allocation3 + $0xd68] sm:$0xff] }
 0x581   : > { %10417 = vmatmul.mubr.f32.gmra.mrb[2].mxu1 %v19148_v29  ;;  %7498 = vmatprep.mubr.f32.mxu0 %v19144_v31  ;;  %v19151_v29 = vld [vmem:[#allocation38_spill] sm:$0xff]  ;;  %v11239_v31 = vpack.c.bf16 %v8181_v34, %v8180_v38  ;;  %v8185_v38 = vld [vmem:[#allocation3 + $0xc58] sm:$0xff]  ;;  %v11301_v33 = vpack.c.bf16 %v8219_v59, %v8218_v11 }
 0x582   : > { %10419 = vmatprep.mubr.f32.mxu1 %v19149_v61  ;;  %11234 = vmatpush1.bf16.msra.mxu1 %v11233_v12  ;;  %v8216_v12 = vld [vmem:[#allocation3 + $0xd50] sm:$0xff]  ;;  %v8189_v59 = vld [vmem:[#allocation3 + $0xc78] sm:$0xff] }
 0x583   : > { %11235 = vmatprep.subr.bf16.mxu1 %v18551_v22  ;;  %11288 = vmatpush3.bf16.msra.mxu0 %v11285_v19  ;;  %v19153_v19 = vld [vmem:[#allocation116_spill] sm:$0xff]  ;;  %v11297_v61 = vpack.c.bf16 %v8217_v27, %v8216_v12  ;;  %v19157_v34 = vld [vmem:[#allocation66_spill] sm:$0xff] }
 0x584   : > { %7499 = vmatmul.mubr.f32.gmra.mrb[246].mxu0 %v19150_v26  ;;  %11290 = vmatprep.subr.bf16.mxu0 %v11289_v57  ;;  %v19158_v26 = vld [vmem:[#allocation113_spill] sm:$0xff]  ;;  %v8188_v11 = vld [vmem:[#allocation3 + $0xc70] sm:$0xff] }
 0x585   : > { %10420 = vmatmul.mubr.f32.gmra.mrb[4].mxu1 %v15600_v2  ;;  %7503 = vmatprep.mubr.f32.mxu0 %v19151_v29  ;;  %v19155_v2 = vld [vmem:[#allocation130_spill] sm:$0xff]  ;;  %v19159_v29 = vld [vmem:[#allocation117_spill] sm:$0xff] }
 0x586   : > { %10422 = vmatprep.mubr.f32.mxu1 %v19152_v13  ;;  %11237 = vmatpush1.bf16.msra.mxu1 %v11236_v36  ;;  %v8184_v36 = vld [vmem:[#allocation3 + $0xc50] sm:$0xff]  ;;  %v8186_v12 = vld [vmem:[#allocation3 + $0xc60] sm:$0xff]  ;;  %v8187_v27 = vld [vmem:[#allocation3 + $0xc68] sm:$0xff] }
 0x587   : > { %11238 = vmatprep.subr.bf16.mxu1 %v18551_v22  ;;  %11292 = vmatpush3.bf16.msra.mxu0 %v11289_v57  ;;  %v19156_v57 = vld [vmem:[#allocation21_spill] sm:$0xff]  ;;  %v19175_v13 = vld [vmem:[#allocation18_spill] sm:$0xff] }
 0x588   : > { %7504 = vmatmul.mubr.f32.gmra.mrb[248].mxu0 %v19153_v19  ;;  %11294 = vmatprep.subr.bf16.mxu0 %v11293_v14  ;;  %v19160_v19 = vld [vmem:[#allocation39_spill] sm:$0xff] }
 0x589   : > { %10423 = vmatmul.mubr.f32.gmra.mrb[6].mxu1 %v19154_v7  ;;  %7508 = vmatprep.mubr.f32.mxu0 %v19155_v2  ;;  %v19161_v2 = vld [vmem:[#allocation79_spill] sm:$0xff]  ;;  %v19172_v7 = vld [vmem:[#allocation74_spill] sm:$0xff] }
 0x58a   : > { %10425 = vmatprep.mubr.f32.mxu1 %v15677_v40  ;;  %11240 = vmatpush1.bf16.msra.mxu1 %v11239_v31  ;;  %v11245_v31 = vpack.c.bf16 %v8185_v38, %v8184_v36 }
 0x58b   : > { %11241 = vmatprep.subr.bf16.mxu1 %v18551_v22  ;;  %11296 = vmatpush3.bf16.msra.mxu0 %v11293_v14 }
 0x58c   : > { %7509 = vmatmul.mubr.f32.gmra.mrb[250].mxu0 %v19156_v57  ;;  %11298 = vmatprep.subr.bf16.mxu0 %v11297_v61  ;;  %v19162_v57 = vld [vmem:[#allocation55_spill] sm:$0xff] }
 0x58d   : > { %10426 = vmatmul.mubr.f32.gmra.mrb[8].mxu1 %v19157_v34  ;;  %7513 = vmatprep.mubr.f32.mxu0 %v19158_v26  ;;  %v19165_v34 = vld [vmem:[#allocation80_spill] sm:$0xff] }
 0x58e   : > { %10428 = vmatprep.mubr.f32.mxu1 %v19159_v29  ;;  %11243 = vmatpush1.bf16.msra.mxu1 %v11242_v50  ;;  %v11248_v50 = vpack.c.bf16 %v8187_v27, %v8186_v12  ;;  %v19169_v12 = vld [vmem:[#allocation45_spill] sm:$0xff]  ;;  %v11251_v27 = vpack.c.bf16 %v8189_v59, %v8188_v11  ;;  %v8192_v11 = vld [vmem:[#allocation3 + $0xc90] sm:$0xff]  ;;  %v8193_v59 = vld [vmem:[#allocation3 + $0xc98] sm:$0xff] }
 0x58f   : > { %11244 = vmatprep.subr.bf16.mxu1 %v18551_v22  ;;  %11300 = vmatpush3.bf16.msra.mxu0 %v11297_v61 }
 0x590   : > { %v6875_v56 = vpop.f32.mrb[160].mxu1  ;;  %7514 = vmatmul.mubr.f32.gmra.mrb[252].mxu0 %v19160_v19  ;;  %11302 = vmatprep.subr.bf16.mxu0 %v11301_v33 }
 0x591   : > { %v6877_v14 = vpop.f32.mrb[161].mxu1  ;;  %10429 = vmatmul.mubr.f32.gmra.mrb[10].mxu1 %v19161_v2  ;;  %7518 = vmatprep.mubr.f32.mxu0 %v19162_v57  ;;  %v19166_v2 = vld [vmem:[#allocation68_spill] sm:$0xff] }
 0x592   : > { %10431 = vmatprep.mubr.f32.mxu1 %v19163_v62  ;;  %11246 = vmatpush1.bf16.msra.mxu1 %v11245_v31  ;;  %v19168_v31 = vld [vmem:[#allocation105_spill] sm:$0xff] }
 0x593   : > { %11247 = vmatprep.subr.bf16.mxu1 %v18551_v22  ;;  %11304 = vmatpush3.bf16.msra.mxu0 %v11301_v33  ;;  %v8190_v33 = vld [vmem:[#allocation3 + $0xc80] sm:$0xff] }
 0x594   : > { %v6880_v36 = vpop.f32.mrb[162].mxu1  ;;  %v10311_v38 = vpop.f32.mrb[192].mxu0  ;;  %7519 = vmatmul.mubr.f32.gmra.mrb[254].mxu0 %v19165_v34 }
 0x595   : > { %v16667_v61 = vadd.f32 %v10311_v38, %v6880_v36  ;;  %v6882_v14 = vpop.f32.mrb[163].mxu1  ;;  %v7180_v29 = vpop.f32.mrb[193].mxu0  ;;  %10432 = vmatmul.mubr.f32.gmra.mrb[12].mxu1 %v19166_v2  ;;  %7523 = vmatprep.mubr.f32.mxu0 %v19168_v31  ;;  %v8191_v36 = vld [vmem:[#allocation3 + $0xc88] sm:$0xff] }
 0x596   : > { %v16671_v40 = vadd.f32 %v7180_v29, %v6875_v56  ;;  %10434 = vmatprep.mubr.f32.mxu1 %v19169_v12  ;;  %11249 = vmatpush1.bf16.msra.mxu1 %v11248_v50  ;;  %v19170_v14 = vld [vmem:[#allocation110_spill] sm:$0xff]  ;;  %v11254_v56 = vpack.c.bf16 %v8191_v36, %v8190_v33  ;;  %v8194_v36 = vld [vmem:[#allocation3 + $0xca0] sm:$0xff] }
 0x597   : > { %19164 = vst [vmem:[#allocation47_spill] sm:$0xff] %v16667_v61  ;;  %11250 = vmatprep.subr.bf16.mxu1 %v18551_v22  ;;  %v19171_v61 = vld [vmem:[#allocation115_spill] sm:$0xff] }
 0x598   : > { %19167 = vst [vmem:[#allocation95_spill] sm:$0xff] %v16671_v40  ;;  %v6885_v62 = vpop.f32.mrb[164].mxu1  ;;  %7524 = vmatmul.mubr.f32.gmra.mrb[0].mxu0 %v19170_v14 }
 0x599   : > { %v6887_v38 = vpop.f32.mrb[165].mxu1  ;;  %10435 = vmatmul.mubr.f32.gmra.mrb[14].mxu1 %v19171_v61  ;;  %7528 = vmatprep.mubr.f32.mxu0 %v19172_v7  ;;  %v19176_v61 = vld [vmem:[#allocation17_spill] sm:$0xff] }
 0x59a   : > { %10437 = vmatprep.mubr.f32.mxu1 %v15886_v28  ;;  %11252 = vmatpush1.bf16.msra.mxu1 %v11251_v27  ;;  %v19177_v28 = vld [vmem:[#allocation27_spill] sm:$0xff]  ;;  %v11257_v27 = vpack.c.bf16 %v8193_v59, %v8192_v11 }
 0x59b   : > { %v10314_v29 = vpop.f32.mrb[194].mxu0  ;;  %11253 = vmatprep.subr.bf16.mxu1 %v18551_v22  ;;  %v8196_v11 = vld [vmem:[#allocation3 + $0xcb0] sm:$0xff]  ;;  %v8197_v59 = vld [vmem:[#allocation3 + $0xcb8] sm:$0xff] }
 0x59c   : > { %v6890_v40 = vpop.f32.mrb[166].mxu1  ;;  %v7190_v50 = vpop.f32.mrb[195].mxu0  ;;  %7529 = vmatmul.mubr.f32.gmra.mrb[2].mxu0 %v19175_v13 }
 0x59d   : > { %v16681_v12 = vadd.f32 %v10314_v29, %v6890_v40  ;;  %v16683_v38 = vadd.f32 %v7190_v50, %v6885_v62  ;;  %v6892_v2 = vpop.f32.mrb[167].mxu1  ;;  %10438 = vmatmul.mubr.f32.gmra.mrb[16].mxu1 %v15912_v10  ;;  %7533 = vmatprep.mubr.f32.mxu0 %v19176_v61  ;;  %v19178_v29 = vld [vmem:[#allocation67_spill] sm:$0xff] }
 0x59e   : > { %10440 = vmatprep.mubr.f32.mxu1 %v19177_v28  ;;  %11255 = vmatpush1.bf16.msra.mxu1 %v11254_v56  ;;  %v19179_v62 = vld [vmem:[#allocation103_spill] sm:$0xff]  ;;  %v19180_v2 = vld [vmem:[#allocation100_spill] sm:$0xff] }
 0x59f   : > { %19173 = vst [vmem:[#allocation109_spill] sm:$0xff] %v16681_v12  ;;  %19174 = vst [vmem:[#allocation51_spill] sm:$0xff] %v16683_v38  ;;  %11256 = vmatprep.subr.bf16.mxu1 %v18551_v22  ;;  %v11260_v12 = vpack.c.bf16 %v8195_v23, %v8194_v36 }
 0x5a0   : > { %v6895_v33 = vpop.f32.mrb[168].mxu1  ;;  %7534 = vmatmul.mubr.f32.gmra.mrb[4].mxu0 %v19178_v29 }
 0x5a1   : > { %v6897_v40 = vpop.f32.mrb[169].mxu1  ;;  %10441 = vmatmul.mubr.f32.gmra.mrb[18].mxu1 %v19179_v62  ;;  %7538 = vmatprep.mubr.f32.mxu0 %v19180_v2  ;;  %v8220_v62 = vld [vmem:[#allocation3 + $0xd70] sm:$0xff] }
 0x5a2   : > { %10443 = vmatprep.mubr.f32.mxu1 %v15993_v42  ;;  %11258 = vmatpush1.bf16.msra.mxu1 %v11257_v27  ;;  %v8221_v42 = vld [vmem:[#allocation3 + $0xd78] sm:$0xff]  ;;  %v11263_v27 = vpack.c.bf16 %v8197_v59, %v8196_v11  ;;  %v8200_v11 = vld [vmem:[#allocation3 + $0xcd0] sm:$0xff] }
 0x5a3   : > { %v10317_v50 = vpop.f32.mrb[196].mxu0  ;;  %11259 = vmatprep.subr.bf16.mxu1 %v18551_v22  ;;  %v11305_v23 = vpack.c.bf16 %v8221_v42, %v8220_v62  ;;  %v8201_v59 = vld [vmem:[#allocation3 + $0xcd8] sm:$0xff] }
 0x5a4   : > { %v6900_v38 = vpop.f32.mrb[170].mxu1  ;;  %v7200_v56 = vpop.f32.mrb[197].mxu0  ;;  %7539 = vmatmul.mubr.f32.gmra.mrb[6].mxu0 %v19183_v52 }
 0x5a5   : > { %v16695_v28 = vadd.f32 %v10317_v50, %v6900_v38  ;;  %v16697_v40 = vadd.f32 %v7200_v56, %v6895_v33  ;;  %v6902_v10 = vpop.f32.mrb[171].mxu1  ;;  %10444 = vmatmul.mubr.f32.gmra.mrb[20].mxu1 %v16019_v4  ;;  %7543 = vmatprep.mubr.f32.mxu0 %v19184_v16  ;;  %v8198_v38 = vld [vmem:[#allocation3 + $0xcc0] sm:$0xff]  ;;  %v8199_v33 = vld [vmem:[#allocation3 + $0xcc8] sm:$0xff] }
 0x5a6   : > { %10446 = vmatprep.mubr.f32.mxu1 %v16042_v54  ;;  %11261 = vmatpush1.bf16.msra.mxu1 %v11260_v12  ;;  %v19185_v50 = vld [vmem:[#allocation86_spill] sm:$0xff]  ;;  %v19186_v56 = vld [vmem:[#allocation128_spill] sm:$0xff]  ;;  %v11266_v42 = vpack.c.bf16 %v8199_v33, %v8198_v38 }
 0x5a7   : > { %19181 = vst [vmem:[#allocation35_spill] sm:$0xff] %v16695_v28  ;;  %19182 = vst [vmem:[#allocation88_spill] sm:$0xff] %v16697_v40  ;;  %11262 = vmatprep.subr.bf16.mxu1 %v18551_v22  ;;  %11306 = vmatprep.subr.bf16.mxu0 %v11305_v23  ;;  %v19187_v28 = vld [vmem:[#allocation19_spill] sm:$0xff]  ;;  %v8202_v38 = vld [vmem:[#allocation3 + $0xce0] sm:$0xff] }
 0x5a8   : > { %v6905_v36 = vpop.f32.mrb[172].mxu1  ;;  %7544 = vmatmul.mubr.f32.gmra.mrb[8].mxu0 %v19185_v50  ;;  %v8203_v33 = vld [vmem:[#allocation3 + $0xce8] sm:$0xff] }
 0x5a9   : > { %v6907_v10 = vpop.f32.mrb[173].mxu1  ;;  %10447 = vmatmul.mubr.f32.gmra.mrb[22].mxu1 %v19186_v56  ;;  %7548 = vmatprep.mubr.f32.mxu0 %v19187_v28  ;;  %v19190_v56 = vld [vmem:[#allocation20_spill] sm:$0xff] }
 0x5aa   : > { %10449 = vmatprep.mubr.f32.mxu1 %v16090_v17  ;;  %11264 = vmatpush1.bf16.msra.mxu1 %v11263_v27  ;;  %v19191_v17 = vld [vmem:[#allocation112_spill] sm:$0xff] }
 0x5ab   : > { %v10320_v40 = vpop.f32.mrb[198].mxu0  ;;  %11308 = vmatpush3.bf16.msra.mxu0 %v11305_v23  ;;  %11265 = vmatprep.subr.bf16.mxu1 %v18551_v22  ;;  %v11269_v23 = vpack.c.bf16 %v8201_v59, %v8200_v11  ;;  %v8204_v11 = vld [vmem:[#allocation3 + $0xcf0] sm:$0xff]  ;;  %v8205_v59 = vld [vmem:[#allocation3 + $0xcf8] sm:$0xff] }
 0x5ac   : > { %v6910_v12 = vpop.f32.mrb[174].mxu1  ;;  %v7210_v62 = vpop.f32.mrb[199].mxu0  ;;  %7549 = vmatmul.mubr.f32.gmra.mrb[10].mxu0 %v19190_v56 }
 0x5ad   : > { %v16709_v54 = vadd.f32 %v10320_v40, %v6910_v12  ;;  %v16711_v10 = vadd.f32 %v7210_v62, %v6905_v36  ;;  %v6912_v4 = vpop.f32.mrb[175].mxu1  ;;  %10450 = vmatmul.mubr.f32.gmra.mrb[24].mxu1 %v16113_v30  ;;  %7553 = vmatprep.mubr.f32.mxu0 %v19191_v17  ;;  %v19192_v12 = vld [vmem:[#allocation14_spill] sm:$0xff]  ;;  %v11272_v62 = vpack.c.bf16 %v8203_v33, %v8202_v38  ;;  %v19196_v30 = vld [vmem:[#allocation16_spill] sm:$0xff] }
 0x5ae   : > { %10452 = vmatprep.mubr.f32.mxu1 %v16134_v25  ;;  %11267 = vmatpush1.bf16.msra.mxu1 %v11266_v42  ;;  %v19193_v4 = vld [vmem:[#allocation123_spill] sm:$0xff] }
 0x5af   : > { %19188 = vst [vmem:[#allocation114_spill] sm:$0xff] %v16709_v54  ;;  %19189 = vst [vmem:[#allocation50_spill] sm:$0xff] %v16711_v10  ;;  %11268 = vmatprep.subr.bf16.mxu1 %v18551_v22 }
 0x5b0   : > { %v6915_v27 = vpop.f32.mrb[176].mxu1  ;;  %7554 = vmatmul.mubr.f32.gmra.mrb[12].mxu0 %v19192_v12 }
 0x5b1   : > { %v6917_v40 = vpop.f32.mrb[177].mxu1  ;;  %10453 = vmatmul.mubr.f32.gmra.mrb[26].mxu1 %v16155_v0  ;;  %7558 = vmatprep.mubr.f32.mxu0 %v19193_v4  ;;  %v19197_v0 = vld [vmem:[#allocation56_spill] sm:$0xff] }
 0x5b2   : > { %10455 = vmatprep.mubr.f32.mxu1 %v16176_v51  ;;  %11270 = vmatpush1.bf16.msra.mxu1 %v11269_v23  ;;  %v11275_v23 = vpack.c.bf16 %v8205_v59, %v8204_v11  ;;  %v19198_v51 = vld [vmem:[#allocation96_spill] sm:$0xff]  ;;  %v19202_v59 = vld [vmem:[#allocation49_spill] sm:$0xff] }
 0x5b3   : > { %v10323_v36 = vpop.f32.mrb[200].mxu0  ;;  %11271 = vmatprep.subr.bf16.mxu1 %v18551_v22 }
 0x5b4   : > { %v6920_v54 = vpop.f32.mrb[178].mxu1  ;;  %v7220_v42 = vpop.f32.mrb[201].mxu0  ;;  %7559 = vmatmul.mubr.f32.gmra.mrb[14].mxu0 %v19196_v30 }
 0x5b5   : > { %v16723_v10 = vadd.f32 %v10323_v36, %v6920_v54  ;;  %v16725_v40 = vadd.f32 %v7220_v42, %v6915_v27  ;;  %v6922_v25 = vpop.f32.mrb[179].mxu1  ;;  %10456 = vmatmul.mubr.f32.gmra.mrb[28].mxu1 %v16197_v1  ;;  %7563 = vmatprep.mubr.f32.mxu0 %v19197_v0  ;;  %v19199_v54 = vld [vmem:[#allocation13_spill] sm:$0xff] }
 0x5b6   : > { %10458 = vmatprep.mubr.f32.mxu1 %v16218_v24  ;;  %11273 = vmatpush1.bf16.msra.mxu1 %v11272_v62 }
 0x5b7   : > { %19194 = vst [vmem:[#allocation40_spill] sm:$0xff] %v16723_v10  ;;  %19195 = vst [vmem:[#allocation101_spill] sm:$0xff] %v16725_v40  ;;  %11274 = vmatprep.subr.bf16.mxu1 %v18551_v22  ;;  %v19203_v22 = vld [vmem:[#allocation90_spill] sm:$0xff]  ;;  %v19204_v40 = vld [vmem:[#allocation72_spill] sm:$0xff] }
 0x5b8   : > { %v6925_v38 = vpop.f32.mrb[180].mxu1  ;;  %7564 = vmatmul.mubr.f32.gmra.mrb[16].mxu0 %v19198_v51 }
 0x5b9   : > { %v6927_v33 = vpop.f32.mrb[181].mxu1  ;;  %10459 = vmatmul.mubr.f32.gmra.mrb[30].mxu1 %v16239_v53  ;;  %7568 = vmatprep.mubr.f32.mxu0 %v19199_v54 }
 0x5ba   : > { %10461 = vmatprep.mubr.f32.mxu1 %v16260_v8  ;;  %11276 = vmatpush1.bf16.msra.mxu1 %v11275_v23  ;;  %v19205_v23 = vld [vmem:[#allocation30_spill] sm:$0xff] }
 0x5bb   : > { %v10326_v25 = vpop.f32.mrb[202].mxu0 }
 0x5bc   : > { %v6930_v27 = vpop.f32.mrb[182].mxu1  ;;  %v7230_v36 = vpop.f32.mrb[203].mxu0  ;;  %7569 = vmatmul.mubr.f32.gmra.mrb[18].mxu0 %v19202_v59 }
 0x5bd   : > { %v16736_v42 = vadd.f32 %v10326_v25, %v6930_v27  ;;  %v16738_v62 = vadd.f32 %v7230_v36, %v6925_v38  ;;  %v6932_v11 = vpop.f32.mrb[183].mxu1  ;;  %10462 = vmatmul.mubr.f32.gmra.mrb[32].mxu1 %v16281_v3  ;;  %7573 = vmatprep.mubr.f32.mxu0 %v19203_v22  ;;  %v19210_v3 = vld [vmem:[#allocation37_spill] sm:$0xff] }
 0x5be   : > { %10464 = vmatprep.mubr.f32.mxu1 %v16302_v39 }
 0x5bf   : > { %19200 = vst [vmem:[#allocation77_spill] sm:$0xff] %v16736_v42  ;;  %19201 = vst [vmem:[#allocation106_spill] sm:$0xff] %v16738_v62  ;;  %v19208_v62 = vld [vmem:[#allocation65_spill] sm:$0xff] }
 0x5c0   : > { %v6935_v33 = vpop.f32.mrb[184].mxu1  ;;  %7574 = vmatmul.mubr.f32.gmra.mrb[20].mxu0 %v19204_v40 }
 0x5c1   : > { %v6937_v10 = vpop.f32.mrb[185].mxu1  ;;  %10465 = vmatmul.mubr.f32.gmra.mrb[34].mxu1 %v16323_v37  ;;  %7578 = vmatprep.mubr.f32.mxu0 %v19205_v23 }
 0x5c2   : > { %10467 = vmatprep.mubr.f32.mxu1 %v16344_v49  ;;  %v19209_v10 = vld [vmem:[#allocation48_spill] sm:$0xff]  ;;  %v19211_v49 = vld [vmem:[#allocation118_spill] sm:$0xff] }
 0x5c3   : > { %v10329_v38 = vpop.f32.mrb[204].mxu0 }
 0x5c4   : > { %v6940_v25 = vpop.f32.mrb[186].mxu1  ;;  %v7240_v27 = vpop.f32.mrb[205].mxu0  ;;  %7579 = vmatmul.mubr.f32.gmra.mrb[22].mxu0 %v19208_v62 }
 0x5c5   : > { %v16748_v36 = vadd.f32 %v10329_v38, %v6940_v25  ;;  %v16750_v11 = vadd.f32 %v7240_v27, %v6935_v33  ;;  %v6942_v42 = vpop.f32.mrb[187].mxu1  ;;  %10468 = vmatmul.mubr.f32.gmra.mrb[36].mxu1 %v16365_v63  ;;  %7583 = vmatprep.mubr.f32.mxu0 %v19209_v10  ;;  %v19216_v63 = vld [vmem:[#allocation32_spill] sm:$0xff] }
 0x5c6   : > { %10470 = vmatprep.mubr.f32.mxu1 %v16386_v35 }
 0x5c7   : > { %19206 = vst [vmem:[#allocation53_spill] sm:$0xff] %v16748_v36  ;;  %19207 = vst [vmem:[#allocation59_spill] sm:$0xff] %v16750_v11  ;;  %v19214_v11 = vld [vmem:[#allocation33_spill] sm:$0xff] }
 0x5c8   : > { %v6945_v37 = vpop.f32.mrb[188].mxu1  ;;  %7584 = vmatmul.mubr.f32.gmra.mrb[24].mxu0 %v19210_v3 }
 0x5c9   : > { %v6947_v39 = vpop.f32.mrb[189].mxu1  ;;  %10471 = vmatmul.mubr.f32.gmra.mrb[38].mxu1 %v16407_v48  ;;  %7588 = vmatprep.mubr.f32.mxu0 %v19211_v49 }
 0x5ca   : > { %10473 = vmatprep.mubr.f32.mxu1 %v16428_v43  ;;  %v19215_v39 = vld [vmem:[#allocation122_spill] sm:$0xff] }
 0x5cb   : > { %v10332_v33 = vpop.f32.mrb[206].mxu0  ;;  %v19217_v43 = vld [vmem:[#allocation54_spill] sm:$0xff] }
 0x5cc   : > { %v6950_v42 = vpop.f32.mrb[190].mxu1  ;;  %v7250_v38 = vpop.f32.mrb[207].mxu0  ;;  %7589 = vmatmul.mubr.f32.gmra.mrb[26].mxu0 %v19214_v11 }
 0x5cd   : > { %v16760_v25 = vadd.f32 %v10332_v33, %v6950_v42  ;;  %v16762_v27 = vadd.f32 %v7250_v38, %v6945_v37  ;;  %v6952_v36 = vpop.f32.mrb[191].mxu1  ;;  %10474 = vmatmul.mubr.f32.gmra.mrb[40].mxu1 %v16449_v46  ;;  %7593 = vmatprep.mubr.f32.mxu0 %v19215_v39 }
 0x5ce   : > { %10476 = vmatprep.mubr.f32.mxu1 %v16470_v9 }
 0x5cf   : > { %19212 = vst [vmem:[#allocation104_spill] sm:$0xff] %v16760_v25  ;;  %19213 = vst [vmem:[#allocation60_spill] sm:$0xff] %v16762_v27 }
 0x5d0   : > { %v6955_v48 = vpop.f32.mrb[192].mxu1  ;;  %7594 = vmatmul.mubr.f32.gmra.mrb[28].mxu0 %v19216_v63 }
 0x5d1   : > { %v6957_v35 = vpop.f32.mrb[193].mxu1  ;;  %10477 = vmatmul.mubr.f32.gmra.mrb[42].mxu1 %v16491_v18  ;;  %7598 = vmatprep.mubr.f32.mxu0 %v19217_v43  ;;  %v19220_v18 = vld [vmem:[#allocation23_spill] sm:$0xff] }
 0x5d2   : > { %10479 = vmatprep.mubr.f32.mxu1 %v16512_v15  ;;  %v19221_v15 = vld [vmem:[#allocation124_spill] sm:$0xff] }
 0x5d3   : > { %v10335_v37 = vpop.f32.mrb[208].mxu0 }
 0x5d4   : > { %v6960_v36 = vpop.f32.mrb[194].mxu1  ;;  %v7260_v33 = vpop.f32.mrb[209].mxu0  ;;  %7599 = vmatmul.mubr.f32.gmra.mrb[30].mxu0 %v16077_v5 }
 0x5d5   : > { %v16772_v42 = vadd.f32 %v10335_v37, %v6960_v36  ;;  %v16774_v38 = vadd.f32 %v7260_v33, %v6955_v48  ;;  %v6962_v25 = vpop.f32.mrb[195].mxu1  ;;  %10480 = vmatmul.mubr.f32.gmra.mrb[44].mxu1 %v16533_v6  ;;  %7603 = vmatprep.mubr.f32.mxu0 %v16036_v45 }
 0x5d6   : > { %10482 = vmatprep.mubr.f32.mxu1 %v16554_v58 }
 0x5d7   : > { %19218 = vst [vmem:[#allocation107_spill] sm:$0xff] %v16772_v42  ;;  %19219 = vst [vmem:[#allocation127_spill] sm:$0xff] %v16774_v38 }
 0x5d8   : > { %v6965_v35 = vpop.f32.mrb[196].mxu1  ;;  %7604 = vmatmul.mubr.f32.gmra.mrb[32].mxu0 %v19220_v18 }
 0x5d9   : > { %v6967_v27 = vpop.f32.mrb[197].mxu1  ;;  %10483 = vmatmul.mubr.f32.gmra.mrb[46].mxu1 %v16574_v20  ;;  %7608 = vmatprep.mubr.f32.mxu0 %v19221_v15 }
 0x5da   : > { %8286 = vmatprep.mubr.f32.mxu1 %v19158_v26  ;;  %v10338_v48 = vpop.f32.mrb[210].mxu0  ;;  %v19222_v27 = vld [vmem:[#allocation42_spill] sm:$0xff]  ;;  %v19223_v26 = vld [vmem:[#allocation133_spill] sm:$0xff] }
 0x5db   : > { %v7270_v37 = vpop.f32.mrb[211].mxu0 }
 0x5dc   : > { %v6970_v25 = vpop.f32.mrb[198].mxu1  ;;  %v16786_v33 = vadd.f32 %v7270_v37, %v6965_v35  ;;  %7609 = vmatmul.mubr.f32.gmra.mrb[34].mxu0 %v16121_v32 }
 0x5dd   : > { %v16784_v36 = vadd.f32 %v10338_v48, %v6970_v25  ;;  %v6972_v42 = vpop.f32.mrb[199].mxu1  ;;  %8287 = vmatmul.mubr.f32.vlgmr.msra.gmra.mrb[48].mxu1 %v19160_v19  ;;  %7613 = vmatprep.mubr.f32.mxu0 %v19222_v27 }
 0x5de   : > { %8291 = vmatprep.mubr.f32.mxu1 %v19162_v57 }
 0x5e0   : > { %v6975_v38 = vpop.f32.mrb[200].mxu1  ;;  %7614 = vmatmul.mubr.f32.gmra.mrb[36].mxu0 %v16142_v44 }
 0x5e1   : > { %v6977_v20 = vpop.f32.mrb[201].mxu1  ;;  %8292 = vmatmul.mubr.f32.gmra.mrb[50].mxu1 %v19165_v34  ;;  %7618 = vmatprep.mubr.f32.mxu0 %v19223_v26 }
 0x5e2   : > { %8296 = vmatprep.mubr.f32.mxu1 %v19168_v31  ;;  %v10341_v35 = vpop.f32.mrb[212].mxu0  ;;  %v19225_v20 = vld [vmem:[#allocation25_spill] sm:$0xff]  ;;  %v19226_v31 = vld [vmem:[#allocation131_spill] sm:$0xff] }
 0x5e3   : > { %v7280_v48 = vpop.f32.mrb[213].mxu0 }
 0x5e4   : > { %v6980_v42 = vpop.f32.mrb[202].mxu1  ;;  %v16798_v19 = vadd.f32 %v7280_v48, %v6975_v38  ;;  %7619 = vmatmul.mubr.f32.gmra.mrb[38].mxu0 %v16163_v55 }
 0x5e5   : > { %v16796_v25 = vadd.f32 %v10341_v35, %v6980_v42  ;;  %v6982_v37 = vpop.f32.mrb[203].mxu1  ;;  %8297 = vmatmul.mubr.f32.gmra.mrb[52].mxu1 %v19170_v14  ;;  %7623 = vmatprep.mubr.f32.mxu0 %v19225_v20 }
 0x5e6   : > { %8301 = vmatprep.mubr.f32.mxu1 %v19172_v7  ;;  %v19229_v7 = vld [vmem:[#allocation134_spill] sm:$0xff] }
 0x5e7   : > { %19224 = vst [vmem:[#allocation10_spill] sm:$0xff] %v16796_v25  ;;  %v19228_v25 = vld [vmem:[#allocation135_spill] sm:$0xff] }
 0x5e8   : > { %v6985_v34 = vpop.f32.mrb[204].mxu1  ;;  %7624 = vmatmul.mubr.f32.gmra.mrb[40].mxu0 %v16184_v21 }
 0x5e9   : > { %v6987_v57 = vpop.f32.mrb[205].mxu1  ;;  %8302 = vmatmul.mubr.f32.gmra.mrb[54].mxu1 %v19175_v13  ;;  %7628 = vmatprep.mubr.f32.mxu0 %v19226_v31 }
 0x5ea   : > { %8306 = vmatprep.mubr.f32.mxu1 %v19176_v61  ;;  %v10344_v38 = vpop.f32.mrb[214].mxu0  ;;  %v19230_v61 = vld [vmem:[#allocation138_spill] sm:$0xff] }
 0x5eb   : > { %v7290_v42 = vpop.f32.mrb[215].mxu0 }
 0x5ec   : > { %v6990_v35 = vpop.f32.mrb[206].mxu1  ;;  %v16810_v14 = vadd.f32 %v7290_v42, %v6985_v34  ;;  %7629 = vmatmul.mubr.f32.gmra.mrb[42].mxu0 %v19228_v25 }
 0x5ed   : > { %v16808_v48 = vadd.f32 %v10344_v38, %v6990_v35  ;;  %v6992_v37 = vpop.f32.mrb[207].mxu1  ;;  %8307 = vmatmul.mubr.f32.gmra.mrb[56].mxu1 %v19178_v29  ;;  %7633 = vmatprep.mubr.f32.mxu0 %v19229_v7 }
 0x5ee   : > { %8311 = vmatprep.mubr.f32.mxu1 %v19180_v2  ;;  %v19233_v2 = vld [vmem:[#allocation87_spill] sm:$0xff] }
 0x5ef   : > { %19227 = vst [vmem:[#allocation61_spill] sm:$0xff] %v16808_v48  ;;  %v19232_v48 = vld [vmem:[#allocation28_spill] sm:$0xff] }
 0x5f0   : > { %v6995_v13 = vpop.f32.mrb[208].mxu1  ;;  %7634 = vmatmul.mubr.f32.gmra.mrb[44].mxu0 %v16226_v47 }
 0x5f1   : > { %v6997_v57 = vpop.f32.mrb[209].mxu1  ;;  %8312 = vmatmul.mubr.f32.gmra.mrb[58].mxu1 %v19183_v52  ;;  %7638 = vmatprep.mubr.f32.mxu0 %v19230_v61 }
 0x5f2   : > { %8316 = vmatprep.mubr.f32.mxu1 %v19184_v16  ;;  %v10347_v34 = vpop.f32.mrb[216].mxu0  ;;  %v19234_v16 = vld [vmem:[#allocation137_spill] sm:$0xff] }
 0x5f3   : > { %v7300_v35 = vpop.f32.mrb[217].mxu0 }
 0x5f4   : > { %v7000_v38 = vpop.f32.mrb[210].mxu1  ;;  %v16822_v29 = vadd.f32 %v7300_v35, %v6995_v13  ;;  %7639 = vmatmul.mubr.f32.gmra.mrb[46].mxu0 %v19232_v48 }
 0x5f5   : > { %v16820_v42 = vadd.f32 %v10347_v34, %v7000_v38  ;;  %v7002_v37 = vpop.f32.mrb[211].mxu1  ;;  %8317 = vmatmul.mubr.f32.gmra.mrb[60].mxu1 %v19185_v50  ;;  %7643 = vmatprep.mubr.f32.mxu0 %v19233_v2 }
 0x5f6   : > { %8321 = vmatprep.mubr.f32.mxu1 %v19187_v28  ;;  %v19237_v28 = vld [vmem:[#allocation139_spill] sm:$0xff] }
 0x5f7   : > { %19231 = vst [vmem:[#allocation119_spill] sm:$0xff] %v16820_v42  ;;  %v19238_v42 = vld [vmem:[#allocation99_spill] sm:$0xff] }
 0x5f8   : > { %v7005_v52 = vpop.f32.mrb[212].mxu1  ;;  %7644 = vmatmul.mubr.f32.gmra.mrb[48].mxu0 %v16268_v41 }
 0x5f9   : > { %v7007_v57 = vpop.f32.mrb[213].mxu1  ;;  %8322 = vmatmul.mubr.f32.gmra.mrb[62].mxu1 %v19190_v56  ;;  %7648 = vmatprep.mubr.f32.mxu0 %v19234_v16 }
 0x5fa   : > { %8326 = vmatprep.mubr.f32.mxu1 %v19191_v17  ;;  %v10350_v13 = vpop.f32.mrb[218].mxu0  ;;  %v19239_v17 = vld [vmem:[#allocation92_spill] sm:$0xff] }
 0x5fb   : > { %v7310_v38 = vpop.f32.mrb[219].mxu0 }
 0x5fc   : > { %v7010_v34 = vpop.f32.mrb[214].mxu1  ;;  %v16834_v50 = vadd.f32 %v7310_v38, %v7005_v52  ;;  %7649 = vmatmul.mubr.f32.gmra.mrb[50].mxu0 %v16289_v60 }
 0x5fd   : > { %v16832_v35 = vadd.f32 %v10350_v13, %v7010_v34  ;;  %v7012_v37 = vpop.f32.mrb[215].mxu1  ;;  %8327 = vmatmul.mubr.f32.gmra.mrb[64].mxu1 %v19192_v12  ;;  %7653 = vmatprep.mubr.f32.mxu0 %v19237_v28 }
 0x5fe   : > { %19236 = vst [vmem:[#allocation121_spill] sm:$0xff] %v16834_v50  ;;  %8331 = vmatprep.mubr.f32.mxu1 %v19193_v4  ;;  %v19243_v4 = vld [vmem:[#allocation140_spill] sm:$0xff]  ;;  %v19244_v50 = vld [vmem:[#allocation143_spill] sm:$0xff] }
 0x5ff   : > { %19235 = vst [vmem:[#allocation57_spill] sm:$0xff] %v16832_v35  ;;  %v19242_v35 = vld [vmem:[#allocation34_spill] sm:$0xff] }
 0x600   : > { %v7015_v56 = vpop.f32.mrb[216].mxu1  ;;  %7654 = vmatmul.mubr.f32.gmra.mrb[52].mxu0 %v19238_v42 }
 0x601   : > { %v7017_v57 = vpop.f32.mrb[217].mxu1  ;;  %8332 = vmatmul.mubr.f32.gmra.mrb[66].mxu1 %v19196_v30  ;;  %7658 = vmatprep.mubr.f32.mxu0 %v19239_v17 }
 0x602   : > { %8336 = vmatprep.mubr.f32.mxu1 %v19197_v0  ;;  %v10353_v52 = vpop.f32.mrb[220].mxu0  ;;  %v19245_v0 = vld [vmem:[#allocation141_spill] sm:$0xff] }
 0x603   : > { %v7320_v34 = vpop.f32.mrb[221].mxu0 }
 0x604   : > { %v7020_v13 = vpop.f32.mrb[218].mxu1  ;;  %v16846_v12 = vadd.f32 %v7320_v34, %v7015_v56  ;;  %7659 = vmatmul.mubr.f32.gmra.mrb[54].mxu0 %v19242_v35 }
 0x605   : > { %v16844_v38 = vadd.f32 %v10353_v52, %v7020_v13  ;;  %v7022_v37 = vpop.f32.mrb[219].mxu1  ;;  %8337 = vmatmul.mubr.f32.gmra.mrb[68].mxu1 %v19198_v51  ;;  %7663 = vmatprep.mubr.f32.mxu0 %v19243_v4 }
 0x606   : > { %19241 = vst [vmem:[#allocation116_spill] sm:$0xff] %v16846_v12  ;;  %8341 = vmatprep.mubr.f32.mxu1 %v19199_v54  ;;  %v19249_v54 = vld [vmem:[#allocation142_spill] sm:$0xff] }
 0x607   : > { %19240 = vst [vmem:[#allocation38_spill] sm:$0xff] %v16844_v38  ;;  %v19248_v38 = vld [vmem:[#allocation69_spill] sm:$0xff]  ;;  %v19250_v12 = vld [vmem:[#allocation146_spill] sm:$0xff] }
 0x608   : > { %v7025_v30 = vpop.f32.mrb[220].mxu1  ;;  %7664 = vmatmul.mubr.f32.gmra.mrb[56].mxu0 %v19244_v50 }
 0x609   : > { %v7027_v57 = vpop.f32.mrb[221].mxu1  ;;  %8342 = vmatmul.mubr.f32.gmra.mrb[70].mxu1 %v19202_v59  ;;  %7668 = vmatprep.mubr.f32.mxu0 %v19245_v0 }
 0x60a   : > { %8346 = vmatprep.mubr.f32.mxu1 %v19203_v22  ;;  %v10356_v56 = vpop.f32.mrb[222].mxu0  ;;  %v19251_v22 = vld [vmem:[#allocation111_spill] sm:$0xff] }
 0x60b   : > { %v7330_v13 = vpop.f32.mrb[223].mxu0 }
 0x60c   : > { %v7030_v52 = vpop.f32.mrb[222].mxu1  ;;  %v16858_v51 = vadd.f32 %v7330_v13, %v7025_v30  ;;  %7669 = vmatmul.mubr.f32.gmra.mrb[58].mxu0 %v19248_v38 }
 0x60d   : > { %v16856_v34 = vadd.f32 %v10356_v56, %v7030_v52  ;;  %v7032_v37 = vpop.f32.mrb[223].mxu1  ;;  %8347 = vmatmul.mubr.f32.gmra.mrb[72].mxu1 %v19204_v40  ;;  %7673 = vmatprep.mubr.f32.mxu0 %v19249_v54 }
 0x60e   : > { %19247 = vst [vmem:[#allocation21_spill] sm:$0xff] %v16858_v51  ;;  %8351 = vmatprep.mubr.f32.mxu1 %v19205_v23  ;;  %v19255_v23 = vld [vmem:[#allocation145_spill] sm:$0xff] }
 0x60f   : > { %19246 = vst [vmem:[#allocation130_spill] sm:$0xff] %v16856_v34  ;;  %v19254_v34 = vld [vmem:[#allocation97_spill] sm:$0xff] }
 0x610   : > { %v7035_v59 = vpop.f32.mrb[224].mxu1  ;;  %7674 = vmatmul.mubr.f32.gmra.mrb[60].mxu0 %v19250_v12  ;;  %v19256_v51 = vld [vmem:[#allocation149_spill] sm:$0xff] }
 0x611   : > { %v7037_v57 = vpop.f32.mrb[225].mxu1  ;;  %8352 = vmatmul.mubr.f32.gmra.mrb[74].mxu1 %v19208_v62  ;;  %7678 = vmatprep.mubr.f32.mxu0 %v19251_v22 }
 0x612   : > { %8356 = vmatprep.mubr.f32.mxu1 %v19209_v10  ;;  %v10359_v30 = vpop.f32.mrb[224].mxu0  ;;  %v19257_v10 = vld [vmem:[#allocation70_spill] sm:$0xff] }
 0x613   : > { %v7340_v52 = vpop.f32.mrb[225].mxu0 }
 0x614   : > { %v7040_v56 = vpop.f32.mrb[226].mxu1  ;;  %v16870_v40 = vadd.f32 %v7340_v52, %v7035_v59  ;;  %7679 = vmatmul.mubr.f32.gmra.mrb[62].mxu0 %v19254_v34 }
 0x615   : > { %v16868_v13 = vadd.f32 %v10359_v30, %v7040_v56  ;;  %v7042_v37 = vpop.f32.mrb[227].mxu1  ;;  %8357 = vmatmul.mubr.f32.gmra.mrb[76].mxu1 %v19210_v3  ;;  %7683 = vmatprep.mubr.f32.mxu0 %v19255_v23 }
 0x616   : > { %19253 = vst [vmem:[#allocation39_spill] sm:$0xff] %v16870_v40  ;;  %8361 = vmatprep.mubr.f32.mxu1 %v19211_v49  ;;  %v19261_v49 = vld [vmem:[#allocation148_spill] sm:$0xff]  ;;  %v19262_v40 = vld [vmem:[#allocation151_spill] sm:$0xff] }
 0x617   : > { %19252 = vst [vmem:[#allocation113_spill] sm:$0xff] %v16868_v13  ;;  %v19260_v13 = vld [vmem:[#allocation150_spill] sm:$0xff] }
 0x618   : > { %v7045_v62 = vpop.f32.mrb[228].mxu1  ;;  %7684 = vmatmul.mubr.f32.gmra.mrb[64].mxu0 %v19256_v51 }
 0x619   : > { %v7047_v57 = vpop.f32.mrb[229].mxu1  ;;  %8362 = vmatmul.mubr.f32.gmra.mrb[78].mxu1 %v19214_v11  ;;  %7688 = vmatprep.mubr.f32.mxu0 %v19257_v10 }
 0x61a   : > { %8366 = vmatprep.mubr.f32.mxu1 %v19215_v39  ;;  %v10362_v59 = vpop.f32.mrb[226].mxu0  ;;  %v19263_v39 = vld [vmem:[#allocation71_spill] sm:$0xff] }
 0x61b   : > { %v7350_v56 = vpop.f32.mrb[227].mxu0 }
 0x61c   : > { %v7050_v30 = vpop.f32.mrb[230].mxu1  ;;  %v16882_v3 = vadd.f32 %v7350_v56, %v7045_v62  ;;  %7689 = vmatmul.mubr.f32.gmra.mrb[66].mxu0 %v19260_v13 }
 0x61d   : > { %v16880_v52 = vadd.f32 %v10362_v59, %v7050_v30  ;;  %v7052_v37 = vpop.f32.mrb[231].mxu1  ;;  %8367 = vmatmul.mubr.f32.gmra.mrb[80].mxu1 %v19216_v63  ;;  %7693 = vmatprep.mubr.f32.mxu0 %v19261_v49 }
 0x61e   : > { %19259 = vst [vmem:[#allocation80_spill] sm:$0xff] %v16882_v3  ;;  %8371 = vmatprep.mubr.f32.mxu1 %v19217_v43  ;;  %v19267_v43 = vld [vmem:[#allocation102_spill] sm:$0xff] }
 0x61f   : > { %19258 = vst [vmem:[#allocation55_spill] sm:$0xff] %v16880_v52  ;;  %v19266_v52 = vld [vmem:[#allocation58_spill] sm:$0xff] }
 0x620   : > { %v7055_v11 = vpop.f32.mrb[232].mxu1  ;;  %7694 = vmatmul.mubr.f32.gmra.mrb[68].mxu0 %v19262_v40  ;;  %v19268_v3 = vld [vmem:[#allocation154_spill] sm:$0xff] }
 0x621   : > { %v7057_v57 = vpop.f32.mrb[233].mxu1  ;;  %8372 = vmatmul.mubr.f32.gmra.mrb[82].mxu1 %v16077_v5  ;;  %7698 = vmatprep.mubr.f32.mxu0 %v19263_v39 }
 0x622   : > { %8376 = vmatprep.mubr.f32.mxu1 %v16036_v45  ;;  %v10365_v62 = vpop.f32.mrb[228].mxu0  ;;  %v19269_v45 = vld [vmem:[#allocation73_spill] sm:$0xff] }
 0x623   : > { %v7360_v30 = vpop.f32.mrb[229].mxu0 }
 0x624   : > { %v7060_v59 = vpop.f32.mrb[234].mxu1  ;;  %v16894_v63 = vadd.f32 %v7360_v30, %v7055_v11  ;;  %7699 = vmatmul.mubr.f32.gmra.mrb[70].mxu0 %v19266_v52 }
 0x625   : > { %v16892_v56 = vadd.f32 %v10365_v62, %v7060_v59  ;;  %v7062_v37 = vpop.f32.mrb[235].mxu1  ;;  %8377 = vmatmul.mubr.f32.gmra.mrb[84].mxu1 %v19220_v18  ;;  %7703 = vmatprep.mubr.f32.mxu0 %v19267_v43 }
 0x626   : > { %19265 = vst [vmem:[#allocation110_spill] sm:$0xff] %v16894_v63  ;;  %8381 = vmatprep.mubr.f32.mxu1 %v19221_v15  ;;  %v19272_v15 = vld [vmem:[#allocation153_spill] sm:$0xff]  ;;  %v19273_v63 = vld [vmem:[#allocation156_spill] sm:$0xff] }
 0x627   : > { %19264 = vst [vmem:[#allocation105_spill] sm:$0xff] %v16892_v56  ;;  %v19271_v56 = vld [vmem:[#allocation155_spill] sm:$0xff] }
 0x628   : > { %v7065_v5 = vpop.f32.mrb[236].mxu1  ;;  %7704 = vmatmul.mubr.f32.gmra.mrb[72].mxu0 %v19268_v3 }
 0x629   : > { %v7067_v57 = vpop.f32.mrb[237].mxu1  ;;  %8382 = vmatmul.mubr.f32.gmra.mrb[86].mxu1 %v16121_v32  ;;  %7708 = vmatprep.mubr.f32.mxu0 %v19269_v45 }
 0x62a   : > { %8386 = vmatprep.mubr.f32.mxu1 %v19222_v27  ;;  %v10368_v11 = vpop.f32.mrb[230].mxu0  ;;  %v19274_v27 = vld [vmem:[#allocation91_spill] sm:$0xff] }
 0x62b   : > { %v7370_v59 = vpop.f32.mrb[231].mxu0 }
 0x62c   : > { %v7070_v62 = vpop.f32.mrb[238].mxu1  ;;  %v16906_v18 = vadd.f32 %v7370_v59, %v7065_v5  ;;  %7709 = vmatmul.mubr.f32.gmra.mrb[74].mxu0 %v19271_v56 }
 0x62d   : > { %v16904_v30 = vadd.f32 %v10368_v11, %v7070_v62  ;;  %v7072_v37 = vpop.f32.mrb[239].mxu1  ;;  %8387 = vmatmul.mubr.f32.gmra.mrb[88].mxu1 %v16142_v44  ;;  %7713 = vmatprep.mubr.f32.mxu0 %v19272_v15 }
 0x62e   : > { %8391 = vmatprep.mubr.f32.mxu1 %v19223_v26  ;;  %v19276_v26 = vld [vmem:[#allocation22_spill] sm:$0xff] }
 0x62f   : > { %19270 = vst [vmem:[#allocation74_spill] sm:$0xff] %v16904_v30  ;;  %v19275_v30 = vld [vmem:[#allocation93_spill] sm:$0xff] }
 0x630   : > { %v7075_v32 = vpop.f32.mrb[240].mxu1  ;;  %7714 = vmatmul.mubr.f32.gmra.mrb[76].mxu0 %v19273_v63 }
 0x631   : > { %v7077_v57 = vpop.f32.mrb[241].mxu1  ;;  %8392 = vmatmul.mubr.f32.gmra.mrb[90].mxu1 %v16163_v55  ;;  %7718 = vmatprep.mubr.f32.mxu0 %v19274_v27 }
 0x632   : > { %8396 = vmatprep.mubr.f32.mxu1 %v19225_v20  ;;  %v10371_v5 = vpop.f32.mrb[232].mxu0  ;;  %v19277_v20 = vld [vmem:[#allocation44_spill] sm:$0xff] }
 0x633   : > { %v7380_v62 = vpop.f32.mrb[233].mxu0 }
 0x634   : > { %v7080_v11 = vpop.f32.mrb[242].mxu1  ;;  %v16918_v44 = vadd.f32 %v7380_v62, %v7075_v32  ;;  %7719 = vmatmul.mubr.f32.gmra.mrb[78].mxu0 %v19275_v30 }
 0x635   : > { %v16916_v59 = vadd.f32 %v10371_v5, %v7080_v11  ;;  %v7082_v37 = vpop.f32.mrb[243].mxu1  ;;  %8397 = vmatmul.mubr.f32.gmra.mrb[92].mxu1 %v16184_v21  ;;  %10517 = vmatprep.mubr.f32.mxu0 %v19276_v26  ;;  %v19278_v5 = vld [vmem:[#allocation82_spill] sm:$0xff] }
 0x636   : > { %8401 = vmatprep.mubr.f32.mxu1 %v19226_v31  ;;  %v19279_v26 = vld [vmem:[#allocation66_spill] sm:$0xff] }
 0x638   : > { %v7085_v55 = vpop.f32.mrb[244].mxu1  ;;  %10518 = vmatmul.mubr.f32.vlgmr.msra.gmra.mrb[80].mxu0 %v19277_v20  ;;  %v19281_v20 = vld [vmem:[#allocation79_spill] sm:$0xff] }
 0x639   : > { %v7087_v57 = vpop.f32.mrb[245].mxu1  ;;  %8402 = vmatmul.mubr.f32.gmra.mrb[94].mxu1 %v19228_v25  ;;  %10520 = vmatprep.mubr.f32.mxu0 %v19278_v5  ;;  %v19280_v25 = vld [vmem:[#allocation117_spill] sm:$0xff]  ;;  %v19282_v5 = vld [vmem:[#allocation12_spill] sm:$0xff] }
 0x63a   : > { %8406 = vmatprep.mubr.f32.mxu1 %v19229_v7  ;;  %v10374_v32 = vpop.f32.mrb[234].mxu0 }
 0x63b   : > { %v7390_v62 = vpop.f32.mrb[235].mxu0 }
 0x63c   : > { %v7090_v11 = vpop.f32.mrb[246].mxu1  ;;  %v16930_v21 = vadd.f32 %v7390_v62, %v7085_v55  ;;  %10521 = vmatmul.mubr.f32.gmra.mrb[82].mxu0 %v19279_v26 }
 0x63d   : > { %v16928_v37 = vadd.f32 %v10374_v32, %v7090_v11  ;;  %v7092_v31 = vpop.f32.mrb[247].mxu1  ;;  %8407 = vmatmul.mubr.f32.gmra.mrb[96].mxu1 %v16226_v47  ;;  %10523 = vmatprep.mubr.f32.mxu0 %v19280_v25 }
 0x63e   : > { %8411 = vmatprep.mubr.f32.mxu1 %v19230_v61  ;;  %v19283_v31 = vld [vmem:[#allocation68_spill] sm:$0xff] }
 0x640   : > { %v7095_v57 = vpop.f32.mrb[248].mxu1  ;;  %10524 = vmatmul.mubr.f32.gmra.mrb[84].mxu0 %v19281_v20  ;;  %v19285_v20 = vld [vmem:[#allocation115_spill] sm:$0xff] }
 0x641   : > { %v7097_v7 = vpop.f32.mrb[249].mxu1  ;;  %8412 = vmatmul.mubr.f32.gmra.mrb[98].mxu1 %v19232_v48  ;;  %10526 = vmatprep.mubr.f32.mxu0 %v19282_v5  ;;  %v19284_v48 = vld [vmem:[#allocation45_spill] sm:$0xff] }
 0x642   : > { %8416 = vmatprep.mubr.f32.mxu1 %v19233_v2  ;;  %v10377_v55 = vpop.f32.mrb[236].mxu0 }
 0x643   : > { %v7400_v11 = vpop.f32.mrb[237].mxu0 }
 0x644   : > { %v7100_v32 = vpop.f32.mrb[250].mxu1  ;;  %v16942_v62 = vadd.f32 %v7400_v11, %v7095_v57  ;;  %10527 = vmatmul.mubr.f32.gmra.mrb[86].mxu0 %v19283_v31  ;;  %v19286_v57 = vld [vmem:[#allocation11_spill] sm:$0xff] }
 0x645   : > { %v16940_v47 = vadd.f32 %v10377_v55, %v7100_v32  ;;  %v7102_v61 = vpop.f32.mrb[251].mxu1  ;;  %8417 = vmatmul.mubr.f32.gmra.mrb[100].mxu1 %v16268_v41  ;;  %10529 = vmatprep.mubr.f32.mxu0 %v19284_v48  ;;  %v19288_v31 = vld [vmem:[#allocation15_spill] sm:$0xff] }
 0x646   : > { %8421 = vmatprep.mubr.f32.mxu1 %v19234_v16  ;;  %v19287_v16 = vld [vmem:[#allocation95_spill] sm:$0xff] }
 0x647   : > { %v10380_v2 = vpop.f32.mrb[238].mxu0  ;;  %v19289_v48 = vld [vmem:[#allocation27_spill] sm:$0xff] }
 0x648   : > { %v7105_v26 = vpop.f32.mrb[252].mxu1  ;;  %v7410_v7 = vpop.f32.mrb[239].mxu0  ;;  %10530 = vmatmul.mubr.f32.gmra.mrb[88].mxu0 %v19285_v20 }
 0x649   : > { %v7107_v25 = vpop.f32.mrb[253].mxu1  ;;  %8422 = vmatmul.mubr.f32.gmra.mrb[102].mxu1 %v16289_v60  ;;  %v16950_v5 = vadd.f32 %v7410_v7, %v7105_v26  ;;  %10532 = vmatprep.mubr.f32.mxu0 %v19286_v57 }
 0x64a   : > { %8426 = vmatprep.mubr.f32.mxu1 %v19237_v28  ;;  %v19290_v25 = vld [vmem:[#allocation47_spill] sm:$0xff] }
 0x64b   : > { %v7485_v55 = vpop.f32.mrb[240].mxu0 }
 0x64c   : > { %v7110_v41 = vpop.f32.mrb[254].mxu1  ;;  %v7486_v11 = vadd.f32 %v7485_v55, %v19287_v16  ;;  %10533 = vmatmul.mubr.f32.gmra.mrb[90].mxu0 %v19288_v31  ;;  %v7487_v60 = vpop.f32.mrb[241].mxu0 }
 0x64d   : > { %v16954_v32 = vadd.f32 %v10380_v2, %v7110_v41  ;;  %v7112_v61 = vpop.f32.mrb[255].mxu1  ;;  %8427 = vmatmul.mubr.f32.gmra.mrb[104].mxu1 %v19238_v42  ;;  %10535 = vmatprep.mubr.f32.mxu0 %v19289_v48  ;;  %v19291_v2 = vld [vmem:[#allocation103_spill] sm:$0xff]  ;;  %v19292_v42 = vld [vmem:[#allocation89_spill] sm:$0xff]  ;;  %v19294_v48 = vld [vmem:[#allocation120_spill] sm:$0xff] }
 0x64e   : > { %8431 = vmatprep.mubr.f32.mxu1 %v19239_v17  ;;  %v19293_v61 = vld [vmem:[#allocation51_spill] sm:$0xff] }
 0x64f   : > { %v7490_v26 = vpop.f32.mrb[242].mxu0 }
 0x650   : > { %v10415_v28 = vpop.f32.mrb[0].mxu1  ;;  %v7491_v7 = vadd.f32 %v7490_v26, %v19290_v25  ;;  %10536 = vmatmul.mubr.f32.gmra.mrb[92].mxu0 %v19291_v2  ;;  %v7492_v57 = vpop.f32.mrb[243].mxu0 }
 0x651   : > { %v7790_v20 = vpop.f32.mrb[1].mxu1  ;;  %8432 = vmatmul.mubr.f32.gmra.mrb[106].mxu1 %v19242_v35  ;;  %10538 = vmatprep.mubr.f32.mxu0 %v19292_v42  ;;  %v19297_v57 = vld [vmem:[#allocation128_spill] sm:$0xff] }
 0x652   : > { %v16964_v41 = vadd.f32 %v7790_v20, %v7486_v11  ;;  %8436 = vmatprep.mubr.f32.mxu1 %v19243_v4  ;;  %v16968_v55 = vadd.f32 %v10415_v28, %v7491_v7  ;;  %v19295_v11 = vld [vmem:[#allocation75_spill] sm:$0xff]  ;;  %v19296_v28 = vld [vmem:[#allocation109_spill] sm:$0xff] }
 0x653   : > { %v7495_v17 = vpop.f32.mrb[244].mxu0 }
 0x654   : > { %v10418_v16 = vpop.f32.mrb[2].mxu1  ;;  %v7496_v31 = vadd.f32 %v7495_v17, %v19293_v61  ;;  %10539 = vmatmul.mubr.f32.gmra.mrb[94].mxu0 %v19294_v48  ;;  %v7497_v35 = vpop.f32.mrb[245].mxu0  ;;  %v19299_v61 = vld [vmem:[#allocation88_spill] sm:$0xff] }
 0x655   : > { %v7800_v60 = vpop.f32.mrb[3].mxu1  ;;  %8437 = vmatmul.mubr.f32.gmra.mrb[108].mxu1 %v19244_v50  ;;  %10541 = vmatprep.mubr.f32.mxu0 %v19295_v11  ;;  %v19298_v50 = vld [vmem:[#allocation126_spill] sm:$0xff]  ;;  %v19300_v35 = vld [vmem:[#allocation83_spill] sm:$0xff] }
 0x656   : > { %8441 = vmatprep.mubr.f32.mxu1 %v19245_v0  ;;  %v16975_v26 = vadd.f32 %v7800_v60, %v7496_v31 }
 0x657   : > { %v7500_v4 = vpop.f32.mrb[246].mxu0 }
 0x658   : > { %v10421_v25 = vpop.f32.mrb[4].mxu1  ;;  %v7501_v7 = vadd.f32 %v7500_v4, %v19296_v28  ;;  %v7502_v20 = vpop.f32.mrb[247].mxu0  ;;  %10542 = vmatmul.mubr.f32.gmra.mrb[96].mxu0 %v19297_v57  ;;  %v19303_v57 = vld [vmem:[#allocation84_spill] sm:$0xff] }
 0x659   : > { %v7810_v2 = vpop.f32.mrb[5].mxu1  ;;  %8442 = vmatmul.mubr.f32.gmra.mrb[110].mxu1 %v19248_v38  ;;  %10544 = vmatprep.mubr.f32.mxu0 %v19298_v50  ;;  %v19301_v38 = vld [vmem:[#allocation136_spill] sm:$0xff] }
 0x65a   : > { %8446 = vmatprep.mubr.f32.mxu1 %v19249_v54  ;;  %v16982_v42 = vadd.f32 %v10418_v16, %v7501_v7  ;;  %v19302_v16 = vld [vmem:[#allocation35_spill] sm:$0xff] }
 0x65b   : > { %v7505_v0 = vpop.f32.mrb[248].mxu0 }
 0x65c   : > { %v10424_v17 = vpop.f32.mrb[6].mxu1  ;;  %v7506_v31 = vadd.f32 %v7505_v0, %v19299_v61  ;;  %v7507_v60 = vpop.f32.mrb[249].mxu0  ;;  %10545 = vmatmul.mubr.f32.gmra.mrb[98].mxu0 %v19300_v35 }
 0x65d   : > { %v7820_v48 = vpop.f32.mrb[7].mxu1  ;;  %8447 = vmatmul.mubr.f32.gmra.mrb[112].mxu1 %v19250_v12  ;;  %10547 = vmatprep.mubr.f32.mxu0 %v19301_v38  ;;  %v19304_v12 = vld [vmem:[#allocation24_spill] sm:$0xff] }
 0x65e   : > { %8451 = vmatprep.mubr.f32.mxu1 %v19251_v22  ;;  %v16989_v11 = vadd.f32 %v7810_v2, %v7506_v31  ;;  %v19305_v2 = vld [vmem:[#allocation50_spill] sm:$0xff] }
 0x65f   : > { %v7510_v54 = vpop.f32.mrb[250].mxu0 }
 0x660   : > { %v10427_v4 = vpop.f32.mrb[8].mxu1  ;;  %v7511_v28 = vadd.f32 %v7510_v54, %v19302_v16  ;;  %v7512_v7 = vpop.f32.mrb[251].mxu0  ;;  %10548 = vmatmul.mubr.f32.gmra.mrb[100].mxu0 %v19303_v57  ;;  %v19308_v57 = vld [vmem:[#allocation64_spill] sm:$0xff] }
 0x661   : > { %v7830_v20 = vpop.f32.mrb[9].mxu1  ;;  %8452 = vmatmul.mubr.f32.gmra.mrb[114].mxu1 %v19254_v34  ;;  %10550 = vmatprep.mubr.f32.mxu0 %v19304_v12 }
 0x662   : > { %8456 = vmatprep.mubr.f32.mxu1 %v19255_v23  ;;  %v16996_v50 = vadd.f32 %v10421_v25, %v7511_v28  ;;  %v19306_v25 = vld [vmem:[#allocation114_spill] sm:$0xff] }
 0x663   : > { %v7515_v22 = vpop.f32.mrb[252].mxu0 }
 0x664   : > { %v10430_v0 = vpop.f32.mrb[10].mxu1  ;;  %v7516_v61 = vadd.f32 %v7515_v22, %v19305_v2  ;;  %v7517_v31 = vpop.f32.mrb[253].mxu0  ;;  %10551 = vmatmul.mubr.f32.gmra.mrb[102].mxu0 %v16197_v1 }
 0x665   : > { %v7840_v60 = vpop.f32.mrb[11].mxu1  ;;  %8457 = vmatmul.mubr.f32.gmra.mrb[116].mxu1 %v19256_v51  ;;  %10553 = vmatprep.mubr.f32.mxu0 %v16218_v24 }
 0x666   : > { %8461 = vmatprep.mubr.f32.mxu1 %v19257_v10  ;;  %v17003_v34 = vadd.f32 %v7820_v48, %v7516_v61  ;;  %v19307_v10 = vld [vmem:[#allocation101_spill] sm:$0xff]  ;;  %v19311_v61 = vld [vmem:[#allocation43_spill] sm:$0xff] }
 0x667   : > { %v7520_v23 = vpop.f32.mrb[254].mxu0 }
 0x668   : > { %v17005_v35 = vpop.f32.mrb[12].mxu1  ;;  %v7521_v38 = vadd.f32 %v7520_v23, %v19306_v25  ;;  %v7522_v54 = vpop.f32.mrb[255].mxu0  ;;  %10554 = vmatmul.mubr.f32.gmra.mrb[104].mxu0 %v16239_v53  ;;  %v19309_v53 = vld [vmem:[#allocation41_spill] sm:$0xff]  ;;  %v19313_v23 = vld [vmem:[#allocation106_spill] sm:$0xff] }
 0x669   : > { %v7850_v16 = vpop.f32.mrb[13].mxu1  ;;  %8462 = vmatmul.mubr.f32.gmra.mrb[118].mxu1 %v19260_v13  ;;  %10556 = vmatprep.mubr.f32.mxu0 %v16260_v8 }
 0x66a   : > { %8466 = vmatprep.mubr.f32.mxu1 %v19261_v49  ;;  %v17012_v1 = vadd.f32 %v10424_v17, %v7521_v38  ;;  %v19310_v17 = vld [vmem:[#allocation40_spill] sm:$0xff] }
 0x66b   : > { %v7525_v24 = vpop.f32.mrb[0].mxu0 }
 0x66c   : > { %v17014_v51 = vpop.f32.mrb[14].mxu1  ;;  %v7526_v48 = vadd.f32 %v7525_v24, %v19307_v10  ;;  %v7527_v28 = vpop.f32.mrb[1].mxu0  ;;  %10557 = vmatmul.mubr.f32.gmra.mrb[106].mxu0 %v19308_v57  ;;  %v19314_v24 = vld [vmem:[#allocation144_spill] sm:$0xff] }
 0x66d   : > { %v17017_v7 = vpop.f32.mrb[15].mxu1  ;;  %8467 = vmatmul.mubr.f32.gmra.mrb[120].mxu1 %v19262_v40  ;;  %10559 = vmatprep.mubr.f32.mxu0 %v19309_v53  ;;  %v19312_v40 = vld [vmem:[#allocation52_spill] sm:$0xff] }
 0x66e   : > { %8471 = vmatprep.mubr.f32.mxu1 %v19263_v39  ;;  %v17023_v13 = vadd.f32 %v7830_v20, %v7526_v48  ;;  %v19316_v48 = vld [vmem:[#allocation77_spill] sm:$0xff] }
 0x66f   : > { %v7530_v8 = vpop.f32.mrb[2].mxu0 }
 0x670   : > { %v17025_v49 = vpop.f32.mrb[16].mxu1  ;;  %v7531_v12 = vadd.f32 %v7530_v8, %v19310_v17  ;;  %v7532_v22 = vpop.f32.mrb[3].mxu0  ;;  %10560 = vmatmul.mubr.f32.gmra.mrb[108].mxu0 %v19311_v61  ;;  %v19317_v8 = vld [vmem:[#allocation147_spill] sm:$0xff] }
 0x671   : > { %v17028_v2 = vpop.f32.mrb[17].mxu1  ;;  %8472 = vmatmul.mubr.f32.gmra.mrb[122].mxu1 %v19266_v52  ;;  %10562 = vmatprep.mubr.f32.mxu0 %v19312_v40  ;;  %v19315_v52 = vld [vmem:[#allocation46_spill] sm:$0xff] }
 0x672   : > { %8476 = vmatprep.mubr.f32.mxu1 %v19267_v43  ;;  %v17034_v39 = vadd.f32 %v10427_v4, %v7531_v12  ;;  %v19319_v12 = vld [vmem:[#allocation59_spill] sm:$0xff] }
 0x673   : > { %v7535_v20 = vpop.f32.mrb[4].mxu0 }
 0x674   : > { %v17036_v31 = vpop.f32.mrb[18].mxu1  ;;  %v7536_v25 = vadd.f32 %v7535_v20, %v19313_v23  ;;  %v7537_v38 = vpop.f32.mrb[5].mxu0  ;;  %10563 = vmatmul.mubr.f32.gmra.mrb[110].mxu0 %v19314_v24  ;;  %v19320_v20 = vld [vmem:[#allocation53_spill] sm:$0xff]  ;;  %v19321_v24 = vld [vmem:[#allocation152_spill] sm:$0xff] }
 0x675   : > { %v17039_v54 = vpop.f32.mrb[19].mxu1  ;;  %8477 = vmatmul.mubr.f32.gmra.mrb[124].mxu1 %v19268_v3  ;;  %10565 = vmatprep.mubr.f32.mxu0 %v19315_v52  ;;  %v19318_v3 = vld [vmem:[#allocation29_spill] sm:$0xff]  ;;  %v19324_v52 = vld [vmem:[#allocation60_spill] sm:$0xff] }
 0x676   : > { %8481 = vmatprep.mubr.f32.mxu1 %v19269_v45  ;;  %v17045_v43 = vadd.f32 %v7840_v60, %v7536_v25 }
 0x677   : > { %v7540_v4 = vpop.f32.mrb[6].mxu0 }
 0x678   : > { %v17047_v10 = vpop.f32.mrb[20].mxu1  ;;  %v7541_v28 = vadd.f32 %v7540_v4, %v19316_v48  ;;  %v7542_v57 = vpop.f32.mrb[7].mxu0  ;;  %10566 = vmatmul.mubr.f32.gmra.mrb[112].mxu0 %v19317_v8 }
 0x679   : > { %v17050_v53 = vpop.f32.mrb[21].mxu1  ;;  %8482 = vmatmul.mubr.f32.gmra.mrb[126].mxu1 %v19271_v56  ;;  %10568 = vmatprep.mubr.f32.mxu0 %v19318_v3  ;;  %v19325_v57 = vld [vmem:[#allocation159_spill] sm:$0xff] }
 0x67a   : > { %8486 = vmatprep.mubr.f32.mxu1 %v19272_v15  ;;  %v17056_v45 = vadd.f32 %v10430_v0, %v7541_v28 }
 0x67b   : > { %v7545_v60 = vpop.f32.mrb[8].mxu0 }
 0x67c   : > { %v17058_v17 = vpop.f32.mrb[22].mxu1  ;;  %v7546_v22 = vadd.f32 %v7545_v60, %v19319_v12  ;;  %v7547_v61 = vpop.f32.mrb[9].mxu0  ;;  %10569 = vmatmul.mubr.f32.gmra.mrb[114].mxu0 %v16449_v46  ;;  %v19323_v46 = vld [vmem:[#allocation81_spill] sm:$0xff]  ;;  %v19328_v60 = vld [vmem:[#allocation104_spill] sm:$0xff] }
 0x67d   : > { %v17061_v40 = vpop.f32.mrb[23].mxu1  ;;  %8487 = vmatmul.mubr.f32.gmra.mrb[128].mxu1 %v19273_v63  ;;  %10571 = vmatprep.mubr.f32.mxu0 %v16470_v9  ;;  %v19322_v63 = vld [vmem:[#allocation85_spill] sm:$0xff] }
 0x67e   : > { %8491 = vmatprep.mubr.f32.mxu1 %v19274_v27  ;;  %v17067_v56 = vadd.f32 %v7850_v16, %v7546_v22 }
 0x67f   : > { %v7550_v15 = vpop.f32.mrb[10].mxu0 }
 0x680   : > { %v17069_v0 = vpop.f32.mrb[24].mxu1  ;;  %v7551_v23 = vadd.f32 %v7550_v15, %v19320_v20  ;;  %v7552_v25 = vpop.f32.mrb[11].mxu0  ;;  %10572 = vmatmul.mubr.f32.gmra.mrb[116].mxu0 %v19321_v24  ;;  %v19329_v15 = vld [vmem:[#allocation98_spill] sm:$0xff]  ;;  %v19330_v20 = vld [vmem:[#allocation157_spill] sm:$0xff]  ;;  %v19333_v24 = vld [vmem:[#allocation127_spill] sm:$0xff] }
 0x681   : > { %v17072_v38 = vpop.f32.mrb[25].mxu1  ;;  %8492 = vmatmul.mubr.f32.gmra.mrb[130].mxu1 %v19275_v30  ;;  %10574 = vmatprep.mubr.f32.mxu0 %v19323_v46  ;;  %v19326_v30 = vld [vmem:[#allocation125_spill] sm:$0xff] }
 0x682   : > { %8496 = vmatprep.mubr.f32.mxu1 %v19322_v63  ;;  %v17079_v9 = vadd.f32 %v17005_v35, %v7551_v23  ;;  %v19332_v23 = vld [vmem:[#allocation129_spill] sm:$0xff] }
 0x683   : > { %v7555_v27 = vpop.f32.mrb[12].mxu0 }
 0x684   : > { %v17081_v16 = vpop.f32.mrb[26].mxu1  ;;  %v7556_v4 = vadd.f32 %v7555_v27, %v19324_v52  ;;  %v7557_v48 = vpop.f32.mrb[13].mxu0  ;;  %10575 = vmatmul.mubr.f32.gmra.mrb[118].mxu0 %v16533_v6  ;;  %v19331_v6 = vld [vmem:[#allocation158_spill] sm:$0xff] }
 0x685   : > { %v17084_v28 = vpop.f32.mrb[27].mxu1  ;;  %8497 = vmatmul.mubr.f32.gmra.mrb[132].mxu1 %v19325_v57  ;;  %10577 = vmatprep.mubr.f32.mxu0 %v16554_v58  ;;  %v19334_v52 = vld [vmem:[#allocation26_spill] sm:$0xff]  ;;  %v19336_v48 = vld [vmem:[#allocation160_spill] sm:$0xff] }
 0x686   : > { %8501 = vmatprep.mubr.f32.mxu1 %v19326_v30  ;;  %v17091_v8 = vadd.f32 %v17017_v7, %v7556_v4  ;;  %v19335_v4 = vld [vmem:[#allocation132_spill] sm:$0xff] }
 0x687   : > { %v7560_v35 = vpop.f32.mrb[14].mxu0  ;;  %v11427_v57 = vld [vmem:[%s11636_s27 + $0x198] sm:$0xff] }
 0x688   : > { %19327 = vst [vmem:[#allocation18_spill] sm:$0xff] %v17091_v8  ;;  %v17093_v3 = vpop.f32.mrb[28].mxu1  ;;  %v7561_v12 = vadd.f32 %v7560_v35, %v19328_v60  ;;  %v7562_v22 = vpop.f32.mrb[15].mxu0  ;;  %10578 = vmatmul.mubr.f32.gmra.mrb[120].mxu0 %v19330_v20  ;;  %v19338_v60 = vld [vmem:[#allocation62_spill] sm:$0xff]  ;;  %v19341_v20 = vld [vmem:[#allocation107_spill] sm:$0xff]  ;;  %v19361_v8 = vld [vmem:[#allocation57_spill] sm:$0xff] }
 0x689   : > { %v17096_v61 = vpop.f32.mrb[29].mxu1  ;;  %8502 = vmatmul.mubr.f32.gmra.mrb[134].mxu1 %v19329_v15  ;;  %10580 = vmatprep.mubr.f32.mxu0 %v19332_v23  ;;  %v11429_v22 = vld [vmem:[%s11636_s27 + $0x1a8] sm:$0xff] }
 0x68a   : > { %8506 = vmatprep.mubr.f32.mxu1 %v19331_v6  ;;  %v17103_v58 = vadd.f32 %v17014_v51, %v7561_v12  ;;  %v19339_v12 = vrot.slane %v19331_v6, 7 }
 0x68b   : > { %v7565_v7 = vpop.f32.mrb[16].mxu0 }
 0x68c   : > { %v17105_v25 = vpop.f32.mrb[30].mxu1  ;;  %v7566_v63 = vadd.f32 %v7565_v7, %v19333_v24  ;;  %v7567_v46 = vpop.f32.mrb[17].mxu0  ;;  %10581 = vmatmul.mubr.f32.gmra.mrb[122].mxu0 %v19335_v4  ;;  %v6290_v15 = vsel %vm392_vm1, %v19339_v12, %v19338_v60  ;;  %v19345_v60 = vld [vmem:[#allocation31_spill] sm:$0xff] }
 0x68d   : > { %v17108_v27 = vpop.f32.mrb[31].mxu1  ;;  %8507 = vmatmul.mubr.f32.gmra.mrb[136].mxu1 %v19334_v52  ;;  %10583 = vmatprep.mubr.f32.mxu0 %v19336_v48  ;;  %v19342_v46 = vld [vmem:[#allocation76_spill] sm:$0xff]  ;;  %v19346_v12 = vld [vmem:[#allocation63_spill] sm:$0xff] }
 0x68e   : > { %8511 = vmatprep.mubr.f32.mxu1 %v11427_v57  ;;  %v17115_v51 = vadd.f32 %v17028_v2, %v7566_v63  ;;  %v11428_v2 = vld [vmem:[%s11636_s27 + $0x1a0] sm:$0xff]  ;;  %v19343_v63 = vld [vmem:[#allocation94_spill] sm:$0xff]  ;;  %s11326_s27 = smul.u32 384, %s19404_s18 }
 0x68f   : > { %v7570_v30 = vpop.f32.mrb[18].mxu0 }
 0x690   : > { %19337 = vst [vmem:[#allocation17_spill] sm:$0xff] %v17115_v51  ;;  %v17117_v35 = vpop.f32.mrb[32].mxu1  ;;  %v7571_v23 = vadd.f32 %v7570_v30, %v19341_v20  ;;  %v7572_v7 = vpop.f32.mrb[19].mxu0  ;;  %10584 = vmatmul.mubr.f32.gmra.mrb[124].mxu0 %v19342_v46  ;;  %s17342_s12 = scalar_lea.vmem %s17555_s4, %s11326_s27 }
 0x691   : > { %v17125_v24 = vpop.f32.mrb[33].mxu1  ;;  %8512 = vmatmul.mubr.f32.gmra.mrb[138].mxu1 %v6290_v15  ;;  %10586 = vmatprep.mubr.f32.mxu0 %v19343_v63 }
 0x692   : > { %8516 = vmatprep.mubr.f32.mxu1 %v11428_v2  ;;  %v17131_v52 = vadd.f32 %v17025_v49, %v7571_v23 }
 0x693   : > { %v7575_v6 = vpop.f32.mrb[20].mxu0 }
 0x694   : > { %19344 = vst [vmem:[#allocation67_spill] sm:$0xff] %v17131_v52  ;;  %v17133_v4 = vpop.f32.mrb[34].mxu1  ;;  %v7576_v48 = vadd.f32 %v7575_v6, %v16786_v33  ;;  %v7577_v57 = vpop.f32.mrb[21].mxu0  ;;  %10587 = vmatmul.mubr.f32.gmra.mrb[126].mxu0 %v19346_v12  ;;  %v19348_v33 = vld [vmem:[#allocation78_spill] sm:$0xff] }
 0x695   : > { %v17136_v30 = vpop.f32.mrb[35].mxu1  ;;  %8517 = vmatmul.mubr.f32.gmra.mrb[140].mxu1 %v19345_v60 }
 0x696   : > { %8521 = vmatprep.mubr.f32.mxu1 %v11429_v22  ;;  %v17142_v15 = vadd.f32 %v17039_v54, %v7576_v48  ;;  %v19351_v22 = vld [vmem:[#allocation10_spill] sm:$0xff] }
 0x697   : > { %v7580_v20 = vpop.f32.mrb[22].mxu0 }
 0x698   : > { %19347 = vst [vmem:[#allocation100_spill] sm:$0xff] %v17142_v15  ;;  %v17144_v49 = vpop.f32.mrb[36].mxu1  ;;  %v7581_v23 = vadd.f32 %v7580_v20, %v16784_v36  ;;  %v7582_v7 = vpop.f32.mrb[23].mxu0 }
 0x699   : > { %v17147_v46 = vpop.f32.mrb[37].mxu1  ;;  %8522 = vmatmul.mubr.f32.gmra.mrb[142].mxu1 %v19348_v33 }
 0x69a   : > { %v17151_v2 = vadd.f32 %v17036_v31, %v7581_v23 }
 0x69b   : > { %v7585_v63 = vpop.f32.mrb[24].mxu0 }
 0x69c   : > { %19349 = vst [vmem:[#allocation108_spill] sm:$0xff] %v17151_v2  ;;  %v17153_v6 = vpop.f32.mrb[38].mxu1  ;;  %v7586_v57 = vadd.f32 %v7585_v63, %v16798_v19  ;;  %v7587_v54 = vpop.f32.mrb[25].mxu0 }
 0x69d   : > { %v17156_v48 = vpop.f32.mrb[39].mxu1 }
 0x69e   : > { %v17159_v60 = vadd.f32 %v17050_v53, %v7586_v57 }
 0x69f   : > { %v7590_v36 = vpop.f32.mrb[26].mxu0 }
 0x6a0   : > { %19350 = vst [vmem:[#allocation36_spill] sm:$0xff] %v17159_v60  ;;  %v17161_v12 = vpop.f32.mrb[40].mxu1  ;;  %v7591_v20 = vadd.f32 %v7590_v36, %v19351_v22  ;;  %v7592_v7 = vpop.f32.mrb[27].mxu0  ;;  %v19354_v36 = vld [vmem:[#allocation61_spill] sm:$0xff] }
 0x6a1   : > { %v17164_v33 = vpop.f32.mrb[41].mxu1 }
 0x6a2   : > { %v17167_v31 = vadd.f32 %v17047_v10, %v7591_v20 }
 0x6a3   : > { %v7595_v23 = vpop.f32.mrb[28].mxu0 }
 0x6a4   : > { %19352 = vst [vmem:[#allocation86_spill] sm:$0xff] %v17167_v31  ;;  %v17169_v15 = vpop.f32.mrb[42].mxu1  ;;  %v7596_v19 = vadd.f32 %v7595_v23, %v16810_v14  ;;  %v7597_v63 = vpop.f32.mrb[29].mxu0 }
 0x6a5   : > { %v17172_v54 = vpop.f32.mrb[43].mxu1 }
 0x6a6   : > { %v17175_v53 = vadd.f32 %v17061_v40, %v7596_v19 }
 0x6a7   : > { %v7600_v57 = vpop.f32.mrb[30].mxu0 }
 0x6a8   : > { %19353 = vst [vmem:[#allocation19_spill] sm:$0xff] %v17175_v53  ;;  %v17177_v60 = vpop.f32.mrb[44].mxu1  ;;  %v7601_v22 = vadd.f32 %v7600_v57, %v19354_v36  ;;  %v7602_v7 = vpop.f32.mrb[31].mxu0  ;;  %v19357_v57 = vld [vmem:[#allocation119_spill] sm:$0xff] }
 0x6a9   : > { %v17180_v2 = vpop.f32.mrb[45].mxu1 }
 0x6aa   : > { %v17183_v10 = vadd.f32 %v17058_v17, %v7601_v22 }
 0x6ab   : > { %v7605_v20 = vpop.f32.mrb[32].mxu0 }
 0x6ac   : > { %19355 = vst [vmem:[#allocation20_spill] sm:$0xff] %v17183_v10  ;;  %v17185_v31 = vpop.f32.mrb[46].mxu1  ;;  %v7606_v14 = vadd.f32 %v7605_v20, %v16822_v29  ;;  %v7607_v23 = vpop.f32.mrb[33].mxu0  ;;  %v19359_v29 = vld [vmem:[#allocation121_spill] sm:$0xff] }
 0x6ad   : > { %v17188_v63 = vpop.f32.mrb[47].mxu1 }
 0x6ae   : > { %v17191_v40 = vadd.f32 %v17072_v38, %v7606_v14 }
 0x6af   : > { %v7610_v19 = vpop.f32.mrb[34].mxu0 }
 0x6b0   : > { %19356 = vst [vmem:[#allocation112_spill] sm:$0xff] %v17191_v40  ;;  %v17193_v53 = vpop.f32.mrb[48].mxu1  ;;  %v7611_v36 = vadd.f32 %v7610_v19, %v19357_v57  ;;  %v7612_v7 = vpop.f32.mrb[35].mxu0 }
 0x6b1   : > { %v8290_v51 = vpop.f32.mrb[49].mxu1 }
 0x6b2   : > { %v17197_v17 = vadd.f32 %v17069_v0, %v7611_v36 }
 0x6b3   : > { %v7615_v22 = vpop.f32.mrb[36].mxu0 }
 0x6b4   : > { %19358 = vst [vmem:[#allocation14_spill] sm:$0xff] %v17197_v17  ;;  %v17199_v10 = vpop.f32.mrb[50].mxu1  ;;  %v7616_v20 = vadd.f32 %v7615_v22, %v19359_v29  ;;  %v7617_v23 = vpop.f32.mrb[37].mxu0  ;;  %v19363_v17 = vld [vmem:[#allocation116_spill] sm:$0xff] }
 0x6b5   : > { %v8295_v52 = vpop.f32.mrb[51].mxu1 }
 0x6b6   : > { %v17203_v38 = vadd.f32 %v17084_v28, %v7616_v20 }
 0x6b7   : > { %v7620_v14 = vpop.f32.mrb[38].mxu0 }
 0x6b8   : > { %19360 = vst [vmem:[#allocation123_spill] sm:$0xff] %v17203_v38  ;;  %v17205_v40 = vpop.f32.mrb[52].mxu1  ;;  %v7621_v19 = vadd.f32 %v7620_v14, %v19361_v8  ;;  %v7622_v57 = vpop.f32.mrb[39].mxu0  ;;  %v19365_v38 = vld [vmem:[#allocation38_spill] sm:$0xff] }
 0x6b9   : > { %v8300_v51 = vpop.f32.mrb[53].mxu1 }
 0x6ba   : > { %v17209_v0 = vadd.f32 %v17081_v16, %v7621_v19 }
 0x6bb   : > { %v7625_v36 = vpop.f32.mrb[40].mxu0 }
 0x6bc   : > { %19362 = vst [vmem:[#allocation16_spill] sm:$0xff] %v17209_v0  ;;  %v17211_v7 = vpop.f32.mrb[54].mxu1  ;;  %v7626_v22 = vadd.f32 %v7625_v36, %v19363_v17  ;;  %v7627_v29 = vpop.f32.mrb[41].mxu0  ;;  %v19367_v0 = vld [vmem:[#allocation21_spill] sm:$0xff] }
 0x6bd   : > { %v8305_v52 = vpop.f32.mrb[55].mxu1 }
 0x6be   : > { %v17215_v28 = vadd.f32 %v17096_v61, %v7626_v22 }
 0x6bf   : > { %v7630_v20 = vpop.f32.mrb[42].mxu0 }
 0x6c0   : > { %19364 = vst [vmem:[#allocation56_spill] sm:$0xff] %v17215_v28  ;;  %v17217_v23 = vpop.f32.mrb[56].mxu1  ;;  %v7631_v8 = vadd.f32 %v7630_v20, %v19365_v38  ;;  %v7632_v14 = vpop.f32.mrb[43].mxu0  ;;  %v19369_v28 = vld [vmem:[#allocation130_spill] sm:$0xff] }
 0x6c1   : > { %v8310_v57 = vpop.f32.mrb[57].mxu1 }
 0x6c2   : > { %v17221_v16 = vadd.f32 %v17093_v3, %v7631_v8 }
 0x6c3   : > { %v7635_v19 = vpop.f32.mrb[44].mxu0 }
 0x6c4   : > { %19366 = vst [vmem:[#allocation96_spill] sm:$0xff] %v17221_v16  ;;  %v17223_v51 = vpop.f32.mrb[58].mxu1  ;;  %v7636_v17 = vadd.f32 %v7635_v19, %v19367_v0  ;;  %v7637_v36 = vpop.f32.mrb[45].mxu0  ;;  %v19371_v16 = vld [vmem:[#allocation39_spill] sm:$0xff] }
 0x6c5   : > { %v8315_v29 = vpop.f32.mrb[59].mxu1 }
 0x6c6   : > { %v17227_v61 = vadd.f32 %v17108_v27, %v7636_v17 }
 0x6c7   : > { %v7640_v22 = vpop.f32.mrb[46].mxu0 }
 0x6c8   : > { %19368 = vst [vmem:[#allocation13_spill] sm:$0xff] %v17227_v61  ;;  %v17229_v52 = vpop.f32.mrb[60].mxu1  ;;  %v7641_v38 = vadd.f32 %v7640_v22, %v19369_v28  ;;  %v7642_v20 = vpop.f32.mrb[47].mxu0  ;;  %v19373_v61 = vld [vmem:[#allocation113_spill] sm:$0xff] }
 0x6c9   : > { %v8320_v14 = vpop.f32.mrb[61].mxu1 }
 0x6ca   : > { %v17233_v3 = vadd.f32 %v17105_v25, %v7641_v38 }
 0x6cb   : > { %v7645_v8 = vpop.f32.mrb[48].mxu0 }
 0x6cc   : > { %19370 = vst [vmem:[#allocation49_spill] sm:$0xff] %v17233_v3  ;;  %v17235_v57 = vpop.f32.mrb[62].mxu1  ;;  %v7646_v0 = vadd.f32 %v7645_v8, %v19371_v16  ;;  %v7647_v19 = vpop.f32.mrb[49].mxu0  ;;  %v19375_v3 = vld [vmem:[#allocation80_spill] sm:$0xff] }
 0x6cd   : > { %v8325_v36 = vpop.f32.mrb[63].mxu1 }
 0x6ce   : > { %v17239_v27 = vadd.f32 %v17125_v24, %v7646_v0 }
 0x6cf   : > { %v7650_v17 = vpop.f32.mrb[50].mxu0 }
 0x6d0   : > { %19372 = vst [vmem:[#allocation90_spill] sm:$0xff] %v17239_v27  ;;  %v17241_v29 = vpop.f32.mrb[64].mxu1  ;;  %v7651_v28 = vadd.f32 %v7650_v17, %v19373_v61  ;;  %v7652_v22 = vpop.f32.mrb[51].mxu0  ;;  %v19377_v27 = vld [vmem:[#allocation55_spill] sm:$0xff] }
 0x6d1   : > { %v8330_v20 = vpop.f32.mrb[65].mxu1 }
 0x6d2   : > { %v17245_v25 = vadd.f32 %v17117_v35, %v7651_v28 }
 0x6d3   : > { %v7655_v38 = vpop.f32.mrb[52].mxu0 }
 0x6d4   : > { %19374 = vst [vmem:[#allocation72_spill] sm:$0xff] %v17245_v25  ;;  %v17247_v14 = vpop.f32.mrb[66].mxu1  ;;  %v7656_v16 = vadd.f32 %v7655_v38, %v19375_v3  ;;  %v7657_v8 = vpop.f32.mrb[53].mxu0  ;;  %v19378_v25 = vld [vmem:[#allocation110_spill] sm:$0xff] }
 0x6d5   : > { %v8335_v19 = vpop.f32.mrb[67].mxu1 }
 0x6d6   : > { %v17251_v24 = vadd.f32 %v17136_v30, %v7656_v16 }
 0x6d7   : > { %v7660_v0 = vpop.f32.mrb[54].mxu0 }
 0x6d8   : > { %19376 = vst [vmem:[#allocation30_spill] sm:$0xff] %v17251_v24  ;;  %v17253_v36 = vpop.f32.mrb[68].mxu1  ;;  %v7661_v61 = vadd.f32 %v7660_v0, %v19377_v27  ;;  %v7662_v17 = vpop.f32.mrb[55].mxu0  ;;  %v19380_v24 = vld [vmem:[#allocation105_spill] sm:$0xff] }
 0x6d9   : > { %v8340_v22 = vpop.f32.mrb[69].mxu1 }
 0x6da   : > { %v17257_v35 = vadd.f32 %v17133_v4, %v7661_v61 }
 0x6db   : > { %v7665_v28 = vpop.f32.mrb[56].mxu0 }
 0x6dc   : > { %v17259_v20 = vpop.f32.mrb[70].mxu1  ;;  %v7666_v3 = vadd.f32 %v7665_v28, %v19378_v25  ;;  %v7667_v38 = vpop.f32.mrb[57].mxu0 }
 0x6dd   : > { %v8345_v8 = vpop.f32.mrb[71].mxu1 }
 0x6de   : > { %v17263_v30 = vadd.f32 %v17147_v46, %v7666_v3 }
 0x6df   : > { %v7670_v16 = vpop.f32.mrb[58].mxu0 }
 0x6e0   : > { %19379 = vst [vmem:[#allocation65_spill] sm:$0xff] %v17263_v30  ;;  %v17265_v19 = vpop.f32.mrb[72].mxu1  ;;  %v7671_v27 = vadd.f32 %v7670_v16, %v19380_v24  ;;  %v7672_v0 = vpop.f32.mrb[59].mxu0  ;;  %v19381_v30 = vld [vmem:[#allocation74_spill] sm:$0xff] }
 0x6e1   : > { %v8350_v17 = vpop.f32.mrb[73].mxu1 }
 0x6e2   : > { %v17269_v4 = vadd.f32 %v17144_v49, %v7671_v27 }
 0x6e3   : > { %v7675_v61 = vpop.f32.mrb[60].mxu0 }
 0x6e4   : > { %v17271_v22 = vpop.f32.mrb[74].mxu1  ;;  %v7676_v25 = vadd.f32 %v7675_v61, %v16906_v18  ;;  %v7677_v28 = vpop.f32.mrb[61].mxu0 }
 0x6e5   : > { %v8355_v38 = vpop.f32.mrb[75].mxu1 }
 0x6e6   : > { %v17275_v46 = vadd.f32 %v17156_v48, %v7676_v25 }
 0x6e7   : > { %v7680_v3 = vpop.f32.mrb[62].mxu0 }
 0x6e8   : > { %v17277_v8 = vpop.f32.mrb[76].mxu1  ;;  %v7681_v24 = vadd.f32 %v7680_v3, %v19381_v30  ;;  %v7682_v16 = vpop.f32.mrb[63].mxu0 }
 0x6e9   : > { %v8360_v0 = vpop.f32.mrb[77].mxu1 }
 0x6ea   : > { %v17281_v49 = vadd.f32 %v17153_v6, %v7681_v24 }
 0x6eb   : > { %v7685_v27 = vpop.f32.mrb[64].mxu0 }
 0x6ec   : > { %v17283_v17 = vpop.f32.mrb[78].mxu1  ;;  %v7686_v18 = vadd.f32 %v7685_v27, %v16918_v44  ;;  %v7687_v61 = vpop.f32.mrb[65].mxu0 }
 0x6ed   : > { %v8365_v28 = vpop.f32.mrb[79].mxu1 }
 0x6ee   : > { %v17287_v48 = vadd.f32 %v17164_v33, %v7686_v18 }
 0x6ef   : > { %v7690_v25 = vpop.f32.mrb[66].mxu0 }
 0x6f0   : > { %v17289_v38 = vpop.f32.mrb[80].mxu1  ;;  %v7691_v30 = vadd.f32 %v7690_v25, %v16916_v59  ;;  %v7692_v3 = vpop.f32.mrb[67].mxu0 }
 0x6f1   : > { %v8370_v16 = vpop.f32.mrb[81].mxu1 }
 0x6f2   : > { %v17293_v6 = vadd.f32 %v17161_v12, %v7691_v30 }
 0x6f3   : > { %v7695_v24 = vpop.f32.mrb[68].mxu0 }
 0x6f4   : > { %v17295_v0 = vpop.f32.mrb[82].mxu1  ;;  %v7696_v44 = vadd.f32 %v7695_v24, %v16930_v21  ;;  %v7697_v27 = vpop.f32.mrb[69].mxu0 }
 0x6f5   : > { %v8375_v61 = vpop.f32.mrb[83].mxu1 }
 0x6f6   : > { %v17299_v33 = vadd.f32 %v17172_v54, %v7696_v44 }
 0x6f7   : > { %v7700_v18 = vpop.f32.mrb[70].mxu0 }
 0x6f8   : > { %v17301_v28 = vpop.f32.mrb[84].mxu1  ;;  %v7701_v59 = vadd.f32 %v7700_v18, %v16928_v37  ;;  %v7702_v25 = vpop.f32.mrb[71].mxu0 }
 0x6f9   : > { %v8380_v3 = vpop.f32.mrb[85].mxu1 }
 0x6fa   : > { %v17305_v12 = vadd.f32 %v17169_v15, %v7701_v59 }
 0x6fb   : > { %v7705_v30 = vpop.f32.mrb[72].mxu0 }
 0x6fc   : > { %v17307_v16 = vpop.f32.mrb[86].mxu1  ;;  %v7706_v21 = vadd.f32 %v7705_v30, %v16942_v62  ;;  %v7707_v24 = vpop.f32.mrb[73].mxu0 }
 0x6fd   : > { %v8385_v27 = vpop.f32.mrb[87].mxu1 }
 0x6fe   : > { %v17311_v54 = vadd.f32 %v17180_v2, %v7706_v21 }
 0x6ff   : > { %v7710_v44 = vpop.f32.mrb[74].mxu0 }
 0x700   : > { %v17313_v61 = vpop.f32.mrb[88].mxu1  ;;  %v7711_v37 = vadd.f32 %v7710_v44, %v16940_v47  ;;  %v7712_v18 = vpop.f32.mrb[75].mxu0 }
 0x701   : > { %v8390_v25 = vpop.f32.mrb[89].mxu1 }
 0x702   : > { %v17317_v15 = vadd.f32 %v17177_v60, %v7711_v37 }
 0x703   : > { %v7715_v59 = vpop.f32.mrb[76].mxu0 }
 0x704   : > { %v17319_v3 = vpop.f32.mrb[90].mxu1  ;;  %v7716_v62 = vadd.f32 %v7715_v59, %v16950_v5  ;;  %v7717_v30 = vpop.f32.mrb[77].mxu0 }
 0x705   : > { %v8395_v24 = vpop.f32.mrb[91].mxu1 }
 0x706   : > { %v17323_v2 = vadd.f32 %v17188_v63, %v7716_v62  ;;  %v17335_v63 = vld [vmem:[#allocation5 + $0x2] ss:$0 sm:$0xff] }
 0x707   : > { %v7720_v21 = vpop.f32.mrb[78].mxu0 }
 0x708   : > { %v17325_v27 = vpop.f32.mrb[92].mxu1  ;;  %v7721_v47 = vadd.f32 %v7720_v21, %v16954_v32  ;;  %v7722_v44 = vpop.f32.mrb[79].mxu0 }
 0x709   : > { %v8400_v18 = vpop.f32.mrb[93].mxu1 }
 0x70a   : > { %v17329_v60 = vadd.f32 %v17185_v31, %v7721_v47 }
 0x70b   : > { %v10519_v25 = vpop.f32.mrb[80].mxu0 }
 0x70c   : > { %v17331_v37 = vpop.f32.mrb[94].mxu1  ;;  %v8599_v5 = vadd.f32 %v10519_v25, %v17199_v10  ;;  %v8593_v30 = vpop.f32.mrb[81].mxu0 }
 0x70d   : > { %v8405_v59 = vpop.f32.mrb[95].mxu1  ;;  %v8594_v62 = vadd.f32 %v8593_v30, %v17193_v53 }
 0x70e   : > { %v8833_v24 = vadd.f32 %v8599_v5, %v16968_v55 }
 0x70f   : > { %v8832_v32 = vadd.f32 %v8594_v62, %v16964_v41  ;;  %v10522_v10 = vpop.f32.mrb[82].mxu0 }
 0x710   : > { %v17345_v31 = vpop.f32.mrb[96].mxu1  ;;  %v8889_v21 = vadd.f32 %v17335_v63, %v8833_v24  ;;  %v8609_v47 = vadd.f32 %v10522_v10, %v17211_v7  ;;  %v8603_v53 = vpop.f32.mrb[83].mxu0 }
 0x711   : > { %v8410_v44 = vpop.f32.mrb[97].mxu1  ;;  %v8888_v55 = vadd.f32 %v17335_v63, %v8832_v32  ;;  %v8604_v18 = vadd.f32 %v8603_v53, %v17205_v40 }
 0x712   : > { %8937 = vst [vmem:[%s17342_s12 + $0x8] sm:$0xff] %v8889_v21  ;;  %v8835_v25 = vadd.f32 %v8609_v47, %v16982_v42 }
 0x713   : > { %8936 = vst [vmem:[%s17342_s12] sm:$0xff] %v8888_v55  ;;  %v8834_v41 = vadd.f32 %v8604_v18, %v16975_v26  ;;  %v10525_v59 = vpop.f32.mrb[84].mxu0 }
 0x714   : > { %v17355_v5 = vpop.f32.mrb[98].mxu1  ;;  %v8891_v30 = vadd.f32 %v17335_v63, %v8835_v25  ;;  %v8619_v7 = vadd.f32 %v10525_v59, %v17223_v51  ;;  %v8613_v24 = vpop.f32.mrb[85].mxu0 }
 0x715   : > { %v8415_v62 = vpop.f32.mrb[99].mxu1  ;;  %v8890_v32 = vadd.f32 %v17335_v63, %v8834_v41  ;;  %v8614_v40 = vadd.f32 %v8613_v24, %v17217_v23 }
 0x716   : > { %8939 = vst [vmem:[%s17342_s12 + $0x18] sm:$0xff] %v8891_v30  ;;  %v8837_v42 = vadd.f32 %v8619_v7, %v16996_v50 }
 0x717   : > { %8938 = vst [vmem:[%s17342_s12 + $0x10] sm:$0xff] %v8890_v32  ;;  %v8836_v26 = vadd.f32 %v8614_v40, %v16989_v11  ;;  %v10528_v21 = vpop.f32.mrb[86].mxu0 }
 0x718   : > { %v17365_v10 = vpop.f32.mrb[100].mxu1  ;;  %v8893_v47 = vadd.f32 %v17335_v63, %v8837_v42  ;;  %v8629_v51 = vadd.f32 %v10528_v21, %v17235_v57  ;;  %v8623_v53 = vpop.f32.mrb[87].mxu0 }
 0x719   : > { %v8420_v44 = vpop.f32.mrb[101].mxu1  ;;  %v8892_v55 = vadd.f32 %v17335_v63, %v8836_v26  ;;  %v8624_v23 = vadd.f32 %v8623_v53, %v17229_v52 }
 0x71a   : > { %8941 = vst [vmem:[%s17342_s12 + $0x28] sm:$0xff] %v8893_v47  ;;  %v8839_v50 = vadd.f32 %v8629_v51, %v17012_v1 }
 0x71b   : > { %8940 = vst [vmem:[%s17342_s12 + $0x20] sm:$0xff] %v8892_v55  ;;  %v8838_v11 = vadd.f32 %v8624_v23, %v17003_v34  ;;  %v10531_v25 = vpop.f32.mrb[88].mxu0 }
 0x71c   : > { %v17375_v18 = vpop.f32.mrb[102].mxu1  ;;  %v8895_v41 = vadd.f32 %v17335_v63, %v8839_v50  ;;  %v8639_v57 = vadd.f32 %v10531_v25, %v17247_v14  ;;  %v8633_v30 = vpop.f32.mrb[89].mxu0 }
 0x71d   : > { %v8425_v59 = vpop.f32.mrb[103].mxu1  ;;  %v8894_v7 = vadd.f32 %v17335_v63, %v8838_v11  ;;  %v8634_v52 = vadd.f32 %v8633_v30, %v17241_v29 }
 0x71e   : > { %8943 = vst [vmem:[%s17342_s12 + $0x38] sm:$0xff] %v8895_v41  ;;  %v8841_v1 = vadd.f32 %v8639_v57, %v17034_v39 }
 0x71f   : > { %8942 = vst [vmem:[%s17342_s12 + $0x30] sm:$0xff] %v8894_v7  ;;  %v8840_v34 = vadd.f32 %v8634_v52, %v17023_v13  ;;  %v10534_v24 = vpop.f32.mrb[90].mxu0 }
 0x720   : > { %v17385_v62 = vpop.f32.mrb[104].mxu1  ;;  %v8897_v32 = vadd.f32 %v17335_v63, %v8841_v1  ;;  %v8649_v14 = vadd.f32 %v10534_v24, %v17259_v20  ;;  %v8643_v42 = vpop.f32.mrb[91].mxu0 }
 0x721   : > { %v8430_v40 = vpop.f32.mrb[105].mxu1  ;;  %v8896_v26 = vadd.f32 %v17335_v63, %v8840_v34  ;;  %v8644_v29 = vadd.f32 %v8643_v42, %v17253_v36 }
 0x722   : > { %8945 = vst [vmem:[%s17342_s12 + $0x48] sm:$0xff] %v8897_v32  ;;  %v8843_v39 = vadd.f32 %v8649_v14, %v17056_v45  ;;  %v19384_v14 = vld [vmem:[#allocation17_spill] sm:$0xff] }
 0x723   : > { %8944 = vst [vmem:[%s17342_s12 + $0x40] sm:$0xff] %v8896_v26  ;;  %v8842_v13 = vadd.f32 %v8644_v29, %v17045_v43  ;;  %v10537_v47 = vpop.f32.mrb[92].mxu0 }
 0x724   : > { %v17395_v21 = vpop.f32.mrb[106].mxu1  ;;  %v8899_v51 = vadd.f32 %v17335_v63, %v8843_v39  ;;  %v8659_v20 = vadd.f32 %v10537_v47, %v17271_v22  ;;  %v8653_v53 = vpop.f32.mrb[93].mxu0 }
 0x725   : > { %v8435_v44 = vpop.f32.mrb[107].mxu1  ;;  %v8898_v55 = vadd.f32 %v17335_v63, %v8842_v13  ;;  %v8654_v36 = vadd.f32 %v8653_v53, %v17265_v19 }
 0x726   : > { %8947 = vst [vmem:[%s17342_s12 + $0x58] sm:$0xff] %v8899_v51  ;;  %v8845_v45 = vadd.f32 %v8659_v20, %v17079_v9  ;;  %v19385_v51 = vld [vmem:[#allocation108_spill] sm:$0xff] }
 0x727   : > { %8946 = vst [vmem:[%s17342_s12 + $0x50] sm:$0xff] %v8898_v55  ;;  %v8844_v43 = vadd.f32 %v8654_v36, %v17067_v56  ;;  %v10540_v50 = vpop.f32.mrb[94].mxu0  ;;  %v19382_v56 = vld [vmem:[#allocation18_spill] sm:$0xff]  ;;  %v19386_v44 = vld [vmem:[#allocation100_spill] sm:$0xff] }
 0x728   : > { %v17405_v23 = vpop.f32.mrb[108].mxu1  ;;  %v8901_v11 = vadd.f32 %v17335_v63, %v8845_v45  ;;  %v8669_v22 = vadd.f32 %v10540_v50, %v17283_v17  ;;  %v8663_v41 = vpop.f32.mrb[95].mxu0 }
 0x729   : > { %v8440_v25 = vpop.f32.mrb[109].mxu1  ;;  %v8900_v57 = vadd.f32 %v17335_v63, %v8844_v43  ;;  %v8664_v19 = vadd.f32 %v8663_v41, %v17277_v8  ;;  %v19388_v41 = vld [vmem:[#allocation36_spill] sm:$0xff] }
 0x72a   : > { %8949 = vst [vmem:[%s17342_s12 + $0x68] sm:$0xff] %v8901_v11  ;;  %v8847_v9 = vadd.f32 %v8669_v22, %v17103_v58  ;;  %v19383_v58 = vld [vmem:[#allocation67_spill] sm:$0xff]  ;;  %v19387_v22 = vld [vmem:[#allocation86_spill] sm:$0xff] }
 0x72b   : > { %8948 = vst [vmem:[%s17342_s12 + $0x60] sm:$0xff] %v8900_v57  ;;  %v8846_v59 = vadd.f32 %v8664_v19, %v19382_v56  ;;  %v10543_v7 = vpop.f32.mrb[96].mxu0 }
 0x72c   : > { %v17415_v30 = vpop.f32.mrb[110].mxu1  ;;  %v8903_v52 = vadd.f32 %v17335_v63, %v8847_v9  ;;  %v8679_v17 = vadd.f32 %v10543_v7, %v17295_v0  ;;  %v8673_v34 = vpop.f32.mrb[97].mxu0 }
 0x72d   : > { %v8445_v1 = vpop.f32.mrb[111].mxu1  ;;  %v8902_v24 = vadd.f32 %v17335_v63, %v8846_v59  ;;  %v8674_v8 = vadd.f32 %v8673_v34, %v17289_v38  ;;  %v19390_v34 = vld [vmem:[#allocation19_spill] sm:$0xff] }
 0x72e   : > { %8951 = vst [vmem:[%s17342_s12 + $0x78] sm:$0xff] %v8903_v52  ;;  %v8849_v32 = vadd.f32 %v8679_v17, %v19383_v58  ;;  %v19389_v17 = vld [vmem:[#allocation20_spill] sm:$0xff] }
 0x72f   : > { %8950 = vst [vmem:[%s17342_s12 + $0x70] sm:$0xff] %v8902_v24  ;;  %v8848_v40 = vadd.f32 %v8674_v8, %v19384_v14  ;;  %v10546_v26 = vpop.f32.mrb[98].mxu0 }
 0x730   : > { %v17425_v42 = vpop.f32.mrb[112].mxu1  ;;  %v8905_v29 = vadd.f32 %v17335_v63, %v8849_v32  ;;  %v8689_v0 = vadd.f32 %v10546_v26, %v17307_v16  ;;  %v8683_v13 = vpop.f32.mrb[99].mxu0 }
 0x731   : > { %v8450_v39 = vpop.f32.mrb[113].mxu1  ;;  %v8904_v47 = vadd.f32 %v17335_v63, %v8848_v40  ;;  %v8684_v38 = vadd.f32 %v8683_v13, %v17301_v28 }
 0x732   : > { %8953 = vst [vmem:[%s17342_s12 + $0x88] sm:$0xff] %v8905_v29  ;;  %v8851_v20 = vadd.f32 %v8689_v0, %v19385_v51  ;;  %v19391_v29 = vld [vmem:[#allocation14_spill] sm:$0xff]  ;;  %v19392_v39 = vld [vmem:[#allocation112_spill] sm:$0xff] }
 0x733   : > { %8952 = vst [vmem:[%s17342_s12 + $0x80] sm:$0xff] %v8904_v47  ;;  %v8850_v53 = vadd.f32 %v8684_v38, %v19386_v44  ;;  %v10549_v36 = vpop.f32.mrb[100].mxu0 }
 0x734   : > { %v17435_v55 = vpop.f32.mrb[114].mxu1  ;;  %v8907_v45 = vadd.f32 %v17335_v63, %v8851_v20  ;;  %v8699_v16 = vadd.f32 %v10549_v36, %v17319_v3  ;;  %v8693_v50 = vpop.f32.mrb[101].mxu0  ;;  %v19393_v36 = vld [vmem:[#allocation16_spill] sm:$0xff] }
 0x735   : > { %v8455_v43 = vpop.f32.mrb[115].mxu1  ;;  %v8906_v11 = vadd.f32 %v17335_v63, %v8850_v53  ;;  %v8694_v28 = vadd.f32 %v8693_v50, %v17313_v61 }
 0x736   : > { %8955 = vst [vmem:[%s17342_s12 + $0x98] sm:$0xff] %v8907_v45  ;;  %v8853_v25 = vadd.f32 %v8699_v16, %v19387_v22  ;;  %v19394_v16 = vld [vmem:[#allocation123_spill] sm:$0xff] }
 0x737   : > { %8954 = vst [vmem:[%s17342_s12 + $0x90] sm:$0xff] %v8906_v11  ;;  %v8852_v57 = vadd.f32 %v8694_v28, %v19388_v41  ;;  %v10552_v9 = vpop.f32.mrb[102].mxu0 }
 0x738   : > { %v17445_v19 = vpop.f32.mrb[116].mxu1  ;;  %v8909_v56 = vadd.f32 %v17335_v63, %v8853_v25  ;;  %v8709_v3 = vadd.f32 %v10552_v9, %v17331_v37  ;;  %v8703_v7 = vpop.f32.mrb[103].mxu0 }
 0x739   : > { %v8460_v59 = vpop.f32.mrb[117].mxu1  ;;  %v8908_v52 = vadd.f32 %v17335_v63, %v8852_v57  ;;  %v8704_v61 = vadd.f32 %v8703_v7, %v17325_v27  ;;  %v19395_v57 = vld [vmem:[#allocation96_spill] sm:$0xff] }
 0x73a   : > { %8957 = vst [vmem:[%s17342_s12 + $0xa8] sm:$0xff] %v8909_v56  ;;  %v8855_v1 = vadd.f32 %v8709_v3, %v19389_v17  ;;  %v19396_v56 = vld [vmem:[#allocation56_spill] sm:$0xff] }
 0x73b   : > { %8956 = vst [vmem:[%s17342_s12 + $0xa0] sm:$0xff] %v8908_v52  ;;  %v8854_v24 = vadd.f32 %v8704_v61, %v19390_v34  ;;  %v10555_v58 = vpop.f32.mrb[104].mxu0  ;;  %v19397_v34 = vld [vmem:[#allocation49_spill] sm:$0xff] }
 0x73c   : > { %v17455_v8 = vpop.f32.mrb[118].mxu1  ;;  %v8911_v32 = vadd.f32 %v17335_v63, %v8855_v1  ;;  %v8719_v37 = vadd.f32 %v10555_v58, %v17355_v5  ;;  %v8713_v40 = vpop.f32.mrb[105].mxu0  ;;  %v19398_v58 = vld [vmem:[#allocation13_spill] sm:$0xff] }
 0x73d   : > { %v8465_v14 = vpop.f32.mrb[119].mxu1  ;;  %v8910_v26 = vadd.f32 %v17335_v63, %v8854_v24  ;;  %v8714_v27 = vadd.f32 %v8713_v40, %v17345_v31 }
 0x73e   : > { %8959 = vst [vmem:[%s17342_s12 + $0xb8] sm:$0xff] %v8911_v32  ;;  %v8857_v0 = vadd.f32 %v8719_v37, %v19391_v29 }
 0x73f   : > { %8958 = vst [vmem:[%s17342_s12 + $0xb0] sm:$0xff] %v8910_v26  ;;  %v8856_v13 = vadd.f32 %v8714_v27, %v19392_v39  ;;  %v10558_v38 = vpop.f32.mrb[106].mxu0 }
 0x740   : > { %v17465_v47 = vpop.f32.mrb[120].mxu1  ;;  %v8913_v51 = vadd.f32 %v17335_v63, %v8857_v0  ;;  %v8729_v5 = vadd.f32 %v10558_v38, %v17375_v18  ;;  %v8723_v44 = vpop.f32.mrb[107].mxu0  ;;  %v19399_v0 = vld [vmem:[#allocation72_spill] sm:$0xff] }
 0x741   : > { %v8470_v20 = vpop.f32.mrb[121].mxu1  ;;  %v8912_v53 = vadd.f32 %v17335_v63, %v8856_v13  ;;  %v8724_v31 = vadd.f32 %v8723_v44, %v17365_v10  ;;  %v19400_v13 = vld [vmem:[#allocation90_spill] sm:$0xff] }
 0x742   : > { %8961 = vst [vmem:[%s17342_s12 + $0xc8] sm:$0xff] %v8913_v51  ;;  %v8859_v45 = vadd.f32 %v8729_v5, %v19393_v36 }
 0x743   : > { %8960 = vst [vmem:[%s17342_s12 + $0xc0] sm:$0xff] %v8912_v53  ;;  %v8858_v43 = vadd.f32 %v8724_v31, %v19394_v16  ;;  %v10561_v11 = vpop.f32.mrb[108].mxu0 }
 0x744   : > { %v8473_v50 = vpop.f32.mrb[122].mxu1  ;;  %v8915_v28 = vadd.f32 %v17335_v63, %v8859_v45  ;;  %v8739_v18 = vadd.f32 %v10561_v11, %v17395_v21  ;;  %v8733_v25 = vpop.f32.mrb[109].mxu0  ;;  %v19401_v45 = vld [vmem:[#allocation30_spill] sm:$0xff] }
 0x745   : > { %v8475_v22 = vpop.f32.mrb[123].mxu1  ;;  %v8914_v41 = vadd.f32 %v17335_v63, %v8858_v43  ;;  %v8734_v10 = vadd.f32 %v8733_v25, %v17385_v62 }
 0x746   : > { %8963 = vst [vmem:[%s17342_s12 + $0xd8] sm:$0xff] %v8915_v28  ;;  %v8861_v9 = vadd.f32 %v8739_v18, %v19395_v57 }
 0x747   : > { %8962 = vst [vmem:[%s17342_s12 + $0xd0] sm:$0xff] %v8914_v41  ;;  %v8860_v3 = vadd.f32 %v8734_v10, %v19396_v56  ;;  %v10564_v7 = vpop.f32.mrb[110].mxu0 }
 0x748   : > { %v8478_v59 = vpop.f32.mrb[124].mxu1  ;;  %v8917_v52 = vadd.f32 %v17335_v63, %v8861_v9  ;;  %v8749_v21 = vadd.f32 %v10564_v7, %v17415_v30  ;;  %v8743_v17 = vpop.f32.mrb[111].mxu0 }
 0x749   : > { %v8480_v61 = vpop.f32.mrb[125].mxu1  ;;  %v8916_v1 = vadd.f32 %v17335_v63, %v8860_v3  ;;  %v8744_v62 = vadd.f32 %v8743_v17, %v17405_v23 }
 0x74a   : > { %8965 = vst [vmem:[%s17342_s12 + $0xe8] sm:$0xff] %v8917_v52  ;;  %v8863_v24 = vadd.f32 %v8749_v21, %v19397_v34 }
 0x74b   : > { %8964 = vst [vmem:[%s17342_s12 + $0xe0] sm:$0xff] %v8916_v1  ;;  %v8862_v32 = vadd.f32 %v8744_v62, %v19398_v58  ;;  %v10567_v14 = vpop.f32.mrb[112].mxu0 }
 0x74c   : > { %v8483_v37 = vpop.f32.mrb[126].mxu1  ;;  %v8919_v40 = vadd.f32 %v17335_v63, %v8863_v24  ;;  %v8759_v30 = vadd.f32 %v10567_v14, %v17435_v55  ;;  %v8753_v27 = vpop.f32.mrb[113].mxu0 }
 0x74d   : > { %v8485_v26 = vpop.f32.mrb[127].mxu1  ;;  %v8918_v29 = vadd.f32 %v17335_v63, %v8862_v32  ;;  %v8754_v23 = vadd.f32 %v8753_v27, %v17425_v42 }
 0x74e   : > { %8967 = vst [vmem:[%s17342_s12 + $0xf8] sm:$0xff] %v8919_v40  ;;  %v8865_v39 = vadd.f32 %v8759_v30, %v19399_v0 }
 0x74f   : > { %8966 = vst [vmem:[%s17342_s12 + $0xf0] sm:$0xff] %v8918_v29  ;;  %v8864_v38 = vadd.f32 %v8754_v23, %v19400_v13  ;;  %v10570_v5 = vpop.f32.mrb[114].mxu0 }
 0x750   : > { %v8488_v51 = vpop.f32.mrb[128].mxu1  ;;  %v8921_v20 = vadd.f32 %v17335_v63, %v8865_v39  ;;  %v8769_v55 = vadd.f32 %v10570_v5, %v17455_v8  ;;  %v8763_v53 = vpop.f32.mrb[115].mxu0 }
 0x751   : > { %v8490_v44 = vpop.f32.mrb[129].mxu1  ;;  %v8920_v31 = vadd.f32 %v17335_v63, %v8864_v38  ;;  %v8764_v42 = vadd.f32 %v8763_v53, %v17445_v19 }
 0x752   : > { %8969 = vst [vmem:[%s17342_s12 + $0x108] sm:$0xff] %v8921_v20  ;;  %v8867_v36 = vadd.f32 %v8769_v55, %v17257_v35  ;;  %v19402_v35 = vld [vmem:[#allocation65_spill] sm:$0xff] }
 0x753   : > { %8968 = vst [vmem:[%s17342_s12 + $0x100] sm:$0xff] %v8920_v31  ;;  %v8866_v16 = vadd.f32 %v8764_v42, %v19401_v45  ;;  %v10573_v11 = vpop.f32.mrb[116].mxu0 }
 0x754   : > { %v8493_v43 = vpop.f32.mrb[130].mxu1  ;;  %v8923_v28 = vadd.f32 %v17335_v63, %v8867_v36  ;;  %v8779_v18 = vadd.f32 %v10573_v11, %v8473_v50  ;;  %v8773_v22 = vpop.f32.mrb[117].mxu0 }
 0x755   : > { %v8495_v8 = vpop.f32.mrb[131].mxu1  ;;  %v8922_v25 = vadd.f32 %v17335_v63, %v8866_v16  ;;  %v8774_v41 = vadd.f32 %v8773_v22, %v17465_v47 }
 0x756   : > { %8971 = vst [vmem:[%s17342_s12 + $0x118] sm:$0xff] %v8923_v28  ;;  %v8869_v19 = vadd.f32 %v8779_v18, %v17269_v4 }
 0x757   : > { %8970 = vst [vmem:[%s17342_s12 + $0x110] sm:$0xff] %v8922_v25  ;;  %v8868_v10 = vadd.f32 %v8774_v41, %v19402_v35  ;;  %v10576_v9 = vpop.f32.mrb[118].mxu0 }
 0x758   : > { %v8498_v57 = vpop.f32.mrb[132].mxu1  ;;  %v8925_v56 = vadd.f32 %v17335_v63, %v8869_v19  ;;  %v8789_v3 = vadd.f32 %v10576_v9, %v8483_v37  ;;  %v8783_v7 = vpop.f32.mrb[119].mxu0 }
 0x759   : > { %v8500_v50 = vpop.f32.mrb[133].mxu1  ;;  %v8924_v52 = vadd.f32 %v17335_v63, %v8868_v10  ;;  %v8784_v21 = vadd.f32 %v8783_v7, %v8478_v59 }
 0x75a   : > { %8973 = vst [vmem:[%s17342_s12 + $0x128] sm:$0xff] %v8925_v56  ;;  %v8871_v47 = vadd.f32 %v8789_v3, %v17281_v49 }
 0x75b   : > { %8972 = vst [vmem:[%s17342_s12 + $0x120] sm:$0xff] %v8924_v52  ;;  %v8870_v4 = vadd.f32 %v8784_v21, %v17275_v46  ;;  %v10579_v17 = vpop.f32.mrb[120].mxu0 }
 0x75c   : > { %v8503_v61 = vpop.f32.mrb[134].mxu1  ;;  %v8927_v1 = vadd.f32 %v17335_v63, %v8871_v47  ;;  %v8799_v62 = vadd.f32 %v10579_v17, %v8493_v43  ;;  %v8793_v24 = vpop.f32.mrb[121].mxu0 }
 0x75d   : > { %v8505_v34 = vpop.f32.mrb[135].mxu1  ;;  %v8926_v58 = vadd.f32 %v17335_v63, %v8870_v4  ;;  %v8794_v32 = vadd.f32 %v8793_v24, %v8488_v51 }
 0x75e   : > { %8975 = vst [vmem:[%s17342_s12 + $0x138] sm:$0xff] %v8927_v1  ;;  %v8873_v59 = vadd.f32 %v8799_v62, %v17293_v6 }
 0x75f   : > { %8974 = vst [vmem:[%s17342_s12 + $0x130] sm:$0xff] %v8926_v58  ;;  %v8872_v49 = vadd.f32 %v8794_v32, %v17287_v48  ;;  %v10582_v46 = vpop.f32.mrb[122].mxu0 }
 0x760   : > { %v8508_v37 = vpop.f32.mrb[136].mxu1  ;;  %v8929_v14 = vadd.f32 %v17335_v63, %v8873_v59  ;;  %v8809_v40 = vadd.f32 %v10582_v46, %v8503_v61  ;;  %v8803_v26 = vpop.f32.mrb[123].mxu0 }
 0x761   : > { %v8510_v30 = vpop.f32.mrb[137].mxu1  ;;  %v8928_v27 = vadd.f32 %v17335_v63, %v8872_v49  ;;  %v8804_v29 = vadd.f32 %v8803_v26, %v8498_v57 }
 0x762   : > { %8977 = vst [vmem:[%s17342_s12 + $0x148] sm:$0xff] %v8929_v14  ;;  %v8875_v23 = vadd.f32 %v8809_v40, %v17305_v12 }
 0x763   : > { %8976 = vst [vmem:[%s17342_s12 + $0x140] sm:$0xff] %v8928_v27  ;;  %v8874_v6 = vadd.f32 %v8804_v29, %v17299_v33  ;;  %v10585_v48 = vpop.f32.mrb[124].mxu0 }
 0x764   : > { %v8513_v0 = vpop.f32.mrb[138].mxu1  ;;  %v8931_v39 = vadd.f32 %v17335_v63, %v8875_v23  ;;  %v8813_v51 = vpop.f32.mrb[125].mxu0 }
 0x765   : > { %v8819_v13 = vadd.f32 %v10585_v48, %v8513_v0  ;;  %v8515_v38 = vpop.f32.mrb[139].mxu1  ;;  %v8930_v5 = vadd.f32 %v17335_v63, %v8874_v6  ;;  %v8814_v20 = vadd.f32 %v8813_v51, %v8508_v37 }
 0x766   : > { %8979 = vst [vmem:[%s17342_s12 + $0x158] sm:$0xff] %v8931_v39 }
 0x767   : > { %v8877_v55 = vadd.f32 %v8819_v13, %v17317_v15  ;;  %8978 = vst [vmem:[%s17342_s12 + $0x150] sm:$0xff] %v8930_v5  ;;  %v8876_v12 = vadd.f32 %v8814_v20, %v17311_v54  ;;  %v10588_v44 = vpop.f32.mrb[126].mxu0 }
 0x768   : > { %v8518_v33 = vpop.f32.mrb[140].mxu1  ;;  %v8823_v42 = vpop.f32.mrb[127].mxu0 }
 0x769   : > { %v8933_v53 = vadd.f32 %v17335_v63, %v8877_v55  ;;  %v8520_v31 = vpop.f32.mrb[141].mxu1  ;;  %v8932_v36 = vadd.f32 %v17335_v63, %v8876_v12  ;;  %v8824_v45 = vadd.f32 %v8823_v42, %v8518_v33 }
 0x76b   : > { %8981 = vst [vmem:[%s17342_s12 + $0x168] sm:$0xff] %v8933_v53  ;;  %8980 = vst [vmem:[%s17342_s12 + $0x160] sm:$0xff] %v8932_v36  ;;  %v8878_v16 = vadd.f32 %v8824_v45, %v17323_v2 }
 0x76c   : > { %v8523_v43 = vpop.f32.mrb[142].mxu1 }
 0x76d   : > { %v8829_v15 = vadd.f32 %v10588_v44, %v8523_v43  ;;  %v8525_v11 = vpop.f32.mrb[143].mxu1  ;;  %v8934_v54 = vadd.f32 %v17335_v63, %v8878_v16 }
 0x76f   : > { %v8879_v28 = vadd.f32 %v8829_v15, %v17329_v60  ;;  %8982 = vst [vmem:[%s17342_s12 + $0x170] sm:$0xff] %v8934_v54 }
 0x771   : > { %v8935_v18 = vadd.f32 %v17335_v63, %v8879_v28 }
 0x773   : > { %8983 = vst [vmem:[%s17342_s12 + $0x178] sm:$0xff] %v8935_v18 }
 0x774 PF: > { %s16_s15 = sadd.s32 1, %s11500_s15  }
 0x775   : > { %p13_p9 = scmp.ge.s32.totalorder %s16_s15, 4  }
 0x777   :  { %15 = sbr.rel (!%p13_p9) target bundleno = 2 (0x2), region = 85 }
 0x77e   :  { %9005 = vsyncpa [#allocation4], 1 }
 0x77f   :  { %9007 = vsyncpa [#allocation4 + $0x1], 1 }
 0x780   :  { %9008 = vsyncpa [#allocation6], 1 }

</bundles_post_ra>
